<compile_context>
chip_gen: v7x
topology: tpu7x:2x2x1
jax: 0.10.0
libtpu: 0.0.40
codegen_flags: <defaults>
</compile_context>

<pallas_src>
import functools

import jax
import jax.numpy as jnp
from jax.experimental import pallas as pl
from jax.experimental.pallas import tpu as pltpu


# ----------------------------------------------------------------------------
# Fused forward kernel: one grid step == B_TILE images
# ----------------------------------------------------------------------------
def _smallcnn_kernel(x_ref, w1_ref, b1_ref, w2_ref, b2_ref,
                     fc1w_ref, fc1b_ref, fc2w_ref, fc2b_ref,
                     out_ref,
                     xpad_ref, p2pad_ref, s1_ref, cm1_ref, s2_ref, cm2_ref,
                     *, bt, h, w, cin, c1, c2):
    f32 = jnp.float32
    h2, w2 = h // 2, w // 2
    h4, w4 = h // 4, w // 4

    # ---- in-kernel zero-pad for conv1: 4 border strips + interior copy ------
    xpad_ref[:, 0:1, :, :] = jnp.zeros((bt, 1, w + 2, cin), f32)
    xpad_ref[:, h + 1:h + 2, :, :] = jnp.zeros((bt, 1, w + 2, cin), f32)
    xpad_ref[:, :, 0:1, :] = jnp.zeros((bt, h + 2, 1, cin), f32)
    xpad_ref[:, :, w + 1:w + 2, :] = jnp.zeros((bt, h + 2, 1, cin), f32)
    xpad_ref[:, 1:1 + h, 1:1 + w, :] = x_ref[...]

    # ---- conv1 (3x3, pad=1) + ReLU: single im2col matmul, K = 9*cin ---------
    taps1 = [xpad_ref[:, kh:kh + h, kw:kw + w, :].reshape(bt * h * w, cin)
             for kh in range(3) for kw in range(3)]
    patches1 = jnp.concatenate(taps1, axis=-1)               # [bt*h*w, 9*cin]
    y1 = jnp.dot(patches1, w1_ref[...], preferred_element_type=f32)
    y1 = jnp.maximum(y1 + b1_ref[...], 0.0)                  # [bt*h*w, c1]
    s1_ref[...] = y1

    # ---- pool1 (2x2 / stride 2), vectorized ----------------------------------
    # column pairs: two whole-array stride-2 reads over the flat pixel rows
    ev1 = s1_ref[pl.ds(0, bt * h * w // 2, stride=2), :]
    od1 = s1_ref[pl.ds(1, bt * h * w // 2, stride=2), :]
    cm1_ref[...] = jnp.maximum(ev1, od1).reshape(bt * h2, w, c1)
    # row pairs: static half/half window reads (rows 2i vs 2i+1 per group)
    pooled1 = jnp.maximum(cm1_ref[:, 0:w2, :], cm1_ref[:, w2:w, :])

    # ---- conv2 input: zero border strips + pooled interior -------------------
    p2pad_ref[:, 0:1, :, :] = jnp.zeros((bt, 1, w2 + 2, c1), f32)
    p2pad_ref[:, h2 + 1:h2 + 2, :, :] = jnp.zeros((bt, 1, w2 + 2, c1), f32)
    p2pad_ref[:, :, 0:1, :] = jnp.zeros((bt, h2 + 2, 1, c1), f32)
    p2pad_ref[:, :, w2 + 1:w2 + 2, :] = jnp.zeros((bt, h2 + 2, 1, c1), f32)
    p2pad_ref[:, 1:1 + h2, 1:1 + w2, :] = pooled1.reshape(bt, h2, w2, c1)

    # ---- conv2 (3x3, pad=1) + ReLU: single im2col matmul, K = 9*c1 ----------
    taps2 = [p2pad_ref[:, kh:kh + h2, kw:kw + w2, :].reshape(bt * h2 * w2, c1)
             for kh in range(3) for kw in range(3)]
    patches2 = jnp.concatenate(taps2, axis=-1)               # [bt*h2*w2, 9*c1]
    y2 = jnp.dot(patches2, w2_ref[...], preferred_element_type=f32)
    y2 = jnp.maximum(y2 + b2_ref[...], 0.0)                  # [bt*h2*w2, c2]
    s2_ref[...] = y2

    # ---- pool2 (2x2 / stride 2), vectorized ----------------------------------
    ev2 = s2_ref[pl.ds(0, bt * h2 * w2 // 2, stride=2), :]
    od2 = s2_ref[pl.ds(1, bt * h2 * w2 // 2, stride=2), :]
    cm2_ref[...] = jnp.maximum(ev2, od2).reshape(bt * h4, w2, c2)
    pooled2 = jnp.maximum(cm2_ref[:, 0:w4, :], cm2_ref[:, w4:w2, :])
    p4 = pooled2.reshape(bt, h4, w4, c2)                     # [bt, h4, w4, c2]

    # ---- fc1 + ReLU: single matmul on a lane-dense flat activation ----------
    # (h, w, c) ordering matches the pre-permuted fc1 weight rows.
    flat = jnp.concatenate(
        [p4[:, i, j, :] for i in range(h4) for j in range(w4)], axis=-1)
    hid = jnp.dot(flat, fc1w_ref[...], preferred_element_type=f32)
    hid = jnp.maximum(hid + fc1b_ref[...], 0.0)              # [bt, hidden]

    # ---- fc2 ------------------------------------------------------------------
    out_ref[...] = jnp.dot(hid, fc2w_ref[...],
                           preferred_element_type=f32) + fc2b_ref[...]


# ----------------------------------------------------------------------------
# Wrapper
# ----------------------------------------------------------------------------
def small_cnn_forward(x, prepped, *, b_tile=None):
    """x: [N, C, H, W] float32 (NCHW, PyTorch layout). Returns [N, 10]."""
    n, cin, h, w = x.shape
    c1 = prepped["b1"].shape[1]
    c2 = prepped["b2"].shape[1]
    hidden = prepped["fc1_b"].shape[1]
    ncls = prepped["fc2_b"].shape[1]
    h2, w2, h4, w4 = h // 2, w // 2, h // 4, w // 4
    fc_dim = h4 * w4 * c2

    # Layout assumptions of the fused kernel (satisfied by the test shapes).
    assert h % 4 == 0 and w % 16 == 0, "kernel expects H % 4 == 0, W % 16 == 0"

    # Batch tile: amortizes per-grid-step overhead and grows the MXU M dim.
    # Default 8 keeps per-step VMEM well under v5e's 16 MiB scoped default;
    # raise (with vmem_limit_bytes) on v6e, keep modest on v7x (64 MiB VMEM).
    if b_tile is None:
        b_tile = min(n, 8)
    n_pad = -(-n // b_tile) * b_tile

    # One-time layout glue: NCHW -> NHWC (pad of the batch only if needed);
    # the spatial zero-padding happens inside the kernel.
    x_nhwc = jnp.transpose(x, (0, 2, 3, 1))
    if n_pad != n:
        x_nhwc = jnp.pad(x_nhwc, ((0, n_pad - n), (0, 0), (0, 0), (0, 0)))

    kernel = functools.partial(_smallcnn_kernel, bt=b_tile, h=h, w=w,
                               cin=cin, c1=c1, c2=c2)

    out = pl.pallas_call(
        kernel,
        out_shape=jax.ShapeDtypeStruct((n_pad, ncls), jnp.float32),
        grid=(n_pad // b_tile,),
        in_specs=[
            pl.BlockSpec((b_tile, h, w, cin), lambda b: (b, 0, 0, 0)),
            # Constant index maps: weights are DMA'd once and revisited, not
            # re-fetched every grid step.
            pl.BlockSpec((9 * cin, c1), lambda b: (0, 0)),
            pl.BlockSpec((1, c1), lambda b: (0, 0)),
            pl.BlockSpec((9 * c1, c2), lambda b: (0, 0)),
            pl.BlockSpec((1, c2), lambda b: (0, 0)),
            pl.BlockSpec((fc_dim, hidden), lambda b: (0, 0)),
            pl.BlockSpec((1, hidden), lambda b: (0, 0)),
            pl.BlockSpec((hidden, ncls), lambda b: (0, 0)),
            pl.BlockSpec((1, ncls), lambda b: (0, 0)),
        ],
        out_specs=pl.BlockSpec((b_tile, ncls), lambda b: (b, 0)),
        scratch_shapes=[
            pltpu.VMEM((b_tile, h + 2, w + 2, cin), jnp.float32),    # padded x
            pltpu.VMEM((b_tile, h2 + 2, w2 + 2, c1), jnp.float32),   # padded pool1
            pltpu.VMEM((b_tile * h * w, c1), jnp.float32),           # conv1+relu
            pltpu.VMEM((b_tile * h2, w, c1), jnp.float32),           # pool1 col-max
            pltpu.VMEM((b_tile * h2 * w2, c2), jnp.float32),         # conv2+relu
            pltpu.VMEM((b_tile * h4, w2, c2), jnp.float32),          # pool2 col-max
        ],
        compiler_params=pltpu.CompilerParams(
            dimension_semantics=("parallel",)),
    )(x_nhwc, prepped["w1"], prepped["b1"], prepped["w2"], prepped["b2"],
      prepped["fc1_w"], prepped["fc1_b"], prepped["fc2_w"], prepped["fc2_b"])
    return out[:n]


def prepare_params(params, height, width):
    """One-time weight re-layout (hoisted out of the jitted forward).

    conv weights: [C_out, C_in, 3, 3] -> [9*C_in, C_out], rows ordered
      (kh, kw, c_in) to match the kernel's tap-concatenation order.
    fc1: permute the input dimension from torch's NCHW-flatten (c, h, w)
      ordering to the kernel's NHWC (h, w, c) ordering, stored as [in, out].
    """
    h4, w4 = height // 4, width // 4
    c2 = params["conv2_w"].shape[0]
    hidden = params["fc1_w"].shape[0]

    def conv_w(wt):
        cout, cin = wt.shape[0], wt.shape[1]
        return wt.transpose(2, 3, 1, 0).reshape(9 * cin, cout)

    fc1p = (params["fc1_w"].reshape(hidden, c2, h4, w4)
            .transpose(2, 3, 1, 0).reshape(h4 * w4 * c2, hidden))
    return {
        "w1": conv_w(params["conv1_w"]),
        "b1": params["conv1_b"].reshape(1, -1),
        "w2": conv_w(params["conv2_w"]),
        "b2": params["conv2_b"].reshape(1, -1),
        "fc1_w": fc1p,
        "fc1_b": params["fc1_b"].reshape(1, -1),
        "fc2_w": params["fc2_w"].T,
        "fc2_b": params["fc2_b"].reshape(1, -1),
    }


def init_params(key, channels, height, width):
    fc_dim = 32 * (height // 4) * (width // 4)
    ks = jax.random.split(key, 8)
    s = 0.05
    return {
        "conv1_w": jax.random.normal(ks[0], (16, channels, 3, 3), jnp.float32) * s,
        "conv1_b": jax.random.normal(ks[1], (16,), jnp.float32) * s,
        "conv2_w": jax.random.normal(ks[2], (32, 16, 3, 3), jnp.float32) * s,
        "conv2_b": jax.random.normal(ks[3], (32,), jnp.float32) * s,
        "fc1_w": jax.random.normal(ks[4], (64, fc_dim), jnp.float32) * s,  # [out, in]
        "fc1_b": jax.random.normal(ks[5], (64,), jnp.float32) * s,
        "fc2_w": jax.random.normal(ks[6], (10, 64), jnp.float32) * s,
        "fc2_b": jax.random.normal(ks[7], (10,), jnp.float32) * s,
    }


def _reference_forward(x, params):
    """Plain-JAX reference matching the PyTorch module semantics."""
    dn = ("NCHW", "OIHW", "NCHW")
    y = jax.lax.conv_general_dilated(x, params["conv1_w"], (1, 1),
                                     ((1, 1), (1, 1)), dimension_numbers=dn)
    y = jax.nn.relu(y + params["conv1_b"][None, :, None, None])
    y = jax.lax.reduce_window(y, -jnp.inf, jax.lax.max,
                              (1, 1, 2, 2), (1, 1, 2, 2), "VALID")
    y = jax.lax.conv_general_dilated(y, params["conv2_w"], (1, 1),
                                     ((1, 1), (1, 1)), dimension_numbers=dn)
    y = jax.nn.relu(y + params["conv2_b"][None, :, None, None])
    y = jax.lax.reduce_window(y, -jnp.inf, jax.lax.max,
                              (1, 1, 2, 2), (1, 1, 2, 2), "VALID")
    flat = y.reshape(y.shape[0], -1)
    h1 = jax.nn.relu(flat @ params["fc1_w"].T + params["fc1_b"])
    return h1 @ params["fc2_w"].T + params["fc2_b"]


if __name__ == "__main__":
    # Small shapes consistent with the module: conv1 hardcodes 3 input
    # channels; spatial dims divisible by 4 (16 here) for the two pools.
    N, C, H, W = 2, 3, 16, 16
    key = jax.random.PRNGKey(0)
    kp, kx = jax.random.split(key)
    params = init_params(kp, C, H, W)
    x = jax.random.normal(kx, (N, C, H, W), jnp.float32)

    prepped = prepare_params(params, H, W)
    out = jax.jit(small_cnn_forward)(x, prepped)
    out = jax.block_until_ready(out)

    assert out.shape == (N, 10), out.shape
    assert out.dtype == jnp.float32

    ref = _reference_forward(x, params)
    assert jnp.allclose(out, ref, atol=5e-3, rtol=5e-3), (
        float(jnp.max(jnp.abs(out - ref))))
    print("KERNEL_OK")
</pallas_src>

<mosaic_0001>
module attributes {stable_mosaic.version = 11 : i64} {
  func.func @_smallcnn_kernel(%arg0: i32, %arg1: memref<2x16x16x3xf32, #tpu.memory_space<vmem>>, %arg2: memref<27x16xf32, #tpu.memory_space<vmem>>, %arg3: memref<1x16xf32, #tpu.memory_space<vmem>>, %arg4: memref<144x32xf32, #tpu.memory_space<vmem>>, %arg5: memref<1x32xf32, #tpu.memory_space<vmem>>, %arg6: memref<512x64xf32, #tpu.memory_space<vmem>>, %arg7: memref<1x64xf32, #tpu.memory_space<vmem>>, %arg8: memref<64x10xf32, #tpu.memory_space<vmem>>, %arg9: memref<1x10xf32, #tpu.memory_space<vmem>>, %arg10: memref<2x10xf32, #tpu.memory_space<vmem>>, %arg11: memref<2x18x18x3xf32, #tpu.memory_space<vmem>>, %arg12: memref<2x10x10x16xf32, #tpu.memory_space<vmem>>, %arg13: memref<512x16xf32, #tpu.memory_space<vmem>>, %arg14: memref<16x16x16xf32, #tpu.memory_space<vmem>>, %arg15: memref<128x32xf32, #tpu.memory_space<vmem>>, %arg16: memref<8x8x32xf32, #tpu.memory_space<vmem>>) attributes {dimension_semantics = [#tpu.dimension_semantics<parallel>], iteration_bounds = array<i64: 1>, scalar_prefetch = 0 : i64, scratch_operands = 6 : i64, tpu.core_type = #tpu.core_type<tc>, window_params = [{transform_indices = @transform_0, window_bounds = array<i64: 2, 16, 16, 3>}, {pipeline_mode = #tpu.pipeline_mode<synchronous>, transform_indices = @transform_1, window_bounds = array<i64: 27, 16>}, {pipeline_mode = #tpu.pipeline_mode<synchronous>, transform_indices = @transform_2, window_bounds = array<i64: 1, 16>}, {pipeline_mode = #tpu.pipeline_mode<synchronous>, transform_indices = @transform_3, window_bounds = array<i64: 144, 32>}, {pipeline_mode = #tpu.pipeline_mode<synchronous>, transform_indices = @transform_4, window_bounds = array<i64: 1, 32>}, {pipeline_mode = #tpu.pipeline_mode<synchronous>, transform_indices = @transform_5, window_bounds = array<i64: 512, 64>}, {pipeline_mode = #tpu.pipeline_mode<synchronous>, transform_indices = @transform_6, window_bounds = array<i64: 1, 64>}, {pipeline_mode = #tpu.pipeline_mode<synchronous>, transform_indices = @transform_7, window_bounds = array<i64: 64, 10>}, {pipeline_mode = #tpu.pipeline_mode<synchronous>, transform_indices = @transform_8, window_bounds = array<i64: 1, 10>}, {transform_indices = @transform_9, window_bounds = array<i64: 2, 10>}]} {
    %cst = arith.constant 0.000000e+00 : f32
    %0 = vector.broadcast %cst : f32 to vector<2x1x18x3xf32>
    %c0 = arith.constant 0 : index
    %c0_0 = arith.constant 0 : index
    %c0_1 = arith.constant 0 : index
    %c0_2 = arith.constant 0 : index
    %1 = vector.load %arg11[%c0, %c0_0, %c0_1, %c0_2] : memref<2x18x18x3xf32, #tpu.memory_space<vmem>>, vector<2x1x18x3xf32>
    tpu.vector_store %arg11[%c0, %c0_0, %c0_1, %c0_2], %0 {strides = array<i32>} : memref<2x18x18x3xf32, #tpu.memory_space<vmem>>, vector<2x1x18x3xf32>,
    %cst_3 = arith.constant 0.000000e+00 : f32
    %2 = vector.broadcast %cst_3 : f32 to vector<2x1x18x3xf32>
    %c0_4 = arith.constant 0 : index
    %c17 = arith.constant 17 : index
    %c0_5 = arith.constant 0 : index
    %c0_6 = arith.constant 0 : index
    %3 = vector.load %arg11[%c0_4, %c17, %c0_5, %c0_6] : memref<2x18x18x3xf32, #tpu.memory_space<vmem>>, vector<2x1x18x3xf32>
    tpu.vector_store %arg11[%c0_4, %c17, %c0_5, %c0_6], %2 {strides = array<i32>} : memref<2x18x18x3xf32, #tpu.memory_space<vmem>>, vector<2x1x18x3xf32>,
    %cst_7 = arith.constant 0.000000e+00 : f32
    %4 = vector.broadcast %cst_7 : f32 to vector<2x18x1x3xf32>
    %c0_8 = arith.constant 0 : index
    %c0_9 = arith.constant 0 : index
    %c0_10 = arith.constant 0 : index
    %c0_11 = arith.constant 0 : index
    %5 = vector.load %arg11[%c0_8, %c0_9, %c0_10, %c0_11] : memref<2x18x18x3xf32, #tpu.memory_space<vmem>>, vector<2x18x1x3xf32>
    tpu.vector_store %arg11[%c0_8, %c0_9, %c0_10, %c0_11], %4 {strides = array<i32>} : memref<2x18x18x3xf32, #tpu.memory_space<vmem>>, vector<2x18x1x3xf32>,
    %cst_12 = arith.constant 0.000000e+00 : f32
    %6 = vector.broadcast %cst_12 : f32 to vector<2x18x1x3xf32>
    %c0_13 = arith.constant 0 : index
    %c0_14 = arith.constant 0 : index
    %c17_15 = arith.constant 17 : index
    %c0_16 = arith.constant 0 : index
    %7 = vector.load %arg11[%c0_13, %c0_14, %c17_15, %c0_16] : memref<2x18x18x3xf32, #tpu.memory_space<vmem>>, vector<2x18x1x3xf32>
    tpu.vector_store %arg11[%c0_13, %c0_14, %c17_15, %c0_16], %6 {strides = array<i32>} : memref<2x18x18x3xf32, #tpu.memory_space<vmem>>, vector<2x18x1x3xf32>,
    %c0_17 = arith.constant 0 : index
    %c0_18 = arith.constant 0 : index
    %c0_19 = arith.constant 0 : index
    %c0_20 = arith.constant 0 : index
    %8 = vector.load %arg1[%c0_17, %c0_18, %c0_19, %c0_20] : memref<2x16x16x3xf32, #tpu.memory_space<vmem>>, vector<2x16x16x3xf32>
    %c0_21 = arith.constant 0 : index
    %c1 = arith.constant 1 : index
    %c1_22 = arith.constant 1 : index
    %c0_23 = arith.constant 0 : index
    %9 = vector.load %arg11[%c0_21, %c1, %c1_22, %c0_23] : memref<2x18x18x3xf32, #tpu.memory_space<vmem>>, vector<2x16x16x3xf32>
    tpu.vector_store %arg11[%c0_21, %c1, %c1_22, %c0_23], %8 {strides = array<i32>} : memref<2x18x18x3xf32, #tpu.memory_space<vmem>>, vector<2x16x16x3xf32>,
    %c0_24 = arith.constant 0 : index
    %c0_25 = arith.constant 0 : index
    %c0_26 = arith.constant 0 : index
    %c0_27 = arith.constant 0 : index
    %10 = vector.load %arg11[%c0_24, %c0_25, %c0_26, %c0_27] : memref<2x18x18x3xf32, #tpu.memory_space<vmem>>, vector<2x16x16x3xf32>
    %11 = vector.shape_cast %10 : vector<2x16x16x3xf32> to vector<512x3xf32>
    %c0_28 = arith.constant 0 : index
    %c0_29 = arith.constant 0 : index
    %c1_30 = arith.constant 1 : index
    %c0_31 = arith.constant 0 : index
    %12 = vector.load %arg11[%c0_28, %c0_29, %c1_30, %c0_31] : memref<2x18x18x3xf32, #tpu.memory_space<vmem>>, vector<2x16x16x3xf32>
    %13 = vector.shape_cast %12 : vector<2x16x16x3xf32> to vector<512x3xf32>
    %c0_32 = arith.constant 0 : index
    %c0_33 = arith.constant 0 : index
    %c2 = arith.constant 2 : index
    %c0_34 = arith.constant 0 : index
    %14 = vector.load %arg11[%c0_32, %c0_33, %c2, %c0_34] : memref<2x18x18x3xf32, #tpu.memory_space<vmem>>, vector<2x16x16x3xf32>
    %15 = vector.shape_cast %14 : vector<2x16x16x3xf32> to vector<512x3xf32>
    %c0_35 = arith.constant 0 : index
    %c1_36 = arith.constant 1 : index
    %c0_37 = arith.constant 0 : index
    %c0_38 = arith.constant 0 : index
    %16 = vector.load %arg11[%c0_35, %c1_36, %c0_37, %c0_38] : memref<2x18x18x3xf32, #tpu.memory_space<vmem>>, vector<2x16x16x3xf32>
    %17 = vector.shape_cast %16 : vector<2x16x16x3xf32> to vector<512x3xf32>
    %c0_39 = arith.constant 0 : index
    %c1_40 = arith.constant 1 : index
    %c1_41 = arith.constant 1 : index
    %c0_42 = arith.constant 0 : index
    %18 = vector.load %arg11[%c0_39, %c1_40, %c1_41, %c0_42] : memref<2x18x18x3xf32, #tpu.memory_space<vmem>>, vector<2x16x16x3xf32>
    %19 = vector.shape_cast %18 : vector<2x16x16x3xf32> to vector<512x3xf32>
    %c0_43 = arith.constant 0 : index
    %c1_44 = arith.constant 1 : index
    %c2_45 = arith.constant 2 : index
    %c0_46 = arith.constant 0 : index
    %20 = vector.load %arg11[%c0_43, %c1_44, %c2_45, %c0_46] : memref<2x18x18x3xf32, #tpu.memory_space<vmem>>, vector<2x16x16x3xf32>
    %21 = vector.shape_cast %20 : vector<2x16x16x3xf32> to vector<512x3xf32>
    %c0_47 = arith.constant 0 : index
    %c2_48 = arith.constant 2 : index
    %c0_49 = arith.constant 0 : index
    %c0_50 = arith.constant 0 : index
    %22 = vector.load %arg11[%c0_47, %c2_48, %c0_49, %c0_50] : memref<2x18x18x3xf32, #tpu.memory_space<vmem>>, vector<2x16x16x3xf32>
    %23 = vector.shape_cast %22 : vector<2x16x16x3xf32> to vector<512x3xf32>
    %c0_51 = arith.constant 0 : index
    %c2_52 = arith.constant 2 : index
    %c1_53 = arith.constant 1 : index
    %c0_54 = arith.constant 0 : index
    %24 = vector.load %arg11[%c0_51, %c2_52, %c1_53, %c0_54] : memref<2x18x18x3xf32, #tpu.memory_space<vmem>>, vector<2x16x16x3xf32>
    %25 = vector.shape_cast %24 : vector<2x16x16x3xf32> to vector<512x3xf32>
    %c0_55 = arith.constant 0 : index
    %c2_56 = arith.constant 2 : index
    %c2_57 = arith.constant 2 : index
    %c0_58 = arith.constant 0 : index
    %26 = vector.load %arg11[%c0_55, %c2_56, %c2_57, %c0_58] : memref<2x18x18x3xf32, #tpu.memory_space<vmem>>, vector<2x16x16x3xf32>
    %27 = vector.shape_cast %26 : vector<2x16x16x3xf32> to vector<512x3xf32>
    %28 = tpu.concatenate %11, %13, %15, %17, %19, %21, %23, %25, %27 in 1 : vector<512x3xf32>, vector<512x3xf32>, vector<512x3xf32>, vector<512x3xf32>, vector<512x3xf32>, vector<512x3xf32>, vector<512x3xf32>, vector<512x3xf32>, vector<512x3xf32> -> vector<512x27xf32>
    %c0_59 = arith.constant 0 : index
    %c0_60 = arith.constant 0 : index
    %29 = vector.load %arg2[%c0_59, %c0_60] : memref<27x16xf32, #tpu.memory_space<vmem>>, vector<27x16xf32>
    %cst_61 = arith.constant dense<0.000000e+00> : vector<512x16xf32>
    %30 = tpu.matmul %28, %29, %cst_61 {dimension_numbers = #tpu.dot_dimension_numbers<[1], [0], [0], [1], [0, 0, 1, 1], [], []>} : vector<512x27xf32>, vector<27x16xf32>, vector<512x16xf32> -> vector<512x16xf32>
    %c0_62 = arith.constant 0 : index
    %c0_63 = arith.constant 0 : index
    %31 = vector.load %arg3[%c0_62, %c0_63] : memref<1x16xf32, #tpu.memory_space<vmem>>, vector<1x16xf32>
    %32 = vector.broadcast %31 : vector<1x16xf32> to vector<512x16xf32>
    %33 = arith.addf %30, %32 : vector<512x16xf32>
    %cst_64 = arith.constant 0.000000e+00 : f32
    %34 = vector.broadcast %cst_64 : f32 to vector<512x16xf32>
    %35 = arith.maximumf %33, %34 : vector<512x16xf32>
    %c0_65 = arith.constant 0 : index
    %c0_66 = arith.constant 0 : index
    %36 = vector.load %arg13[%c0_65, %c0_66] : memref<512x16xf32, #tpu.memory_space<vmem>>, vector<512x16xf32>
    tpu.vector_store %arg13[%c0_65, %c0_66], %35 {strides = array<i32>} : memref<512x16xf32, #tpu.memory_space<vmem>>, vector<512x16xf32>,
    %c0_67 = arith.constant 0 : index
    %c0_68 = arith.constant 0 : index
    %37 = tpu.strided_load %arg13[%c0_67, %c0_68] {strides = array<i32: 2, 1>} : memref<512x16xf32, #tpu.memory_space<vmem>>, vector<256x16xf32>
    %c1_69 = arith.constant 1 : index
    %c0_70 = arith.constant 0 : index
    %38 = tpu.strided_load %arg13[%c1_69, %c0_70] {strides = array<i32: 2, 1>} : memref<512x16xf32, #tpu.memory_space<vmem>>, vector<256x16xf32>
    %39 = arith.maximumf %37, %38 : vector<256x16xf32>
    %40 = vector.shape_cast %39 : vector<256x16xf32> to vector<16x16x16xf32>
    %c0_71 = arith.constant 0 : index
    %c0_72 = arith.constant 0 : index
    %c0_73 = arith.constant 0 : index
    %41 = vector.load %arg14[%c0_71, %c0_72, %c0_73] : memref<16x16x16xf32, #tpu.memory_space<vmem>>, vector<16x16x16xf32>
    tpu.vector_store %arg14[%c0_71, %c0_72, %c0_73], %40 {strides = array<i32>} : memref<16x16x16xf32, #tpu.memory_space<vmem>>, vector<16x16x16xf32>,
    %c0_74 = arith.constant 0 : index
    %c0_75 = arith.constant 0 : index
    %c0_76 = arith.constant 0 : index
    %42 = vector.load %arg14[%c0_74, %c0_75, %c0_76] : memref<16x16x16xf32, #tpu.memory_space<vmem>>, vector<16x8x16xf32>
    %c0_77 = arith.constant 0 : index
    %c8 = arith.constant 8 : index
    %c0_78 = arith.constant 0 : index
    %43 = vector.load %arg14[%c0_77, %c8, %c0_78] : memref<16x16x16xf32, #tpu.memory_space<vmem>>, vector<16x8x16xf32>
    %44 = arith.maximumf %42, %43 : vector<16x8x16xf32>
    %cst_79 = arith.constant 0.000000e+00 : f32
    %45 = vector.broadcast %cst_79 : f32 to vector<2x1x10x16xf32>
    %c0_80 = arith.constant 0 : index
    %c0_81 = arith.constant 0 : index
    %c0_82 = arith.constant 0 : index
    %c0_83 = arith.constant 0 : index
    %46 = vector.load %arg12[%c0_80, %c0_81, %c0_82, %c0_83] : memref<2x10x10x16xf32, #tpu.memory_space<vmem>>, vector<2x1x10x16xf32>
    tpu.vector_store %arg12[%c0_80, %c0_81, %c0_82, %c0_83], %45 {strides = array<i32>} : memref<2x10x10x16xf32, #tpu.memory_space<vmem>>, vector<2x1x10x16xf32>,
    %cst_84 = arith.constant 0.000000e+00 : f32
    %47 = vector.broadcast %cst_84 : f32 to vector<2x1x10x16xf32>
    %c0_85 = arith.constant 0 : index
    %c9 = arith.constant 9 : index
    %c0_86 = arith.constant 0 : index
    %c0_87 = arith.constant 0 : index
    %48 = vector.load %arg12[%c0_85, %c9, %c0_86, %c0_87] : memref<2x10x10x16xf32, #tpu.memory_space<vmem>>, vector<2x1x10x16xf32>
    tpu.vector_store %arg12[%c0_85, %c9, %c0_86, %c0_87], %47 {strides = array<i32>} : memref<2x10x10x16xf32, #tpu.memory_space<vmem>>, vector<2x1x10x16xf32>,
    %cst_88 = arith.constant 0.000000e+00 : f32
    %49 = vector.broadcast %cst_88 : f32 to vector<2x10x1x16xf32>
    %c0_89 = arith.constant 0 : index
    %c0_90 = arith.constant 0 : index
    %c0_91 = arith.constant 0 : index
    %c0_92 = arith.constant 0 : index
    %50 = vector.load %arg12[%c0_89, %c0_90, %c0_91, %c0_92] : memref<2x10x10x16xf32, #tpu.memory_space<vmem>>, vector<2x10x1x16xf32>
    tpu.vector_store %arg12[%c0_89, %c0_90, %c0_91, %c0_92], %49 {strides = array<i32>} : memref<2x10x10x16xf32, #tpu.memory_space<vmem>>, vector<2x10x1x16xf32>,
    %cst_93 = arith.constant 0.000000e+00 : f32
    %51 = vector.broadcast %cst_93 : f32 to vector<2x10x1x16xf32>
    %c0_94 = arith.constant 0 : index
    %c0_95 = arith.constant 0 : index
    %c9_96 = arith.constant 9 : index
    %c0_97 = arith.constant 0 : index
    %52 = vector.load %arg12[%c0_94, %c0_95, %c9_96, %c0_97] : memref<2x10x10x16xf32, #tpu.memory_space<vmem>>, vector<2x10x1x16xf32>
    tpu.vector_store %arg12[%c0_94, %c0_95, %c9_96, %c0_97], %51 {strides = array<i32>} : memref<2x10x10x16xf32, #tpu.memory_space<vmem>>, vector<2x10x1x16xf32>,
    %53 = vector.shape_cast %44 : vector<16x8x16xf32> to vector<2x8x8x16xf32>
    %c0_98 = arith.constant 0 : index
    %c1_99 = arith.constant 1 : index
    %c1_100 = arith.constant 1 : index
    %c0_101 = arith.constant 0 : index
    %54 = vector.load %arg12[%c0_98, %c1_99, %c1_100, %c0_101] : memref<2x10x10x16xf32, #tpu.memory_space<vmem>>, vector<2x8x8x16xf32>
    tpu.vector_store %arg12[%c0_98, %c1_99, %c1_100, %c0_101], %53 {strides = array<i32>} : memref<2x10x10x16xf32, #tpu.memory_space<vmem>>, vector<2x8x8x16xf32>,
    %c0_102 = arith.constant 0 : index
    %c0_103 = arith.constant 0 : index
    %c0_104 = arith.constant 0 : index
    %c0_105 = arith.constant 0 : index
    %55 = vector.load %arg12[%c0_102, %c0_103, %c0_104, %c0_105] : memref<2x10x10x16xf32, #tpu.memory_space<vmem>>, vector<2x8x8x16xf32>
    %56 = vector.shape_cast %55 : vector<2x8x8x16xf32> to vector<128x16xf32>
    %c0_106 = arith.constant 0 : index
    %c0_107 = arith.constant 0 : index
    %c1_108 = arith.constant 1 : index
    %c0_109 = arith.constant 0 : index
    %57 = vector.load %arg12[%c0_106, %c0_107, %c1_108, %c0_109] : memref<2x10x10x16xf32, #tpu.memory_space<vmem>>, vector<2x8x8x16xf32>
    %58 = vector.shape_cast %57 : vector<2x8x8x16xf32> to vector<128x16xf32>
    %c0_110 = arith.constant 0 : index
    %c0_111 = arith.constant 0 : index
    %c2_112 = arith.constant 2 : index
    %c0_113 = arith.constant 0 : index
    %59 = vector.load %arg12[%c0_110, %c0_111, %c2_112, %c0_113] : memref<2x10x10x16xf32, #tpu.memory_space<vmem>>, vector<2x8x8x16xf32>
    %60 = vector.shape_cast %59 : vector<2x8x8x16xf32> to vector<128x16xf32>
    %c0_114 = arith.constant 0 : index
    %c1_115 = arith.constant 1 : index
    %c0_116 = arith.constant 0 : index
    %c0_117 = arith.constant 0 : index
    %61 = vector.load %arg12[%c0_114, %c1_115, %c0_116, %c0_117] : memref<2x10x10x16xf32, #tpu.memory_space<vmem>>, vector<2x8x8x16xf32>
    %62 = vector.shape_cast %61 : vector<2x8x8x16xf32> to vector<128x16xf32>
    %c0_118 = arith.constant 0 : index
    %c1_119 = arith.constant 1 : index
    %c1_120 = arith.constant 1 : index
    %c0_121 = arith.constant 0 : index
    %63 = vector.load %arg12[%c0_118, %c1_119, %c1_120, %c0_121] : memref<2x10x10x16xf32, #tpu.memory_space<vmem>>, vector<2x8x8x16xf32>
    %64 = vector.shape_cast %63 : vector<2x8x8x16xf32> to vector<128x16xf32>
    %c0_122 = arith.constant 0 : index
    %c1_123 = arith.constant 1 : index
    %c2_124 = arith.constant 2 : index
    %c0_125 = arith.constant 0 : index
    %65 = vector.load %arg12[%c0_122, %c1_123, %c2_124, %c0_125] : memref<2x10x10x16xf32, #tpu.memory_space<vmem>>, vector<2x8x8x16xf32>
    %66 = vector.shape_cast %65 : vector<2x8x8x16xf32> to vector<128x16xf32>
    %c0_126 = arith.constant 0 : index
    %c2_127 = arith.constant 2 : index
    %c0_128 = arith.constant 0 : index
    %c0_129 = arith.constant 0 : index
    %67 = vector.load %arg12[%c0_126, %c2_127, %c0_128, %c0_129] : memref<2x10x10x16xf32, #tpu.memory_space<vmem>>, vector<2x8x8x16xf32>
    %68 = vector.shape_cast %67 : vector<2x8x8x16xf32> to vector<128x16xf32>
    %c0_130 = arith.constant 0 : index
    %c2_131 = arith.constant 2 : index
    %c1_132 = arith.constant 1 : index
    %c0_133 = arith.constant 0 : index
    %69 = vector.load %arg12[%c0_130, %c2_131, %c1_132, %c0_133] : memref<2x10x10x16xf32, #tpu.memory_space<vmem>>, vector<2x8x8x16xf32>
    %70 = vector.shape_cast %69 : vector<2x8x8x16xf32> to vector<128x16xf32>
    %c0_134 = arith.constant 0 : index
    %c2_135 = arith.constant 2 : index
    %c2_136 = arith.constant 2 : index
    %c0_137 = arith.constant 0 : index
    %71 = vector.load %arg12[%c0_134, %c2_135, %c2_136, %c0_137] : memref<2x10x10x16xf32, #tpu.memory_space<vmem>>, vector<2x8x8x16xf32>
    %72 = vector.shape_cast %71 : vector<2x8x8x16xf32> to vector<128x16xf32>
    %73 = tpu.concatenate %56, %58, %60, %62, %64, %66, %68, %70, %72 in 1 : vector<128x16xf32>, vector<128x16xf32>, vector<128x16xf32>, vector<128x16xf32>, vector<128x16xf32>, vector<128x16xf32>, vector<128x16xf32>, vector<128x16xf32>, vector<128x16xf32> -> vector<128x144xf32>
    %c0_138 = arith.constant 0 : index
    %c0_139 = arith.constant 0 : index
    %74 = vector.load %arg4[%c0_138, %c0_139] : memref<144x32xf32, #tpu.memory_space<vmem>>, vector<144x32xf32>
    %cst_140 = arith.constant dense<0.000000e+00> : vector<128x32xf32>
    %75 = tpu.matmul %73, %74, %cst_140 {dimension_numbers = #tpu.dot_dimension_numbers<[1], [0], [0], [1], [0, 0, 1, 1], [], []>} : vector<128x144xf32>, vector<144x32xf32>, vector<128x32xf32> -> vector<128x32xf32>
    %c0_141 = arith.constant 0 : index
    %c0_142 = arith.constant 0 : index
    %76 = vector.load %arg5[%c0_141, %c0_142] : memref<1x32xf32, #tpu.memory_space<vmem>>, vector<1x32xf32>
    %77 = vector.broadcast %76 : vector<1x32xf32> to vector<128x32xf32>
    %78 = arith.addf %75, %77 : vector<128x32xf32>
    %cst_143 = arith.constant 0.000000e+00 : f32
    %79 = vector.broadcast %cst_143 : f32 to vector<128x32xf32>
    %80 = arith.maximumf %78, %79 : vector<128x32xf32>
    %c0_144 = arith.constant 0 : index
    %c0_145 = arith.constant 0 : index
    %81 = vector.load %arg15[%c0_144, %c0_145] : memref<128x32xf32, #tpu.memory_space<vmem>>, vector<128x32xf32>
    tpu.vector_store %arg15[%c0_144, %c0_145], %80 {strides = array<i32>} : memref<128x32xf32, #tpu.memory_space<vmem>>, vector<128x32xf32>,
    %c0_146 = arith.constant 0 : index
    %c0_147 = arith.constant 0 : index
    %82 = tpu.strided_load %arg15[%c0_146, %c0_147] {strides = array<i32: 2, 1>} : memref<128x32xf32, #tpu.memory_space<vmem>>, vector<64x32xf32>
    %c1_148 = arith.constant 1 : index
    %c0_149 = arith.constant 0 : index
    %83 = tpu.strided_load %arg15[%c1_148, %c0_149] {strides = array<i32: 2, 1>} : memref<128x32xf32, #tpu.memory_space<vmem>>, vector<64x32xf32>
    %84 = arith.maximumf %82, %83 : vector<64x32xf32>
    %85 = vector.shape_cast %84 : vector<64x32xf32> to vector<8x8x32xf32>
    %c0_150 = arith.constant 0 : index
    %c0_151 = arith.constant 0 : index
    %c0_152 = arith.constant 0 : index
    %86 = vector.load %arg16[%c0_150, %c0_151, %c0_152] : memref<8x8x32xf32, #tpu.memory_space<vmem>>, vector<8x8x32xf32>
    tpu.vector_store %arg16[%c0_150, %c0_151, %c0_152], %85 {strides = array<i32>} : memref<8x8x32xf32, #tpu.memory_space<vmem>>, vector<8x8x32xf32>,
    %c0_153 = arith.constant 0 : index
    %c0_154 = arith.constant 0 : index
    %c0_155 = arith.constant 0 : index
    %87 = vector.load %arg16[%c0_153, %c0_154, %c0_155] : memref<8x8x32xf32, #tpu.memory_space<vmem>>, vector<8x4x32xf32>
    %c0_156 = arith.constant 0 : index
    %c4 = arith.constant 4 : index
    %c0_157 = arith.constant 0 : index
    %88 = vector.load %arg16[%c0_156, %c4, %c0_157] : memref<8x8x32xf32, #tpu.memory_space<vmem>>, vector<8x4x32xf32>
    %89 = arith.maximumf %87, %88 : vector<8x4x32xf32>
    %90 = vector.shape_cast %89 : vector<8x4x32xf32> to vector<2x4x4x32xf32>
    %91 = vector.extract_strided_slice %90 {offsets = [0, 0, 0, 0], sizes = [2, 1, 1, 32], strides = [1, 1, 1, 1]} : vector<2x4x4x32xf32> to vector<2x1x1x32xf32>
    %92 = vector.shape_cast %91 : vector<2x1x1x32xf32> to vector<2x32xf32>
    %93 = vector.extract_strided_slice %90 {offsets = [0, 0, 1, 0], sizes = [2, 1, 1, 32], strides = [1, 1, 1, 1]} : vector<2x4x4x32xf32> to vector<2x1x1x32xf32>
    %94 = vector.shape_cast %93 : vector<2x1x1x32xf32> to vector<2x32xf32>
    %95 = vector.extract_strided_slice %90 {offsets = [0, 0, 2, 0], sizes = [2, 1, 1, 32], strides = [1, 1, 1, 1]} : vector<2x4x4x32xf32> to vector<2x1x1x32xf32>
    %96 = vector.shape_cast %95 : vector<2x1x1x32xf32> to vector<2x32xf32>
    %97 = vector.extract_strided_slice %90 {offsets = [0, 0, 3, 0], sizes = [2, 1, 1, 32], strides = [1, 1, 1, 1]} : vector<2x4x4x32xf32> to vector<2x1x1x32xf32>
    %98 = vector.shape_cast %97 : vector<2x1x1x32xf32> to vector<2x32xf32>
    %99 = vector.extract_strided_slice %90 {offsets = [0, 1, 0, 0], sizes = [2, 1, 1, 32], strides = [1, 1, 1, 1]} : vector<2x4x4x32xf32> to vector<2x1x1x32xf32>
    %100 = vector.shape_cast %99 : vector<2x1x1x32xf32> to vector<2x32xf32>
    %101 = vector.extract_strided_slice %90 {offsets = [0, 1, 1, 0], sizes = [2, 1, 1, 32], strides = [1, 1, 1, 1]} : vector<2x4x4x32xf32> to vector<2x1x1x32xf32>
    %102 = vector.shape_cast %101 : vector<2x1x1x32xf32> to vector<2x32xf32>
    %103 = vector.extract_strided_slice %90 {offsets = [0, 1, 2, 0], sizes = [2, 1, 1, 32], strides = [1, 1, 1, 1]} : vector<2x4x4x32xf32> to vector<2x1x1x32xf32>
    %104 = vector.shape_cast %103 : vector<2x1x1x32xf32> to vector<2x32xf32>
    %105 = vector.extract_strided_slice %90 {offsets = [0, 1, 3, 0], sizes = [2, 1, 1, 32], strides = [1, 1, 1, 1]} : vector<2x4x4x32xf32> to vector<2x1x1x32xf32>
    %106 = vector.shape_cast %105 : vector<2x1x1x32xf32> to vector<2x32xf32>
    %107 = vector.extract_strided_slice %90 {offsets = [0, 2, 0, 0], sizes = [2, 1, 1, 32], strides = [1, 1, 1, 1]} : vector<2x4x4x32xf32> to vector<2x1x1x32xf32>
    %108 = vector.shape_cast %107 : vector<2x1x1x32xf32> to vector<2x32xf32>
    %109 = vector.extract_strided_slice %90 {offsets = [0, 2, 1, 0], sizes = [2, 1, 1, 32], strides = [1, 1, 1, 1]} : vector<2x4x4x32xf32> to vector<2x1x1x32xf32>
    %110 = vector.shape_cast %109 : vector<2x1x1x32xf32> to vector<2x32xf32>
    %111 = vector.extract_strided_slice %90 {offsets = [0, 2, 2, 0], sizes = [2, 1, 1, 32], strides = [1, 1, 1, 1]} : vector<2x4x4x32xf32> to vector<2x1x1x32xf32>
    %112 = vector.shape_cast %111 : vector<2x1x1x32xf32> to vector<2x32xf32>
    %113 = vector.extract_strided_slice %90 {offsets = [0, 2, 3, 0], sizes = [2, 1, 1, 32], strides = [1, 1, 1, 1]} : vector<2x4x4x32xf32> to vector<2x1x1x32xf32>
    %114 = vector.shape_cast %113 : vector<2x1x1x32xf32> to vector<2x32xf32>
    %115 = vector.extract_strided_slice %90 {offsets = [0, 3, 0, 0], sizes = [2, 1, 1, 32], strides = [1, 1, 1, 1]} : vector<2x4x4x32xf32> to vector<2x1x1x32xf32>
    %116 = vector.shape_cast %115 : vector<2x1x1x32xf32> to vector<2x32xf32>
    %117 = vector.extract_strided_slice %90 {offsets = [0, 3, 1, 0], sizes = [2, 1, 1, 32], strides = [1, 1, 1, 1]} : vector<2x4x4x32xf32> to vector<2x1x1x32xf32>
    %118 = vector.shape_cast %117 : vector<2x1x1x32xf32> to vector<2x32xf32>
    %119 = vector.extract_strided_slice %90 {offsets = [0, 3, 2, 0], sizes = [2, 1, 1, 32], strides = [1, 1, 1, 1]} : vector<2x4x4x32xf32> to vector<2x1x1x32xf32>
    %120 = vector.shape_cast %119 : vector<2x1x1x32xf32> to vector<2x32xf32>
    %121 = vector.extract_strided_slice %90 {offsets = [0, 3, 3, 0], sizes = [2, 1, 1, 32], strides = [1, 1, 1, 1]} : vector<2x4x4x32xf32> to vector<2x1x1x32xf32>
    %122 = vector.shape_cast %121 : vector<2x1x1x32xf32> to vector<2x32xf32>
    %123 = tpu.concatenate %92, %94, %96, %98, %100, %102, %104, %106, %108, %110, %112, %114, %116, %118, %120, %122 in 1 : vector<2x32xf32>, vector<2x32xf32>, vector<2x32xf32>, vector<2x32xf32>, vector<2x32xf32>, vector<2x32xf32>, vector<2x32xf32>, vector<2x32xf32>, vector<2x32xf32>, vector<2x32xf32>, vector<2x32xf32>, vector<2x32xf32>, vector<2x32xf32>, vector<2x32xf32>, vector<2x32xf32>, vector<2x32xf32> -> vector<2x512xf32>
    %c0_158 = arith.constant 0 : index
    %c0_159 = arith.constant 0 : index
    %124 = vector.load %arg6[%c0_158, %c0_159] : memref<512x64xf32, #tpu.memory_space<vmem>>, vector<512x64xf32>
    %cst_160 = arith.constant dense<0.000000e+00> : vector<2x64xf32>
    %125 = tpu.matmul %123, %124, %cst_160 {dimension_numbers = #tpu.dot_dimension_numbers<[1], [0], [0], [1], [0, 0, 1, 1], [], []>} : vector<2x512xf32>, vector<512x64xf32>, vector<2x64xf32> -> vector<2x64xf32>
    %c0_161 = arith.constant 0 : index
    %c0_162 = arith.constant 0 : index
    %126 = vector.load %arg7[%c0_161, %c0_162] : memref<1x64xf32, #tpu.memory_space<vmem>>, vector<1x64xf32>
    %127 = vector.broadcast %126 : vector<1x64xf32> to vector<2x64xf32>
    %128 = arith.addf %125, %127 : vector<2x64xf32>
    %cst_163 = arith.constant 0.000000e+00 : f32
    %129 = vector.broadcast %cst_163 : f32 to vector<2x64xf32>
    %130 = arith.maximumf %128, %129 : vector<2x64xf32>
    %c0_164 = arith.constant 0 : index
    %c0_165 = arith.constant 0 : index
    %131 = vector.load %arg8[%c0_164, %c0_165] : memref<64x10xf32, #tpu.memory_space<vmem>>, vector<64x10xf32>
    %cst_166 = arith.constant dense<0.000000e+00> : vector<2x10xf32>
    %132 = tpu.matmul %130, %131, %cst_166 {dimension_numbers = #tpu.dot_dimension_numbers<[1], [0], [0], [1], [0, 0, 1, 1], [], []>} : vector<2x64xf32>, vector<64x10xf32>, vector<2x10xf32> -> vector<2x10xf32>
    %c0_167 = arith.constant 0 : index
    %c0_168 = arith.constant 0 : index
    %133 = vector.load %arg9[%c0_167, %c0_168] : memref<1x10xf32, #tpu.memory_space<vmem>>, vector<1x10xf32>
    %134 = vector.broadcast %133 : vector<1x10xf32> to vector<2x10xf32>
    %135 = arith.addf %132, %134 : vector<2x10xf32>
    %c0_169 = arith.constant 0 : index
    %c0_170 = arith.constant 0 : index
    %136 = vector.load %arg10[%c0_169, %c0_170] : memref<2x10xf32, #tpu.memory_space<vmem>>, vector<2x10xf32>
    tpu.vector_store %arg10[%c0_169, %c0_170], %135 {strides = array<i32>} : memref<2x10xf32, #tpu.memory_space<vmem>>, vector<2x10xf32>,
    return
  }
  func.func @transform_0(%arg0: i32) -> (i32, i32, i32, i32) {
    %c0_i32 = arith.constant 0 : i32
    %c0_i32_0 = arith.constant 0 : i32
    %c0_i32_1 = arith.constant 0 : i32
    %c0_i32_2 = arith.constant 0 : i32
    return %arg0, %c0_i32, %c0_i32_0, %c0_i32_1 : i32, i32, i32, i32
  }
  func.func @transform_1(%arg0: i32) -> (i32, i32) {
    %c0_i32 = arith.constant 0 : i32
    %c0_i32_0 = arith.constant 0 : i32
    %c0_i32_1 = arith.constant 0 : i32
    return %c0_i32, %c0_i32_0 : i32, i32
  }
  func.func @transform_2(%arg0: i32) -> (i32, i32) {
    %c0_i32 = arith.constant 0 : i32
    %c0_i32_0 = arith.constant 0 : i32
    %c0_i32_1 = arith.constant 0 : i32
    return %c0_i32, %c0_i32_0 : i32, i32
  }
  func.func @transform_3(%arg0: i32) -> (i32, i32) {
    %c0_i32 = arith.constant 0 : i32
    %c0_i32_0 = arith.constant 0 : i32
    %c0_i32_1 = arith.constant 0 : i32
    return %c0_i32, %c0_i32_0 : i32, i32
  }
  func.func @transform_4(%arg0: i32) -> (i32, i32) {
    %c0_i32 = arith.constant 0 : i32
    %c0_i32_0 = arith.constant 0 : i32
    %c0_i32_1 = arith.constant 0 : i32
    return %c0_i32, %c0_i32_0 : i32, i32
  }
  func.func @transform_5(%arg0: i32) -> (i32, i32) {
    %c0_i32 = arith.constant 0 : i32
    %c0_i32_0 = arith.constant 0 : i32
    %c0_i32_1 = arith.constant 0 : i32
    return %c0_i32, %c0_i32_0 : i32, i32
  }
  func.func @transform_6(%arg0: i32) -> (i32, i32) {
    %c0_i32 = arith.constant 0 : i32
    %c0_i32_0 = arith.constant 0 : i32
    %c0_i32_1 = arith.constant 0 : i32
    return %c0_i32, %c0_i32_0 : i32, i32
  }
  func.func @transform_7(%arg0: i32) -> (i32, i32) {
    %c0_i32 = arith.constant 0 : i32
    %c0_i32_0 = arith.constant 0 : i32
    %c0_i32_1 = arith.constant 0 : i32
    return %c0_i32, %c0_i32_0 : i32, i32
  }
  func.func @transform_8(%arg0: i32) -> (i32, i32) {
    %c0_i32 = arith.constant 0 : i32
    %c0_i32_0 = arith.constant 0 : i32
    %c0_i32_1 = arith.constant 0 : i32
    return %c0_i32, %c0_i32_0 : i32, i32
  }
  func.func @transform_9(%arg0: i32) -> (i32, i32) {
    %c0_i32 = arith.constant 0 : i32
    %c0_i32_0 = arith.constant 0 : i32
    return %arg0, %c0_i32 : i32, i32
  }
}

</mosaic_0001>

<bundles_post_ra>
// kernel: small_cnn_forward.1
= control target key start
LH: loop header
LB: loop body
LE: loop exit
PB: predicated region body
PF: predicated region fallthrough
CT: control target
= control target key end

     0   :  { %vm33_vm0 = vcmask 23552   ;;  %vm36_vm1 = vcmask 17408   ;;  %v6687_v2 = vmov 0.0   ;;  %vm48_vm2 = vcmask 16384   ;;  %s10396_s0 = inlined_call_operand.vmem [shape: f32[2,16,16,3], index: 0, kind: input, shape index: {}]   ;;  %s10397_s1 = inlined_call_operand.vmem [shape: f32[27,16], index: 1, kind: input, shape index: {}]   ;;  %s10398_s2 = inlined_call_operand.vmem [shape: f32[1,16], index: 2, kind: input, shape index: {}]   ;;  %s10399_s3 = inlined_call_operand.vmem [shape: f32[144,32], index: 3, kind: input, shape index: {}]   ;;  %s10400_s4 = inlined_call_operand.vmem [shape: f32[1,32], index: 4, kind: input, shape index: {}]   ;;  %s10401_s5 = inlined_call_operand.vmem [shape: f32[512,64], index: 5, kind: input, shape index: {}]   ;;  %s10402_s6 = inlined_call_operand.vmem [shape: f32[1,64], index: 6, kind: input, shape index: {}]   ;;  %s10403_s7 = inlined_call_operand.vmem [shape: f32[64,10], index: 7, kind: input, shape index: {}]   ;;  %s10404_s8 = inlined_call_operand.vmem [shape: f32[1,10], index: 8, kind: input, shape index: {}]   ;;  %s10405_s9 = inlined_call_operand.hbm [shape: f32[2,10], index: 9, kind: output, shape index: {}]  }
   0x1   :  { %v121_v0 = vld [vmem:[%s10396_s0] sm:$0xff]  ;;  %v122_v1 = vld [vmem:[%s10396_s0 + $0x8] sm:$0xff]  ;;  %34 = vst.msk [vmem:[#allocation2] sm:$0xff] %vm33_vm0, %v6687_v2  ;;  %35 = vst.msk [vmem:[#allocation2 + $0x8] sm:$0xff] %vm33_vm0, %v6687_v2 }
   0x2   :  { %186 = vst.msk [vmem:[#allocation2 + $0x19] sm:$0xff] %vm33_vm0, %v121_v0  ;;  %38 = vst.msk [vmem:[#allocation2 + $0x1b0] sm:$0xff] %vm33_vm0, %v6687_v2  ;;  %v124_v3 = vld [vmem:[%s10396_s0 + $0x18] sm:$0xff]  ;;  %v123_v4 = vld [vmem:[%s10396_s0 + $0x10] sm:$0xff] }
   0x3   :  { %39 = vst.msk [vmem:[#allocation2 + $0x1b8] sm:$0xff] %vm33_vm0, %v6687_v2  ;;  %42 = vst.msk [vmem:[#allocation2 + $0x198] sm:$0xff] %vm33_vm0, %v6687_v2  ;;  %v126_v5 = vld [vmem:[%s10396_s0 + $0x28] sm:$0xff]  ;;  %v6800_v6 = vld [vmem:[%s10396_s0 + $0x20] sm:$0xff] }
   0x4   :  { %43 = vst.msk [vmem:[#allocation2 + $0x1a0] sm:$0xff] %vm33_vm0, %v6687_v2  ;;  %45 = vst.msk [vmem:[#allocation2 + $0x348] sm:$0xff] %vm33_vm0, %v6687_v2  ;;  %v6805_v7 = vld [vmem:[%s10396_s0 + $0x38] sm:$0xff]  ;;  %v6810_v8 = vld [vmem:[%s10396_s0 + $0x30] sm:$0xff] }
   0x5   :  { %46 = vst.msk [vmem:[#allocation2 + $0x350] sm:$0xff] %vm33_vm0, %v6687_v2  ;;  %187 = vst.msk [vmem:[#allocation2 + $0x21] sm:$0xff] %vm33_vm0, %v122_v1  ;;  %v130_v9 = vld [vmem:[%s10396_s0 + $0x48] sm:$0xff]  ;;  %v129_v10 = vld [vmem:[%s10396_s0 + $0x40] sm:$0xff] }
   0x6   :  { %37 = vst.msk [vmem:[#allocation2 + $0x10] sm:$0x3] %vm36_vm1, %v6687_v2  ;;  %40 = vst.msk [vmem:[#allocation2 + $0x1c0] sm:$0x3] %vm36_vm1, %v6687_v2  ;;  %v132_v11 = vld [vmem:[%s10396_s0 + $0x58] sm:$0xff]  ;;  %v131_v12 = vld [vmem:[%s10396_s0 + $0x50] sm:$0xff] }
   0x7   :  { %44 = vst.msk [vmem:[#allocation2 + $0x1a8] sm:$0x3] %vm36_vm1, %v6687_v2  ;;  %47 = vst.msk [vmem:[#allocation2 + $0x358] sm:$0x3] %vm36_vm1, %v6687_v2  ;;  %v134_v13 = vld [vmem:[%s10396_s0 + $0x68] sm:$0xff]  ;;  %v133_v14 = vld [vmem:[%s10396_s0 + $0x60] sm:$0xff] }
   0x8   :  { %189 = vst.msk [vmem:[#allocation2 + $0x39] sm:$0xff] %vm33_vm0, %v124_v3  ;;  %188 = vst.msk [vmem:[#allocation2 + $0x31] sm:$0xff] %vm33_vm0, %v123_v4  ;;  %v136_v15 = vld [vmem:[%s10396_s0 + $0x78] sm:$0xff]  ;;  %v135_v16 = vld [vmem:[%s10396_s0 + $0x70] sm:$0xff] }
   0x9   :  { %191 = vst.msk [vmem:[#allocation2 + $0x51] sm:$0xff] %vm33_vm0, %v126_v5  ;;  %190 = vst.msk [vmem:[#allocation2 + $0x49] sm:$0xff] %vm33_vm0, %v6800_v6 }
   0xa   :  { %85 = vst.msk [vmem:[#allocation2 + $0x11] sm:$0x1] %vm48_vm2, %v6687_v2  ;;  %49 = vst.msk [vmem:[#allocation2] sm:$0x1] %vm48_vm2, %v6687_v2 }
   0xb   :  { %50 = vst.msk [vmem:[#allocation2 + $0x18] sm:$0x1] %vm48_vm2, %v6687_v2  ;;  %51 = vst.msk [vmem:[#allocation2 + $0x30] sm:$0x1] %vm48_vm2, %v6687_v2 }
   0xc   :  { %52 = vst.msk [vmem:[#allocation2 + $0x48] sm:$0x1] %vm48_vm2, %v6687_v2  ;;  %53 = vst.msk [vmem:[#allocation2 + $0x60] sm:$0x1] %vm48_vm2, %v6687_v2 }
   0xd   :  { %54 = vst.msk [vmem:[#allocation2 + $0x78] sm:$0x1] %vm48_vm2, %v6687_v2  ;;  %55 = vst.msk [vmem:[#allocation2 + $0x90] sm:$0x1] %vm48_vm2, %v6687_v2 }
   0xe   :  { %56 = vst.msk [vmem:[#allocation2 + $0xa8] sm:$0x1] %vm48_vm2, %v6687_v2  ;;  %57 = vst.msk [vmem:[#allocation2 + $0xc0] sm:$0x1] %vm48_vm2, %v6687_v2 }
   0xf   :  { %58 = vst.msk [vmem:[#allocation2 + $0xd8] sm:$0x1] %vm48_vm2, %v6687_v2  ;;  %59 = vst.msk [vmem:[#allocation2 + $0xf0] sm:$0x1] %vm48_vm2, %v6687_v2 }
  0x10   :  { %60 = vst.msk [vmem:[#allocation2 + $0x108] sm:$0x1] %vm48_vm2, %v6687_v2  ;;  %61 = vst.msk [vmem:[#allocation2 + $0x120] sm:$0x1] %vm48_vm2, %v6687_v2 }
  0x11   :  { %62 = vst.msk [vmem:[#allocation2 + $0x138] sm:$0x1] %vm48_vm2, %v6687_v2  ;;  %63 = vst.msk [vmem:[#allocation2 + $0x150] sm:$0x1] %vm48_vm2, %v6687_v2 }
  0x12   :  { %64 = vst.msk [vmem:[#allocation2 + $0x168] sm:$0x1] %vm48_vm2, %v6687_v2  ;;  %65 = vst.msk [vmem:[#allocation2 + $0x180] sm:$0x1] %vm48_vm2, %v6687_v2 }
  0x13   :  { %66 = vst.msk [vmem:[#allocation2 + $0x198] sm:$0x1] %vm48_vm2, %v6687_v2  ;;  %67 = vst.msk [vmem:[#allocation2 + $0x1b0] sm:$0x1] %vm48_vm2, %v6687_v2 }
  0x14   :  { %68 = vst.msk [vmem:[#allocation2 + $0x1c8] sm:$0x1] %vm48_vm2, %v6687_v2  ;;  %69 = vst.msk [vmem:[#allocation2 + $0x1e0] sm:$0x1] %vm48_vm2, %v6687_v2 }
  0x15   :  { %70 = vst.msk [vmem:[#allocation2 + $0x1f8] sm:$0x1] %vm48_vm2, %v6687_v2  ;;  %71 = vst.msk [vmem:[#allocation2 + $0x210] sm:$0x1] %vm48_vm2, %v6687_v2 }
  0x16   :  { %72 = vst.msk [vmem:[#allocation2 + $0x228] sm:$0x1] %vm48_vm2, %v6687_v2  ;;  %73 = vst.msk [vmem:[#allocation2 + $0x240] sm:$0x1] %vm48_vm2, %v6687_v2 }
  0x17   :  { %74 = vst.msk [vmem:[#allocation2 + $0x258] sm:$0x1] %vm48_vm2, %v6687_v2  ;;  %75 = vst.msk [vmem:[#allocation2 + $0x270] sm:$0x1] %vm48_vm2, %v6687_v2 }
  0x18   :  { %76 = vst.msk [vmem:[#allocation2 + $0x288] sm:$0x1] %vm48_vm2, %v6687_v2  ;;  %77 = vst.msk [vmem:[#allocation2 + $0x2a0] sm:$0x1] %vm48_vm2, %v6687_v2 }
  0x19   :  { %78 = vst.msk [vmem:[#allocation2 + $0x2b8] sm:$0x1] %vm48_vm2, %v6687_v2  ;;  %79 = vst.msk [vmem:[#allocation2 + $0x2d0] sm:$0x1] %vm48_vm2, %v6687_v2 }
  0x1a   :  { %80 = vst.msk [vmem:[#allocation2 + $0x2e8] sm:$0x1] %vm48_vm2, %v6687_v2  ;;  %81 = vst.msk [vmem:[#allocation2 + $0x300] sm:$0x1] %vm48_vm2, %v6687_v2 }
  0x1b   :  { %82 = vst.msk [vmem:[#allocation2 + $0x318] sm:$0x1] %vm48_vm2, %v6687_v2  ;;  %83 = vst.msk [vmem:[#allocation2 + $0x330] sm:$0x1] %vm48_vm2, %v6687_v2 }
  0x1c   :  { %84 = vst.msk [vmem:[#allocation2 + $0x348] sm:$0x1] %vm48_vm2, %v6687_v2  ;;  %86 = vst.msk [vmem:[#allocation2 + $0x29] sm:$0x1] %vm48_vm2, %v6687_v2 }
  0x1d   :  { %87 = vst.msk [vmem:[#allocation2 + $0x41] sm:$0x1] %vm48_vm2, %v6687_v2  ;;  %88 = vst.msk [vmem:[#allocation2 + $0x59] sm:$0x1] %vm48_vm2, %v6687_v2 }
  0x1e   :  { %89 = vst.msk [vmem:[#allocation2 + $0x71] sm:$0x1] %vm48_vm2, %v6687_v2  ;;  %90 = vst.msk [vmem:[#allocation2 + $0x89] sm:$0x1] %vm48_vm2, %v6687_v2 }
  0x1f   :  { %91 = vst.msk [vmem:[#allocation2 + $0xa1] sm:$0x1] %vm48_vm2, %v6687_v2  ;;  %92 = vst.msk [vmem:[#allocation2 + $0xb9] sm:$0x1] %vm48_vm2, %v6687_v2 }
  0x20   :  { %93 = vst.msk [vmem:[#allocation2 + $0xd1] sm:$0x1] %vm48_vm2, %v6687_v2  ;;  %94 = vst.msk [vmem:[#allocation2 + $0xe9] sm:$0x1] %vm48_vm2, %v6687_v2 }
  0x21   :  { %95 = vst.msk [vmem:[#allocation2 + $0x101] sm:$0x1] %vm48_vm2, %v6687_v2  ;;  %96 = vst.msk [vmem:[#allocation2 + $0x119] sm:$0x1] %vm48_vm2, %v6687_v2 }
  0x22   :  { %97 = vst.msk [vmem:[#allocation2 + $0x131] sm:$0x1] %vm48_vm2, %v6687_v2  ;;  %98 = vst.msk [vmem:[#allocation2 + $0x149] sm:$0x1] %vm48_vm2, %v6687_v2 }
  0x23   :  { %99 = vst.msk [vmem:[#allocation2 + $0x161] sm:$0x1] %vm48_vm2, %v6687_v2  ;;  %100 = vst.msk [vmem:[#allocation2 + $0x179] sm:$0x1] %vm48_vm2, %v6687_v2 }
  0x24   :  { %101 = vst.msk [vmem:[#allocation2 + $0x191] sm:$0x1] %vm48_vm2, %v6687_v2  ;;  %102 = vst.msk [vmem:[#allocation2 + $0x1a9] sm:$0x1] %vm48_vm2, %v6687_v2 }
  0x25   :  { %103 = vst.msk [vmem:[#allocation2 + $0x1c1] sm:$0x1] %vm48_vm2, %v6687_v2  ;;  %104 = vst.msk [vmem:[#allocation2 + $0x1d9] sm:$0x1] %vm48_vm2, %v6687_v2 }
  0x26   :  { %105 = vst.msk [vmem:[#allocation2 + $0x1f1] sm:$0x1] %vm48_vm2, %v6687_v2  ;;  %106 = vst.msk [vmem:[#allocation2 + $0x209] sm:$0x1] %vm48_vm2, %v6687_v2 }
  0x27   :  { %107 = vst.msk [vmem:[#allocation2 + $0x221] sm:$0x1] %vm48_vm2, %v6687_v2  ;;  %108 = vst.msk [vmem:[#allocation2 + $0x239] sm:$0x1] %vm48_vm2, %v6687_v2 }
  0x28   :  { %109 = vst.msk [vmem:[#allocation2 + $0x251] sm:$0x1] %vm48_vm2, %v6687_v2  ;;  %110 = vst.msk [vmem:[#allocation2 + $0x269] sm:$0x1] %vm48_vm2, %v6687_v2 }
  0x29   :  { %111 = vst.msk [vmem:[#allocation2 + $0x281] sm:$0x1] %vm48_vm2, %v6687_v2  ;;  %112 = vst.msk [vmem:[#allocation2 + $0x299] sm:$0x1] %vm48_vm2, %v6687_v2 }
  0x2a   :  { %113 = vst.msk [vmem:[#allocation2 + $0x2b1] sm:$0x1] %vm48_vm2, %v6687_v2  ;;  %114 = vst.msk [vmem:[#allocation2 + $0x2c9] sm:$0x1] %vm48_vm2, %v6687_v2 }
  0x2b   :  { %115 = vst.msk [vmem:[#allocation2 + $0x2e1] sm:$0x1] %vm48_vm2, %v6687_v2  ;;  %116 = vst.msk [vmem:[#allocation2 + $0x2f9] sm:$0x1] %vm48_vm2, %v6687_v2 }
  0x2c   :  { %117 = vst.msk [vmem:[#allocation2 + $0x311] sm:$0x1] %vm48_vm2, %v6687_v2  ;;  %118 = vst.msk [vmem:[#allocation2 + $0x329] sm:$0x1] %vm48_vm2, %v6687_v2 }
  0x2d   :  { %119 = vst.msk [vmem:[#allocation2 + $0x341] sm:$0x1] %vm48_vm2, %v6687_v2  ;;  %120 = vst.msk [vmem:[#allocation2 + $0x359] sm:$0x1] %vm48_vm2, %v6687_v2 }
  0x2e   :  { %193 = vst.msk [vmem:[#allocation2 + $0x69] sm:$0xff] %vm33_vm0, %v6805_v7  ;;  %192 = vst.msk [vmem:[#allocation2 + $0x61] sm:$0xff] %vm33_vm0, %v6810_v8 }
  0x2f   :  { %195 = vst.msk [vmem:[#allocation2 + $0x81] sm:$0xff] %vm33_vm0, %v130_v9  ;;  %194 = vst.msk [vmem:[#allocation2 + $0x79] sm:$0xff] %vm33_vm0, %v129_v10 }
  0x30   :  { %197 = vst.msk [vmem:[#allocation2 + $0x99] sm:$0xff] %vm33_vm0, %v132_v11  ;;  %196 = vst.msk [vmem:[#allocation2 + $0x91] sm:$0xff] %vm33_vm0, %v131_v12 }
  0x31   :  { %199 = vst.msk [vmem:[#allocation2 + $0xb1] sm:$0xff] %vm33_vm0, %v134_v13  ;;  %198 = vst.msk [vmem:[#allocation2 + $0xa9] sm:$0xff] %vm33_vm0, %v133_v14 }
  0x32   :  { %14 = vsyncpa [#allocation9], 0  ;;  %201 = vst.msk [vmem:[#allocation2 + $0xc9] sm:$0xff] %vm33_vm0, %v136_v15  ;;  %v316_v17 = vld [vmem:[#allocation2 + $0x19] sm:$0xff]  ;;  %v314_v18 = vld [vmem:[#allocation2 + $0x1] sm:$0xff]  ;;  %s6688_s20 = smov 3  }
  0x33   :  { %200 = vst.msk [vmem:[#allocation2 + $0xc1] sm:$0xff] %vm33_vm0, %v135_v16  ;;  %895 = vrot.lane.b32.xlu1 %v316_v17, %s6688_s20  ;;  %891 = vrot.lane.b32.xlu0 %v314_v18, %s6688_s20  ;;  %v317_v19 = vld [vmem:[#allocation2 + $0x21] sm:$0xff]  ;;  %v315_v20 = vld [vmem:[#allocation2 + $0x9] sm:$0xff]  ;;  %v6998_v21 = vld [vmem:[#allocation2 + $0x39] sm:$0xff]  ;;  %s6689_s21 = smov 6   ;;  %s6690_s22 = smov 9  }
  0x34   :  { %v7000_v22 = vld [vmem:[#allocation2 + $0x31] sm:$0xff]  ;;  %v7008_v24 = vld [vmem:[#allocation2 + $0x49] sm:$0xff]  ;;  %v7056_v37 = vld [vmem:[#allocation2 + $0x20] sm:$0xff]  ;;  %s6691_s23 = smov 12   ;;  %s6692_s24 = smov 15   ;;  %vm3598_vm3 = vcmask 1042432  }
  0x35   :  { %v7006_v23 = vld [vmem:[#allocation2 + $0x51] sm:$0xff]  ;;  %v7014_v25 = vld [vmem:[#allocation2 + $0x69] sm:$0xff]  ;;  %v7016_v26 = vld [vmem:[#allocation2 + $0x61] sm:$0xff]  ;;  %s6693_s25 = smov 18   ;;  %s6694_s13 = smov 21   ;;  %vm6695_vm4 = vmmov 1  }
  0x36   :  { %v7022_v27 = vld [vmem:[#allocation2 + $0x81] sm:$0xff]  ;;  %v7024_v28 = vld [vmem:[#allocation2 + $0x79] sm:$0xff]  ;;  %v379_v35 = vld [vmem:[#allocation2 + $0xa] sm:$0xff]  ;;  %vm2939_vm6 = vcmask 48128   ;;  %vm3004_vm7 = vcmask 72704   ;;  %vm3069_vm8 = vcmask 97280  }
  0x37   :  { %897 = vrot.lane.b32.xlu1 %v317_v19, %s6688_s20  ;;  %893 = vrot.lane.b32.xlu0 %v315_v20, %s6688_s20  ;;  %v7030_v29 = vld [vmem:[#allocation2 + $0x99] sm:$0xff]  ;;  %v7032_v30 = vld [vmem:[#allocation2 + $0x91] sm:$0xff]  ;;  %v378_v36 = vld [vmem:[#allocation2 + $0x2] sm:$0xff]  ;;  %vm3134_vm9 = vcmask 121856   ;;  %vm3199_vm10 = vcmask 146432   ;;  %vm3264_vm11 = vcmask 171008  }
  0x38   :  { %v7038_v31 = vld [vmem:[#allocation2 + $0xb1] sm:$0xff]  ;;  %v7040_v32 = vld [vmem:[#allocation2 + $0xa9] sm:$0xff]  ;;  %v380_v39 = vld [vmem:[#allocation2 + $0x1a] sm:$0xff]  ;;  %vm3329_vm12 = vcmask 195584   ;;  %vm3405_vm13 = vcmask 220160   ;;  %vm4051_vm14 = vcmask 130048  }
  0x39   :  { %v7046_v33 = vld [vmem:[#allocation2 + $0xc9] sm:$0xff]  ;;  %v7058_v38 = vld [vmem:[#allocation2 + $0x18] sm:$0xff]  ;;  %v3394_v42 = vld [vmem:[%s10397_s1] sm:$0xff]  ;;  %4355 = vst.msk [vmem:[#allocation3] sm:$0xff] %vm4051_vm14, %v6687_v2  ;;  %vm4356_vm15 = vcmask 123904   ;;  %vm4365_vm1 = vcmask 122880  }
  0x3a   :  { %v7048_v34 = vld [vmem:[#allocation2 + $0xc1] sm:$0xff]  ;;  %v7068_v40 = vld [vmem:[#allocation2 + $0x30] sm:$0xff]  ;;  %v7082_v45 = vld [vmem:[#allocation2 + $0x38] sm:$0xff]  ;;  %4358 = vst.msk [vmem:[#allocation3 + $0xa0] sm:$0xff] %vm4051_vm14, %v6687_v2  ;;  %s6698_s12 = smov 32   ;;  %s6699_s14 = smov 16  }
  0x3b   :  { %901 = vrot.lane.b32.xlu1 %v6998_v21, %s6688_s20  ;;  %899 = vrot.lane.b32.xlu0 %v7000_v22, %s6688_s20  ;;  %v571_v41 = vld [vmem:[#allocation2 + $0x22] sm:$0xff]  ;;  %v3396_v46 = vld [vmem:[%s10397_s1 + $0x10] sm:$0xff]  ;;  %v3397_v47 = vld [vmem:[%s10397_s1 + $0x18] sm:$0x7]  ;;  %4361 = vst.msk [vmem:[#allocation3 + $0x90] sm:$0xff] %vm4051_vm14, %v6687_v2  ;;  %s6701_s15 = smov 48  }
  0x3c   :  { %v3395_v43 = vld [vmem:[%s10397_s1 + $0x8] sm:$0xff]  ;;  %v6232_v48 = vpack.c.bf16 %v3397_v47, %v3396_v46  ;;  %vm6233_vm5 = vmpackc.low %vm3598_vm3, %vm6695_vm4  ;;  %v763_v49 = vld [vmem:[#allocation2 + $0x32] sm:$0xff]  ;;  %s6696_s1 = smov 24   ;;  %4363 = vst.msk [vmem:[#allocation3 + $0x130] sm:$0xff] %vm4051_vm14, %v6687_v2  ;;  %s6702_s16 = smov 96   ;;  %vm5049_vm2 = vcmask 392192  }
  0x3d   :  { %v6228_v44 = vpack.c.bf16 %v3395_v43, %v3394_v42  ;;  %v764_v50 = vld [vmem:[#allocation2 + $0x3a] sm:$0xff]  ;;  %v7106_v51 = vld [vmem:[#allocation2 + $0x48] sm:$0xff]  ;;  %v7114_v52 = vld [vmem:[#allocation2 + $0x50] sm:$0xff]  ;;  %4357 = vst.msk [vmem:[#allocation3 + $0x8] sm:$0x3] %vm4356_vm15, %v6687_v2  ;;  %s6703_s17 = smov 80  }
  0x3e   :  { %v765_v53 = vld [vmem:[#allocation2 + $0x4a] sm:$0xff]  ;;  %v766_v54 = vld [vmem:[#allocation2 + $0x52] sm:$0xff]  ;;  %v7132_v55 = vld [vmem:[#allocation2 + $0x60] sm:$0xff]  ;;  %4359 = vst.msk [vmem:[#allocation3 + $0xa8] sm:$0x3] %vm4356_vm15, %v6687_v2  ;;  %vm5066_vm3 = vcmask 523264  }
  0x3f   :  { %905 = vrot.lane.b32.xlu1 %v7006_v23, %s6688_s20  ;;  %903 = vrot.lane.b32.xlu0 %v7008_v24, %s6688_s20  ;;  %v137_v56 = vld [vmem:[%s10396_s0 + $0x80] sm:$0xff]  ;;  %v7143_v57 = vld [vmem:[#allocation2 + $0x68] sm:$0xff]  ;;  %v7186_v8 = vld [vmem:[#allocation2 + $0x78] sm:$0xff]  ;;  %4362 = vst.msk [vmem:[#allocation3 + $0x98] sm:$0x3] %vm4356_vm15, %v6687_v2  ;;  %vm5083_vm4 = vcmask 654336  }
  0x40   :  { %6229 = vmatprep.subr.bf16.mxu0 %v6228_v44  ;;  %202 = vst.msk [vmem:[#allocation2 + $0xd9] sm:$0xff] %vm33_vm0, %v137_v56  ;;  %v138_v62 = vld [vmem:[%s10396_s0 + $0x88] sm:$0xff]  ;;  %v7206_v15 = vld [vmem:[#allocation2 + $0x80] sm:$0xff]  ;;  %v139_v16 = vld [vmem:[%s10396_s0 + $0x90] sm:$0xff]  ;;  %s6706_s26 = smov [#allocation8]  }
  0x41   :  { %6231 = vmatpush3.bf16.msra.mxu0 %v6228_v44  ;;  %v767_v63 = vld [vmem:[#allocation2 + $0x62] sm:$0xff]  ;;  %203 = vst.msk [vmem:[#allocation2 + $0xe1] sm:$0xff] %vm33_vm0, %v138_v62  ;;  %v768_v5 = vld [vmem:[#allocation2 + $0x6a] sm:$0xff]  ;;  %204 = vst.msk [vmem:[#allocation2 + $0xf1] sm:$0xff] %vm33_vm0, %v139_v16  ;;  %s5864_s27 = sshll.u32 %s6706_s26, 4  ;;  %s5865_s27 = int_to_ptr.vmem [resolvable:$true] %s5864_s27 }
  0x42   :  { %6234 = vmatprep.subr.msk.bf16.mxu0 %vm6233_vm5, %v6232_v48  ;;  %v7254_v44 = vld [vmem:[#allocation2 + $0x98] sm:$0xff]  ;;  %v250_v46 = vld [vmem:[#allocation2] sm:$0xff]  ;;  %4364 = vst.msk [vmem:[#allocation3 + $0x138] sm:$0x3] %vm4356_vm15, %v6687_v2  ;;  %p6668_p1 = scmp.lt.s32.totalorder %s5865_s27, %s5865_s27 }
  0x43   :  { %909 = vrot.lane.b32.xlu1 %v7014_v25, %s6688_s20  ;;  %907 = vrot.lane.b32.xlu0 %v7016_v26, %s6688_s20  ;;  %4388 = vst.msk [vmem:[#allocation3 + $0x29] sm:$0x1] %vm4365_vm1, %v6687_v2  ;;  %4366 = vst.msk [vmem:[#allocation3] sm:$0x1] %vm4365_vm1, %v6687_v2 }
  0x44   :  { %4367 = vst.msk [vmem:[#allocation3 + $0x10] sm:$0x1] %vm4365_vm1, %v6687_v2  ;;  %4368 = vst.msk [vmem:[#allocation3 + $0x20] sm:$0x1] %vm4365_vm1, %v6687_v2 }
  0x45   :  { %6237 = vmatpush3.bf16.msk.msra.mxu0 %vm6233_vm5, %v6232_v48  ;;  %4369 = vst.msk [vmem:[#allocation3 + $0x30] sm:$0x1] %vm4365_vm1, %v6687_v2  ;;  %4370 = vst.msk [vmem:[#allocation3 + $0x40] sm:$0x1] %vm4365_vm1, %v6687_v2  ;;  %vm5100_vm5 = vcmask 785408  }
  0x46   :  { %4371 = vst.msk [vmem:[#allocation3 + $0x50] sm:$0x1] %vm4365_vm1, %v6687_v2  ;;  %4372 = vst.msk [vmem:[#allocation3 + $0x60] sm:$0x1] %vm4365_vm1, %v6687_v2 }
  0x47   :  { %913 = vrot.lane.b32.xlu1 %v7022_v27, %s6688_s20  ;;  %911 = vrot.lane.b32.xlu0 %v7024_v28, %s6688_s20  ;;  %4373 = vst.msk [vmem:[#allocation3 + $0x70] sm:$0x1] %vm4365_vm1, %v6687_v2  ;;  %4374 = vst.msk [vmem:[#allocation3 + $0x80] sm:$0x1] %vm4365_vm1, %v6687_v2 }
  0x48   :  { %4375 = vst.msk [vmem:[#allocation3 + $0x90] sm:$0x1] %vm4365_vm1, %v6687_v2  ;;  %4376 = vst.msk [vmem:[#allocation3 + $0xa0] sm:$0x1] %vm4365_vm1, %v6687_v2 }
  0x49   :  { %4377 = vst.msk [vmem:[#allocation3 + $0xb0] sm:$0x1] %vm4365_vm1, %v6687_v2  ;;  %4378 = vst.msk [vmem:[#allocation3 + $0xc0] sm:$0x1] %vm4365_vm1, %v6687_v2 }
  0x4a   :  { %4379 = vst.msk [vmem:[#allocation3 + $0xd0] sm:$0x1] %vm4365_vm1, %v6687_v2  ;;  %4380 = vst.msk [vmem:[#allocation3 + $0xe0] sm:$0x1] %vm4365_vm1, %v6687_v2 }
  0x4b   :  { %917 = vrot.lane.b32.xlu1 %v7030_v29, %s6688_s20  ;;  %915 = vrot.lane.b32.xlu0 %v7032_v30, %s6688_s20  ;;  %4381 = vst.msk [vmem:[#allocation3 + $0xf0] sm:$0x1] %vm4365_vm1, %v6687_v2  ;;  %4382 = vst.msk [vmem:[#allocation3 + $0x100] sm:$0x1] %vm4365_vm1, %v6687_v2 }
  0x4c   :  { %4383 = vst.msk [vmem:[#allocation3 + $0x110] sm:$0x1] %vm4365_vm1, %v6687_v2  ;;  %4384 = vst.msk [vmem:[#allocation3 + $0x120] sm:$0x1] %vm4365_vm1, %v6687_v2 }
  0x4d   :  { %4385 = vst.msk [vmem:[#allocation3 + $0x130] sm:$0x1] %vm4365_vm1, %v6687_v2  ;;  %4387 = vst.msk [vmem:[#allocation3 + $0x19] sm:$0x1] %vm4365_vm1, %v6687_v2 }
  0x4e   :  { %4389 = vst.msk [vmem:[#allocation3 + $0x39] sm:$0x1] %vm4365_vm1, %v6687_v2  ;;  %4390 = vst.msk [vmem:[#allocation3 + $0x49] sm:$0x1] %vm4365_vm1, %v6687_v2 }
  0x4f   :  { %921 = vrot.lane.b32.xlu1 %v7038_v31, %s6688_s20  ;;  %919 = vrot.lane.b32.xlu0 %v7040_v32, %s6688_s20  ;;  %4391 = vst.msk [vmem:[#allocation3 + $0x59] sm:$0x1] %vm4365_vm1, %v6687_v2  ;;  %4392 = vst.msk [vmem:[#allocation3 + $0x69] sm:$0x1] %vm4365_vm1, %v6687_v2 }
  0x50   :  { %4393 = vst.msk [vmem:[#allocation3 + $0x79] sm:$0x1] %vm4365_vm1, %v6687_v2  ;;  %4394 = vst.msk [vmem:[#allocation3 + $0x89] sm:$0x1] %vm4365_vm1, %v6687_v2 }
  0x51   :  { %4397 = vst.msk [vmem:[#allocation3 + $0xb9] sm:$0x1] %vm4365_vm1, %v6687_v2  ;;  %4398 = vst.msk [vmem:[#allocation3 + $0xc9] sm:$0x1] %vm4365_vm1, %v6687_v2 }
  0x52   :  { %4399 = vst.msk [vmem:[#allocation3 + $0xd9] sm:$0x1] %vm4365_vm1, %v6687_v2  ;;  %4400 = vst.msk [vmem:[#allocation3 + $0xe9] sm:$0x1] %vm4365_vm1, %v6687_v2 }
  0x53   :  { %925 = vrot.lane.b32.xlu1 %v7046_v33, %s6688_s20  ;;  %923 = vrot.lane.b32.xlu0 %v7048_v34, %s6688_s20  ;;  %4401 = vst.msk [vmem:[#allocation3 + $0xf9] sm:$0x1] %vm4365_vm1, %v6687_v2  ;;  %4402 = vst.msk [vmem:[#allocation3 + $0x109] sm:$0x1] %vm4365_vm1, %v6687_v2 }
  0x54   :  { %4403 = vst.msk [vmem:[#allocation3 + $0x119] sm:$0x1] %vm4365_vm1, %v6687_v2  ;;  %4404 = vst.msk [vmem:[#allocation3 + $0x129] sm:$0x1] %vm4365_vm1, %v6687_v2 }
  0x55   :  { %4386 = vst.msk [vmem:[#allocation3 + $0x9] sm:$0x1] %vm4365_vm1, %v6687_v2  ;;  %4395 = vst.msk [vmem:[#allocation3 + $0x99] sm:$0x1] %vm4365_vm1, %v6687_v2 }
  0x56   :  { %4396 = vst.msk [vmem:[#allocation3 + $0xa9] sm:$0x1] %vm4365_vm1, %v6687_v2  ;;  %4405 = vst.msk [vmem:[#allocation3 + $0x139] sm:$0x1] %vm4365_vm1, %v6687_v2 }
  0x57   :  { %1149 = vrot.lane.b32.xlu1 %v379_v35, %s6689_s21  ;;  %1147 = vrot.lane.b32.xlu0 %v378_v36, %s6689_s21 }
  0x5b   :  { %1405 = vrot.lane.b32.xlu1 %v7056_v37, %s6690_s22  ;;  %1403 = vrot.lane.b32.xlu0 %v7058_v38, %s6690_s22 }
  0x5f   :  { %1661 = vrot.lane.b32.xlu1 %v317_v19, %s6691_s23  ;;  %1659 = vrot.lane.b32.xlu0 %v316_v17, %s6691_s23  ;;  %v769_v19 = vld [vmem:[#allocation2 + $0x7a] sm:$0xff] }
  0x63   :  { %1151 = vrot.lane.b32.xlu1 %v380_v39, %s6689_s21  ;;  %1915 = vrot.lane.b32.xlu0 %v380_v39, %s6692_s24  ;;  %v7242_v39 = vld [vmem:[#allocation2 + $0x90] sm:$0xff] }
  0x67   :  { %2171 = vrot.lane.b32.xlu1 %v7068_v40, %s6693_s25  ;;  %1917 = vrot.lane.b32.xlu0 %v571_v41, %s6692_s24 }
  0x6b   :  { %1407 = vrot.lane.b32.xlu1 %v7068_v40, %s6690_s22  ;;  %1153 = vrot.lane.b32.xlu0 %v571_v41, %s6689_s21 }
  0x6f   :  { %2427 = vrot.lane.b32.xlu1 %v7000_v22, %s6694_s13  ;;  %2173 = vrot.lane.b32.xlu0 %v7082_v45, %s6693_s25 }
  0x73   :  { %1663 = vrot.lane.b32.xlu1 %v7000_v22, %s6691_s23  ;;  %1409 = vrot.lane.b32.xlu0 %v7082_v45, %s6690_s22  ;;  %v140_v22 = vld [vmem:[%s10396_s0 + $0x98] sm:$0xff] }
  0x74   :  { %205 = vst.msk [vmem:[#allocation2 + $0xf9] sm:$0xff] %vm33_vm0, %v140_v22 }
  0x77   :  { %2683 = vrot.lane.b32.xlu1 %v763_v49, %s6696_s1  ;;  %2429 = vrot.lane.b32.xlu0 %v6998_v21, %s6694_s13 }
  0x7b   :  { %1919 = vrot.lane.b32.xlu1 %v763_v49, %s6692_s24  ;;  %1665 = vrot.lane.b32.xlu0 %v6998_v21, %s6691_s23 }
  0x7f   :  { %1155 = vrot.lane.b32.xlu1 %v763_v49, %s6689_s21  ;;  %2685 = vrot.lane.b32.xlu0 %v764_v50, %s6696_s1 }
  0x83   :  { %2175 = vrot.lane.b32.xlu1 %v7106_v51, %s6693_s25  ;;  %1921 = vrot.lane.b32.xlu0 %v764_v50, %s6692_s24 }
  0x87   :  { %1411 = vrot.lane.b32.xlu1 %v7106_v51, %s6690_s22  ;;  %1157 = vrot.lane.b32.xlu0 %v764_v50, %s6689_s21  ;;  %v141_v50 = vld [vmem:[%s10396_s0 + $0xa0] sm:$0xff] }
  0x88   :  { %206 = vst.msk [vmem:[#allocation2 + $0x109] sm:$0xff] %vm33_vm0, %v141_v50 }
  0x8b   :  { %2431 = vrot.lane.b32.xlu1 %v7008_v24, %s6694_s13  ;;  %2177 = vrot.lane.b32.xlu0 %v7114_v52, %s6693_s25 }
  0x8f   :  { %1667 = vrot.lane.b32.xlu1 %v7008_v24, %s6691_s23  ;;  %1413 = vrot.lane.b32.xlu0 %v7114_v52, %s6690_s22 }
  0x93   :  { %2687 = vrot.lane.b32.xlu1 %v765_v53, %s6696_s1  ;;  %2433 = vrot.lane.b32.xlu0 %v7006_v23, %s6694_s13 }
  0x97   :  { %1923 = vrot.lane.b32.xlu1 %v765_v53, %s6692_s24  ;;  %1669 = vrot.lane.b32.xlu0 %v7006_v23, %s6691_s23 }
  0x9b   :  { %1159 = vrot.lane.b32.xlu1 %v765_v53, %s6689_s21  ;;  %2689 = vrot.lane.b32.xlu0 %v766_v54, %s6696_s1 }
  0x9f   :  { %2179 = vrot.lane.b32.xlu1 %v7132_v55, %s6693_s25  ;;  %1925 = vrot.lane.b32.xlu0 %v766_v54, %s6692_s24 }
  0xa3   :  { %1415 = vrot.lane.b32.xlu1 %v7132_v55, %s6690_s22  ;;  %1161 = vrot.lane.b32.xlu0 %v766_v54, %s6689_s21  ;;  %v771_v54 = vld [vmem:[#allocation2 + $0x92] sm:$0xff] }
  0xa5   :  { %v7146_v58 = vpop.permute.xlu1 %895  ;;  %v7148_v59 = vpop.permute.xlu0 %891 }
  0xa6   :  { %v2875_v49 = vsel %vm33_vm0, %v250_v46, %v7148_v59 }
  0xa7   :  { %2435 = vrot.lane.b32.xlu1 %v7016_v26, %s6694_s13  ;;  %2181 = vrot.lane.b32.xlu0 %v7143_v57, %s6693_s25 }
  0xa9   :  { %v7154_v60 = vpop.permute.xlu1 %897  ;;  %v7156_v61 = vpop.permute.xlu0 %893 }
  0xab   :  { %1671 = vrot.lane.b32.xlu1 %v7016_v26, %s6691_s23  ;;  %1417 = vrot.lane.b32.xlu0 %v7143_v57, %s6690_s22 }
  0xad   :  { %v7166_v0 = vpop.permute.xlu1 %901  ;;  %v7168_v1 = vpop.permute.xlu0 %899 }
  0xaf   :  { %2691 = vrot.lane.b32.xlu1 %v767_v63, %s6696_s1  ;;  %2437 = vrot.lane.b32.xlu0 %v7014_v25, %s6694_s13 }
  0xb1   :  { %v7173_v3 = vpop.permute.xlu1 %905  ;;  %v7175_v4 = vpop.permute.xlu0 %903 }
  0xb3   :  { %1927 = vrot.lane.b32.xlu1 %v767_v63, %s6692_s24  ;;  %1673 = vrot.lane.b32.xlu0 %v7014_v25, %s6691_s23  ;;  %v770_v25 = vld [vmem:[#allocation2 + $0x82] sm:$0xff] }
  0xb5   :  { %v7180_v6 = vpop.permute.xlu1 %909  ;;  %v7182_v7 = vpop.permute.xlu0 %907 }
  0xb7   :  { %1163 = vrot.lane.b32.xlu1 %v767_v63, %s6689_s21  ;;  %2693 = vrot.lane.b32.xlu0 %v768_v5, %s6696_s1 }
  0xb9   :  { %v7188_v9 = vpop.permute.xlu1 %913  ;;  %v7190_v10 = vpop.permute.xlu0 %911 }
  0xbb   :  { %2183 = vrot.lane.b32.xlu1 %v7186_v8, %s6693_s25  ;;  %1929 = vrot.lane.b32.xlu0 %v768_v5, %s6692_s24 }
  0xbd   :  { %v7195_v11 = vpop.permute.xlu1 %917  ;;  %v7197_v12 = vpop.permute.xlu0 %915 }
  0xbf   :  { %1419 = vrot.lane.b32.xlu1 %v7186_v8, %s6690_s22  ;;  %1165 = vrot.lane.b32.xlu0 %v768_v5, %s6689_s21  ;;  %v251_v5 = vld [vmem:[#allocation2 + $0x8] sm:$0xff] }
  0xc1   :  { %v7202_v13 = vpop.permute.xlu1 %921  ;;  %v7204_v14 = vpop.permute.xlu0 %919 }
  0xc3   :  { %2439 = vrot.lane.b32.xlu1 %v7024_v28, %s6694_s13  ;;  %2185 = vrot.lane.b32.xlu0 %v7206_v15, %s6693_s25 }
  0xc5   :  { %v7216_v17 = vpop.permute.xlu1 %925  ;;  %v7218_v18 = vpop.permute.xlu0 %923 }
  0xc7   :  { %1675 = vrot.lane.b32.xlu1 %v7024_v28, %s6691_s23  ;;  %1421 = vrot.lane.b32.xlu0 %v7206_v15, %s6690_s22 }
  0xc9   :  { %v7224_v20 = vpop.permute.xlu1 %1149  ;;  %v1148_v21 = vpop.permute.xlu0 %1147 }
  0xca   :  { %v2940_v53 = vsel %vm2939_vm6, %v2875_v49, %v1148_v21 }
  0xcb   :  { %2695 = vrot.lane.b32.xlu1 %v769_v19, %s6696_s1  ;;  %2441 = vrot.lane.b32.xlu0 %v7022_v27, %s6694_s13 }
  0xcd   :  { %v7233_v23 = vpop.permute.xlu1 %1405  ;;  %v1404_v24 = vpop.permute.xlu0 %1403 }
  0xce   :  { %v3005_v56 = vsel %vm3004_vm7, %v2940_v53, %v1404_v24 }
  0xcf   :  { %1931 = vrot.lane.b32.xlu1 %v769_v19, %s6692_s24  ;;  %1677 = vrot.lane.b32.xlu0 %v7022_v27, %s6691_s23 }
  0xd1   :  { %v1662_v26 = vpop.permute.xlu1 %1661  ;;  %v1660_v28 = vpop.permute.xlu0 %1659 }
  0xd3   :  { %1167 = vrot.lane.b32.xlu1 %v769_v19, %s6689_s21  ;;  %2697 = vrot.lane.b32.xlu0 %v770_v25, %s6696_s1 }
  0xd5   :  { %v7240_v35 = vpop.permute.xlu1 %1151  ;;  %v1916_v36 = vpop.permute.xlu0 %1915 }
  0xd7   :  { %2187 = vrot.lane.b32.xlu1 %v7242_v39, %s6693_s25  ;;  %1933 = vrot.lane.b32.xlu0 %v770_v25, %s6692_s24 }
  0xd9   :  { %v2172_v41 = vpop.permute.xlu1 %2171  ;;  %v1918_v42 = vpop.permute.xlu0 %1917 }
  0xdb   :  { %1423 = vrot.lane.b32.xlu1 %v7242_v39, %s6690_s22  ;;  %1169 = vrot.lane.b32.xlu0 %v770_v25, %s6689_s21  ;;  %v2876_v25 = vsel %vm33_vm0, %v251_v5, %v7156_v61 }
  0xdd   :  { %v7250_v27 = vpop.permute.xlu1 %1407  ;;  %v7252_v43 = vpop.permute.xlu0 %1153 }
  0xdf   :  { %2443 = vrot.lane.b32.xlu1 %v7032_v30, %s6694_s13  ;;  %2189 = vrot.lane.b32.xlu0 %v7254_v44, %s6693_s25 }
  0xe1   :  { %v2428_v47 = vpop.permute.xlu1 %2427  ;;  %v2174_v48 = vpop.permute.xlu0 %2173 }
  0xe3   :  { %1679 = vrot.lane.b32.xlu1 %v7032_v30, %s6691_s23  ;;  %1425 = vrot.lane.b32.xlu0 %v7254_v44, %s6690_s22  ;;  %v3070_v30 = vsel %vm3069_vm8, %v3005_v56, %v1660_v28  ;;  %v142_v28 = vld [vmem:[%s10396_s0 + $0xa8] sm:$0xff] }
  0xe4   :  { %v3135_v63 = vsel %vm3134_vm9, %v3070_v30, %v1916_v36  ;;  %v2941_v36 = vsel %vm2939_vm6, %v2876_v25, %v7224_v20  ;;  %207 = vst.msk [vmem:[#allocation2 + $0x111] sm:$0xff] %vm33_vm0, %v142_v28  ;;  %v7304_v30 = vld [vmem:[#allocation2 + $0xa8] sm:$0xff] }
  0xe5   :  { %v1664_v59 = vpop.permute.xlu1 %1663  ;;  %v7272_v62 = vpop.permute.xlu0 %1409  ;;  %v3200_v16 = vsel %vm3199_vm10, %v3135_v63, %v2172_v41  ;;  %v772_v41 = vld [vmem:[#allocation2 + $0x9a] sm:$0xff]  ;;  %v3006_v61 = vsel %vm3004_vm7, %v2941_v36, %v7233_v23  ;;  %v7318_v63 = vld [vmem:[#allocation2 + $0xb0] sm:$0xff] }
  0xe6   :  { %v3265_v19 = vsel %vm3264_vm11, %v3200_v16, %v2428_v47  ;;  %v3071_v49 = vsel %vm3069_vm8, %v3006_v61, %v1662_v26  ;;  %v2878_v61 = vsel %vm33_vm0, %v7056_v37, %v7154_v60 }
  0xe7   :  { %2699 = vrot.lane.b32.xlu1 %v771_v54, %s6696_s1  ;;  %2445 = vrot.lane.b32.xlu0 %v7030_v29, %s6694_s13 }
  0xe9   :  { %v2684_v21 = vpop.permute.xlu1 %2683  ;;  %v2430_v22 = vpop.permute.xlu0 %2429 }
  0xea   :  { %v3330_v24 = vsel %vm3329_vm12, %v3265_v19, %v2684_v21  ;;  %v2877_v19 = vsel %vm33_vm0, %v7058_v38, %v7146_v58 }
  0xeb   :  { %1935 = vrot.lane.b32.xlu1 %v771_v54, %s6692_s24  ;;  %1681 = vrot.lane.b32.xlu0 %v7030_v29, %s6691_s23  ;;  %v3136_v29 = vsel %vm3134_vm9, %v3071_v49, %v1918_v42  ;;  %v2942_v21 = vsel %vm2939_vm6, %v2877_v19, %v7240_v35  ;;  %v774_v49 = vld [vmem:[#allocation2 + $0xb2] sm:$0xff] }
  0xec   :  { %6113 = vmatprep.mubr.msk.f32.mxu0 %vm3405_vm13, %v3330_v24  ;;  %v3201_v20 = vsel %vm3199_vm10, %v3136_v29, %v2174_v48  ;;  %v3007_v24 = vsel %vm3004_vm7, %v2942_v21, %v7250_v27  ;;  %v7386_v21 = vld [vmem:[#allocation2 + $0xc8] sm:$0xff] }
  0xed   :  { %v1920_v46 = vpop.permute.xlu1 %1919  ;;  %v1666_v47 = vpop.permute.xlu0 %1665  ;;  %v3266_v50 = vsel %vm3264_vm11, %v3201_v20, %v2430_v22  ;;  %v773_v22 = vld [vmem:[#allocation2 + $0xaa] sm:$0xff]  ;;  %v3072_v36 = vsel %vm3069_vm8, %v3007_v24, %v1664_v59 }
  0xee   :  { %v3137_v38 = vsel %vm3134_vm9, %v3072_v36, %v1920_v46  ;;  %v2943_v46 = vsel %vm2939_vm6, %v2878_v61, %v7252_v43  ;;  %v2879_v36 = vsel %vm33_vm0, %v7068_v40, %v7168_v1  ;;  %v2880_v61 = vsel %vm33_vm0, %v7082_v45, %v7166_v0 }
  0xef   :  { %1171 = vrot.lane.b32.xlu1 %v771_v54, %s6689_s21  ;;  %2701 = vrot.lane.b32.xlu0 %v772_v41, %s6696_s1  ;;  %v3008_v29 = vsel %vm3004_vm7, %v2943_v46, %v7272_v62 }
  0xf1   :  { %v7302_v53 = vpop.permute.xlu1 %1155  ;;  %v2686_v56 = vpop.permute.xlu0 %2685 }
  0xf2   :  { %v3331_v23 = vsel %vm3329_vm12, %v3266_v50, %v2686_v56  ;;  %v3073_v56 = vsel %vm3069_vm8, %v3008_v29, %v1666_v47  ;;  %v7372_v47 = vld [vmem:[#allocation2 + $0xc0] sm:$0xff] }
  0xf3   :  { %2191 = vrot.lane.b32.xlu1 %v7304_v30, %s6693_s25  ;;  %1937 = vrot.lane.b32.xlu0 %v772_v41, %s6692_s24 }
  0xf4   :  { %6114 = vmatmul.mubr.msk.f32.vlgmr.msra.gmra.mrb[0].mxu0 %vm3405_vm13, %v3331_v23 }
  0xf5   :  { %v2176_v26 = vpop.permute.xlu1 %2175  ;;  %v1922_v42 = vpop.permute.xlu0 %1921 }
  0xf6   :  { %v3202_v58 = vsel %vm3199_vm10, %v3137_v38, %v2176_v26  ;;  %v3138_v37 = vsel %vm3134_vm9, %v3073_v56, %v1922_v42  ;;  %v2944_v38 = vsel %vm2939_vm6, %v2879_v36, %v7302_v53  ;;  %v7433_v56 = vld [vmem:[#allocation2 + $0xd8] sm:$0xff] }
  0xf7   :  { %1427 = vrot.lane.b32.xlu1 %v7304_v30, %s6690_s22  ;;  %1173 = vrot.lane.b32.xlu0 %v772_v41, %s6689_s21 }
  0xf9   :  { %v7314_v48 = vpop.permute.xlu1 %1411  ;;  %v7316_v54 = vpop.permute.xlu0 %1157 }
  0xfa   :  { %v2945_v46 = vsel %vm2939_vm6, %v2880_v61, %v7316_v54 }
  0xfb   :  { %2447 = vrot.lane.b32.xlu1 %v7040_v32, %s6694_s13  ;;  %2193 = vrot.lane.b32.xlu0 %v7318_v63, %s6693_s25 }
  0xfd   :  { %v2432_v5 = vpop.permute.xlu1 %2431  ;;  %v2178_v16 = vpop.permute.xlu0 %2177 }
  0xfe   :  { %v3267_v35 = vsel %vm3264_vm11, %v3202_v58, %v2432_v5  ;;  %v3203_v60 = vsel %vm3199_vm10, %v3138_v37, %v2178_v16  ;;  %v3009_v58 = vsel %vm3004_vm7, %v2944_v38, %v7314_v48  ;;  %v2881_v38 = vsel %vm33_vm0, %v7106_v51, %v7175_v4 }
  0xff   :  { %1683 = vrot.lane.b32.xlu1 %v7040_v32, %s6691_s23  ;;  %1429 = vrot.lane.b32.xlu0 %v7318_v63, %s6690_s22  ;;  %v143_v32 = vld [vmem:[%s10396_s0 + $0xb0] sm:$0xff] }
 0x100   :  { %208 = vst.msk [vmem:[#allocation2 + $0x121] sm:$0xff] %vm33_vm0, %v143_v32  ;;  %v775_v32 = vld [vmem:[#allocation2 + $0xc2] sm:$0xff] }
 0x101   :  { %v1668_v25 = vpop.permute.xlu1 %1667  ;;  %v7335_v28 = vpop.permute.xlu0 %1413 }
 0x102   :  { %v3010_v45 = vsel %vm3004_vm7, %v2945_v46, %v7335_v28 }
 0x103   :  { %2703 = vrot.lane.b32.xlu1 %v773_v22, %s6696_s1  ;;  %2449 = vrot.lane.b32.xlu0 %v7038_v31, %s6694_s13 }
 0x105   :  { %v2688_v27 = vpop.permute.xlu1 %2687  ;;  %v2434_v41 = vpop.permute.xlu0 %2433 }
 0x106   :  { %v3332_v59 = vsel %vm3329_vm12, %v3267_v35, %v2688_v27  ;;  %v3268_v43 = vsel %vm3264_vm11, %v3203_v60, %v2434_v41  ;;  %v3074_v41 = vsel %vm3069_vm8, %v3009_v58, %v1668_v25  ;;  %v145_v25 = vld [vmem:[%s10396_s0 + $0xc0] sm:$0xff] }
 0x107   :  { %1939 = vrot.lane.b32.xlu1 %v773_v22, %s6692_s24  ;;  %1685 = vrot.lane.b32.xlu0 %v7038_v31, %s6691_s23  ;;  %v144_v31 = vld [vmem:[%s10396_s0 + $0xb8] sm:$0xff]  ;;  %210 = vst.msk [vmem:[#allocation2 + $0x139] sm:$0xff] %vm33_vm0, %v145_v25  ;;  %v778_v25 = vld [vmem:[#allocation2 + $0xe2] sm:$0xff] }
 0x108   :  { %6116 = vmatprep.mubr.msk.f32.mxu0 %vm3405_vm13, %v3332_v59  ;;  %209 = vst.msk [vmem:[#allocation2 + $0x129] sm:$0xff] %vm33_vm0, %v144_v31  ;;  %v777_v58 = vld [vmem:[#allocation2 + $0xda] sm:$0xff] }
 0x109   :  { %v1924_v20 = vpop.permute.xlu1 %1923  ;;  %v1670_v50 = vpop.permute.xlu0 %1669 }
 0x10a   :  { %v3139_v40 = vsel %vm3134_vm9, %v3074_v41, %v1924_v20  ;;  %v3075_v20 = vsel %vm3069_vm8, %v3010_v45, %v1670_v50  ;;  %v146_v50 = vld [vmem:[%s10396_s0 + $0xc8] sm:$0xff] }
 0x10b   :  { %1175 = vrot.lane.b32.xlu1 %v773_v22, %s6689_s21  ;;  %2705 = vrot.lane.b32.xlu0 %v774_v49, %s6696_s1  ;;  %211 = vst.msk [vmem:[#allocation2 + $0x141] sm:$0xff] %vm33_vm0, %v146_v50  ;;  %v714_v41 = vld [vmem:[#allocation2 + $0xe1] sm:$0xff] }
 0x10d   :  { %v7370_v62 = vpop.permute.xlu1 %1159  ;;  %v2690_v23 = vpop.permute.xlu0 %2689 }
 0x10e   :  { %v3333_v26 = vsel %vm3329_vm12, %v3268_v43, %v2690_v23 }
 0x10f   :  { %2195 = vrot.lane.b32.xlu1 %v7372_v47, %s6693_s25  ;;  %1941 = vrot.lane.b32.xlu0 %v774_v49, %s6692_s24 }
 0x110   :  { %6117 = vmatmul.mubr.msk.f32.gmra.mrb[2].mxu0 %vm3405_vm13, %v3333_v26  ;;  %v713_v26 = vld [vmem:[#allocation2 + $0xd9] sm:$0xff] }
 0x111   :  { %v2180_v42 = vpop.permute.xlu1 %2179  ;;  %v1926_v5 = vpop.permute.xlu0 %1925 }
 0x113   :  { %1431 = vrot.lane.b32.xlu1 %v7372_v47, %s6690_s22  ;;  %1177 = vrot.lane.b32.xlu0 %v774_v49, %s6689_s21  ;;  %v776_v49 = vld [vmem:[#allocation2 + $0xca] sm:$0xff] }
 0x115   :  { %v7382_v16 = vpop.permute.xlu1 %1415  ;;  %v7384_v19 = vpop.permute.xlu0 %1161 }
 0x117   :  { %2451 = vrot.lane.b32.xlu1 %v7048_v34, %s6694_s13  ;;  %2197 = vrot.lane.b32.xlu0 %v7386_v21, %s6693_s25 }
 0x119   :  { %v2436_v22 = vpop.permute.xlu1 %2435  ;;  %v2182_v24 = vpop.permute.xlu0 %2181 }
 0x11b   :  { %1687 = vrot.lane.b32.xlu1 %v7048_v34, %s6691_s23  ;;  %1433 = vrot.lane.b32.xlu0 %v7386_v21, %s6690_s22  ;;  %v3204_v34 = vsel %vm3199_vm10, %v3139_v40, %v2180_v42  ;;  %v7450_v42 = vld [vmem:[#allocation2 + $0xe0] sm:$0xff] }
 0x11c   :  { %v3269_v1 = vsel %vm3264_vm11, %v3204_v34, %v2436_v22 }
 0x11d   :  { %v1672_v35 = vpop.permute.xlu1 %1671  ;;  %v7403_v27 = vpop.permute.xlu0 %1417 }
 0x11f   :  { %2707 = vrot.lane.b32.xlu1 %v775_v32, %s6696_s1  ;;  %2453 = vrot.lane.b32.xlu0 %v7046_v33, %s6694_s13 }
 0x121   :  { %v2692_v53 = vpop.permute.xlu1 %2691  ;;  %v2438_v59 = vpop.permute.xlu0 %2437 }
 0x122   :  { %v3334_v48 = vsel %vm3329_vm12, %v3269_v1, %v2692_v53 }
 0x123   :  { %1943 = vrot.lane.b32.xlu1 %v775_v32, %s6692_s24  ;;  %1689 = vrot.lane.b32.xlu0 %v7046_v33, %s6691_s23  ;;  %v3140_v33 = vsel %vm3134_vm9, %v3075_v20, %v1926_v5 }
 0x124   :  { %6119 = vmatprep.mubr.msk.f32.mxu0 %vm3405_vm13, %v3334_v48  ;;  %v3205_v54 = vsel %vm3199_vm10, %v3140_v33, %v2182_v24 }
 0x125   :  { %v1928_v0 = vpop.permute.xlu1 %1927  ;;  %v1674_v29 = vpop.permute.xlu0 %1673  ;;  %v3270_v37 = vsel %vm3264_vm11, %v3205_v54, %v2438_v59  ;;  %v7504_v54 = vld [vmem:[#allocation2 + $0xf0] sm:$0xff] }
 0x127   :  { %1179 = vrot.lane.b32.xlu1 %v775_v32, %s6689_s21  ;;  %2709 = vrot.lane.b32.xlu0 %v776_v49, %s6696_s1  ;;  %v2946_v32 = vsel %vm2939_vm6, %v2881_v38, %v7370_v62  ;;  %v2883_v38 = vsel %vm33_vm0, %v7132_v55, %v7182_v7  ;;  %v779_v7 = vld [vmem:[#allocation2 + $0xf2] sm:$0xff] }
 0x128   :  { %v3011_v40 = vsel %vm3004_vm7, %v2946_v32, %v7382_v16  ;;  %v2882_v16 = vsel %vm33_vm0, %v7114_v52, %v7173_v3  ;;  %v147_v52 = vld [vmem:[%s10396_s0 + $0xd0] sm:$0xff] }
 0x129   :  { %v7436_v31 = vpop.permute.xlu1 %1163  ;;  %v2694_v60 = vpop.permute.xlu0 %2693  ;;  %v3076_v53 = vsel %vm3069_vm8, %v3011_v40, %v1672_v35  ;;  %v2947_v35 = vsel %vm2939_vm6, %v2882_v16, %v7384_v19  ;;  %212 = vst.msk [vmem:[#allocation2 + $0x151] sm:$0xff] %vm33_vm0, %v147_v52 }
 0x12a   :  { %v3335_v28 = vsel %vm3329_vm12, %v3270_v37, %v2694_v60  ;;  %v3141_v51 = vsel %vm3134_vm9, %v3076_v53, %v1928_v0  ;;  %v3012_v46 = vsel %vm3004_vm7, %v2947_v35, %v7403_v27  ;;  %v2948_v32 = vsel %vm2939_vm6, %v2883_v38, %v7436_v31 }
 0x12b   :  { %2199 = vrot.lane.b32.xlu1 %v7433_v56, %s6693_s25  ;;  %1945 = vrot.lane.b32.xlu0 %v776_v49, %s6692_s24  ;;  %v3077_v0 = vsel %vm3069_vm8, %v3012_v46, %v1674_v29 }
 0x12c   :  { %6120 = vmatmul.mubr.msk.f32.gmra.mrb[4].mxu0 %vm3405_vm13, %v3335_v28  ;;  %v148_v28 = vld [vmem:[%s10396_s0 + $0xd8] sm:$0xff] }
 0x12d   :  { %v2184_v43 = vpop.permute.xlu1 %2183  ;;  %v1930_v23 = vpop.permute.xlu0 %1929  ;;  %213 = vst.msk [vmem:[#allocation2 + $0x159] sm:$0xff] %vm33_vm0, %v148_v28  ;;  %v2885_v28 = vsel %vm33_vm0, %v7186_v8, %v7190_v10 }
 0x12e   :  { %v3206_v4 = vsel %vm3199_vm10, %v3141_v51, %v2184_v43  ;;  %v3142_v20 = vsel %vm3134_vm9, %v3077_v0, %v1930_v23  ;;  %v715_v23 = vld [vmem:[#allocation2 + $0xf1] sm:$0xff] }
 0x12f   :  { %1435 = vrot.lane.b32.xlu1 %v7433_v56, %s6690_s22  ;;  %1181 = vrot.lane.b32.xlu0 %v776_v49, %s6689_s21 }
 0x131   :  { %v7452_v5 = vpop.permute.xlu1 %1419  ;;  %v7454_v22 = vpop.permute.xlu0 %1165 }
 0x133   :  { %2455 = vrot.lane.b32.xlu1 %v713_v26, %s6694_s13  ;;  %2201 = vrot.lane.b32.xlu0 %v7450_v42, %s6693_s25 }
 0x135   :  { %v2440_v24 = vpop.permute.xlu1 %2439  ;;  %v2186_v36 = vpop.permute.xlu0 %2185 }
 0x136   :  { %v3271_v62 = vsel %vm3264_vm11, %v3206_v4, %v2440_v24  ;;  %v3207_v3 = vsel %vm3199_vm10, %v3142_v20, %v2186_v36  ;;  %v716_v4 = vld [vmem:[#allocation2 + $0xf9] sm:$0xff] }
 0x137   :  { %1691 = vrot.lane.b32.xlu1 %v713_v26, %s6691_s23  ;;  %1437 = vrot.lane.b32.xlu0 %v7450_v42, %s6690_s22 }
 0x139   :  { %v1676_v34 = vpop.permute.xlu1 %1675  ;;  %v7469_v1 = vpop.permute.xlu0 %1421 }
 0x13b   :  { %2711 = vrot.lane.b32.xlu1 %v777_v58, %s6696_s1  ;;  %2457 = vrot.lane.b32.xlu0 %v714_v41, %s6694_s13 }
 0x13d   :  { %v2696_v59 = vpop.permute.xlu1 %2695  ;;  %v2442_v48 = vpop.permute.xlu0 %2441 }
 0x13e   :  { %v3336_v61 = vsel %vm3329_vm12, %v3271_v62, %v2696_v59  ;;  %v3272_v19 = vsel %vm3264_vm11, %v3207_v3, %v2442_v48  ;;  %v7578_v3 = vld [vmem:[#allocation2 + $0x108] sm:$0xff] }
 0x13f   :  { %1693 = vrot.lane.b32.xlu1 %v714_v41, %s6691_s23  ;;  %927 = vrot.lane.b32.xlu0 %v713_v26, %s6688_s20  ;;  %v7528_v26 = vld [vmem:[#allocation2 + $0xf8] sm:$0xff] }
 0x140   :  { %6122 = vmatprep.mubr.msk.f32.mxu0 %vm3405_vm13, %v3336_v61 }
 0x141   :  { %v1932_v49 = vpop.permute.xlu1 %1931  ;;  %v1678_v45 = vpop.permute.xlu0 %1677 }
 0x143   :  { %2713 = vrot.lane.b32.xlu1 %v778_v25, %s6696_s1  ;;  %1947 = vrot.lane.b32.xlu0 %v777_v58, %s6692_s24 }
 0x145   :  { %v7498_v27 = vpop.permute.xlu1 %1167  ;;  %v2698_v33 = vpop.permute.xlu0 %2697 }
 0x146   :  { %v3337_v29 = vsel %vm3329_vm12, %v3272_v19, %v2698_v33 }
 0x147   :  { %1183 = vrot.lane.b32.xlu1 %v777_v58, %s6689_s21  ;;  %929 = vrot.lane.b32.xlu0 %v714_v41, %s6688_s20  ;;  %v3013_v58 = vsel %vm3004_vm7, %v2948_v32, %v7452_v5 }
 0x148   :  { %6123 = vmatmul.mubr.msk.f32.gmra.mrb[6].mxu0 %vm3405_vm13, %v3337_v29  ;;  %v3078_v53 = vsel %vm3069_vm8, %v3013_v58, %v1676_v34  ;;  %v2884_v34 = vsel %vm33_vm0, %v7143_v57, %v7180_v6  ;;  %v780_v6 = vld [vmem:[#allocation2 + $0xfa] sm:$0xff]  ;;  %v150_v29 = vld [vmem:[%s10396_s0 + $0xe8] sm:$0xff] }
 0x149   :  { %v2188_v37 = vpop.permute.xlu1 %2187  ;;  %v1934_v60 = vpop.permute.xlu0 %1933  ;;  %v3143_v51 = vsel %vm3134_vm9, %v3078_v53, %v1932_v49  ;;  %v2949_v48 = vsel %vm2939_vm6, %v2884_v34, %v7454_v22  ;;  %215 = vst.msk [vmem:[#allocation2 + $0x171] sm:$0xff] %vm33_vm0, %v150_v29 }
 0x14a   :  { %v3208_v55 = vsel %vm3199_vm10, %v3143_v51, %v2188_v37  ;;  %v3014_v61 = vsel %vm3004_vm7, %v2949_v48, %v7469_v1 }
 0x14b   :  { %2203 = vrot.lane.b32.xlu1 %v7504_v54, %s6693_s25  ;;  %1949 = vrot.lane.b32.xlu0 %v778_v25, %s6692_s24 }
 0x14d   :  { %v7521_v50 = vpop.permute.xlu1 %1423  ;;  %v7523_v43 = vpop.permute.xlu0 %1169 }
 0x14f   :  { %1439 = vrot.lane.b32.xlu1 %v7504_v54, %s6690_s22  ;;  %1185 = vrot.lane.b32.xlu0 %v778_v25, %s6689_s21  ;;  %v3079_v25 = vsel %vm3069_vm8, %v3014_v61, %v1678_v45  ;;  %v149_v45 = vld [vmem:[%s10396_s0 + $0xe0] sm:$0xff] }
 0x150   :  { %v3144_v46 = vsel %vm3134_vm9, %v3079_v25, %v1934_v60  ;;  %214 = vst.msk [vmem:[#allocation2 + $0x169] sm:$0xff] %vm33_vm0, %v149_v45  ;;  %v2887_v45 = vsel %vm33_vm0, %v7242_v39, %v7197_v12 }
 0x151   :  { %v2444_v24 = vpop.permute.xlu1 %2443  ;;  %v2190_v36 = vpop.permute.xlu0 %2189 }
 0x152   :  { %v3273_v31 = vsel %vm3264_vm11, %v3208_v55, %v2444_v24  ;;  %v3209_v57 = vsel %vm3199_vm10, %v3144_v46, %v2190_v36  ;;  %v7599_v24 = vld [vmem:[#allocation2 + $0x109] sm:$0xff] }
 0x153   :  { %2459 = vrot.lane.b32.xlu1 %v715_v23, %s6694_s13  ;;  %2205 = vrot.lane.b32.xlu0 %v7528_v26, %s6693_s25  ;;  %v7601_v36 = vld [vmem:[#allocation2 + $0x110] sm:$0xff] }
 0x154   :  { %v151_v46 = vld [vmem:[%s10396_s0 + $0xf0] sm:$0xff] }
 0x155   :  { %v1680_v41 = vpop.permute.xlu1 %1679  ;;  %v7540_v40 = vpop.permute.xlu0 %1425  ;;  %216 = vst.msk [vmem:[#allocation2 + $0x181] sm:$0xff] %vm33_vm0, %v151_v46 }
 0x157   :  { %1695 = vrot.lane.b32.xlu1 %v715_v23, %s6691_s23  ;;  %1441 = vrot.lane.b32.xlu0 %v7528_v26, %s6690_s22 }
 0x159   :  { %v2700_v62 = vpop.permute.xlu1 %2699  ;;  %v2446_v5 = vpop.permute.xlu0 %2445 }
 0x15a   :  { %v3338_v59 = vsel %vm3329_vm12, %v3273_v31, %v2700_v62  ;;  %v3274_v22 = vsel %vm3264_vm11, %v3209_v57, %v2446_v5  ;;  %v7630_v31 = vld [vmem:[#allocation2 + $0x111] sm:$0xff] }
 0x15b   :  { %2715 = vrot.lane.b32.xlu1 %v779_v7, %s6696_s1  ;;  %2461 = vrot.lane.b32.xlu0 %v716_v4, %s6694_s13 }
 0x15c   :  { %6125 = vmatprep.mubr.msk.f32.mxu0 %vm3405_vm13, %v3338_v59 }
 0x15d   :  { %v1936_v16 = vpop.permute.xlu1 %1935  ;;  %v1682_v35 = vpop.permute.xlu0 %1681 }
 0x15f   :  { %1697 = vrot.lane.b32.xlu1 %v716_v4, %s6691_s23  ;;  %931 = vrot.lane.b32.xlu0 %v715_v23, %s6688_s20  ;;  %v2950_v23 = vsel %vm2939_vm6, %v2885_v28, %v7498_v27  ;;  %v719_v28 = vld [vmem:[#allocation2 + $0x121] sm:$0xff] }
 0x160   :  { %v3015_v38 = vsel %vm3004_vm7, %v2950_v23, %v7521_v50  ;;  %v7779_v23 = vld [vmem:[#allocation2 + $0x128] sm:$0xff] }
 0x161   :  { %v7566_v49 = vpop.permute.xlu1 %1171  ;;  %v2702_v0 = vpop.permute.xlu0 %2701  ;;  %v3080_v8 = vsel %vm3069_vm8, %v3015_v38, %v1680_v41  ;;  %v2886_v41 = vsel %vm33_vm0, %v7206_v15, %v7188_v9 }
 0x162   :  { %v3339_v1 = vsel %vm3329_vm12, %v3274_v22, %v2702_v0  ;;  %v3145_v10 = vsel %vm3134_vm9, %v3080_v8, %v1936_v16  ;;  %v782_v16 = vld [vmem:[#allocation2 + $0x112] sm:$0xff]  ;;  %v7753_v22 = vld [vmem:[#allocation2 + $0x120] sm:$0xff] }
 0x163   :  { %2717 = vrot.lane.b32.xlu1 %v780_v6, %s6696_s1  ;;  %1951 = vrot.lane.b32.xlu0 %v779_v7, %s6692_s24 }
 0x164   :  { %6126 = vmatmul.mubr.msk.f32.gmra.mrb[8].mxu0 %vm3405_vm13, %v3339_v1 }
 0x165   :  { %v2192_v20 = vpop.permute.xlu1 %2191  ;;  %v1938_v52 = vpop.permute.xlu0 %1937 }
 0x166   :  { %v3210_v27 = vsel %vm3199_vm10, %v3145_v10, %v2192_v20  ;;  %v152_v20 = vld [vmem:[%s10396_s0 + $0xf8] sm:$0xff] }
 0x167   :  { %1187 = vrot.lane.b32.xlu1 %v779_v7, %s6689_s21  ;;  %933 = vrot.lane.b32.xlu0 %v716_v4, %s6688_s20  ;;  %v2951_v7 = vsel %vm2939_vm6, %v2886_v41, %v7523_v43  ;;  %v7628_v4 = vld [vmem:[#allocation2 + $0x10a] sm:$0xff]  ;;  %217 = vst.msk [vmem:[#allocation2 + $0x189] sm:$0xff] %vm33_vm0, %v152_v20  ;;  %v2890_v20 = vsel %vm33_vm0, %v7318_v63, %v7202_v13 }
 0x168   :  { %v3016_v62 = vsel %vm3004_vm7, %v2951_v7, %v7540_v40 }
 0x169   :  { %v7580_v19 = vpop.permute.xlu1 %1427  ;;  %v7582_v33 = vpop.permute.xlu0 %1173  ;;  %v3081_v15 = vsel %vm3069_vm8, %v3016_v62, %v1682_v35 }
 0x16a   :  { %v3146_v59 = vsel %vm3134_vm9, %v3081_v15, %v1938_v52  ;;  %v2952_v52 = vsel %vm2939_vm6, %v2887_v45, %v7566_v49 }
 0x16b   :  { %2207 = vrot.lane.b32.xlu1 %v7578_v3, %s6693_s25  ;;  %1953 = vrot.lane.b32.xlu0 %v780_v6, %s6692_s24  ;;  %v3017_v29 = vsel %vm3004_vm7, %v2952_v52, %v7580_v19  ;;  %v154_v52 = vld [vmem:[%s10396_s0 + $0x108] sm:$0xff] }
 0x16c   :  { %219 = vst.msk [vmem:[#allocation2 + $0x1d1] sm:$0xff] %vm33_vm0, %v154_v52  ;;  %v7940_v52 = vld [vmem:[#allocation2 + $0x158] sm:$0xff] }
 0x16d   :  { %v2448_v37 = vpop.permute.xlu1 %2447  ;;  %v2194_v60 = vpop.permute.xlu0 %2193 }
 0x16e   :  { %v3275_v53 = vsel %vm3264_vm11, %v3210_v27, %v2448_v37  ;;  %v3211_v43 = vsel %vm3199_vm10, %v3146_v59, %v2194_v60 }
 0x16f   :  { %1443 = vrot.lane.b32.xlu1 %v7578_v3, %s6690_s22  ;;  %1189 = vrot.lane.b32.xlu0 %v780_v6, %s6689_s21 }
 0x171   :  { %v7605_v32 = vpop.permute.xlu1 %1683  ;;  %v7607_v58 = vpop.permute.xlu0 %1429 }
 0x172   :  { %v3082_v12 = vsel %vm3069_vm8, %v3017_v29, %v7605_v32  ;;  %v2888_v32 = vsel %vm33_vm0, %v7254_v44, %v7195_v11 }
 0x173   :  { %2463 = vrot.lane.b32.xlu1 %v7599_v24, %s6694_s13  ;;  %2209 = vrot.lane.b32.xlu0 %v7601_v36, %s6693_s25  ;;  %v2953_v10 = vsel %vm2939_vm6, %v2888_v32, %v7582_v33  ;;  %v783_v33 = vld [vmem:[#allocation2 + $0x122] sm:$0xff] }
 0x174   :  { %v3018_v27 = vsel %vm3004_vm7, %v2953_v10, %v7607_v58  ;;  %v722_v32 = vld [vmem:[#allocation2 + $0x141] sm:$0xff] }
 0x175   :  { %v2704_v51 = vpop.permute.xlu1 %2703  ;;  %v2450_v50 = vpop.permute.xlu0 %2449 }
 0x176   :  { %v3340_v55 = vsel %vm3329_vm12, %v3275_v53, %v2704_v51  ;;  %v3276_v40 = vsel %vm3264_vm11, %v3211_v43, %v2450_v50 }
 0x177   :  { %1699 = vrot.lane.b32.xlu1 %v7599_v24, %s6691_s23  ;;  %1445 = vrot.lane.b32.xlu0 %v7601_v36, %s6690_s22 }
 0x178   :  { %6128 = vmatprep.mubr.msk.f32.mxu0 %vm3405_vm13, %v3340_v55  ;;  %v720_v55 = vld [vmem:[#allocation2 + $0x129] sm:$0xff] }
 0x179   :  { %v7634_v5 = vpop.permute.xlu1 %1939  ;;  %v7636_v9 = vpop.permute.xlu0 %1685 }
 0x17a   :  { %v3147_v39 = vsel %vm3134_vm9, %v3082_v12, %v7634_v5  ;;  %v3083_v50 = vsel %vm3069_vm8, %v3018_v27, %v7636_v9  ;;  %v784_v5 = vld [vmem:[#allocation2 + $0x12a] sm:$0xff]  ;;  %v7855_v12 = vld [vmem:[#allocation2 + $0x140] sm:$0xff] }
 0x17b   :  { %2719 = vrot.lane.b32.xlu1 %v7628_v4, %s6696_s1  ;;  %2465 = vrot.lane.b32.xlu0 %v7630_v31, %s6694_s13 }
 0x17d   :  { %v7650_v34 = vpop.permute.xlu1 %1175  ;;  %v2706_v48 = vpop.permute.xlu0 %2705 }
 0x17e   :  { %v3341_v61 = vsel %vm3329_vm12, %v3276_v40, %v2706_v48  ;;  %v2889_v40 = vsel %vm33_vm0, %v7304_v30, %v7204_v14  ;;  %v153_v48 = vld [vmem:[%s10396_s0 + $0x100] sm:$0xff] }
 0x17f   :  { %1701 = vrot.lane.b32.xlu1 %v7630_v31, %s6691_s23  ;;  %935 = vrot.lane.b32.xlu0 %v7599_v24, %s6688_s20  ;;  %218 = vst.msk [vmem:[#allocation2 + $0x1c9] sm:$0xff] %vm33_vm0, %v153_v48 }
 0x180   :  { %6129 = vmatmul.mubr.msk.f32.gmra.mrb[10].mxu0 %vm3405_vm13, %v3341_v61  ;;  %v2954_v61 = vsel %vm2939_vm6, %v2889_v40, %v7650_v34 }
 0x181   :  { %v2196_v35 = vpop.permute.xlu1 %2195  ;;  %v1942_v25 = vpop.permute.xlu0 %1941 }
 0x182   :  { %v3212_v49 = vsel %vm3199_vm10, %v3147_v39, %v2196_v35  ;;  %v3148_v11 = vsel %vm3134_vm9, %v3083_v50, %v1942_v25  ;;  %v786_v50 = vld [vmem:[#allocation2 + $0x142] sm:$0xff] }
 0x183   :  { %2721 = vrot.lane.b32.xlu1 %v782_v16, %s6696_s1  ;;  %1955 = vrot.lane.b32.xlu0 %v7628_v4, %s6692_s24 }
 0x185   :  { %v7745_v57 = vpop.permute.xlu1 %1431  ;;  %v7747_v6 = vpop.permute.xlu0 %1177 }
 0x186   :  { %v3019_v35 = vsel %vm3004_vm7, %v2954_v61, %v7745_v57  ;;  %v2955_v29 = vsel %vm2939_vm6, %v2890_v20, %v7747_v6  ;;  %v723_v20 = vld [vmem:[#allocation2 + $0x151] sm:$0xff] }
 0x187   :  { %1191 = vrot.lane.b32.xlu1 %v7628_v4, %s6689_s21  ;;  %937 = vrot.lane.b32.xlu0 %v7630_v31, %s6688_s20 }
 0x189   :  { %v2452_v0 = vpop.permute.xlu1 %2451  ;;  %v2198_v1 = vpop.permute.xlu0 %2197 }
 0x18a   :  { %v3277_v19 = vsel %vm3264_vm11, %v3212_v49, %v2452_v0  ;;  %v3213_v44 = vsel %vm3199_vm10, %v3148_v11, %v2198_v1 }
 0x18b   :  { %2211 = vrot.lane.b32.xlu1 %v7753_v22, %s6693_s25  ;;  %1957 = vrot.lane.b32.xlu0 %v782_v16, %s6692_s24 }
 0x18d   :  { %v1688_v37 = vpop.permute.xlu1 %1687  ;;  %v7769_v60 = vpop.permute.xlu0 %1433 }
 0x18e   :  { %v3084_v30 = vsel %vm3069_vm8, %v3019_v35, %v1688_v37  ;;  %v721_v37 = vld [vmem:[#allocation2 + $0x139] sm:$0xff]  ;;  %v3020_v13 = vsel %vm3004_vm7, %v2955_v29, %v7769_v60 }
 0x18f   :  { %1447 = vrot.lane.b32.xlu1 %v7753_v22, %s6690_s22  ;;  %1193 = vrot.lane.b32.xlu0 %v782_v16, %s6689_s21  ;;  %v7826_v16 = vld [vmem:[#allocation2 + $0x138] sm:$0xff] }
 0x191   :  { %v2708_v24 = vpop.permute.xlu1 %2707  ;;  %v2454_v38 = vpop.permute.xlu0 %2453 }
 0x192   :  { %v3342_v8 = vsel %vm3329_vm12, %v3277_v19, %v2708_v24  ;;  %v3278_v41 = vsel %vm3264_vm11, %v3213_v44, %v2454_v38 }
 0x193   :  { %2467 = vrot.lane.b32.xlu1 %v719_v28, %s6694_s13  ;;  %2213 = vrot.lane.b32.xlu0 %v7779_v23, %s6693_s25 }
 0x194   :  { %6131 = vmatprep.mubr.msk.f32.mxu0 %vm3405_vm13, %v3342_v8  ;;  %v785_v8 = vld [vmem:[#allocation2 + $0x13a] sm:$0xff] }
 0x195   :  { %v1944_v53 = vpop.permute.xlu1 %1943  ;;  %v1690_v51 = vpop.permute.xlu0 %1689 }
 0x196   :  { %v3149_v46 = vsel %vm3134_vm9, %v3084_v30, %v1944_v53  ;;  %v3085_v49 = vsel %vm3069_vm8, %v3020_v13, %v1690_v51 }
 0x197   :  { %1703 = vrot.lane.b32.xlu1 %v719_v28, %s6691_s23  ;;  %1449 = vrot.lane.b32.xlu0 %v7779_v23, %s6690_s22 }
 0x199   :  { %v7802_v7 = vpop.permute.xlu1 %1179  ;;  %v2710_v58 = vpop.permute.xlu0 %2709 }
 0x19a   :  { %v3343_v4 = vsel %vm3329_vm12, %v3278_v41, %v2710_v58  ;;  %v7897_v58 = vld [vmem:[%s10398_s2] ss:$0 sm:$0xff] }
 0x19b   :  { %2723 = vrot.lane.b32.xlu1 %v783_v33, %s6696_s1  ;;  %2469 = vrot.lane.b32.xlu0 %v720_v55, %s6694_s13 }
 0x19c   :  { %6132 = vmatmul.mubr.msk.f32.gmra.mrb[12].mxu0 %vm3405_vm13, %v3343_v4  ;;  %v2891_v4 = vsel %vm33_vm0, %v7372_v47, %v7218_v18 }
 0x19d   :  { %v2200_v31 = vpop.permute.xlu1 %2199  ;;  %v1946_v62 = vpop.permute.xlu0 %1945 }
 0x19e   :  { %v3214_v34 = vsel %vm3199_vm10, %v3149_v46, %v2200_v31 }
 0x19f   :  { %1705 = vrot.lane.b32.xlu1 %v720_v55, %s6691_s23  ;;  %939 = vrot.lane.b32.xlu0 %v719_v28, %s6688_s20  ;;  %v3150_v28 = vsel %vm3134_vm9, %v3085_v49, %v1946_v62  ;;  %v2956_v62 = vsel %vm2939_vm6, %v2891_v4, %v7802_v7  ;;  %v157_v4 = vld [vmem:[%s10396_s0 + $0x120] sm:$0xff] }
 0x1a0   :  { %222 = vst.msk [vmem:[#allocation2 + $0x1f9] sm:$0xff] %vm33_vm0, %v157_v4 }
 0x1a1   :  { %v7810_v9 = vpop.permute.xlu1 %1435  ;;  %v7812_v15 = vpop.permute.xlu0 %1181 }
 0x1a2   :  { %v3021_v40 = vsel %vm3004_vm7, %v2956_v62, %v7810_v9  ;;  %v156_v9 = vld [vmem:[%s10396_s0 + $0x118] sm:$0xff] }
 0x1a3   :  { %2725 = vrot.lane.b32.xlu1 %v784_v5, %s6696_s1  ;;  %1959 = vrot.lane.b32.xlu0 %v783_v33, %s6692_s24  ;;  %221 = vst.msk [vmem:[#allocation2 + $0x1e9] sm:$0xff] %vm33_vm0, %v156_v9 }
 0x1a5   :  { %v2456_v59 = vpop.permute.xlu1 %2455  ;;  %v2202_v43 = vpop.permute.xlu0 %2201 }
 0x1a6   :  { %v3279_v0 = vsel %vm3264_vm11, %v3214_v34, %v2456_v59  ;;  %v3215_v6 = vsel %vm3199_vm10, %v3150_v28, %v2202_v43  ;;  %v7907_v43 = vld [vmem:[#allocation2 + $0x150] sm:$0xff] }
 0x1a7   :  { %1195 = vrot.lane.b32.xlu1 %v783_v33, %s6689_s21  ;;  %941 = vrot.lane.b32.xlu0 %v720_v55, %s6688_s20  ;;  %v155_v33 = vld [vmem:[%s10396_s0 + $0x110] sm:$0xff] }
 0x1a8   :  { %220 = vst.msk [vmem:[#allocation2 + $0x1e1] sm:$0xff] %vm33_vm0, %v155_v33 }
 0x1a9   :  { %v7831_v25 = vpop.permute.xlu1 %1691  ;;  %v7833_v14 = vpop.permute.xlu0 %1437 }
 0x1aa   :  { %v3086_v47 = vsel %vm3069_vm8, %v3021_v40, %v7831_v25 }
 0x1ab   :  { %2215 = vrot.lane.b32.xlu1 %v7826_v16, %s6693_s25  ;;  %1961 = vrot.lane.b32.xlu0 %v784_v5, %s6692_s24 }
 0x1ad   :  { %v2712_v1 = vpop.permute.xlu1 %2711  ;;  %v2458_v45 = vpop.permute.xlu0 %2457 }
 0x1ae   :  { %v3344_v57 = vsel %vm3329_vm12, %v3279_v0, %v2712_v1  ;;  %v3280_v19 = vsel %vm3264_vm11, %v3215_v6, %v2458_v45  ;;  %v2892_v45 = vsel %vm33_vm0, %v7386_v21, %v7216_v17 }
 0x1af   :  { %1451 = vrot.lane.b32.xlu1 %v7826_v16, %s6690_s22  ;;  %1197 = vrot.lane.b32.xlu0 %v784_v5, %s6689_s21 }
 0x1b0   :  { %6134 = vmatprep.mubr.msk.f32.mxu0 %vm3405_vm13, %v3344_v57  ;;  %v2957_v57 = vsel %vm2939_vm6, %v2892_v45, %v7812_v15 }
 0x1b1   :  { %v7860_v63 = vpop.permute.xlu1 %1693  ;;  %v7862_v39 = vpop.permute.xlu0 %927  ;;  %v3022_v29 = vsel %vm3004_vm7, %v2957_v57, %v7833_v14  ;;  %v725_v57 = vld [vmem:[#allocation2 + $0x169] sm:$0xff] }
 0x1b2   :  { %v3087_v17 = vsel %vm3069_vm8, %v3022_v29, %v7860_v63  ;;  %v787_v63 = vld [vmem:[#allocation2 + $0x152] sm:$0xff] }
 0x1b3   :  { %2471 = vrot.lane.b32.xlu1 %v721_v37, %s6694_s13  ;;  %2217 = vrot.lane.b32.xlu0 %v7855_v12, %s6693_s25 }
 0x1b5   :  { %v2714_v24 = vpop.permute.xlu1 %2713  ;;  %v1948_v38 = vpop.permute.xlu0 %1947 }
 0x1b6   :  { %v3345_v60 = vsel %vm3329_vm12, %v3280_v19, %v2714_v24  ;;  %v3151_v7 = vsel %vm3134_vm9, %v3086_v47, %v1948_v38  ;;  %v2893_v47 = vsel %vm33_vm0, %v7433_v56, %v7862_v39 }
 0x1b7   :  { %1707 = vrot.lane.b32.xlu1 %v721_v37, %s6691_s23  ;;  %1453 = vrot.lane.b32.xlu0 %v7855_v12, %s6690_s22 }
 0x1b8   :  { %6135 = vmatmul.mubr.msk.f32.gmra.mrb[14].mxu0 %vm3405_vm13, %v3345_v60  ;;  %v724_v60 = vld [vmem:[#allocation2 + $0x159] sm:$0xff] }
 0x1b9   :  { %v7876_v10 = vpop.permute.xlu1 %1183  ;;  %v7878_v27 = vpop.permute.xlu0 %929 }
 0x1ba   :  { %v2894_v45 = vsel %vm33_vm0, %v7450_v42, %v7878_v27 }
 0x1bb   :  { %2727 = vrot.lane.b32.xlu1 %v785_v8, %s6696_s1  ;;  %2473 = vrot.lane.b32.xlu0 %v722_v32, %s6694_s13 }
 0x1bd   :  { %v2204_v53 = vpop.permute.xlu1 %2203  ;;  %v1950_v51 = vpop.permute.xlu0 %1949 }
 0x1be   :  { %v3216_v46 = vsel %vm3199_vm10, %v3151_v7, %v2204_v53  ;;  %v3152_v21 = vsel %vm3134_vm9, %v3087_v17, %v1950_v51  ;;  %v2958_v7 = vsel %vm2939_vm6, %v2893_v47, %v7876_v10  ;;  %v158_v10 = vld [vmem:[%s10396_s0 + $0x128] sm:$0xff] }
 0x1bf   :  { %1709 = vrot.lane.b32.xlu1 %v722_v32, %s6691_s23  ;;  %943 = vrot.lane.b32.xlu0 %v721_v37, %s6688_s20  ;;  %223 = vst.msk [vmem:[#allocation2 + $0x201] sm:$0xff] %vm33_vm0, %v158_v10 }
 0x1c1   :  { %v7884_v11 = vpop.permute.xlu1 %1439  ;;  %v7886_v44 = vpop.permute.xlu0 %1185 }
 0x1c2   :  { %v3023_v9 = vsel %vm3004_vm7, %v2958_v7, %v7884_v11 }
 0x1c3   :  { %2729 = vrot.lane.b32.xlu1 %v786_v50, %s6696_s1  ;;  %1963 = vrot.lane.b32.xlu0 %v785_v8, %s6692_s24 }
 0x1c5   :  { %v2460_v55 = vpop.permute.xlu1 %2459  ;;  %v2206_v41 = vpop.permute.xlu0 %2205 }
 0x1c6   :  { %v3281_v25 = vsel %vm3264_vm11, %v3216_v46, %v2460_v55  ;;  %v3217_v15 = vsel %vm3199_vm10, %v3152_v21, %v2206_v41  ;;  %v8021_v21 = vld [vmem:[#allocation2 + $0x170] sm:$0xff] }
 0x1c7   :  { %v6115_v31 = vpop.f32.mrb[0].mxu0  ;;  %1199 = vrot.lane.b32.xlu1 %v785_v8, %s6689_s21  ;;  %945 = vrot.lane.b32.xlu0 %v722_v32, %s6688_s20 }
 0x1c8   :  { %v3674_v5 = vadd.f32 %v6115_v31, %v7897_v58  ;;  %v3668_v59 = vpop.f32.mrb[1].mxu0 }
 0x1c9   :  { %v3669_v48 = vadd.f32 %v7897_v58, %v3668_v59  ;;  %v7912_v61 = vpop.permute.xlu1 %1695  ;;  %v7914_v18 = vpop.permute.xlu0 %1441 }
 0x1ca   :  { %v3988_v35 = vmax.f32 %v3674_v5, 0.0  ;;  %v3088_v39 = vsel %vm3069_vm8, %v3023_v9, %v7912_v61  ;;  %v159_v9 = vld [vmem:[%s10396_s0 + $0x130] sm:$0xff] }
 0x1cb   :  { %v3987_v30 = vmax.f32 %v3669_v48, 0.0  ;;  %2219 = vrot.lane.b32.xlu1 %v7907_v43, %s6693_s25  ;;  %1965 = vrot.lane.b32.xlu0 %v786_v50, %s6692_s24  ;;  %224 = vst.msk [vmem:[#allocation2 + $0x211] sm:$0xff] %vm33_vm0, %v159_v9  ;;  %v792_v9 = vld [vmem:[#allocation2 + $0x18a] sm:$0xff] }
 0x1cc   :  { %4053 = vst.msk [vmem:[#allocation4 + $0x8] sm:$0xff] %vm4051_vm14, %v3988_v35 }
 0x1cd   :  { %4052 = vst.msk [vmem:[#allocation4] sm:$0xff] %vm4051_vm14, %v3987_v30  ;;  %v2716_v34 = vpop.permute.xlu1 %2715  ;;  %v2462_v0 = vpop.permute.xlu0 %2461  ;;  %v7990_v30 = vld [vmem:[#allocation2 + $0x168] sm:$0xff] }
 0x1ce   :  { %v3346_v1 = vsel %vm3329_vm12, %v3281_v25, %v2716_v34  ;;  %v3282_v14 = vsel %vm3264_vm11, %v3217_v15, %v2462_v0 }
 0x1cf   :  { %1455 = vrot.lane.b32.xlu1 %v7907_v43, %s6690_s22  ;;  %1201 = vrot.lane.b32.xlu0 %v786_v50, %s6689_s21  ;;  %v788_v50 = vld [vmem:[#allocation2 + $0x15a] sm:$0xff] }
 0x1d0   :  { %6137 = vmatprep.mubr.msk.f32.mxu0 %vm3405_vm13, %v3346_v1 }
 0x1d1   :  { %v7944_v37 = vpop.permute.xlu1 %1697  ;;  %v7946_v13 = vpop.permute.xlu0 %931 }
 0x1d2   :  { %v2895_v10 = vsel %vm33_vm0, %v7504_v54, %v7946_v13  ;;  %v160_v13 = vld [vmem:[%s10396_s0 + $0x138] sm:$0xff] }
 0x1d3   :  { %2475 = vrot.lane.b32.xlu1 %v723_v20, %s6694_s13  ;;  %2221 = vrot.lane.b32.xlu0 %v7940_v52, %s6693_s25  ;;  %225 = vst.msk [vmem:[#allocation2 + $0x219] sm:$0xff] %vm33_vm0, %v160_v13 }
 0x1d4   :  { %v4116_v49 = vld [vmem:[#allocation4] ss:$2 sm:$0xff]  ;;  %v4180_v28 = vld [vmem:[#allocation4 + $0x1] ss:$2 sm:$0xff] }
 0x1d5   :  { %v4243_v6 = vmax.f32 %v4116_v49, %v4180_v28  ;;  %v2718_v19 = vpop.permute.xlu1 %2717  ;;  %v1952_v24 = vpop.permute.xlu0 %1951 }
 0x1d6   :  { %v3347_v38 = vsel %vm3329_vm12, %v3282_v14, %v2718_v19  ;;  %v3153_v25 = vsel %vm3134_vm9, %v3088_v39, %v1952_v24 }
 0x1d7   :  { %4275 = vst.msk [vmem:[#allocation5] sm:$0xff] %vm4051_vm14, %v4243_v6  ;;  %1711 = vrot.lane.b32.xlu1 %v723_v20, %s6691_s23  ;;  %1457 = vrot.lane.b32.xlu0 %v7940_v52, %s6690_s22 }
 0x1d8   :  { %6138 = vmatmul.mubr.msk.f32.gmra.mrb[16].mxu0 %vm3405_vm13, %v3347_v38  ;;  %v726_v38 = vld [vmem:[#allocation2 + $0x171] sm:$0xff] }
 0x1d9   :  { %v7962_v8 = vpop.permute.xlu1 %1187  ;;  %v7964_v32 = vpop.permute.xlu0 %933 }
 0x1db   :  { %2731 = vrot.lane.b32.xlu1 %v787_v63, %s6696_s1  ;;  %2477 = vrot.lane.b32.xlu0 %v724_v60, %s6694_s13 }
 0x1dd   :  { %v2208_v53 = vpop.permute.xlu1 %2207  ;;  %v1954_v51 = vpop.permute.xlu0 %1953 }
 0x1de   :  { %v3218_v11 = vsel %vm3199_vm10, %v3153_v25, %v2208_v53  ;;  %v4307_v53 = vld [vmem:[#allocation5] sm:$0xff] }
 0x1df   :  { %1713 = vrot.lane.b32.xlu1 %v724_v60, %s6691_s23  ;;  %947 = vrot.lane.b32.xlu0 %v723_v20, %s6688_s20  ;;  %v2959_v20 = vsel %vm2939_vm6, %v2894_v45, %v7886_v44 }
 0x1e0   :  { %v3024_v15 = vsel %vm3004_vm7, %v2959_v20, %v7914_v18 }
 0x1e1   :  { %v7970_v33 = vpop.permute.xlu1 %1443  ;;  %v7972_v55 = vpop.permute.xlu0 %1189  ;;  %v3089_v28 = vsel %vm3069_vm8, %v3024_v15, %v7944_v37  ;;  %v789_v37 = vld [vmem:[#allocation2 + $0x16a] sm:$0xff] }
 0x1e2   :  { %v3154_v6 = vsel %vm3134_vm9, %v3089_v28, %v1954_v51 }
 0x1e3   :  { %v6118_v41 = vpop.f32.mrb[2].mxu0  ;;  %2733 = vrot.lane.b32.xlu1 %v788_v50, %s6696_s1  ;;  %1967 = vrot.lane.b32.xlu0 %v787_v63, %s6692_s24 }
 0x1e4   :  { %v3684_v31 = vadd.f32 %v6118_v41, %v7897_v58  ;;  %v3678_v62 = vpop.f32.mrb[3].mxu0 }
 0x1e5   :  { %v3679_v5 = vadd.f32 %v7897_v58, %v3678_v62  ;;  %v2464_v59 = vpop.permute.xlu1 %2463  ;;  %v2210_v40 = vpop.permute.xlu0 %2209 }
 0x1e6   :  { %v3990_v48 = vmax.f32 %v3684_v31, 0.0  ;;  %v3283_v34 = vsel %vm3264_vm11, %v3218_v11, %v2464_v59  ;;  %v3219_v44 = vsel %vm3199_vm10, %v3154_v6, %v2210_v40  ;;  %v790_v59 = vld [vmem:[#allocation2 + $0x172] sm:$0xff]  ;;  %v2960_v11 = vsel %vm2939_vm6, %v2895_v10, %v7962_v8  ;;  %v727_v6 = vld [vmem:[#allocation2 + $0x181] sm:$0xff] }
 0x1e7   :  { %v3989_v35 = vmax.f32 %v3679_v5, 0.0  ;;  %1203 = vrot.lane.b32.xlu1 %v787_v63, %s6689_s21  ;;  %949 = vrot.lane.b32.xlu0 %v724_v60, %s6688_s20  ;;  %v161_v10 = vld [vmem:[%s10396_s0 + $0x140] sm:$0xff] }
 0x1e8   :  { %4055 = vst.msk [vmem:[#allocation4 + $0x18] sm:$0xff] %vm4051_vm14, %v3990_v48 }
 0x1e9   :  { %4054 = vst.msk [vmem:[#allocation4 + $0x10] sm:$0xff] %vm4051_vm14, %v3989_v35  ;;  %v7995_v46 = vpop.permute.xlu1 %1699  ;;  %v7997_v56 = vpop.permute.xlu0 %1445 }
 0x1ea   :  { %226 = vst.msk [vmem:[#allocation2 + $0x229] sm:$0xff] %vm33_vm0, %v161_v10 }
 0x1eb   :  { %2223 = vrot.lane.b32.xlu1 %v7990_v30, %s6693_s25  ;;  %1969 = vrot.lane.b32.xlu0 %v788_v50, %s6692_s24 }
 0x1ed   :  { %v2720_v0 = vpop.permute.xlu1 %2719  ;;  %v2466_v1 = vpop.permute.xlu0 %2465 }
 0x1ee   :  { %v3348_v61 = vsel %vm3329_vm12, %v3283_v34, %v2720_v0  ;;  %v3284_v18 = vsel %vm3264_vm11, %v3219_v44, %v2466_v1  ;;  %v663_v34 = vld [vmem:[#allocation2 + $0x180] sm:$0xff]  ;;  %v3025_v0 = vsel %vm3004_vm7, %v2960_v11, %v7970_v33  ;;  %v664_v44 = vld [vmem:[#allocation2 + $0x188] sm:$0xff]  ;;  %v410_v11 = vld [vmem:[#allocation2 + $0x1b2] sm:$0xff] }
 0x1ef   :  { %1459 = vrot.lane.b32.xlu1 %v7990_v30, %s6690_s22  ;;  %1205 = vrot.lane.b32.xlu0 %v788_v50, %s6689_s21  ;;  %v3090_v45 = vsel %vm3069_vm8, %v3025_v0, %v7995_v46 }
 0x1f0   :  { %v4118_v29 = vld [vmem:[#allocation4 + $0x10] ss:$2 sm:$0xff]  ;;  %v4182_v17 = vld [vmem:[#allocation4 + $0x11] ss:$2 sm:$0xff]  ;;  %6140 = vmatprep.mubr.msk.f32.mxu0 %vm3405_vm13, %v3348_v61 }
 0x1f1   :  { %v4244_v49 = vmax.f32 %v4118_v29, %v4182_v17  ;;  %v8025_v42 = vpop.permute.xlu1 %1701  ;;  %v8027_v27 = vpop.permute.xlu0 %935 }
 0x1f3   :  { %4276 = vst.msk [vmem:[#allocation5 + $0x8] sm:$0xff] %vm4051_vm14, %v4244_v49  ;;  %2479 = vrot.lane.b32.xlu1 %v725_v57, %s6694_s13  ;;  %2225 = vrot.lane.b32.xlu0 %v8021_v21, %s6693_s25  ;;  %v2896_v49 = vsel %vm33_vm0, %v7528_v26, %v7964_v32 }
 0x1f4   :  { %v2961_v28 = vsel %vm2939_vm6, %v2896_v49, %v7972_v55  ;;  %v411_v49 = vld [vmem:[#allocation2 + $0x1ba] sm:$0xff] }
 0x1f5   :  { %v2722_v14 = vpop.permute.xlu1 %2721  ;;  %v1956_v19 = vpop.permute.xlu0 %1955 }
 0x1f6   :  { %v3349_v24 = vsel %vm3329_vm12, %v3284_v18, %v2722_v14  ;;  %v3155_v54 = vsel %vm3134_vm9, %v3090_v45, %v1956_v19  ;;  %v3026_v18 = vsel %vm3004_vm7, %v2961_v28, %v7997_v56 }
 0x1f7   :  { %1715 = vrot.lane.b32.xlu1 %v725_v57, %s6691_s23  ;;  %1461 = vrot.lane.b32.xlu0 %v8021_v21, %s6690_s22  ;;  %v3091_v26 = vsel %vm3069_vm8, %v3026_v18, %v8025_v42  ;;  %v791_v42 = vld [vmem:[#allocation2 + $0x182] sm:$0xff] }
 0x1f8   :  { %6141 = vmatmul.mubr.msk.f32.gmra.mrb[18].mxu0 %vm3405_vm13, %v3349_v24 }
 0x1f9   :  { %v8043_v63 = vpop.permute.xlu1 %1191  ;;  %v8045_v60 = vpop.permute.xlu0 %937 }
 0x1fa   :  { %v4323_v51 = vld [vmem:[#allocation5 + $0x8] sm:$0xff]  ;;  %v2898_v18 = vsel %vm33_vm0, %v7601_v36, %v8045_v60 }
 0x1fb   :  { %2735 = vrot.lane.b32.xlu1 %v789_v37, %s6696_s1  ;;  %2481 = vrot.lane.b32.xlu0 %v726_v38, %s6694_s13  ;;  %v4339_v50 = vmax.f32 %v4307_v53, %v4323_v51  ;;  %v728_v53 = vld [vmem:[#allocation2 + $0x189] sm:$0xff] }
 0x1fd   :  { %v2212_v41 = vpop.permute.xlu1 %2211  ;;  %v1958_v4 = vpop.permute.xlu0 %1957  ;;  %4407 = vst.msk [vmem:[#allocation3 + $0x11] sm:$0xff] %vm4051_vm14, %v4339_v50 }
 0x1fe   :  { %v3220_v8 = vsel %vm3199_vm10, %v3155_v54, %v2212_v41  ;;  %v3156_v32 = vsel %vm3134_vm9, %v3091_v26, %v1958_v4  ;;  %v2897_v54 = vsel %vm33_vm0, %v7578_v3, %v8027_v27 }
 0x1ff   :  { %v6121_v31 = vpop.f32.mrb[4].mxu0  ;;  %1717 = vrot.lane.b32.xlu1 %v726_v38, %s6691_s23  ;;  %951 = vrot.lane.b32.xlu0 %v725_v57, %s6688_s20  ;;  %v2962_v13 = vsel %vm2939_vm6, %v2897_v54, %v8043_v63  ;;  %v162_v63 = vld [vmem:[%s10396_s0 + $0x148] sm:$0xff]  ;;  %v539_v54 = vld [vmem:[#allocation2 + $0x1d1] sm:$0xff] }
 0x200   :  { %v3694_v62 = vadd.f32 %v6121_v31, %v7897_v58  ;;  %v3688_v5 = vpop.f32.mrb[5].mxu0  ;;  %227 = vst.msk [vmem:[#allocation2 + $0x231] sm:$0xff] %vm33_vm0, %v162_v63 }
 0x201   :  { %v3689_v40 = vadd.f32 %v7897_v58, %v3688_v5  ;;  %v8054_v48 = vpop.permute.xlu1 %1447  ;;  %v8056_v47 = vpop.permute.xlu0 %1193 }
 0x202   :  { %v3992_v35 = vmax.f32 %v3694_v62, 0.0  ;;  %v346_v62 = vld [vmem:[#allocation2 + $0x1b1] sm:$0xff]  ;;  %v2963_v26 = vsel %vm2939_vm6, %v2898_v18, %v8056_v47 }
 0x203   :  { %v3991_v7 = vmax.f32 %v3689_v40, 0.0  ;;  %2737 = vrot.lane.b32.xlu1 %v790_v59, %s6696_s1  ;;  %1971 = vrot.lane.b32.xlu0 %v789_v37, %s6692_s24  ;;  %v603_v18 = vld [vmem:[#allocation2 + $0x1d2] sm:$0xff] }
 0x204   :  { %4057 = vst.msk [vmem:[#allocation4 + $0x28] sm:$0xff] %vm4051_vm14, %v3992_v35 }
 0x205   :  { %4056 = vst.msk [vmem:[#allocation4 + $0x20] sm:$0xff] %vm4051_vm14, %v3991_v7  ;;  %v2468_v39 = vpop.permute.xlu1 %2467  ;;  %v2214_v25 = vpop.permute.xlu0 %2213 }
 0x206   :  { %v3285_v29 = vsel %vm3264_vm11, %v3220_v8, %v2468_v39  ;;  %v3221_v55 = vsel %vm3199_vm10, %v3156_v32, %v2214_v25  ;;  %v729_v32 = vld [vmem:[#allocation2 + $0x199] sm:$0xff] }
 0x207   :  { %1207 = vrot.lane.b32.xlu1 %v789_v37, %s6689_s21  ;;  %953 = vrot.lane.b32.xlu0 %v726_v38, %s6688_s20 }
 0x209   :  { %v8075_v1 = vpop.permute.xlu1 %1703  ;;  %v8077_v61 = vpop.permute.xlu0 %1449 }
 0x20b   :  { %2227 = vrot.lane.b32.xlu1 %v663_v34, %s6693_s25  ;;  %1973 = vrot.lane.b32.xlu0 %v790_v59, %s6692_s24 }
 0x20c   :  { %v4120_v33 = vld [vmem:[#allocation4 + $0x20] ss:$2 sm:$0xff]  ;;  %v4184_v57 = vld [vmem:[#allocation4 + $0x21] ss:$2 sm:$0xff] }
 0x20d   :  { %v4245_v20 = vmax.f32 %v4120_v33, %v4184_v57  ;;  %v2724_v46 = vpop.permute.xlu1 %2723  ;;  %v2470_v17 = vpop.permute.xlu0 %2469  ;;  %v665_v57 = vld [vmem:[#allocation2 + $0x198] sm:$0xff] }
 0x20e   :  { %v3350_v15 = vsel %vm3329_vm12, %v3285_v29, %v2724_v46  ;;  %v3286_v24 = vsel %vm3264_vm11, %v3221_v55, %v2470_v17  ;;  %v666_v55 = vld [vmem:[#allocation2 + $0x1a0] sm:$0xff] }
 0x20f   :  { %4277 = vst.msk [vmem:[#allocation5 + $0x10] sm:$0xff] %vm4051_vm14, %v4245_v20  ;;  %1463 = vrot.lane.b32.xlu1 %v663_v34, %s6690_s22  ;;  %1209 = vrot.lane.b32.xlu0 %v790_v59, %s6689_s21  ;;  %v347_v34 = vld [vmem:[#allocation2 + $0x1b9] sm:$0xff]  ;;  %v3027_v20 = vsel %vm3004_vm7, %v2962_v13, %v8054_v48 }
 0x210   :  { %6143 = vmatprep.mubr.msk.f32.mxu0 %vm3405_vm13, %v3350_v15  ;;  %v3092_v3 = vsel %vm3069_vm8, %v3027_v20, %v8075_v1  ;;  %v8162_v15 = vld [vmem:[#allocation2 + $0x1c8] sm:$0xff] }
 0x211   :  { %v8102_v14 = vpop.permute.xlu1 %1705  ;;  %v8104_v19 = vpop.permute.xlu0 %939 }
 0x213   :  { %2483 = vrot.lane.b32.xlu1 %v727_v6, %s6694_s13  ;;  %2229 = vrot.lane.b32.xlu0 %v664_v44, %s6693_s25 }
 0x215   :  { %v2726_v37 = vpop.permute.xlu1 %2725  ;;  %v1960_v38 = vpop.permute.xlu0 %1959 }
 0x216   :  { %v3351_v56 = vsel %vm3329_vm12, %v3286_v24, %v2726_v37  ;;  %v3157_v27 = vsel %vm3134_vm9, %v3092_v3, %v1960_v38  ;;  %v3028_v24 = vsel %vm3004_vm7, %v2963_v26, %v8077_v61  ;;  %v4308_v60 = vld [vmem:[#allocation5 + $0x10] sm:$0xff] }
 0x217   :  { %1719 = vrot.lane.b32.xlu1 %v727_v6, %s6691_s23  ;;  %1465 = vrot.lane.b32.xlu0 %v664_v44, %s6690_s22  ;;  %v3093_v36 = vsel %vm3069_vm8, %v3028_v24, %v8102_v14  ;;  %v8188_v61 = vld [vmem:[#allocation2 + $0x1d0] sm:$0xff] }
 0x218   :  { %6144 = vmatmul.mubr.msk.f32.gmra.mrb[20].mxu0 %vm3405_vm13, %v3351_v56  ;;  %v163_v3 = vld [vmem:[%s10396_s0 + $0x150] sm:$0xff] }
 0x219   :  { %v8117_v51 = vpop.permute.xlu1 %1195  ;;  %v8119_v50 = vpop.permute.xlu0 %941  ;;  %228 = vst.msk [vmem:[#allocation2 + $0x241] sm:$0xff] %vm33_vm0, %v163_v3  ;;  %v796_v3 = vld [vmem:[#allocation2 + $0x1ea] sm:$0xff] }
 0x21b   :  { %v6124_v41 = vpop.f32.mrb[6].mxu0  ;;  %2739 = vrot.lane.b32.xlu1 %v791_v42, %s6696_s1  ;;  %2485 = vrot.lane.b32.xlu0 %v728_v53, %s6694_s13 }
 0x21c   :  { %v3704_v4 = vadd.f32 %v6124_v41, %v7897_v58  ;;  %v3698_v31 = vpop.f32.mrb[7].mxu0  ;;  %v538_v41 = vld [vmem:[#allocation2 + $0x1c9] sm:$0xff] }
 0x21d   :  { %v3699_v5 = vadd.f32 %v7897_v58, %v3698_v31  ;;  %v2216_v59 = vpop.permute.xlu1 %2215  ;;  %v1962_v40 = vpop.permute.xlu0 %1961 }
 0x21e   :  { %v3994_v35 = vmax.f32 %v3704_v4, 0.0  ;;  %v3222_v48 = vsel %vm3199_vm10, %v3157_v27, %v2216_v59 }
 0x21f   :  { %v3993_v7 = vmax.f32 %v3699_v5, 0.0  ;;  %1721 = vrot.lane.b32.xlu1 %v728_v53, %s6691_s23  ;;  %955 = vrot.lane.b32.xlu0 %v346_v62, %s6688_s20 }
 0x220   :  { %4059 = vst.msk [vmem:[#allocation4 + $0x38] sm:$0xff] %vm4051_vm14, %v3994_v35  ;;  %v793_v35 = vld [vmem:[#allocation2 + $0x19a] sm:$0xff] }
 0x221   :  { %4058 = vst.msk [vmem:[#allocation4 + $0x30] sm:$0xff] %vm4051_vm14, %v3993_v7  ;;  %v8129_v39 = vpop.permute.xlu1 %1451  ;;  %v8131_v25 = vpop.permute.xlu0 %1197  ;;  %v730_v7 = vld [vmem:[#allocation2 + $0x1a1] sm:$0xff] }
 0x223   :  { %2741 = vrot.lane.b32.xlu1 %v792_v9, %s6696_s1  ;;  %1975 = vrot.lane.b32.xlu0 %v791_v42, %s6692_s24  ;;  %v3158_v42 = vsel %vm3134_vm9, %v3093_v36, %v1962_v40 }
 0x225   :  { %v2472_v0 = vpop.permute.xlu1 %2471  ;;  %v2218_v45 = vpop.permute.xlu0 %2217 }
 0x226   :  { %v3287_v1 = vsel %vm3264_vm11, %v3222_v48, %v2472_v0  ;;  %v3223_v53 = vsel %vm3199_vm10, %v3158_v42, %v2218_v45 }
 0x227   :  { %1211 = vrot.lane.b32.xlu1 %v410_v11, %s6689_s21  ;;  %957 = vrot.lane.b32.xlu0 %v347_v34, %s6688_s20 }
 0x228   :  { %v4122_v8 = vld [vmem:[#allocation4 + $0x30] ss:$2 sm:$0xff]  ;;  %v4186_v33 = vld [vmem:[#allocation4 + $0x31] ss:$2 sm:$0xff] }
 0x229   :  { %v4246_v29 = vmax.f32 %v4122_v8, %v4186_v33  ;;  %v8148_v46 = vpop.permute.xlu1 %1707  ;;  %v8150_v17 = vpop.permute.xlu0 %1453  ;;  %v794_v33 = vld [vmem:[#allocation2 + $0x1a2] sm:$0xff] }
 0x22b   :  { %4278 = vst.msk [vmem:[#allocation5 + $0x18] sm:$0xff] %vm4051_vm14, %v4246_v29  ;;  %2231 = vrot.lane.b32.xlu1 %v665_v57, %s6693_s25  ;;  %1977 = vrot.lane.b32.xlu0 %v792_v9, %s6692_s24  ;;  %v602_v57 = vld [vmem:[#allocation2 + $0x1ca] sm:$0xff] }
 0x22d   :  { %v2728_v28 = vpop.permute.xlu1 %2727  ;;  %v2474_v6 = vpop.permute.xlu0 %2473 }
 0x22e   :  { %v3352_v44 = vsel %vm3329_vm12, %v3287_v1, %v2728_v28  ;;  %v3288_v4 = vsel %vm3264_vm11, %v3223_v53, %v2474_v6  ;;  %v2899_v28 = vsel %vm33_vm0, %v7753_v22, %v8104_v19  ;;  %v8258_v53 = vld [vmem:[#allocation2 + $0x1e8] sm:$0xff] }
 0x22f   :  { %1467 = vrot.lane.b32.xlu1 %v8162_v15, %s6690_s22  ;;  %1213 = vrot.lane.b32.xlu0 %v411_v49, %s6689_s21  ;;  %v2964_v6 = vsel %vm2939_vm6, %v2899_v28, %v8117_v51  ;;  %v164_v51 = vld [vmem:[%s10396_s0 + $0x158] sm:$0xff] }
 0x230   :  { %6146 = vmatprep.mubr.msk.f32.mxu0 %vm3405_vm13, %v3352_v44  ;;  %v8228_v44 = vld [vmem:[#allocation2 + $0x1e0] sm:$0xff]  ;;  %v3029_v26 = vsel %vm3004_vm7, %v2964_v6, %v8129_v39  ;;  %229 = vst.msk [vmem:[#allocation2 + $0x249] sm:$0xff] %vm33_vm0, %v164_v51 }
 0x231   :  { %v8178_v37 = vpop.permute.xlu1 %1709  ;;  %v8180_v38 = vpop.permute.xlu0 %943  ;;  %v3094_v22 = vsel %vm3069_vm8, %v3029_v26, %v8148_v46  ;;  %v8309_v26 = vld [vmem:[#allocation2 + $0x1f8] sm:$0xff] }
 0x232   :  { %v4324_v56 = vld [vmem:[#allocation5 + $0x18] sm:$0xff]  ;;  %v2901_v6 = vsel %vm33_vm0, %v7826_v16, %v8180_v38 }
 0x233   :  { %2487 = vrot.lane.b32.xlu1 %v729_v32, %s6694_s13  ;;  %2233 = vrot.lane.b32.xlu0 %v666_v55, %s6693_s25  ;;  %v4340_v47 = vmax.f32 %v4308_v60, %v4324_v56  ;;  %v2900_v56 = vsel %vm33_vm0, %v7779_v23, %v8119_v50 }
 0x234   :  { %v2965_v42 = vsel %vm2939_vm6, %v2900_v56, %v8131_v25 }
 0x235   :  { %v2730_v31 = vpop.permute.xlu1 %2729  ;;  %v1964_v62 = vpop.permute.xlu0 %1963  ;;  %4408 = vst.msk [vmem:[#allocation3 + $0x21] sm:$0xff] %vm4051_vm14, %v4340_v47  ;;  %v731_v47 = vld [vmem:[#allocation2 + $0x1e1] sm:$0xff] }
 0x236   :  { %v3353_v14 = vsel %vm3329_vm12, %v3288_v4, %v2730_v31  ;;  %v3159_v19 = vsel %vm3134_vm9, %v3094_v22, %v1964_v62 }
 0x237   :  { %v6127_v5 = vpop.f32.mrb[8].mxu0  ;;  %1723 = vrot.lane.b32.xlu1 %v538_v41, %s6691_s23  ;;  %1469 = vrot.lane.b32.xlu0 %v8188_v61, %s6690_s22 }
 0x238   :  { %v3714_v59 = vadd.f32 %v6127_v5, %v7897_v58  ;;  %v3708_v40 = vpop.f32.mrb[9].mxu0  ;;  %6147 = vmatmul.mubr.msk.f32.gmra.mrb[22].mxu0 %vm3405_vm13, %v3353_v14 }
 0x239   :  { %v3709_v9 = vadd.f32 %v7897_v58, %v3708_v40  ;;  %v8199_v10 = vpop.permute.xlu1 %1199  ;;  %v8201_v11 = vpop.permute.xlu0 %945 }
 0x23a   :  { %v3996_v34 = vmax.f32 %v3714_v59, 0.0 }
 0x23b   :  { %v3995_v0 = vmax.f32 %v3709_v9, 0.0  ;;  %2743 = vrot.lane.b32.xlu1 %v793_v35, %s6696_s1  ;;  %2489 = vrot.lane.b32.xlu0 %v730_v7, %s6694_s13 }
 0x23c   :  { %4061 = vst.msk [vmem:[#allocation4 + $0x48] sm:$0xff] %vm4051_vm14, %v3996_v34  ;;  %v4552_v45 = vld [vmem:[#allocation3 + $0x22] sm:$0xff] }
 0x23d   :  { %4060 = vst.msk [vmem:[#allocation4 + $0x40] sm:$0xff] %vm4051_vm14, %v3995_v0  ;;  %5939 = vmatprep.mubr.msk.f32.mxu1 %vm4051_vm14, %v4552_v45  ;;  %v2220_v13 = vpop.permute.xlu1 %2219  ;;  %v1966_v8 = vpop.permute.xlu0 %1965  ;;  %v795_v34 = vld [vmem:[#allocation2 + $0x1e2] sm:$0xff] }
 0x23e   :  { %v3224_v39 = vsel %vm3199_vm10, %v3159_v19, %v2220_v13  ;;  %v732_v0 = vld [vmem:[#allocation2 + $0x1e9] sm:$0xff] }
 0x23f   :  { %1725 = vrot.lane.b32.xlu1 %v539_v54, %s6691_s23  ;;  %959 = vrot.lane.b32.xlu0 %v538_v41, %s6688_s20  ;;  %v3030_v41 = vsel %vm3004_vm7, %v2965_v42, %v8150_v17  ;;  %v2902_v42 = vsel %vm33_vm0, %v7855_v12, %v8201_v11 }
 0x240   :  { %v3095_v23 = vsel %vm3069_vm8, %v3030_v41, %v8178_v37 }
 0x241   :  { %v8210_v20 = vpop.permute.xlu1 %1455  ;;  %v8212_v29 = vpop.permute.xlu0 %1201  ;;  %v3160_v50 = vsel %vm3134_vm9, %v3095_v23, %v1966_v8 }
 0x242   :  { %v2967_v41 = vsel %vm2939_vm6, %v2902_v42, %v8212_v29 }
 0x243   :  { %2745 = vrot.lane.b32.xlu1 %v794_v33, %s6696_s1  ;;  %1979 = vrot.lane.b32.xlu0 %v602_v57, %s6692_s24 }
 0x244   :  { %v4124_v27 = vld [vmem:[#allocation4 + $0x40] ss:$2 sm:$0xff]  ;;  %v4188_v63 = vld [vmem:[#allocation4 + $0x41] ss:$2 sm:$0xff] }
 0x245   :  { %v4247_v48 = vmax.f32 %v4124_v27, %v4188_v63  ;;  %v2476_v49 = vpop.permute.xlu1 %2475  ;;  %v2222_v1 = vpop.permute.xlu0 %2221 }
 0x246   :  { %v3289_v24 = vsel %vm3264_vm11, %v3224_v39, %v2476_v49  ;;  %v3225_v25 = vsel %vm3199_vm10, %v3160_v50, %v2222_v1  ;;  %v165_v49 = vld [vmem:[%s10396_s0 + $0x160] sm:$0xff] }
 0x247   :  { %4279 = vst.msk [vmem:[#allocation5 + $0x20] sm:$0xff] %vm4051_vm14, %v4247_v48  ;;  %1215 = vrot.lane.b32.xlu1 %v602_v57, %s6689_s21  ;;  %961 = vrot.lane.b32.xlu0 %v539_v54, %s6688_s20 }
 0x248   :  { %230 = vst.msk [vmem:[#allocation2 + $0x259] sm:$0xff] %vm33_vm0, %v165_v49  ;;  %v798_v49 = vld [vmem:[#allocation2 + $0x202] sm:$0xff] }
 0x249   :  { %v8232_v32 = vpop.permute.xlu1 %1711  ;;  %v8234_v55 = vpop.permute.xlu0 %1457 }
 0x24a   :  { %v3032_v12 = vsel %vm3004_vm7, %v2967_v41, %v8234_v55 }
 0x24b   :  { %2235 = vrot.lane.b32.xlu1 %v8228_v44, %s6693_s25  ;;  %1981 = vrot.lane.b32.xlu0 %v603_v18, %s6692_s24 }
 0x24d   :  { %v2732_v36 = vpop.permute.xlu1 %2731  ;;  %v2478_v60 = vpop.permute.xlu0 %2477 }
 0x24e   :  { %v3354_v46 = vsel %vm3329_vm12, %v3289_v24, %v2732_v36  ;;  %v3290_v5 = vsel %vm3264_vm11, %v3225_v25, %v2478_v60  ;;  %v4309_v16 = vld [vmem:[#allocation5 + $0x20] sm:$0xff] }
 0x24f   :  { %1471 = vrot.lane.b32.xlu1 %v8228_v44, %s6690_s22  ;;  %1217 = vrot.lane.b32.xlu0 %v603_v18, %s6689_s21  ;;  %v2966_v18 = vsel %vm2939_vm6, %v2901_v6, %v8199_v10  ;;  %v166_v10 = vld [vmem:[%s10396_s0 + $0x168] sm:$0xff]  ;;  %v8341_v25 = vld [vmem:[#allocation2 + $0x200] sm:$0xff]  ;;  %v167_v6 = vld [vmem:[%s10396_s0 + $0x170] sm:$0xff] }
 0x250   :  { %6149 = vmatprep.mubr.msk.f32.mxu0 %vm3405_vm13, %v3354_v46  ;;  %v3031_v22 = vsel %vm3004_vm7, %v2966_v18, %v8210_v20  ;;  %231 = vst.msk [vmem:[#allocation2 + $0x261] sm:$0xff] %vm33_vm0, %v166_v10  ;;  %232 = vst.msk [vmem:[#allocation2 + $0x271] sm:$0xff] %vm33_vm0, %v167_v6 }
 0x251   :  { %v8262_v4 = vpop.permute.xlu1 %1713  ;;  %v8264_v31 = vpop.permute.xlu0 %947  ;;  %v3096_v39 = vsel %vm3069_vm8, %v3031_v22, %v8232_v32 }
 0x252   :  { %v3097_v29 = vsel %vm3069_vm8, %v3032_v12, %v8262_v4  ;;  %v8424_v12 = vld [vmem:[#allocation2 + $0x218] sm:$0xff] }
 0x253   :  { %v6130_v62 = vpop.f32.mrb[10].mxu0  ;;  %2491 = vrot.lane.b32.xlu1 %v731_v47, %s6694_s13  ;;  %2237 = vrot.lane.b32.xlu0 %v8258_v53, %s6693_s25 }
 0x254   :  { %v3724_v14 = vadd.f32 %v6130_v62, %v7897_v58  ;;  %v3718_v17 = vpop.f32.mrb[11].mxu0  ;;  %v733_v62 = vld [vmem:[#allocation2 + $0x1f9] sm:$0xff] }
 0x255   :  { %v3719_v59 = vadd.f32 %v7897_v58, %v3718_v17  ;;  %v2734_v40 = vpop.permute.xlu1 %2733  ;;  %v1968_v35 = vpop.permute.xlu0 %1967 }
 0x256   :  { %v3998_v37 = vmax.f32 %v3724_v14, 0.0  ;;  %v3355_v7 = vsel %vm3329_vm12, %v3290_v5, %v2734_v40  ;;  %v3161_v24 = vsel %vm3134_vm9, %v3096_v39, %v1968_v35  ;;  %v2903_v39 = vsel %vm33_vm0, %v7907_v43, %v8264_v31 }
 0x257   :  { %v3997_v9 = vmax.f32 %v3719_v59, 0.0  ;;  %1727 = vrot.lane.b32.xlu1 %v731_v47, %s6691_s23  ;;  %1473 = vrot.lane.b32.xlu0 %v8258_v53, %s6690_s22 }
 0x258   :  { %4063 = vst.msk [vmem:[#allocation4 + $0x58] sm:$0xff] %vm4051_vm14, %v3998_v37  ;;  %6150 = vmatmul.mubr.msk.f32.gmra.mrb[24].mxu0 %vm3405_vm13, %v3355_v7 }
 0x259   :  { %4062 = vst.msk [vmem:[#allocation4 + $0x50] sm:$0xff] %vm4051_vm14, %v3997_v9  ;;  %v8283_v45 = vpop.permute.xlu1 %1203  ;;  %v8285_v54 = vpop.permute.xlu0 %949  ;;  %v797_v9 = vld [vmem:[#allocation2 + $0x1fa] sm:$0xff] }
 0x25b   :  { %2747 = vrot.lane.b32.xlu1 %v795_v34, %s6696_s1  ;;  %2493 = vrot.lane.b32.xlu0 %v732_v0, %s6694_s13 }
 0x25d   :  { %v2224_v13 = vpop.permute.xlu1 %2223  ;;  %v1970_v8 = vpop.permute.xlu0 %1969 }
 0x25e   :  { %v3226_v36 = vsel %vm3199_vm10, %v3161_v24, %v2224_v13  ;;  %v3162_v59 = vsel %vm3134_vm9, %v3097_v29, %v1970_v8 }
 0x25f   :  { %1729 = vrot.lane.b32.xlu1 %v732_v0, %s6691_s23  ;;  %963 = vrot.lane.b32.xlu0 %v731_v47, %s6688_s20 }
 0x260   :  { %v4126_v33 = vld [vmem:[#allocation4 + $0x50] ss:$2 sm:$0xff]  ;;  %v4190_v57 = vld [vmem:[#allocation4 + $0x51] ss:$2 sm:$0xff] }
 0x261   :  { %v4248_v27 = vmax.f32 %v4126_v33, %v4190_v57  ;;  %v8291_v63 = vpop.permute.xlu1 %1459  ;;  %v8293_v48 = vpop.permute.xlu0 %1205 }
 0x263   :  { %4280 = vst.msk [vmem:[#allocation5 + $0x28] sm:$0xff] %vm4051_vm14, %v4248_v27  ;;  %2749 = vrot.lane.b32.xlu1 %v796_v3, %s6696_s1  ;;  %1983 = vrot.lane.b32.xlu0 %v795_v34, %s6692_s24 }
 0x265   :  { %v2480_v1 = vpop.permute.xlu1 %2479  ;;  %v2226_v28 = vpop.permute.xlu0 %2225 }
 0x266   :  { %v3291_v32 = vsel %vm3264_vm11, %v3226_v36, %v2480_v1  ;;  %v3227_v55 = vsel %vm3199_vm10, %v3162_v59, %v2226_v28 }
 0x267   :  { %1219 = vrot.lane.b32.xlu1 %v795_v34, %s6689_s21  ;;  %965 = vrot.lane.b32.xlu0 %v732_v0, %s6688_s20  ;;  %v734_v34 = vld [vmem:[#allocation2 + $0x201] sm:$0xff] }
 0x269   :  { %v8313_v19 = vpop.permute.xlu1 %1715  ;;  %v8315_v51 = vpop.permute.xlu0 %1461 }
 0x26a   :  { %v4325_v38 = vld [vmem:[#allocation5 + $0x28] sm:$0xff] }
 0x26b   :  { %2239 = vrot.lane.b32.xlu1 %v8309_v26, %s6693_s25  ;;  %1985 = vrot.lane.b32.xlu0 %v796_v3, %s6692_s24  ;;  %v4341_v20 = vmax.f32 %v4309_v16, %v4325_v38  ;;  %v2968_v16 = vsel %vm2939_vm6, %v2903_v39, %v8283_v45  ;;  %v8391_v38 = vld [vmem:[#allocation2 + $0x210] sm:$0xff]  ;;  %v168_v45 = vld [vmem:[%s10396_s0 + $0x178] sm:$0xff] }
 0x26c   :  { %v3033_v24 = vsel %vm3004_vm7, %v2968_v16, %v8291_v63  ;;  %233 = vst.msk [vmem:[#allocation2 + $0x279] sm:$0xff] %vm33_vm0, %v168_v45 }
 0x26d   :  { %v2736_v60 = vpop.permute.xlu1 %2735  ;;  %v2482_v46 = vpop.permute.xlu0 %2481  ;;  %4409 = vst.msk [vmem:[#allocation3 + $0x31] sm:$0xff] %vm4051_vm14, %v4341_v20  ;;  %v3098_v36 = vsel %vm3069_vm8, %v3033_v24, %v8313_v19 }
 0x26e   :  { %v3356_v56 = vsel %vm3329_vm12, %v3291_v32, %v2736_v60  ;;  %v3292_v35 = vsel %vm3264_vm11, %v3227_v55, %v2482_v46 }
 0x26f   :  { %v6133_v47 = vpop.f32.mrb[12].mxu0  ;;  %1475 = vrot.lane.b32.xlu1 %v8309_v26, %s6690_s22  ;;  %1221 = vrot.lane.b32.xlu0 %v796_v3, %s6689_s21 }
 0x270   :  { %v3734_v23 = vadd.f32 %v6133_v47, %v7897_v58  ;;  %v3728_v50 = vpop.f32.mrb[13].mxu0  ;;  %6152 = vmatprep.mubr.msk.f32.mxu0 %vm3405_vm13, %v3356_v56 }
 0x271   :  { %v3729_v11 = vadd.f32 %v7897_v58, %v3728_v50  ;;  %v8346_v14 = vpop.permute.xlu1 %1717  ;;  %v8348_v17 = vpop.permute.xlu0 %951 }
 0x272   :  { %v4000_v5 = vmax.f32 %v3734_v23, 0.0  ;;  %v2904_v23 = vsel %vm33_vm0, %v7940_v52, %v8285_v54  ;;  %v2905_v24 = vsel %vm33_vm0, %v7990_v30, %v8348_v17 }
 0x273   :  { %v3999_v40 = vmax.f32 %v3729_v11, 0.0  ;;  %2495 = vrot.lane.b32.xlu1 %v733_v62, %s6694_s13  ;;  %2241 = vrot.lane.b32.xlu0 %v8341_v25, %s6693_s25 }
 0x274   :  { %4065 = vst.msk [vmem:[#allocation4 + $0x68] sm:$0xff] %vm4051_vm14, %v4000_v5 }
 0x275   :  { %4064 = vst.msk [vmem:[#allocation4 + $0x60] sm:$0xff] %vm4051_vm14, %v3999_v40  ;;  %v2738_v37 = vpop.permute.xlu1 %2737  ;;  %v1972_v7 = vpop.permute.xlu0 %1971 }
 0x276   :  { %v3357_v4 = vsel %vm3329_vm12, %v3292_v35, %v2738_v37  ;;  %v3163_v43 = vsel %vm3134_vm9, %v3098_v36, %v1972_v7  ;;  %v736_v7 = vld [vmem:[#allocation2 + $0x219] sm:$0xff] }
 0x277   :  { %1731 = vrot.lane.b32.xlu1 %v733_v62, %s6691_s23  ;;  %1477 = vrot.lane.b32.xlu0 %v8341_v25, %s6690_s22 }
 0x278   :  { %6153 = vmatmul.mubr.msk.f32.gmra.mrb[26].mxu0 %vm3405_vm13, %v3357_v4 }
 0x279   :  { %v8365_v0 = vpop.permute.xlu1 %1207  ;;  %v8367_v13 = vpop.permute.xlu0 %953 }
 0x27a   :  { %v2970_v36 = vsel %vm2939_vm6, %v2905_v24, %v8365_v0  ;;  %v170_v0 = vld [vmem:[%s10396_s0 + $0x188] sm:$0xff] }
 0x27b   :  { %2751 = vrot.lane.b32.xlu1 %v797_v9, %s6696_s1  ;;  %2497 = vrot.lane.b32.xlu0 %v734_v34, %s6694_s13  ;;  %235 = vst.msk [vmem:[#allocation2 + $0x291] sm:$0xff] %vm33_vm0, %v170_v0 }
 0x27c   :  { %v4128_v8 = vld [vmem:[#allocation4 + $0x60] ss:$2 sm:$0xff]  ;;  %v4192_v33 = vld [vmem:[#allocation4 + $0x61] ss:$2 sm:$0xff] }
 0x27d   :  { %v4249_v57 = vmax.f32 %v4128_v8, %v4192_v33  ;;  %v2228_v3 = vpop.permute.xlu1 %2227  ;;  %v1974_v27 = vpop.permute.xlu0 %1973 }
 0x27e   :  { %v3228_v63 = vsel %vm3199_vm10, %v3163_v43, %v2228_v3  ;;  %v8473_v43 = vld [vmem:[#allocation2 + $0x228] sm:$0xff] }
 0x27f   :  { %4281 = vst.msk [vmem:[#allocation5 + $0x30] sm:$0xff] %vm4051_vm14, %v4249_v57  ;;  %1733 = vrot.lane.b32.xlu1 %v734_v34, %s6691_s23  ;;  %967 = vrot.lane.b32.xlu0 %v733_v62, %s6688_s20  ;;  %v2969_v62 = vsel %vm2939_vm6, %v2904_v23, %v8293_v48  ;;  %v800_v57 = vld [vmem:[#allocation2 + $0x21a] sm:$0xff] }
 0x280   :  { %v3034_v11 = vsel %vm3004_vm7, %v2969_v62, %v8315_v51 }
 0x281   :  { %v8374_v1 = vpop.permute.xlu1 %1463  ;;  %v8376_v28 = vpop.permute.xlu0 %1209  ;;  %v3099_v29 = vsel %vm3069_vm8, %v3034_v11, %v8346_v14  ;;  %v799_v14 = vld [vmem:[#allocation2 + $0x212] sm:$0xff]  ;;  %v737_v11 = vld [vmem:[#allocation2 + $0x229] sm:$0xff] }
 0x282   :  { %v3164_v48 = vsel %vm3134_vm9, %v3099_v29, %v1974_v27  ;;  %v8511_v29 = vld [vmem:[#allocation2 + $0x230] sm:$0xff] }
 0x283   :  { %2753 = vrot.lane.b32.xlu1 %v798_v49, %s6696_s1  ;;  %1987 = vrot.lane.b32.xlu0 %v797_v9, %s6692_s24 }
 0x285   :  { %v2484_v18 = vpop.permute.xlu1 %2483  ;;  %v2230_v22 = vpop.permute.xlu0 %2229 }
 0x286   :  { %v3293_v19 = vsel %vm3264_vm11, %v3228_v63, %v2484_v18  ;;  %v3229_v5 = vsel %vm3199_vm10, %v3164_v48, %v2230_v22  ;;  %v169_v18 = vld [vmem:[%s10396_s0 + $0x180] sm:$0xff] }
 0x287   :  { %1223 = vrot.lane.b32.xlu1 %v797_v9, %s6689_s21  ;;  %969 = vrot.lane.b32.xlu0 %v734_v34, %s6688_s20  ;;  %234 = vst.msk [vmem:[#allocation2 + $0x289] sm:$0xff] %vm33_vm0, %v169_v18 }
 0x289   :  { %v8395_v10 = vpop.permute.xlu1 %1719  ;;  %v8397_v20 = vpop.permute.xlu0 %1465 }
 0x28b   :  { %v6136_v31 = vpop.f32.mrb[14].mxu0  ;;  %2243 = vrot.lane.b32.xlu1 %v8391_v38, %s6693_s25  ;;  %1989 = vrot.lane.b32.xlu0 %v798_v49, %s6692_s24 }
 0x28c   :  { %v3744_v32 = vadd.f32 %v6136_v31, %v7897_v58  ;;  %v3738_v60 = vpop.f32.mrb[15].mxu0  ;;  %v3035_v31 = vsel %vm3004_vm7, %v2970_v36, %v8374_v1 }
 0x28d   :  { %v3739_v46 = vadd.f32 %v7897_v58, %v3738_v60  ;;  %v2740_v56 = vpop.permute.xlu1 %2739  ;;  %v2486_v42 = vpop.permute.xlu0 %2485  ;;  %v735_v58 = vld [vmem:[#allocation2 + $0x211] sm:$0xff]  ;;  %v8494_v60 = vld [vmem:[%s10398_s2] ss:$0 sm:$0xff] }
 0x28e   :  { %v4002_v47 = vmax.f32 %v3744_v32, 0.0  ;;  %v3358_v41 = vsel %vm3329_vm12, %v3293_v19, %v2740_v56  ;;  %v3294_v51 = vsel %vm3264_vm11, %v3229_v5, %v2486_v42  ;;  %v3100_v32 = vsel %vm3069_vm8, %v3035_v31, %v8395_v10 }
 0x28f   :  { %v4001_v50 = vmax.f32 %v3739_v46, 0.0  ;;  %1479 = vrot.lane.b32.xlu1 %v8391_v38, %s6690_s22  ;;  %1225 = vrot.lane.b32.xlu0 %v798_v49, %s6689_s21  ;;  %v4310_v49 = vld [vmem:[#allocation5 + $0x30] sm:$0xff] }
 0x290   :  { %4067 = vst.msk [vmem:[#allocation4 + $0x78] sm:$0xff] %vm4051_vm14, %v4002_v47  ;;  %6155 = vmatprep.mubr.msk.f32.mxu0 %vm3405_vm13, %v3358_v41 }
 0x291   :  { %4066 = vst.msk [vmem:[#allocation4 + $0x70] sm:$0xff] %vm4051_vm14, %v4001_v50  ;;  %v8429_v52 = vpop.permute.xlu1 %1721  ;;  %v8431_v54 = vpop.permute.xlu0 %955  ;;  %v2906_v50 = vsel %vm33_vm0, %v8021_v21, %v8367_v13 }
 0x293   :  { %2499 = vrot.lane.b32.xlu1 %v735_v58, %s6694_s13  ;;  %2245 = vrot.lane.b32.xlu0 %v8424_v12, %s6693_s25 }
 0x295   :  { %v2742_v59 = vpop.permute.xlu1 %2741  ;;  %v1976_v40 = vpop.permute.xlu0 %1975 }
 0x296   :  { %v3359_v55 = vsel %vm3329_vm12, %v3294_v51, %v2742_v59  ;;  %v3165_v30 = vsel %vm3134_vm9, %v3100_v32, %v1976_v40  ;;  %v8558_v32 = vld [vmem:[#allocation2 + $0x240] sm:$0xff] }
 0x297   :  { %1735 = vrot.lane.b32.xlu1 %v735_v58, %s6691_s23  ;;  %1481 = vrot.lane.b32.xlu0 %v8424_v12, %s6690_s22 }
 0x298   :  { %v4130_v35 = vld [vmem:[#allocation4 + $0x70] ss:$2 sm:$0xff]  ;;  %v4194_v37 = vld [vmem:[#allocation4 + $0x71] ss:$2 sm:$0xff]  ;;  %6156 = vmatmul.mubr.msk.f32.gmra.mrb[28].mxu0 %vm3405_vm13, %v3359_v55 }
 0x299   :  { %v4250_v4 = vmax.f32 %v4130_v35, %v4194_v37  ;;  %v8446_v9 = vpop.permute.xlu1 %1211  ;;  %v8448_v34 = vpop.permute.xlu0 %957  ;;  %v738_v37 = vld [vmem:[#allocation2 + $0x231] sm:$0xff] }
 0x29b   :  { %4282 = vst.msk [vmem:[#allocation5 + $0x38] sm:$0xff] %vm4051_vm14, %v4250_v4  ;;  %2755 = vrot.lane.b32.xlu1 %v799_v14, %s6696_s1  ;;  %2501 = vrot.lane.b32.xlu0 %v736_v7, %s6694_s13 }
 0x29d   :  { %v2232_v8 = vpop.permute.xlu1 %2231  ;;  %v1978_v33 = vpop.permute.xlu0 %1977 }
 0x29e   :  { %v3230_v1 = vsel %vm3199_vm10, %v3165_v30, %v2232_v8 }
 0x29f   :  { %1737 = vrot.lane.b32.xlu1 %v736_v7, %s6691_s23  ;;  %971 = vrot.lane.b32.xlu0 %v735_v58, %s6688_s20  ;;  %v2971_v58 = vsel %vm2939_vm6, %v2906_v50, %v8376_v28 }
 0x2a0   :  { %v3036_v48 = vsel %vm3004_vm7, %v2971_v58, %v8397_v20 }
 0x2a1   :  { %v8455_v3 = vpop.permute.xlu1 %1467  ;;  %v8457_v27 = vpop.permute.xlu0 %1213  ;;  %v3101_v5 = vsel %vm3069_vm8, %v3036_v48, %v8429_v52  ;;  %v801_v52 = vld [vmem:[#allocation2 + $0x22a] sm:$0xff]  ;;  %v739_v48 = vld [vmem:[#allocation2 + $0x241] sm:$0xff] }
 0x2a2   :  { %v4326_v6 = vld [vmem:[#allocation5 + $0x38] sm:$0xff]  ;;  %v3166_v28 = vsel %vm3134_vm9, %v3101_v5, %v1978_v33  ;;  %v8590_v5 = vld [vmem:[#allocation2 + $0x248] sm:$0xff] }
 0x2a3   :  { %2757 = vrot.lane.b32.xlu1 %v800_v57, %s6696_s1  ;;  %1991 = vrot.lane.b32.xlu0 %v799_v14, %s6692_s24  ;;  %v4342_v22 = vmax.f32 %v4310_v49, %v4326_v6  ;;  %v802_v49 = vld [vmem:[#allocation2 + $0x232] sm:$0xff] }
 0x2a5   :  { %v2488_v39 = vpop.permute.xlu1 %2487  ;;  %v2234_v16 = vpop.permute.xlu0 %2233  ;;  %4410 = vst.msk [vmem:[#allocation3 + $0x41] sm:$0xff] %vm4051_vm14, %v4342_v22  ;;  %v171_v22 = vld [vmem:[%s10396_s0 + $0x190] sm:$0xff] }
 0x2a6   :  { %v3295_v46 = vsel %vm3264_vm11, %v3230_v1, %v2488_v39  ;;  %v3231_v51 = vsel %vm3199_vm10, %v3166_v28, %v2234_v16  ;;  %v282_v39 = vld [vmem:[#allocation2 + $0x1b0] sm:$0xff]  ;;  %236 = vst.msk [vmem:[#allocation2 + $0x2a1] sm:$0xff] %vm33_vm0, %v171_v22 }
 0x2a7   :  { %1227 = vrot.lane.b32.xlu1 %v799_v14, %s6689_s21  ;;  %973 = vrot.lane.b32.xlu0 %v736_v7, %s6688_s20  ;;  %v2907_v36 = vsel %vm33_vm0, %v282_v39, %v8431_v54  ;;  %v173_v39 = vld [vmem:[%s10396_s0 + $0x1a0] sm:$0xff] }
 0x2a8   :  { %v2972_v31 = vsel %vm2939_vm6, %v2907_v36, %v8446_v9  ;;  %v172_v9 = vld [vmem:[%s10396_s0 + $0x198] sm:$0xff]  ;;  %238 = vst.msk [vmem:[#allocation2 + $0x2b9] sm:$0xff] %vm33_vm0, %v173_v39 }
 0x2a9   :  { %v8477_v45 = vpop.permute.xlu1 %1723  ;;  %v8479_v63 = vpop.permute.xlu0 %1469  ;;  %v3037_v30 = vsel %vm3004_vm7, %v2972_v31, %v8455_v3  ;;  %v283_v3 = vld [vmem:[#allocation2 + $0x1b8] sm:$0xff]  ;;  %237 = vst.msk [vmem:[#allocation2 + $0x2a9] sm:$0xff] %vm33_vm0, %v172_v9 }
 0x2aa   :  { %v3102_v1 = vsel %vm3069_vm8, %v3037_v30, %v8477_v45 }
 0x2ab   :  { %v6139_v17 = vpop.f32.mrb[16].mxu0  ;;  %2247 = vrot.lane.b32.xlu1 %v8473_v43, %s6693_s25  ;;  %1993 = vrot.lane.b32.xlu0 %v800_v57, %s6692_s24 }
 0x2ac   :  { %v3754_v10 = vadd.f32 %v8494_v60, %v6139_v17  ;;  %v3748_v19 = vpop.f32.mrb[17].mxu0 }
 0x2ad   :  { %v3749_v56 = vadd.f32 %v8494_v60, %v3748_v19  ;;  %v2744_v42 = vpop.permute.xlu1 %2743  ;;  %v2490_v47 = vpop.permute.xlu0 %2489 }
 0x2ae   :  { %v4004_v41 = vmax.f32 %v3754_v10, 0.0  ;;  %v3360_v23 = vsel %vm3329_vm12, %v3295_v46, %v2744_v42  ;;  %v3296_v20 = vsel %vm3264_vm11, %v3231_v51, %v2490_v47 }
 0x2af   :  { %v4003_v62 = vmax.f32 %v3749_v56, 0.0  ;;  %1483 = vrot.lane.b32.xlu1 %v8473_v43, %s6690_s22  ;;  %1229 = vrot.lane.b32.xlu0 %v800_v57, %s6689_s21 }
 0x2b0   :  { %4069 = vst.msk [vmem:[#allocation4 + $0x88] sm:$0xff] %vm4051_vm14, %v4004_v41  ;;  %6158 = vmatprep.mubr.msk.f32.mxu0 %vm3405_vm13, %v3360_v23 }
 0x2b1   :  { %4068 = vst.msk [vmem:[#allocation4 + $0x80] sm:$0xff] %vm4051_vm14, %v4003_v62  ;;  %v8516_v21 = vpop.permute.xlu1 %1725  ;;  %v8518_v13 = vpop.permute.xlu0 %959  ;;  %v2908_v62 = vsel %vm33_vm0, %v283_v3, %v8448_v34 }
 0x2b2   :  { %v2909_v3 = vsel %vm33_vm0, %v8162_v15, %v8518_v13 }
 0x2b3   :  { %2503 = vrot.lane.b32.xlu1 %v737_v11, %s6694_s13  ;;  %2249 = vrot.lane.b32.xlu0 %v8511_v29, %s6693_s25 }
 0x2b5   :  { %v2746_v59 = vpop.permute.xlu1 %2745  ;;  %v1980_v40 = vpop.permute.xlu0 %1979 }
 0x2b6   :  { %v3361_v55 = vsel %vm3329_vm12, %v3296_v20, %v2746_v59  ;;  %v3167_v54 = vsel %vm3134_vm9, %v3102_v1, %v1980_v40 }
 0x2b7   :  { %1739 = vrot.lane.b32.xlu1 %v737_v11, %s6691_s23  ;;  %1485 = vrot.lane.b32.xlu0 %v8511_v29, %s6690_s22 }
 0x2b8   :  { %v4132_v14 = vld [vmem:[#allocation4 + $0x80] ss:$2 sm:$0xff]  ;;  %v4196_v35 = vld [vmem:[#allocation4 + $0x81] ss:$2 sm:$0xff]  ;;  %6159 = vmatmul.mubr.msk.f32.gmra.mrb[30].mxu0 %vm3405_vm13, %v3361_v55 }
 0x2b9   :  { %v4251_v7 = vmax.f32 %v4132_v14, %v4196_v35  ;;  %v8533_v4 = vpop.permute.xlu1 %1215  ;;  %v8535_v8 = vpop.permute.xlu0 %961 }
 0x2bb   :  { %4283 = vst.msk [vmem:[#allocation5 + $0x40] sm:$0xff] %vm4051_vm14, %v4251_v7  ;;  %2759 = vrot.lane.b32.xlu1 %v801_v52, %s6696_s1  ;;  %2505 = vrot.lane.b32.xlu0 %v738_v37, %s6694_s13 }
 0x2bd   :  { %v2236_v33 = vpop.permute.xlu1 %2235  ;;  %v1982_v57 = vpop.permute.xlu0 %1981 }
 0x2be   :  { %v3232_v19 = vsel %vm3199_vm10, %v3167_v54, %v2236_v33 }
 0x2bf   :  { %1741 = vrot.lane.b32.xlu1 %v738_v37, %s6691_s23  ;;  %975 = vrot.lane.b32.xlu0 %v737_v11, %s6688_s20  ;;  %v2973_v11 = vsel %vm2939_vm6, %v2908_v62, %v8457_v27 }
 0x2c0   :  { %v3038_v28 = vsel %vm3004_vm7, %v2973_v11, %v8479_v63 }
 0x2c1   :  { %v8542_v6 = vpop.permute.xlu1 %1471  ;;  %v8544_v18 = vpop.permute.xlu0 %1217  ;;  %v3103_v20 = vsel %vm3069_vm8, %v3038_v28, %v8516_v21  ;;  %v803_v21 = vld [vmem:[#allocation2 + $0x242] sm:$0xff] }
 0x2c2   :  { %v3168_v27 = vsel %vm3134_vm9, %v3103_v20, %v1982_v57  ;;  %v4311_v30 = vld [vmem:[#allocation5 + $0x40] sm:$0xff] }
 0x2c3   :  { %2761 = vrot.lane.b32.xlu1 %v802_v49, %s6696_s1  ;;  %1995 = vrot.lane.b32.xlu0 %v801_v52, %s6692_s24 }
 0x2c5   :  { %v2492_v16 = vpop.permute.xlu1 %2491  ;;  %v2238_v24 = vpop.permute.xlu0 %2237 }
 0x2c6   :  { %v3297_v45 = vsel %vm3264_vm11, %v3232_v19, %v2492_v16  ;;  %v3233_v59 = vsel %vm3199_vm10, %v3168_v27, %v2238_v24  ;;  %v174_v16 = vld [vmem:[%s10396_s0 + $0x1a8] sm:$0xff]  ;;  %v2974_v19 = vsel %vm2939_vm6, %v2909_v3, %v8533_v4  ;;  %v741_v27 = vld [vmem:[#allocation2 + $0x259] sm:$0xff] }
 0x2c7   :  { %1231 = vrot.lane.b32.xlu1 %v801_v52, %s6689_s21  ;;  %977 = vrot.lane.b32.xlu0 %v738_v37, %s6688_s20  ;;  %v740_v37 = vld [vmem:[#allocation2 + $0x249] sm:$0xff]  ;;  %239 = vst.msk [vmem:[#allocation2 + $0x2c1] sm:$0xff] %vm33_vm0, %v174_v16 }
 0x2c8   :  { %v804_v24 = vld [vmem:[#allocation2 + $0x24a] sm:$0xff] }
 0x2c9   :  { %v8562_v17 = vpop.permute.xlu1 %1727  ;;  %v8564_v0 = vpop.permute.xlu0 %1473 }
 0x2cb   :  { %v6142_v10 = vpop.f32.mrb[18].mxu0  ;;  %2251 = vrot.lane.b32.xlu1 %v8558_v32, %s6693_s25  ;;  %1997 = vrot.lane.b32.xlu0 %v802_v49, %s6692_s24 }
 0x2cc   :  { %v3764_v46 = vadd.f32 %v8494_v60, %v6142_v10  ;;  %v3758_v56 = vpop.f32.mrb[19].mxu0 }
 0x2cd   :  { %v3759_v42 = vadd.f32 %v8494_v60, %v3758_v56  ;;  %v2748_v47 = vpop.permute.xlu1 %2747  ;;  %v2494_v41 = vpop.permute.xlu0 %2493  ;;  %v3039_v56 = vsel %vm3004_vm7, %v2974_v19, %v8542_v6 }
 0x2ce   :  { %v4006_v23 = vmax.f32 %v3764_v46, 0.0  ;;  %v3362_v50 = vsel %vm3329_vm12, %v3297_v45, %v2748_v47  ;;  %v3298_v63 = vsel %vm3264_vm11, %v3233_v59, %v2494_v41  ;;  %v8643_v46 = vld [vmem:[#allocation2 + $0x258] sm:$0xff]  ;;  %v3104_v47 = vsel %vm3069_vm8, %v3039_v56, %v8562_v17  ;;  %v8672_v59 = vld [vmem:[#allocation2 + $0x260] sm:$0xff] }
 0x2cf   :  { %v4005_v58 = vmax.f32 %v3759_v42, 0.0  ;;  %1487 = vrot.lane.b32.xlu1 %v8558_v32, %s6690_s22  ;;  %1233 = vrot.lane.b32.xlu0 %v802_v49, %s6689_s21 }
 0x2d0   :  { %4071 = vst.msk [vmem:[#allocation4 + $0x98] sm:$0xff] %vm4051_vm14, %v4006_v23  ;;  %6161 = vmatprep.mubr.msk.f32.mxu0 %vm3405_vm13, %v3362_v50 }
 0x2d1   :  { %4070 = vst.msk [vmem:[#allocation4 + $0x90] sm:$0xff] %vm4051_vm14, %v4005_v58  ;;  %v8595_v34 = vpop.permute.xlu1 %1729  ;;  %v8597_v51 = vpop.permute.xlu0 %963 }
 0x2d2   :  { %v2911_v19 = vsel %vm33_vm0, %v8228_v44, %v8597_v51 }
 0x2d3   :  { %2507 = vrot.lane.b32.xlu1 %v739_v48, %s6694_s13  ;;  %2253 = vrot.lane.b32.xlu0 %v8590_v5, %s6693_s25 }
 0x2d5   :  { %v2750_v40 = vpop.permute.xlu1 %2749  ;;  %v1984_v55 = vpop.permute.xlu0 %1983 }
 0x2d6   :  { %v3363_v52 = vsel %vm3329_vm12, %v3298_v63, %v2750_v40  ;;  %v3169_v15 = vsel %vm3134_vm9, %v3104_v47, %v1984_v55  ;;  %v8720_v47 = vld [vmem:[#allocation2 + $0x270] sm:$0xff] }
 0x2d7   :  { %1743 = vrot.lane.b32.xlu1 %v739_v48, %s6691_s23  ;;  %1489 = vrot.lane.b32.xlu0 %v8590_v5, %s6690_s22 }
 0x2d8   :  { %v4134_v14 = vld [vmem:[#allocation4 + $0x90] ss:$2 sm:$0xff]  ;;  %v4198_v35 = vld [vmem:[#allocation4 + $0x91] ss:$2 sm:$0xff]  ;;  %6162 = vmatmul.mubr.msk.f32.gmra.mrb[32].mxu0 %vm3405_vm13, %v3363_v52 }
 0x2d9   :  { %v4252_v7 = vmax.f32 %v4134_v14, %v4198_v35  ;;  %v8612_v33 = vpop.permute.xlu1 %1219  ;;  %v8614_v57 = vpop.permute.xlu0 %965 }
 0x2da   :  { %v2976_v56 = vsel %vm2939_vm6, %v2911_v19, %v8612_v33  ;;  %v176_v33 = vld [vmem:[%s10396_s0 + $0x1b8] sm:$0xff] }
 0x2db   :  { %4284 = vst.msk [vmem:[#allocation5 + $0x48] sm:$0xff] %vm4051_vm14, %v4252_v7  ;;  %2763 = vrot.lane.b32.xlu1 %v803_v21, %s6696_s1  ;;  %2509 = vrot.lane.b32.xlu0 %v740_v37, %s6694_s13  ;;  %v742_v7 = vld [vmem:[#allocation2 + $0x261] sm:$0xff] }
 0x2dc   :  { %241 = vst.msk [vmem:[#allocation2 + $0x2d9] sm:$0xff] %vm33_vm0, %v176_v33 }
 0x2dd   :  { %v2240_v49 = vpop.permute.xlu1 %2239  ;;  %v1986_v22 = vpop.permute.xlu0 %1985 }
 0x2de   :  { %v3234_v4 = vsel %vm3199_vm10, %v3169_v15, %v2240_v49 }
 0x2df   :  { %1745 = vrot.lane.b32.xlu1 %v740_v37, %s6691_s23  ;;  %979 = vrot.lane.b32.xlu0 %v739_v48, %s6688_s20  ;;  %v2910_v48 = vsel %vm33_vm0, %v8188_v61, %v8535_v8 }
 0x2e0   :  { %v2975_v20 = vsel %vm2939_vm6, %v2910_v48, %v8544_v18  ;;  %v2912_v48 = vsel %vm33_vm0, %v8258_v53, %v8614_v57 }
 0x2e1   :  { %v8629_v36 = vpop.permute.xlu1 %1475  ;;  %v8631_v31 = vpop.permute.xlu0 %1221  ;;  %v3040_v63 = vsel %vm3004_vm7, %v2975_v20, %v8564_v0 }
 0x2e2   :  { %v4327_v1 = vld [vmem:[#allocation5 + $0x48] sm:$0xff]  ;;  %v3105_v40 = vsel %vm3069_vm8, %v3040_v63, %v8595_v34  ;;  %v805_v34 = vld [vmem:[#allocation2 + $0x25a] sm:$0xff]  ;;  %v3041_v15 = vsel %vm3004_vm7, %v2976_v56, %v8629_v36  ;;  %v2977_v20 = vsel %vm2939_vm6, %v2912_v48, %v8631_v31 }
 0x2e3   :  { %2765 = vrot.lane.b32.xlu1 %v804_v24, %s6696_s1  ;;  %1999 = vrot.lane.b32.xlu0 %v803_v21, %s6692_s24  ;;  %v4343_v54 = vmax.f32 %v4311_v30, %v4327_v1  ;;  %v3170_v18 = vsel %vm3134_vm9, %v3105_v40, %v1986_v22  ;;  %v806_v30 = vld [vmem:[#allocation2 + $0x262] sm:$0xff]  ;;  %v8753_v63 = vld [vmem:[#allocation2 + $0x278] sm:$0xff] }
 0x2e4   :  { %v177_v56 = vld [vmem:[%s10396_s0 + $0x1c0] sm:$0xff] }
 0x2e5   :  { %v2496_v10 = vpop.permute.xlu1 %2495  ;;  %v2242_v9 = vpop.permute.xlu0 %2241  ;;  %4411 = vst.msk [vmem:[#allocation3 + $0x51] sm:$0xff] %vm4051_vm14, %v4343_v54 }
 0x2e6   :  { %v3299_v23 = vsel %vm3264_vm11, %v3234_v4, %v2496_v10  ;;  %v3235_v55 = vsel %vm3199_vm10, %v3170_v18, %v2242_v9  ;;  %v175_v10 = vld [vmem:[%s10396_s0 + $0x1b0] sm:$0xff]  ;;  %242 = vst.msk [vmem:[#allocation2 + $0x2e9] sm:$0xff] %vm33_vm0, %v177_v56 }
 0x2e7   :  { %1235 = vrot.lane.b32.xlu1 %v803_v21, %s6689_s21  ;;  %981 = vrot.lane.b32.xlu0 %v740_v37, %s6688_s20  ;;  %240 = vst.msk [vmem:[#allocation2 + $0x2d1] sm:$0xff] %vm33_vm0, %v175_v10  ;;  %v810_v56 = vld [vmem:[#allocation2 + $0x292] sm:$0xff] }
 0x2e9   :  { %v8647_v45 = vpop.permute.xlu1 %1731  ;;  %v8649_v42 = vpop.permute.xlu0 %1477 }
 0x2ea   :  { %v3042_v40 = vsel %vm3004_vm7, %v2977_v20, %v8649_v42 }
 0x2eb   :  { %v6145_v13 = vpop.f32.mrb[20].mxu0  ;;  %2255 = vrot.lane.b32.xlu1 %v8643_v46, %s6693_s25  ;;  %2001 = vrot.lane.b32.xlu0 %v804_v24, %s6692_s24 }
 0x2ec   :  { %v3774_v41 = vadd.f32 %v8494_v60, %v6145_v13  ;;  %v3768_v6 = vpop.f32.mrb[21].mxu0 }
 0x2ed   :  { %v3769_v50 = vadd.f32 %v8494_v60, %v3768_v6  ;;  %v2752_v62 = vpop.permute.xlu1 %2751  ;;  %v2498_v58 = vpop.permute.xlu0 %2497 }
 0x2ee   :  { %v4008_v17 = vmax.f32 %v3774_v41, 0.0  ;;  %v3364_v11 = vsel %vm3329_vm12, %v3299_v23, %v2752_v62  ;;  %v3300_v0 = vsel %vm3264_vm11, %v3235_v55, %v2498_v58  ;;  %v3106_v41 = vsel %vm3069_vm8, %v3041_v15, %v8647_v45 }
 0x2ef   :  { %v4007_v28 = vmax.f32 %v3769_v50, 0.0  ;;  %1491 = vrot.lane.b32.xlu1 %v8643_v46, %s6690_s22  ;;  %1237 = vrot.lane.b32.xlu0 %v804_v24, %s6689_s21 }
 0x2f0   :  { %4073 = vst.msk [vmem:[#allocation4 + $0xa8] sm:$0xff] %vm4051_vm14, %v4008_v17  ;;  %6164 = vmatprep.mubr.msk.f32.mxu0 %vm3405_vm13, %v3364_v11 }
 0x2f1   :  { %4072 = vst.msk [vmem:[#allocation4 + $0xa0] sm:$0xff] %vm4051_vm14, %v4007_v28  ;;  %v8677_v61 = vpop.permute.xlu1 %1733  ;;  %v8679_v8 = vpop.permute.xlu0 %967 }
 0x2f2   :  { %v3107_v18 = vsel %vm3069_vm8, %v3042_v40, %v8677_v61  ;;  %v807_v61 = vld [vmem:[#allocation2 + $0x272] sm:$0xff] }
 0x2f3   :  { %2511 = vrot.lane.b32.xlu1 %v741_v27, %s6694_s13  ;;  %2257 = vrot.lane.b32.xlu0 %v8672_v59, %s6693_s25 }
 0x2f5   :  { %v2754_v52 = vpop.permute.xlu1 %2753  ;;  %v1988_v21 = vpop.permute.xlu0 %1987 }
 0x2f6   :  { %v3365_v14 = vsel %vm3329_vm12, %v3300_v0, %v2754_v52  ;;  %v3171_v44 = vsel %vm3134_vm9, %v3106_v41, %v1988_v21 }
 0x2f7   :  { %1747 = vrot.lane.b32.xlu1 %v741_v27, %s6691_s23  ;;  %1493 = vrot.lane.b32.xlu0 %v8672_v59, %s6690_s22 }
 0x2f8   :  { %v4136_v35 = vld [vmem:[#allocation4 + $0xa0] ss:$2 sm:$0xff]  ;;  %v4200_v37 = vld [vmem:[#allocation4 + $0xa1] ss:$2 sm:$0xff]  ;;  %6165 = vmatmul.mubr.msk.f32.gmra.mrb[34].mxu0 %vm3405_vm13, %v3365_v14 }
 0x2f9   :  { %v4253_v49 = vmax.f32 %v4136_v35, %v4200_v37  ;;  %v8694_v22 = vpop.permute.xlu1 %1223  ;;  %v8696_v39 = vpop.permute.xlu0 %969  ;;  %v744_v35 = vld [vmem:[#allocation2 + $0x279] sm:$0xff] }
 0x2fb   :  { %4285 = vst.msk [vmem:[#allocation5 + $0x50] sm:$0xff] %vm4051_vm14, %v4253_v49  ;;  %2767 = vrot.lane.b32.xlu1 %v805_v34, %s6696_s1  ;;  %2513 = vrot.lane.b32.xlu0 %v742_v7, %s6694_s13 }
 0x2fd   :  { %v2244_v16 = vpop.permute.xlu1 %2243  ;;  %v1990_v24 = vpop.permute.xlu0 %1989 }
 0x2fe   :  { %v3236_v36 = vsel %vm3199_vm10, %v3171_v44, %v2244_v16  ;;  %v3172_v31 = vsel %vm3134_vm9, %v3107_v18, %v1990_v24 }
 0x2ff   :  { %1749 = vrot.lane.b32.xlu1 %v742_v7, %s6691_s23  ;;  %983 = vrot.lane.b32.xlu0 %v741_v27, %s6688_s20  ;;  %v743_v27 = vld [vmem:[#allocation2 + $0x271] sm:$0xff] }
 0x301   :  { %v8703_v1 = vpop.permute.xlu1 %1479  ;;  %v8705_v54 = vpop.permute.xlu0 %1225 }
 0x303   :  { %2769 = vrot.lane.b32.xlu1 %v806_v30, %s6696_s1  ;;  %2003 = vrot.lane.b32.xlu0 %v805_v34, %s6692_s24 }
 0x305   :  { %v2500_v9 = vpop.permute.xlu1 %2499  ;;  %v2246_v3 = vpop.permute.xlu0 %2245 }
 0x306   :  { %v3301_v45 = vsel %vm3264_vm11, %v3236_v36, %v2500_v9  ;;  %v3237_v55 = vsel %vm3199_vm10, %v3172_v31, %v2246_v3  ;;  %v4312_v3 = vld [vmem:[#allocation5 + $0x50] sm:$0xff]  ;;  %v8802_v36 = vld [vmem:[#allocation2 + $0x288] sm:$0xff] }
 0x307   :  { %1239 = vrot.lane.b32.xlu1 %v805_v34, %s6689_s21  ;;  %985 = vrot.lane.b32.xlu0 %v742_v7, %s6688_s20  ;;  %v745_v31 = vld [vmem:[#allocation2 + $0x289] sm:$0xff] }
 0x309   :  { %v8724_v13 = vpop.permute.xlu1 %1735  ;;  %v8726_v4 = vpop.permute.xlu0 %1481 }
 0x30b   :  { %v6148_v51 = vpop.f32.mrb[22].mxu0  ;;  %2259 = vrot.lane.b32.xlu1 %v8720_v47, %s6693_s25  ;;  %2005 = vrot.lane.b32.xlu0 %v806_v30, %s6692_s24 }
 0x30c   :  { %v3784_v6 = vadd.f32 %v8494_v60, %v6148_v51  ;;  %v3778_v23 = vpop.f32.mrb[23].mxu0  ;;  %v2913_v51 = vsel %vm33_vm0, %v8309_v26, %v8679_v8 }
 0x30d   :  { %v3779_v50 = vadd.f32 %v8494_v60, %v3778_v23  ;;  %v2756_v62 = vpop.permute.xlu1 %2755  ;;  %v2502_v58 = vpop.permute.xlu0 %2501  ;;  %v2978_v33 = vsel %vm2939_vm6, %v2913_v51, %v8694_v22  ;;  %v178_v22 = vld [vmem:[%s10396_s0 + $0x1c8] sm:$0xff] }
 0x30e   :  { %v4010_v17 = vmax.f32 %v3784_v6, 0.0  ;;  %v3366_v11 = vsel %vm3329_vm12, %v3301_v45, %v2756_v62  ;;  %v3302_v42 = vsel %vm3264_vm11, %v3237_v55, %v2502_v58  ;;  %v3043_v6 = vsel %vm3004_vm7, %v2978_v33, %v8703_v1  ;;  %243 = vst.msk [vmem:[#allocation2 + $0x2f1] sm:$0xff] %vm33_vm0, %v178_v22  ;;  %v8835_v55 = vld [vmem:[#allocation2 + $0x290] sm:$0xff] }
 0x30f   :  { %v4009_v28 = vmax.f32 %v3779_v50, 0.0  ;;  %1495 = vrot.lane.b32.xlu1 %v8720_v47, %s6690_s22  ;;  %1241 = vrot.lane.b32.xlu0 %v806_v30, %s6689_s21  ;;  %v808_v30 = vld [vmem:[#allocation2 + $0x27a] sm:$0xff]  ;;  %v3108_v50 = vsel %vm3069_vm8, %v3043_v6, %v8724_v13 }
 0x310   :  { %4075 = vst.msk [vmem:[#allocation4 + $0xb8] sm:$0xff] %vm4051_vm14, %v4010_v17  ;;  %6167 = vmatprep.mubr.msk.f32.mxu0 %vm3405_vm13, %v3366_v11 }
 0x311   :  { %4074 = vst.msk [vmem:[#allocation4 + $0xb0] sm:$0xff] %vm4051_vm14, %v4009_v28  ;;  %v8758_v53 = vpop.permute.xlu1 %1737  ;;  %v8760_v57 = vpop.permute.xlu0 %971 }
 0x312   :  { %v2915_v6 = vsel %vm33_vm0, %v8391_v38, %v8760_v57 }
 0x313   :  { %2515 = vrot.lane.b32.xlu1 %v743_v27, %s6694_s13  ;;  %2261 = vrot.lane.b32.xlu0 %v8753_v63, %s6693_s25 }
 0x315   :  { %v2758_v0 = vpop.permute.xlu1 %2757  ;;  %v1992_v52 = vpop.permute.xlu0 %1991 }
 0x316   :  { %v3367_v21 = vsel %vm3329_vm12, %v3302_v42, %v2758_v0  ;;  %v3173_v26 = vsel %vm3134_vm9, %v3108_v50, %v1992_v52 }
 0x317   :  { %1751 = vrot.lane.b32.xlu1 %v743_v27, %s6691_s23  ;;  %1497 = vrot.lane.b32.xlu0 %v8753_v63, %s6690_s22 }
 0x318   :  { %v4138_v14 = vld [vmem:[#allocation4 + $0xb0] ss:$2 sm:$0xff]  ;;  %v4202_v34 = vld [vmem:[#allocation4 + $0xb1] ss:$2 sm:$0xff]  ;;  %6168 = vmatmul.mubr.msk.f32.gmra.mrb[36].mxu0 %vm3405_vm13, %v3367_v21 }
 0x319   :  { %v4254_v37 = vmax.f32 %v4138_v14, %v4202_v34  ;;  %v8775_v7 = vpop.permute.xlu1 %1227  ;;  %v8777_v49 = vpop.permute.xlu0 %973 }
 0x31a   :  { %v2980_v50 = vsel %vm2939_vm6, %v2915_v6, %v8775_v7  ;;  %v180_v7 = vld [vmem:[%s10396_s0 + $0x1d8] sm:$0xff] }
 0x31b   :  { %4286 = vst.msk [vmem:[#allocation5 + $0x58] sm:$0xff] %vm4051_vm14, %v4254_v37  ;;  %2771 = vrot.lane.b32.xlu1 %v807_v61, %s6696_s1  ;;  %2517 = vrot.lane.b32.xlu0 %v744_v35, %s6694_s13  ;;  %v746_v37 = vld [vmem:[#allocation2 + $0x291] sm:$0xff] }
 0x31c   :  { %245 = vst.msk [vmem:[#allocation2 + $0x309] sm:$0xff] %vm33_vm0, %v180_v7 }
 0x31d   :  { %v2248_v16 = vpop.permute.xlu1 %2247  ;;  %v1994_v24 = vpop.permute.xlu0 %1993 }
 0x31e   :  { %v3238_v1 = vsel %vm3199_vm10, %v3173_v26, %v2248_v16  ;;  %v8883_v26 = vld [vmem:[#allocation2 + $0x2a0] sm:$0xff] }
 0x31f   :  { %1753 = vrot.lane.b32.xlu1 %v744_v35, %s6691_s23  ;;  %987 = vrot.lane.b32.xlu0 %v743_v27, %s6688_s20  ;;  %v2914_v27 = vsel %vm33_vm0, %v8341_v25, %v8696_v39 }
 0x320   :  { %v2979_v18 = vsel %vm2939_vm6, %v2914_v27, %v8705_v54  ;;  %v2916_v27 = vsel %vm33_vm0, %v8424_v12, %v8777_v49 }
 0x321   :  { %v8784_v10 = vpop.permute.xlu1 %1483  ;;  %v8786_v9 = vpop.permute.xlu0 %1229  ;;  %v3044_v42 = vsel %vm3004_vm7, %v2979_v18, %v8726_v4 }
 0x322   :  { %v4328_v19 = vld [vmem:[#allocation5 + $0x58] sm:$0xff]  ;;  %v3109_v0 = vsel %vm3069_vm8, %v3044_v42, %v8758_v53  ;;  %v809_v53 = vld [vmem:[#allocation2 + $0x28a] sm:$0xff]  ;;  %v2981_v18 = vsel %vm2939_vm6, %v2916_v27, %v8786_v9 }
 0x323   :  { %2773 = vrot.lane.b32.xlu1 %v808_v30, %s6696_s1  ;;  %2007 = vrot.lane.b32.xlu0 %v807_v61, %s6692_s24  ;;  %v4344_v15 = vmax.f32 %v4312_v3, %v4328_v19  ;;  %v3174_v54 = vsel %vm3134_vm9, %v3109_v0, %v1994_v24  ;;  %v8916_v42 = vld [vmem:[#allocation2 + $0x2a8] sm:$0xff]  ;;  %v813_v27 = vld [vmem:[#allocation2 + $0x2ba] sm:$0xff] }
 0x325   :  { %v2504_v41 = vpop.permute.xlu1 %2503  ;;  %v2250_v44 = vpop.permute.xlu0 %2249  ;;  %4412 = vst.msk [vmem:[#allocation3 + $0x61] sm:$0xff] %vm4051_vm14, %v4344_v15 }
 0x326   :  { %v3303_v13 = vsel %vm3264_vm11, %v3238_v1, %v2504_v41  ;;  %v3239_v52 = vsel %vm3199_vm10, %v3174_v54, %v2250_v44  ;;  %v179_v44 = vld [vmem:[%s10396_s0 + $0x1d0] sm:$0xff] }
 0x327   :  { %1243 = vrot.lane.b32.xlu1 %v807_v61, %s6689_s21  ;;  %989 = vrot.lane.b32.xlu0 %v744_v35, %s6688_s20  ;;  %244 = vst.msk [vmem:[#allocation2 + $0x301] sm:$0xff] %vm33_vm0, %v179_v44 }
 0x329   :  { %v8806_v23 = vpop.permute.xlu1 %1739  ;;  %v8808_v45 = vpop.permute.xlu0 %1485 }
 0x32a   :  { %v3046_v0 = vsel %vm3004_vm7, %v2981_v18, %v8808_v45 }
 0x32b   :  { %v6151_v8 = vpop.f32.mrb[24].mxu0  ;;  %2263 = vrot.lane.b32.xlu1 %v8802_v36, %s6693_s25  ;;  %2009 = vrot.lane.b32.xlu0 %v808_v30, %s6692_s24 }
 0x32c   :  { %v3794_v62 = vadd.f32 %v8494_v60, %v6151_v8  ;;  %v3788_v58 = vpop.f32.mrb[25].mxu0  ;;  %v3045_v8 = vsel %vm3004_vm7, %v2980_v50, %v8784_v10  ;;  %v181_v50 = vld [vmem:[%s10396_s0 + $0x1e0] sm:$0xff] }
 0x32d   :  { %v3789_v17 = vadd.f32 %v8494_v60, %v3788_v58  ;;  %v2760_v11 = vpop.permute.xlu1 %2759  ;;  %v2506_v48 = vpop.permute.xlu0 %2505  ;;  %246 = vst.msk [vmem:[#allocation2 + $0x319] sm:$0xff] %vm33_vm0, %v181_v50 }
 0x32e   :  { %v4012_v28 = vmax.f32 %v3794_v62, 0.0  ;;  %v3368_v20 = vsel %vm3329_vm12, %v3303_v13, %v2760_v11  ;;  %v3304_v4 = vsel %vm3264_vm11, %v3239_v52, %v2506_v48  ;;  %v3110_v62 = vsel %vm3069_vm8, %v3045_v8, %v8806_v23 }
 0x32f   :  { %v4011_v40 = vmax.f32 %v3789_v17, 0.0  ;;  %1499 = vrot.lane.b32.xlu1 %v8802_v36, %s6690_s22  ;;  %1245 = vrot.lane.b32.xlu0 %v808_v30, %s6689_s21 }
 0x330   :  { %4077 = vst.msk [vmem:[#allocation4 + $0xc8] sm:$0xff] %vm4051_vm14, %v4012_v28  ;;  %6170 = vmatprep.mubr.msk.f32.mxu0 %vm3405_vm13, %v3368_v20 }
 0x331   :  { %4076 = vst.msk [vmem:[#allocation4 + $0xc0] sm:$0xff] %vm4051_vm14, %v4011_v40  ;;  %v8840_v25 = vpop.permute.xlu1 %1741  ;;  %v8842_v39 = vpop.permute.xlu0 %975 }
 0x332   :  { %v3111_v54 = vsel %vm3069_vm8, %v3046_v0, %v8840_v25  ;;  %v8937_v25 = vld [vmem:[#allocation2 + $0x2a2] sm:$0xff] }
 0x333   :  { %2519 = vrot.lane.b32.xlu1 %v745_v31, %s6694_s13  ;;  %2265 = vrot.lane.b32.xlu0 %v8835_v55, %s6693_s25 }
 0x335   :  { %v2762_v21 = vpop.permute.xlu1 %2761  ;;  %v1996_v61 = vpop.permute.xlu0 %1995 }
 0x336   :  { %v3369_v14 = vsel %vm3329_vm12, %v3304_v4, %v2762_v21  ;;  %v3175_v38 = vsel %vm3134_vm9, %v3110_v62, %v1996_v61  ;;  %v8968_v62 = vld [vmem:[#allocation2 + $0x2c0] sm:$0xff] }
 0x337   :  { %1755 = vrot.lane.b32.xlu1 %v745_v31, %s6691_s23  ;;  %1501 = vrot.lane.b32.xlu0 %v8835_v55, %s6690_s22 }
 0x338   :  { %v4140_v34 = vld [vmem:[#allocation4 + $0xc0] ss:$2 sm:$0xff]  ;;  %v4204_v35 = vld [vmem:[#allocation4 + $0xc1] ss:$2 sm:$0xff]  ;;  %6171 = vmatmul.mubr.msk.f32.gmra.mrb[38].mxu0 %vm3405_vm13, %v3369_v14 }
 0x339   :  { %v4255_v16 = vmax.f32 %v4140_v34, %v4204_v35  ;;  %v8857_v24 = vpop.permute.xlu1 %1231  ;;  %v8859_v30 = vpop.permute.xlu0 %977  ;;  %v8940_v34 = vld [vmem:[#allocation2 + $0x2a9] sm:$0xff] }
 0x33b   :  { %4287 = vst.msk [vmem:[#allocation5 + $0x60] sm:$0xff] %vm4051_vm14, %v4255_v16  ;;  %2775 = vrot.lane.b32.xlu1 %v809_v53, %s6696_s1  ;;  %2521 = vrot.lane.b32.xlu0 %v746_v37, %s6694_s13 }
 0x33d   :  { %v2252_v3 = vpop.permute.xlu1 %2251  ;;  %v1998_v19 = vpop.permute.xlu0 %1997 }
 0x33e   :  { %v3240_v10 = vsel %vm3199_vm10, %v3175_v38, %v2252_v3  ;;  %v3176_v9 = vsel %vm3134_vm9, %v3111_v54, %v1998_v19  ;;  %v8970_v38 = vld [vmem:[#allocation2 + $0x2b8] sm:$0xff] }
 0x33f   :  { %1757 = vrot.lane.b32.xlu1 %v746_v37, %s6691_s23  ;;  %991 = vrot.lane.b32.xlu0 %v745_v31, %s6688_s20  ;;  %v747_v31 = vld [vmem:[#allocation2 + $0x2a1] sm:$0xff] }
 0x341   :  { %v8866_v15 = vpop.permute.xlu1 %1487  ;;  %v8868_v41 = vpop.permute.xlu0 %1233 }
 0x343   :  { %2777 = vrot.lane.b32.xlu1 %v810_v56, %s6696_s1  ;;  %2011 = vrot.lane.b32.xlu0 %v809_v53, %s6692_s24 }
 0x345   :  { %v2508_v51 = vpop.permute.xlu1 %2507  ;;  %v2254_v33 = vpop.permute.xlu0 %2253 }
 0x346   :  { %v3305_v23 = vsel %vm3264_vm11, %v3240_v10, %v2508_v51  ;;  %v3241_v52 = vsel %vm3199_vm10, %v3176_v9, %v2254_v33  ;;  %v4313_v33 = vld [vmem:[#allocation5 + $0x60] sm:$0xff]  ;;  %v2917_v10 = vsel %vm33_vm0, %v8473_v43, %v8842_v39 }
 0x347   :  { %1247 = vrot.lane.b32.xlu1 %v809_v53, %s6689_s21  ;;  %993 = vrot.lane.b32.xlu0 %v746_v37, %s6688_s20 }
 0x349   :  { %v8887_v22 = vpop.permute.xlu1 %1743  ;;  %v8889_v1 = vpop.permute.xlu0 %1489 }
 0x34b   :  { %v6154_v57 = vpop.f32.mrb[26].mxu0  ;;  %2267 = vrot.lane.b32.xlu1 %v8883_v26, %s6693_s25  ;;  %2013 = vrot.lane.b32.xlu0 %v810_v56, %s6692_s24 }
 0x34c   :  { %v3804_v58 = vadd.f32 %v8494_v60, %v6154_v57  ;;  %v3798_v13 = vpop.f32.mrb[27].mxu0 }
 0x34d   :  { %v3799_v17 = vadd.f32 %v8494_v60, %v3798_v13  ;;  %v2764_v11 = vpop.permute.xlu1 %2763  ;;  %v2510_v48 = vpop.permute.xlu0 %2509  ;;  %v749_v13 = vld [vmem:[#allocation2 + $0x2b9] sm:$0xff] }
 0x34e   :  { %v4014_v28 = vmax.f32 %v3804_v58, 0.0  ;;  %v3370_v20 = vsel %vm3329_vm12, %v3305_v23, %v2764_v11  ;;  %v3306_v45 = vsel %vm3264_vm11, %v3241_v52, %v2510_v48  ;;  %v2982_v58 = vsel %vm2939_vm6, %v2917_v10, %v8857_v24  ;;  %v182_v24 = vld [vmem:[%s10396_s0 + $0x1e8] sm:$0xff] }
 0x34f   :  { %v4013_v40 = vmax.f32 %v3799_v17, 0.0  ;;  %1503 = vrot.lane.b32.xlu1 %v8883_v26, %s6690_s22  ;;  %1249 = vrot.lane.b32.xlu0 %v810_v56, %s6689_s21  ;;  %v8955_v56 = vld [vmem:[#allocation2 + $0x2aa] sm:$0xff]  ;;  %v3047_v23 = vsel %vm3004_vm7, %v2982_v58, %v8866_v15  ;;  %247 = vst.msk [vmem:[#allocation2 + $0x321] sm:$0xff] %vm33_vm0, %v182_v24  ;;  %v2918_v52 = vsel %vm33_vm0, %v8511_v29, %v8859_v30 }
 0x350   :  { %4079 = vst.msk [vmem:[#allocation4 + $0xd8] sm:$0xff] %vm4051_vm14, %v4014_v28  ;;  %6173 = vmatprep.mubr.msk.f32.mxu0 %vm3405_vm13, %v3370_v20  ;;  %v3112_v43 = vsel %vm3069_vm8, %v3047_v23, %v8887_v22  ;;  %v9061_v23 = vld [vmem:[#allocation2 + $0x2d0] sm:$0xff] }
 0x351   :  { %4078 = vst.msk [vmem:[#allocation4 + $0xd0] sm:$0xff] %vm4051_vm14, %v4013_v40  ;;  %v8921_v12 = vpop.permute.xlu1 %1745  ;;  %v8923_v49 = vpop.permute.xlu0 %979  ;;  %v750_v40 = vld [vmem:[#allocation2 + $0x2c1] sm:$0xff] }
 0x352   :  { %v2919_v58 = vsel %vm33_vm0, %v8558_v32, %v8923_v49 }
 0x353   :  { %2523 = vrot.lane.b32.xlu1 %v747_v31, %s6694_s13  ;;  %2269 = vrot.lane.b32.xlu0 %v8916_v42, %s6693_s25 }
 0x355   :  { %v2766_v4 = vpop.permute.xlu1 %2765  ;;  %v2000_v21 = vpop.permute.xlu0 %1999 }
 0x356   :  { %v3371_v61 = vsel %vm3329_vm12, %v3306_v45, %v2766_v4  ;;  %v3177_v39 = vsel %vm3134_vm9, %v3112_v43, %v2000_v21  ;;  %v2983_v4 = vsel %vm2939_vm6, %v2918_v52, %v8868_v41  ;;  %v751_v52 = vld [vmem:[#allocation2 + $0x2d1] sm:$0xff] }
 0x357   :  { %1759 = vrot.lane.b32.xlu1 %v747_v31, %s6691_s23  ;;  %1505 = vrot.lane.b32.xlu0 %v8916_v42, %s6690_s22 }
 0x358   :  { %v4142_v14 = vld [vmem:[#allocation4 + $0xd0] ss:$2 sm:$0xff]  ;;  %v4206_v53 = vld [vmem:[#allocation4 + $0xd1] ss:$2 sm:$0xff]  ;;  %6174 = vmatmul.mubr.msk.f32.gmra.mrb[40].mxu0 %vm3405_vm13, %v3371_v61 }
 0x359   :  { %v4256_v35 = vmax.f32 %v4142_v14, %v4206_v53  ;;  %v8942_v37 = vpop.permute.xlu1 %1235  ;;  %v8944_v16 = vpop.permute.xlu0 %981 }
 0x35b   :  { %4288 = vst.msk [vmem:[#allocation5 + $0x68] sm:$0xff] %vm4051_vm14, %v4256_v35  ;;  %2779 = vrot.lane.b32.xlu1 %v8937_v25, %s6696_s1  ;;  %2525 = vrot.lane.b32.xlu0 %v8940_v34, %s6694_s13 }
 0x35d   :  { %v2256_v3 = vpop.permute.xlu1 %2255  ;;  %v2002_v19 = vpop.permute.xlu0 %2001 }
 0x35e   :  { %v3242_v15 = vsel %vm3199_vm10, %v3177_v39, %v2256_v3 }
 0x35f   :  { %2015 = vrot.lane.b32.xlu1 %v8937_v25, %s6692_s24  ;;  %1761 = vrot.lane.b32.xlu0 %v8940_v34, %s6691_s23 }
 0x361   :  { %v8957_v44 = vpop.permute.xlu1 %1491  ;;  %v8959_v51 = vpop.permute.xlu0 %1237 }
 0x362   :  { %v4329_v6 = vld [vmem:[#allocation5 + $0x68] sm:$0xff] }
 0x363   :  { %2017 = vrot.lane.b32.xlu1 %v8955_v56, %s6692_s24  ;;  %2781 = vrot.lane.b32.xlu0 %v8955_v56, %s6696_s1  ;;  %v4345_v8 = vmax.f32 %v4313_v33, %v4329_v6 }
 0x365   :  { %v2512_v57 = vpop.permute.xlu1 %2511  ;;  %v2258_v7 = vpop.permute.xlu0 %2257  ;;  %4413 = vst.msk [vmem:[#allocation3 + $0x71] sm:$0xff] %vm4051_vm14, %v4345_v8 }
 0x366   :  { %v3307_v22 = vsel %vm3264_vm11, %v3242_v15, %v2512_v57  ;;  %v183_v57 = vld [vmem:[%s10396_s0 + $0x1f0] sm:$0xff]  ;;  %v9082_v15 = vld [vmem:[%s10398_s2] ss:$0 sm:$0xff] }
 0x367   :  { %2273 = vrot.lane.b32.xlu1 %v8968_v62, %s6693_s25  ;;  %2271 = vrot.lane.b32.xlu0 %v8970_v38, %s6693_s25  ;;  %248 = vst.msk [vmem:[#allocation2 + $0x331] sm:$0xff] %vm33_vm0, %v183_v57 }
 0x369   :  { %v8985_v17 = vpop.permute.xlu1 %1747  ;;  %v8987_v11 = vpop.permute.xlu0 %1493 }
 0x36b   :  { %v6157_v48 = vpop.f32.mrb[28].mxu0  ;;  %995 = vrot.lane.b32.xlu1 %v747_v31, %s6688_s20  ;;  %2527 = vrot.lane.b32.xlu0 %v749_v13, %s6694_s13 }
 0x36c   :  { %v3814_v28 = vadd.f32 %v8494_v60, %v6157_v48  ;;  %v3808_v20 = vpop.f32.mrb[29].mxu0 }
 0x36d   :  { %v3809_v18 = vadd.f32 %v8494_v60, %v3808_v20  ;;  %v2768_v31 = vpop.permute.xlu1 %2767  ;;  %v2514_v0 = vpop.permute.xlu0 %2513  ;;  %v3048_v60 = vsel %vm3004_vm7, %v2983_v4, %v8889_v1  ;;  %v814_v1 = vld [vmem:[#allocation2 + $0x2c2] sm:$0xff] }
 0x36e   :  { %v4016_v54 = vmax.f32 %v3814_v28, 0.0  ;;  %v3372_v9 = vsel %vm3329_vm12, %v3307_v22, %v2768_v31  ;;  %v3113_v30 = vsel %vm3069_vm8, %v3048_v60, %v8921_v12 }
 0x36f   :  { %v4015_v45 = vmax.f32 %v3809_v18, 0.0  ;;  %2783 = vrot.lane.b32.xlu1 %v813_v27, %s6696_s1  ;;  %2529 = vrot.lane.b32.xlu0 %v750_v40, %s6694_s13  ;;  %v3178_v61 = vsel %vm3134_vm9, %v3113_v30, %v2002_v19 }
 0x370   :  { %4081 = vst.msk [vmem:[#allocation4 + $0xe8] sm:$0xff] %vm4051_vm14, %v4016_v54  ;;  %6176 = vmatprep.mubr.msk.f32.mxu0 %vm3405_vm13, %v3372_v9  ;;  %v3243_v41 = vsel %vm3199_vm10, %v3178_v61, %v2258_v7 }
 0x371   :  { %4080 = vst.msk [vmem:[#allocation4 + $0xe0] sm:$0xff] %vm4051_vm14, %v4015_v45  ;;  %v9015_v21 = vpop.permute.xlu1 %1749  ;;  %v9017_v29 = vpop.permute.xlu0 %983  ;;  %v3308_v14 = vsel %vm3264_vm11, %v3243_v41, %v2514_v0  ;;  %v2920_v0 = vsel %vm33_vm0, %v8590_v5, %v8944_v16  ;;  %v9099_v45 = vld [vmem:[#allocation2 + $0x2d8] sm:$0xff] }
 0x372   :  { %v2985_v9 = vsel %vm2939_vm6, %v2920_v0, %v8959_v51 }
 0x373   :  { %1251 = vrot.lane.b32.xlu1 %v8937_v25, %s6689_s21  ;;  %997 = vrot.lane.b32.xlu0 %v8940_v34, %s6688_s20  ;;  %v3050_v4 = vsel %vm3004_vm7, %v2985_v9, %v8987_v11 }
 0x374   :  { %v3115_v60 = vsel %vm3069_vm8, %v3050_v4, %v9015_v21  ;;  %v815_v21 = vld [vmem:[#allocation2 + $0x2d2] sm:$0xff]  ;;  %v753_v4 = vld [vmem:[#allocation2 + $0x2e9] sm:$0xff] }
 0x375   :  { %v2770_v53 = vpop.permute.xlu1 %2769  ;;  %v2004_v35 = vpop.permute.xlu0 %2003 }
 0x376   :  { %v3373_v3 = vsel %vm3329_vm12, %v3308_v14, %v2770_v53 }
 0x377   :  { %1253 = vrot.lane.b32.xlu1 %v8955_v56, %s6689_s21  ;;  %2785 = vrot.lane.b32.xlu0 %v814_v1, %s6696_s1 }
 0x378   :  { %v4144_v12 = vld [vmem:[#allocation4 + $0xe0] ss:$2 sm:$0xff]  ;;  %v4208_v19 = vld [vmem:[#allocation4 + $0xe1] ss:$2 sm:$0xff]  ;;  %6177 = vmatmul.mubr.msk.f32.gmra.mrb[42].mxu0 %vm3405_vm13, %v3373_v3 }
 0x379   :  { %v4257_v25 = vmax.f32 %v4144_v12, %v4208_v19  ;;  %v9033_v34 = vpop.permute.xlu1 %1239  ;;  %v9035_v33 = vpop.permute.xlu0 %985 }
 0x37b   :  { %4289 = vst.msk [vmem:[#allocation5 + $0x70] sm:$0xff] %vm4051_vm14, %v4257_v25  ;;  %1509 = vrot.lane.b32.xlu1 %v8968_v62, %s6690_s22  ;;  %1507 = vrot.lane.b32.xlu0 %v8970_v38, %s6690_s22 }
 0x37d   :  { %v2260_v56 = vpop.permute.xlu1 %2259  ;;  %v2006_v6 = vpop.permute.xlu0 %2005 }
 0x37e   :  { %v3180_v51 = vsel %vm3134_vm9, %v3115_v60, %v2006_v6  ;;  %v816_v6 = vld [vmem:[#allocation2 + $0x2da] sm:$0xff]  ;;  %v690_v60 = vld [vmem:[#allocation2 + $0x2f0] sm:$0xff] }
 0x37f   :  { %999 = vrot.lane.b32.xlu1 %v749_v13, %s6688_s20  ;;  %1763 = vrot.lane.b32.xlu0 %v749_v13, %s6691_s23  ;;  %v2984_v13 = vsel %vm2939_vm6, %v2919_v58, %v8942_v37  ;;  %v184_v37 = vld [vmem:[%s10396_s0 + $0x1f8] sm:$0xff]  ;;  %s6704_s0 = smov 112  }
 0x380   :  { %v3049_v43 = vsel %vm3004_vm7, %v2984_v13, %v8957_v44  ;;  %249 = vst.msk [vmem:[#allocation2 + $0x339] sm:$0xff] %vm33_vm0, %v184_v37  ;;  %v689_v37 = vld [vmem:[#allocation2 + $0x2e8] sm:$0xff] }
 0x381   :  { %v9044_v50 = vpop.permute.xlu1 %1495  ;;  %v9046_v8 = vpop.permute.xlu0 %1241  ;;  %v3114_v24 = vsel %vm3069_vm8, %v3049_v43, %v8985_v17 }
 0x382   :  { %v3179_v32 = vsel %vm3134_vm9, %v3114_v24, %v2004_v35  ;;  %v752_v35 = vld [vmem:[#allocation2 + $0x2d9] sm:$0xff] }
 0x383   :  { %2019 = vrot.lane.b32.xlu1 %v813_v27, %s6692_s24  ;;  %1765 = vrot.lane.b32.xlu0 %v750_v40, %s6691_s23  ;;  %v3244_v44 = vsel %vm3199_vm10, %v3179_v32, %v2260_v56  ;;  %v2921_v32 = vsel %vm33_vm0, %v8643_v46, %v9017_v29 }
 0x385   :  { %v2516_v7 = vpop.permute.xlu1 %2515  ;;  %v2262_v10 = vpop.permute.xlu0 %2261 }
 0x386   :  { %v3309_v20 = vsel %vm3264_vm11, %v3244_v44, %v2516_v7  ;;  %v3245_v30 = vsel %vm3199_vm10, %v3180_v51, %v2262_v10  ;;  %v4314_v10 = vld [vmem:[#allocation5 + $0x70] sm:$0xff] }
 0x387   :  { %1255 = vrot.lane.b32.xlu1 %v813_v27, %s6689_s21  ;;  %1001 = vrot.lane.b32.xlu0 %v750_v40, %s6688_s20 }
 0x389   :  { %v9065_v39 = vpop.permute.xlu1 %1751  ;;  %v9067_v48 = vpop.permute.xlu0 %1497 }
 0x38b   :  { %v6160_v49 = vpop.f32.mrb[30].mxu0  ;;  %2275 = vrot.lane.b32.xlu1 %v9061_v23, %s6693_s25  ;;  %2021 = vrot.lane.b32.xlu0 %v814_v1, %s6692_s24 }
 0x38c   :  { %v3824_v17 = vadd.f32 %v9082_v15, %v6160_v49  ;;  %v3818_v28 = vpop.f32.mrb[31].mxu0  ;;  %v2986_v49 = vsel %vm2939_vm6, %v2921_v32, %v9033_v34 }
 0x38d   :  { %v3819_v27 = vadd.f32 %v9082_v15, %v3818_v28  ;;  %v2772_v40 = vpop.permute.xlu1 %2771  ;;  %v2518_v22 = vpop.permute.xlu0 %2517  ;;  %v3051_v44 = vsel %vm3004_vm7, %v2986_v49, %v9044_v50 }
 0x38e   :  { %v4018_v18 = vmax.f32 %v3824_v17, 0.0  ;;  %v3374_v31 = vsel %vm3329_vm12, %v3309_v20, %v2772_v40  ;;  %v3310_v11 = vsel %vm3264_vm11, %v3245_v30, %v2518_v22  ;;  %v3116_v20 = vsel %vm3069_vm8, %v3051_v44, %v9065_v39 }
 0x38f   :  { %v4017_v54 = vmax.f32 %v3819_v27, 0.0  ;;  %1511 = vrot.lane.b32.xlu1 %v9061_v23, %s6690_s22  ;;  %1257 = vrot.lane.b32.xlu0 %v814_v1, %s6689_s21 }
 0x390   :  { %4083 = vst.msk [vmem:[#allocation4 + $0xf8] sm:$0xff] %vm4051_vm14, %v4018_v18  ;;  %6179 = vmatprep.mubr.msk.f32.mxu0 %vm3405_vm13, %v3374_v31 }
 0x391   :  { %4082 = vst.msk [vmem:[#allocation4 + $0xf0] sm:$0xff] %vm4051_vm14, %v4017_v54  ;;  %v9104_v5 = vpop.permute.xlu1 %1753  ;;  %v9106_v16 = vpop.permute.xlu0 %987  ;;  %v2922_v54 = vsel %vm33_vm0, %v8672_v59, %v9035_v33 }
 0x392   :  { %v2923_v32 = vsel %vm33_vm0, %v8720_v47, %v9106_v16 }
 0x393   :  { %2531 = vrot.lane.b32.xlu1 %v751_v52, %s6694_s13  ;;  %2277 = vrot.lane.b32.xlu0 %v9099_v45, %s6693_s25 }
 0x395   :  { %v2774_v61 = vpop.permute.xlu1 %2773  ;;  %v2008_v41 = vpop.permute.xlu0 %2007 }
 0x396   :  { %v3375_v1 = vsel %vm3329_vm12, %v3310_v11, %v2774_v61  ;;  %v3181_v46 = vsel %vm3134_vm9, %v3116_v20, %v2008_v41 }
 0x397   :  { %1767 = vrot.lane.b32.xlu1 %v751_v52, %s6691_s23  ;;  %1513 = vrot.lane.b32.xlu0 %v9099_v45, %s6690_s22 }
 0x398   :  { %v4146_v14 = vld [vmem:[#allocation4 + $0xf0] ss:$2 sm:$0xff]  ;;  %v4210_v53 = vld [vmem:[#allocation4 + $0xf1] ss:$2 sm:$0xff]  ;;  %6180 = vmatmul.mubr.msk.f32.gmra.mrb[44].mxu0 %vm3405_vm13, %v3375_v1 }
 0x399   :  { %v4258_v3 = vmax.f32 %v4146_v14, %v4210_v53  ;;  %v9121_v12 = vpop.permute.xlu1 %1243  ;;  %v9123_v19 = vpop.permute.xlu0 %989  ;;  %v754_v53 = vld [vmem:[#allocation2 + $0x2f1] sm:$0xff] }
 0x39a   :  { %v2988_v49 = vsel %vm2939_vm6, %v2923_v32, %v9121_v12 }
 0x39b   :  { %4290 = vst.msk [vmem:[#allocation5 + $0x78] sm:$0xff] %vm4051_vm14, %v4258_v3  ;;  %2787 = vrot.lane.b32.xlu1 %v815_v21, %s6696_s1  ;;  %2533 = vrot.lane.b32.xlu0 %v752_v35, %s6694_s13 }
 0x39d   :  { %v2264_v25 = vpop.permute.xlu1 %2263  ;;  %v2010_v56 = vpop.permute.xlu0 %2009 }
 0x39e   :  { %v3246_v34 = vsel %vm3199_vm10, %v3181_v46, %v2264_v25 }
 0x39f   :  { %1769 = vrot.lane.b32.xlu1 %v752_v35, %s6691_s23  ;;  %1003 = vrot.lane.b32.xlu0 %v751_v52, %s6688_s20  ;;  %v2987_v52 = vsel %vm2939_vm6, %v2922_v54, %v9046_v8  ;;  %v755_v54 = vld [vmem:[#allocation2 + $0x301] sm:$0xff] }
 0x3a0   :  { %v3052_v51 = vsel %vm3004_vm7, %v2987_v52, %v9067_v48 }
 0x3a1   :  { %v9130_v57 = vpop.permute.xlu1 %1499  ;;  %v9132_v7 = vpop.permute.xlu0 %1245  ;;  %v3117_v30 = vsel %vm3069_vm8, %v3052_v51, %v9104_v5 }
 0x3a2   :  { %v4330_v58 = vld [vmem:[#allocation5 + $0x78] sm:$0xff]  ;;  %v3182_v8 = vsel %vm3134_vm9, %v3117_v30, %v2010_v56  ;;  %v3053_v44 = vsel %vm3004_vm7, %v2988_v49, %v9130_v57 }
 0x3a3   :  { %2789 = vrot.lane.b32.xlu1 %v816_v6, %s6696_s1  ;;  %2023 = vrot.lane.b32.xlu0 %v815_v21, %s6692_s24  ;;  %v4346_v13 = vmax.f32 %v4314_v10, %v4330_v58  ;;  %v818_v10 = vld [vmem:[#allocation2 + $0x2f2] sm:$0xff] }
 0x3a5   :  { %v2520_v43 = vpop.permute.xlu1 %2519  ;;  %v2266_v24 = vpop.permute.xlu0 %2265  ;;  %4414 = vst.msk [vmem:[#allocation3 + $0x81] sm:$0xff] %vm4051_vm14, %v4346_v13 }
 0x3a6   :  { %v3311_v50 = vsel %vm3264_vm11, %v3246_v34, %v2520_v43  ;;  %v3247_v11 = vsel %vm3199_vm10, %v3182_v8, %v2266_v24 }
 0x3a7   :  { %1259 = vrot.lane.b32.xlu1 %v815_v21, %s6689_s21  ;;  %1005 = vrot.lane.b32.xlu0 %v752_v35, %s6688_s20  ;;  %v817_v21 = vld [vmem:[#allocation2 + $0x2ea] sm:$0xff] }
 0x3a9   :  { %v9146_v17 = vpop.permute.xlu1 %1755  ;;  %v9148_v28 = vpop.permute.xlu0 %1501 }
 0x3ab   :  { %v6163_v29 = vpop.f32.mrb[32].mxu0  ;;  %2279 = vrot.lane.b32.xlu1 %v689_v37, %s6693_s25  ;;  %2025 = vrot.lane.b32.xlu0 %v816_v6, %s6692_s24 }
 0x3ac   :  { %v3834_v27 = vadd.f32 %v9082_v15, %v6163_v29  ;;  %v3828_v40 = vpop.f32.mrb[33].mxu0  ;;  %v3118_v29 = vsel %vm3069_vm8, %v3053_v44, %v9146_v17 }
 0x3ad   :  { %v3829_v22 = vadd.f32 %v9082_v15, %v3828_v40  ;;  %v2776_v18 = vpop.permute.xlu1 %2775  ;;  %v2522_v31 = vpop.permute.xlu0 %2521 }
 0x3ae   :  { %v4020_v0 = vmax.f32 %v3834_v27, 0.0  ;;  %v3376_v39 = vsel %vm3329_vm12, %v3311_v50, %v2776_v18  ;;  %v3312_v61 = vsel %vm3264_vm11, %v3247_v11, %v2522_v31  ;;  %v2924_v31 = vsel %vm33_vm0, %v8753_v63, %v9123_v19  ;;  %v819_v11 = vld [vmem:[#allocation2 + $0x302] sm:$0xff] }
 0x3af   :  { %v4019_v9 = vmax.f32 %v3829_v22, 0.0  ;;  %1515 = vrot.lane.b32.xlu1 %v689_v37, %s6690_s22  ;;  %1261 = vrot.lane.b32.xlu0 %v816_v6, %s6689_s21  ;;  %v691_v37 = vld [vmem:[#allocation2 + $0x300] sm:$0xff] }
 0x3b0   :  { %4085 = vst.msk [vmem:[#allocation4 + $0x108] sm:$0xff] %vm4051_vm14, %v4020_v0  ;;  %6182 = vmatprep.mubr.msk.f32.mxu0 %vm3405_vm13, %v3376_v39  ;;  %v2989_v39 = vsel %vm2939_vm6, %v2924_v31, %v9132_v7 }
 0x3b1   :  { %4084 = vst.msk [vmem:[#allocation4 + $0x100] sm:$0xff] %vm4051_vm14, %v4019_v9  ;;  %v9172_v59 = vpop.permute.xlu1 %1757  ;;  %v9174_v33 = vpop.permute.xlu0 %991  ;;  %v692_v9 = vld [vmem:[#allocation2 + $0x308] sm:$0xff]  ;;  %v3054_v52 = vsel %vm3004_vm7, %v2989_v39, %v9148_v28 }
 0x3b3   :  { %2535 = vrot.lane.b32.xlu1 %v753_v4, %s6694_s13  ;;  %2281 = vrot.lane.b32.xlu0 %v690_v60, %s6693_s25 }
 0x3b5   :  { %v2778_v48 = vpop.permute.xlu1 %2777  ;;  %v2012_v41 = vpop.permute.xlu0 %2011 }
 0x3b6   :  { %v3377_v1 = vsel %vm3329_vm12, %v3312_v61, %v2778_v48  ;;  %v3183_v34 = vsel %vm3134_vm9, %v3118_v29, %v2012_v41  ;;  %v756_v48 = vld [vmem:[#allocation2 + $0x309] sm:$0xff] }
 0x3b7   :  { %1771 = vrot.lane.b32.xlu1 %v753_v4, %s6691_s23  ;;  %1517 = vrot.lane.b32.xlu0 %v690_v60, %s6690_s22 }
 0x3b8   :  { %v4148_v5 = vld [vmem:[#allocation4 + $0x100] ss:$2 sm:$0xff]  ;;  %v4212_v14 = vld [vmem:[#allocation4 + $0x101] ss:$2 sm:$0xff]  ;;  %6183 = vmatmul.mubr.msk.f32.gmra.mrb[46].mxu0 %vm3405_vm13, %v3377_v1 }
 0x3b9   :  { %v4259_v35 = vmax.f32 %v4148_v5, %v4212_v14  ;;  %v9187_v3 = vpop.permute.xlu1 %1247  ;;  %v9189_v25 = vpop.permute.xlu0 %993  ;;  %v2925_v5 = vsel %vm33_vm0, %v8802_v36, %v9174_v33  ;;  %v820_v33 = vld [vmem:[#allocation2 + $0x30a] sm:$0xff] }
 0x3ba   :  { %v2990_v14 = vsel %vm2939_vm6, %v2925_v5, %v9187_v3 }
 0x3bb   :  { %4291 = vst.msk [vmem:[#allocation5 + $0x80] sm:$0xff] %vm4051_vm14, %v4259_v35  ;;  %2791 = vrot.lane.b32.xlu1 %v817_v21, %s6696_s1  ;;  %2537 = vrot.lane.b32.xlu0 %v754_v53, %s6694_s13 }
 0x3bd   :  { %v2268_v56 = vpop.permute.xlu1 %2267  ;;  %v2014_v6 = vpop.permute.xlu0 %2013 }
 0x3be   :  { %v3248_v16 = vsel %vm3199_vm10, %v3183_v34, %v2268_v56 }
 0x3bf   :  { %1773 = vrot.lane.b32.xlu1 %v754_v53, %s6691_s23  ;;  %1007 = vrot.lane.b32.xlu0 %v753_v4, %s6688_s20  ;;  %v3119_v4 = vsel %vm3069_vm8, %v3054_v52, %v9172_v59 }
 0x3c0   :  { %v3184_v60 = vsel %vm3134_vm9, %v3119_v4, %v2014_v6 }
 0x3c1   :  { %v9196_v58 = vpop.permute.xlu1 %1503  ;;  %v9198_v13 = vpop.permute.xlu0 %1249 }
 0x3c2   :  { %v4315_v32 = vld [vmem:[#allocation5 + $0x80] sm:$0xff] }
 0x3c3   :  { %2793 = vrot.lane.b32.xlu1 %v818_v10, %s6696_s1  ;;  %2027 = vrot.lane.b32.xlu0 %v817_v21, %s6692_s24 }
 0x3c5   :  { %v2524_v43 = vpop.permute.xlu1 %2523  ;;  %v2270_v24 = vpop.permute.xlu0 %2269 }
 0x3c6   :  { %v3313_v57 = vsel %vm3264_vm11, %v3248_v16, %v2524_v43  ;;  %v3249_v7 = vsel %vm3199_vm10, %v3184_v60, %v2270_v24  ;;  %v9285_v16 = vld [vmem:[#allocation2 + $0x318] sm:$0xff] }
 0x3c7   :  { %1263 = vrot.lane.b32.xlu1 %v817_v21, %s6689_s21  ;;  %1009 = vrot.lane.b32.xlu0 %v754_v53, %s6688_s20  ;;  %v3055_v53 = vsel %vm3004_vm7, %v2990_v14, %v9196_v58  ;;  %v821_v60 = vld [vmem:[#allocation2 + $0x31a] sm:$0xff] }
 0x3c9   :  { %v1760_v20 = vpop.permute.xlu1 %1759  ;;  %v9211_v46 = vpop.permute.xlu0 %1505 }
 0x3ca   :  { %v3120_v6 = vsel %vm3069_vm8, %v3055_v53, %v1760_v20 }
 0x3cb   :  { %v6166_v47 = vpop.f32.mrb[34].mxu0  ;;  %2283 = vrot.lane.b32.xlu1 %v691_v37, %s6693_s25  ;;  %2029 = vrot.lane.b32.xlu0 %v818_v10, %s6692_s24 }
 0x3cc   :  { %v3844_v12 = vadd.f32 %v9082_v15, %v6166_v47  ;;  %v3838_v27 = vpop.f32.mrb[35].mxu0 }
 0x3cd   :  { %v3839_v40 = vadd.f32 %v9082_v15, %v3838_v27  ;;  %v2780_v50 = vpop.permute.xlu1 %2779  ;;  %v2526_v22 = vpop.permute.xlu0 %2525 }
 0x3ce   :  { %v4022_v18 = vmax.f32 %v3844_v12, 0.0  ;;  %v3378_v17 = vsel %vm3329_vm12, %v3313_v57, %v2780_v50  ;;  %v3314_v51 = vsel %vm3264_vm11, %v3249_v7, %v2526_v22 }
 0x3cf   :  { %v4021_v0 = vmax.f32 %v3839_v40, 0.0  ;;  %1519 = vrot.lane.b32.xlu1 %v691_v37, %s6690_s22  ;;  %1265 = vrot.lane.b32.xlu0 %v818_v10, %s6689_s21  ;;  %v2926_v37 = vsel %vm33_vm0, %v8835_v55, %v9189_v25 }
 0x3d0   :  { %4087 = vst.msk [vmem:[#allocation4 + $0x118] sm:$0xff] %vm4051_vm14, %v4022_v18  ;;  %6185 = vmatprep.mubr.msk.f32.mxu0 %vm3405_vm13, %v3378_v17  ;;  %v2991_v20 = vsel %vm2939_vm6, %v2926_v37, %v9198_v13 }
 0x3d1   :  { %4086 = vst.msk [vmem:[#allocation4 + $0x110] sm:$0xff] %vm4051_vm14, %v4021_v0  ;;  %v2016_v63 = vpop.permute.xlu1 %2015  ;;  %v1762_v19 = vpop.permute.xlu0 %1761  ;;  %v3056_v29 = vsel %vm3004_vm7, %v2991_v20, %v9211_v46 }
 0x3d2   :  { %v3185_v10 = vsel %vm3134_vm9, %v3120_v6, %v2016_v63  ;;  %v3121_v55 = vsel %vm3069_vm8, %v3056_v29, %v1762_v19 }
 0x3d3   :  { %2539 = vrot.lane.b32.xlu1 %v755_v54, %s6694_s13  ;;  %2285 = vrot.lane.b32.xlu0 %v692_v9, %s6693_s25 }
 0x3d5   :  { %v2018_v30 = vpop.permute.xlu1 %2017  ;;  %v2782_v8 = vpop.permute.xlu0 %2781 }
 0x3d6   :  { %v3379_v28 = vsel %vm3329_vm12, %v3314_v51, %v2782_v8  ;;  %v3186_v25 = vsel %vm3134_vm9, %v3121_v55, %v2018_v30  ;;  %v758_v30 = vld [vmem:[#allocation2 + $0x321] sm:$0xff] }
 0x3d7   :  { %1775 = vrot.lane.b32.xlu1 %v755_v54, %s6691_s23  ;;  %1521 = vrot.lane.b32.xlu0 %v692_v9, %s6690_s22  ;;  %v9303_v9 = vld [vmem:[#allocation2 + $0x320] sm:$0xff] }
 0x3d8   :  { %v4150_v59 = vld [vmem:[#allocation4 + $0x110] ss:$2 sm:$0xff]  ;;  %v4214_v61 = vld [vmem:[#allocation4 + $0x111] ss:$2 sm:$0xff]  ;;  %6186 = vmatmul.mubr.msk.f32.gmra.mrb[48].mxu0 %vm3405_vm13, %v3379_v28 }
 0x3d9   :  { %v4260_v41 = vmax.f32 %v4150_v59, %v4214_v61  ;;  %v2274_v1 = vpop.permute.xlu1 %2273  ;;  %v2272_v21 = vpop.permute.xlu0 %2271 }
 0x3da   :  { %v3250_v36 = vsel %vm3199_vm10, %v3185_v10, %v2272_v21  ;;  %v3251_v13 = vsel %vm3199_vm10, %v3186_v25, %v2274_v1  ;;  %v759_v25 = vld [vmem:[#allocation2 + $0x331] sm:$0xff] }
 0x3db   :  { %4292 = vst.msk [vmem:[#allocation5 + $0x88] sm:$0xff] %vm4051_vm14, %v4260_v41  ;;  %2795 = vrot.lane.b32.xlu1 %v819_v11, %s6696_s1  ;;  %2541 = vrot.lane.b32.xlu0 %v756_v48, %s6694_s13 }
 0x3dd   :  { %v9256_v35 = vpop.permute.xlu1 %995  ;;  %v2528_v56 = vpop.permute.xlu0 %2527 }
 0x3de   :  { %v3315_v43 = vsel %vm3264_vm11, %v3250_v36, %v2528_v56  ;;  %v2927_v14 = vsel %vm33_vm0, %v8883_v26, %v9256_v35  ;;  %v695_v56 = vld [vmem:[#allocation2 + $0x330] sm:$0xff] }
 0x3df   :  { %1777 = vrot.lane.b32.xlu1 %v756_v48, %s6691_s23  ;;  %1011 = vrot.lane.b32.xlu0 %v755_v54, %s6688_s20  ;;  %v757_v54 = vld [vmem:[#allocation2 + $0x319] sm:$0xff] }
 0x3e1   :  { %v2784_v3 = vpop.permute.xlu1 %2783  ;;  %v2530_v24 = vpop.permute.xlu0 %2529 }
 0x3e2   :  { %v3380_v58 = vsel %vm3329_vm12, %v3315_v43, %v2784_v3  ;;  %v4331_v49 = vld [vmem:[#allocation5 + $0x88] sm:$0xff]  ;;  %v3316_v46 = vsel %vm3264_vm11, %v3251_v13, %v2530_v24  ;;  %v696_v13 = vld [vmem:[#allocation2 + $0x338] sm:$0xff] }
 0x3e3   :  { %2797 = vrot.lane.b32.xlu1 %v820_v33, %s6696_s1  ;;  %2031 = vrot.lane.b32.xlu0 %v819_v11, %s6692_s24  ;;  %v4347_v44 = vmax.f32 %v4315_v32, %v4331_v49 }
 0x3e4   :  { %6188 = vmatprep.mubr.msk.f32.mxu0 %vm3405_vm13, %v3380_v58 }
 0x3e5   :  { %v9275_v34 = vpop.permute.xlu1 %1251  ;;  %v9277_v47 = vpop.permute.xlu0 %997  ;;  %4415 = vst.msk [vmem:[#allocation3 + $0xb1] sm:$0xff] %vm4051_vm14, %v4347_v44 }
 0x3e6   :  { %v2992_v53 = vsel %vm2939_vm6, %v2927_v14, %v9275_v34  ;;  %v2928_v29 = vsel %vm33_vm0, %v8916_v42, %v9277_v47 }
 0x3e7   :  { %1267 = vrot.lane.b32.xlu1 %v819_v11, %s6689_s21  ;;  %1013 = vrot.lane.b32.xlu0 %v756_v48, %s6688_s20  ;;  %v822_v48 = vld [vmem:[#allocation2 + $0x322] sm:$0xff] }
 0x3e9   :  { %v9288_v12 = vpop.permute.xlu1 %1253  ;;  %v2786_v27 = vpop.permute.xlu0 %2785 }
 0x3ea   :  { %v3381_v57 = vsel %vm3329_vm12, %v3316_v46, %v2786_v27  ;;  %v2993_v55 = vsel %vm2939_vm6, %v2928_v29, %v9288_v12  ;;  %v5134_v12 = vld [vmem:[%s10399_s3] sm:$0xff] }
 0x3eb   :  { %v6169_v40 = vpop.f32.mrb[36].mxu0  ;;  %2287 = vrot.lane.b32.xlu1 %v9285_v16, %s6693_s25  ;;  %2033 = vrot.lane.b32.xlu0 %v820_v33, %s6692_s24 }
 0x3ec   :  { %v3854_v50 = vadd.f32 %v9082_v15, %v6169_v40  ;;  %v3848_v22 = vpop.f32.mrb[37].mxu0  ;;  %6189 = vmatmul.mubr.msk.f32.gmra.mrb[50].mxu0 %vm3405_vm13, %v3381_v57  ;;  %v5135_v57 = vld [vmem:[%s10399_s3 + $0x8] sm:$0xff] }
 0x3ed   :  { %v3849_v18 = vadd.f32 %v9082_v15, %v3848_v22  ;;  %v9297_v17 = vpop.permute.xlu1 %1509  ;;  %v1508_v31 = vpop.permute.xlu0 %1507 }
 0x3ee   :  { %v4024_v0 = vmax.f32 %v3854_v50, 0.0  ;;  %v3057_v6 = vsel %vm3004_vm7, %v2992_v53, %v1508_v31  ;;  %v3058_v46 = vsel %vm3004_vm7, %v2993_v55, %v9297_v17  ;;  %v6239_v50 = vpack.c.bf16 %v5135_v57, %v5134_v12  ;;  %v5140_v53 = vld [vmem:[%s10399_s3 + $0x30] sm:$0xff]  ;;  %v5145_v55 = vld [vmem:[%s10399_s3 + $0x58] sm:$0xff] }
 0x3ef   :  { %v4023_v39 = vmax.f32 %v3849_v18, 0.0  ;;  %1523 = vrot.lane.b32.xlu1 %v9285_v16, %s6690_s22  ;;  %1269 = vrot.lane.b32.xlu0 %v820_v33, %s6689_s21  ;;  %v6697_v18 = vmov 0.0|0.0   ;;  %v761_v12 = vld [vmem:[#allocation2 + $0x349] sm:$0xff] }
 0x3f0   :  { %4089 = vst.msk [vmem:[#allocation4 + $0x128] sm:$0xff] %vm4051_vm14, %v4024_v0  ;;  %6238 = vmatprep.subr.bf16.mxu1 %v6697_v18  ;;  %6329 = vmatprep.subr.bf16.mxu0 %v6697_v18 }
 0x3f1   :  { %4088 = vst.msk [vmem:[#allocation4 + $0x120] sm:$0xff] %vm4051_vm14, %v4023_v39  ;;  %v9306_v52 = vpop.permute.xlu1 %999  ;;  %v1764_v63 = vpop.permute.xlu0 %1763  ;;  %6240 = vmatpush1.bf16.msra.mxu1 %v6239_v50 }
 0x3f2   :  { %v3122_v33 = vsel %vm3069_vm8, %v3057_v6, %v1764_v63  ;;  %6241 = vmatprep.subr.bf16.mxu1 %v6697_v18  ;;  %v5137_v63 = vld [vmem:[%s10399_s3 + $0x18] sm:$0xff] }
 0x3f3   :  { %2543 = vrot.lane.b32.xlu1 %v757_v54, %s6694_s13  ;;  %2289 = vrot.lane.b32.xlu0 %v9303_v9, %s6693_s25 }
 0x3f5   :  { %v2020_v19 = vpop.permute.xlu1 %2019  ;;  %v1766_v4 = vpop.permute.xlu0 %1765 }
 0x3f6   :  { %v3187_v43 = vsel %vm3134_vm9, %v3122_v33, %v2020_v19  ;;  %v3123_v27 = vsel %vm3069_vm8, %v3058_v46, %v1766_v4  ;;  %v823_v19 = vld [vmem:[#allocation2 + $0x332] sm:$0xff]  ;;  %v633_v33 = vld [vmem:[#allocation2 + $0x33a] sm:$0xff] }
 0x3f7   :  { %1779 = vrot.lane.b32.xlu1 %v757_v54, %s6691_s23  ;;  %1525 = vrot.lane.b32.xlu0 %v9303_v9, %s6690_s22 }
 0x3f8   :  { %v4152_v7 = vld [vmem:[#allocation4 + $0x120] ss:$2 sm:$0xff]  ;;  %v4216_v51 = vld [vmem:[#allocation4 + $0x121] ss:$2 sm:$0xff] }
 0x3f9   :  { %v4261_v8 = vmax.f32 %v4152_v7, %v4216_v51  ;;  %v9314_v28 = vpop.permute.xlu1 %1255  ;;  %v9316_v11 = vpop.permute.xlu0 %1001  ;;  %v760_v51 = vld [vmem:[#allocation2 + $0x339] sm:$0xff] }
 0x3fb   :  { %4293 = vst.msk [vmem:[#allocation5 + $0x90] sm:$0xff] %vm4051_vm14, %v4261_v8  ;;  %2799 = vrot.lane.b32.xlu1 %v821_v60, %s6696_s1  ;;  %2545 = vrot.lane.b32.xlu0 %v758_v30, %s6694_s13 }
 0x3fd   :  { %v2276_v59 = vpop.permute.xlu1 %2275  ;;  %v2022_v61 = vpop.permute.xlu0 %2021 }
 0x3fe   :  { %v3252_v26 = vsel %vm3199_vm10, %v3187_v43, %v2276_v59  ;;  %v3188_v40 = vsel %vm3134_vm9, %v3123_v27, %v2022_v61  ;;  %v5138_v61 = vld [vmem:[%s10399_s3 + $0x20] sm:$0xff]  ;;  %v762_v27 = vld [vmem:[#allocation2 + $0x351] sm:$0xff] }
 0x3ff   :  { %1781 = vrot.lane.b32.xlu1 %v758_v30, %s6691_s23  ;;  %1015 = vrot.lane.b32.xlu0 %v757_v54, %s6688_s20  ;;  %v5136_v54 = vld [vmem:[%s10399_s3 + $0x10] sm:$0xff] }
 0x400   :  { %v6242_v4 = vpack.c.bf16 %v5137_v63, %v5136_v54  ;;  %v826_v54 = vld [vmem:[#allocation2 + $0x352] sm:$0xff]  ;;  %v825_v63 = vld [vmem:[#allocation2 + $0x34a] sm:$0xff] }
 0x401   :  { %v9323_v41 = vpop.permute.xlu1 %1511  ;;  %v9325_v1 = vpop.permute.xlu0 %1257 }
 0x402   :  { %6243 = vmatpush1.bf16.msra.mxu1 %v6242_v4 }
 0x403   :  { %2801 = vrot.lane.b32.xlu1 %v822_v48, %s6696_s1  ;;  %2035 = vrot.lane.b32.xlu0 %v821_v60, %s6692_s24 }
 0x404   :  { %6244 = vmatprep.subr.bf16.mxu1 %v6697_v18 }
 0x405   :  { %v2532_v21 = vpop.permute.xlu1 %2531  ;;  %v2278_v5 = vpop.permute.xlu0 %2277 }
 0x406   :  { %v3317_v58 = vsel %vm3264_vm11, %v3252_v26, %v2532_v21  ;;  %v3253_v22 = vsel %vm3199_vm10, %v3188_v40, %v2278_v5  ;;  %v4316_v26 = vld [vmem:[#allocation5 + $0x90] sm:$0xff] }
 0x407   :  { %1271 = vrot.lane.b32.xlu1 %v821_v60, %s6689_s21  ;;  %1017 = vrot.lane.b32.xlu0 %v758_v30, %s6688_s20 }
 0x409   :  { %v9337_v10 = vpop.permute.xlu1 %1767  ;;  %v9339_v36 = vpop.permute.xlu0 %1513 }
 0x40b   :  { %v6172_v3 = vpop.f32.mrb[38].mxu0  ;;  %2291 = vrot.lane.b32.xlu1 %v695_v56, %s6693_s25  ;;  %2037 = vrot.lane.b32.xlu0 %v822_v48, %s6692_s24 }
 0x40c   :  { %v3864_v35 = vadd.f32 %v9082_v15, %v6172_v3  ;;  %v3858_v24 = vpop.f32.mrb[39].mxu0 }
 0x40d   :  { %v3859_v32 = vadd.f32 %v9082_v15, %v3858_v24  ;;  %v2788_v49 = vpop.permute.xlu1 %2787  ;;  %v2534_v37 = vpop.permute.xlu0 %2533  ;;  %v5142_v24 = vld [vmem:[%s10399_s3 + $0x40] sm:$0xff] }
 0x40e   :  { %v4026_v44 = vmax.f32 %v3864_v35, 0.0  ;;  %v3382_v20 = vsel %vm3329_vm12, %v3317_v58, %v2788_v49  ;;  %v3318_v17 = vsel %vm3264_vm11, %v3253_v22, %v2534_v37  ;;  %v5143_v58 = vld [vmem:[%s10399_s3 + $0x48] sm:$0xff]  ;;  %v698_v37 = vld [vmem:[#allocation2 + $0x350] sm:$0xff] }
 0x40f   :  { %v4025_v34 = vmax.f32 %v3859_v32, 0.0  ;;  %1527 = vrot.lane.b32.xlu1 %v695_v56, %s6690_s22  ;;  %1273 = vrot.lane.b32.xlu0 %v822_v48, %s6689_s21  ;;  %v5139_v48 = vld [vmem:[%s10399_s3 + $0x28] sm:$0xff]  ;;  %v5141_v56 = vld [vmem:[%s10399_s3 + $0x38] sm:$0xff]  ;;  %v6251_v49 = vpack.c.bf16 %v5143_v58, %v5142_v24 }
 0x410   :  { %4091 = vst.msk [vmem:[#allocation4 + $0x138] sm:$0xff] %vm4051_vm14, %v4026_v44  ;;  %6191 = vmatprep.mubr.msk.f32.mxu0 %vm3405_vm13, %v3382_v20  ;;  %v6245_v21 = vpack.c.bf16 %v5139_v48, %v5138_v61  ;;  %v6248_v6 = vpack.c.bf16 %v5141_v56, %v5140_v53  ;;  %v697_v44 = vld [vmem:[#allocation2 + $0x348] sm:$0xff]  ;;  %v5149_v53 = vld [vmem:[%s10399_s3 + $0x78] sm:$0xff]  ;;  %v2930_v56 = vsel %vm33_vm0, %v8968_v62, %v9316_v11 }
 0x411   :  { %4090 = vst.msk [vmem:[#allocation4 + $0x130] sm:$0xff] %vm4051_vm14, %v4025_v34  ;;  %v9362_v42 = vpop.permute.xlu1 %1769  ;;  %v9364_v47 = vpop.permute.xlu0 %1003  ;;  %v5144_v34 = vld [vmem:[%s10399_s3 + $0x50] sm:$0xff] }
 0x412   :  { %6246 = vmatpush1.bf16.msra.mxu1 %v6245_v21  ;;  %v4440_v21 = vld [vmem:[#allocation3 + $0x11] sm:$0xff] }
 0x413   :  { %2547 = vrot.lane.b32.xlu1 %v759_v25, %s6694_s13  ;;  %2293 = vrot.lane.b32.xlu0 %v696_v13, %s6693_s25 }
 0x414   :  { %6247 = vmatprep.subr.bf16.mxu1 %v6697_v18 }
 0x415   :  { %v2790_v31 = vpop.permute.xlu1 %2789  ;;  %v9380_v0 = vpop.permute.xlu0 %2023 }
 0x416   :  { %v3383_v39 = vsel %vm3329_vm12, %v3318_v17, %v2790_v31  ;;  %6249 = vmatpush1.bf16.msra.mxu1 %v6248_v6 }
 0x417   :  { %1783 = vrot.lane.b32.xlu1 %v759_v25, %s6691_s23  ;;  %1529 = vrot.lane.b32.xlu0 %v696_v13, %s6690_s22  ;;  %v2929_v25 = vsel %vm33_vm0, %v8970_v38, %v9306_v52  ;;  %v6254_v13 = vpack.c.bf16 %v5145_v55, %v5144_v34  ;;  %v5146_v52 = vld [vmem:[%s10399_s3 + $0x60] sm:$0xff] }
 0x418   :  { %v4154_v60 = vld [vmem:[#allocation4 + $0x130] ss:$2 sm:$0xff]  ;;  %v4218_v7 = vld [vmem:[#allocation4 + $0x131] ss:$2 sm:$0xff]  ;;  %6192 = vmatmul.mubr.msk.f32.gmra.mrb[52].mxu0 %vm3405_vm13, %v3383_v39  ;;  %6250 = vmatprep.subr.bf16.mxu1 %v6697_v18  ;;  %v2994_v46 = vsel %vm2939_vm6, %v2929_v25, %v9314_v28  ;;  %v5147_v28 = vld [vmem:[%s10399_s3 + $0x68] sm:$0xff] }
 0x419   :  { %v4262_v30 = vmax.f32 %v4154_v60, %v4218_v7  ;;  %v9393_v8 = vpop.permute.xlu1 %1259  ;;  %v9395_v59 = vpop.permute.xlu0 %1005  ;;  %v3059_v57 = vsel %vm3004_vm7, %v2994_v46, %v9323_v41  ;;  %v6257_v17 = vpack.c.bf16 %v5147_v28, %v5146_v52  ;;  %v9516_v46 = vld [vmem:[#allocation3 + $0x10] sm:$0xff] }
 0x41a   :  { %6252 = vmatpush1.bf16.msra.mxu1 %v6251_v49  ;;  %v3124_v38 = vsel %vm3069_vm8, %v3059_v57, %v9337_v10  ;;  %v5151_v49 = vld [vmem:[%s10399_s3 + $0x88] sm:$0xff] }
 0x41b   :  { %4294 = vst.msk [vmem:[#allocation5 + $0x98] sm:$0xff] %vm4051_vm14, %v4262_v30  ;;  %2803 = vrot.lane.b32.xlu1 %v823_v19, %s6696_s1  ;;  %2549 = vrot.lane.b32.xlu0 %v760_v51, %s6694_s13  ;;  %v3189_v41 = vsel %vm3134_vm9, %v3124_v38, %v9380_v0  ;;  %v4455_v0 = vld [vmem:[#allocation3 + $0x2] sm:$0xff] }
 0x41c   :  { %6253 = vmatprep.subr.bf16.mxu1 %v6697_v18  ;;  %v4439_v30 = vld [vmem:[#allocation3 + $0x1] sm:$0xff] }
 0x41d   :  { %v2280_v5 = vpop.permute.xlu1 %2279  ;;  %v9407_v14 = vpop.permute.xlu0 %2025  ;;  %v6361_v58 = vpack.i.bf16 %v4440_v21, %v4439_v30  ;;  %v4490_v30 = vld [vmem:[#allocation3 + $0x41] sm:$0xff] }
 0x41e   :  { %6255 = vmatpush1.bf16.msra.mxu1 %v6254_v13  ;;  %v3254_v10 = vsel %vm3199_vm10, %v3189_v41, %v2280_v5  ;;  %v5148_v5 = vld [vmem:[%s10399_s3 + $0x70] sm:$0xff] }
 0x41f   :  { %2039 = vrot.lane.b32.xlu1 %v823_v19, %s6692_s24  ;;  %1785 = vrot.lane.b32.xlu0 %v760_v51, %s6691_s23  ;;  %v9471_v51 = vld [vmem:[#allocation3 + $0x12] sm:$0xff] }
 0x420   :  { %6256 = vmatprep.subr.bf16.mxu1 %v6697_v18  ;;  %v6366_v11 = vpack.i.bf16 %v9471_v51, %v4455_v0 }
 0x421   :  { %v9418_v43 = vpop.permute.xlu1 %1515  ;;  %v9420_v3 = vpop.permute.xlu0 %1261 }
 0x422   :  { %v4332_v35 = vld [vmem:[#allocation5 + $0x98] sm:$0xff]  ;;  %6258 = vmatpush1.bf16.msra.mxu1 %v6257_v17 }
 0x423   :  { %2041 = vrot.lane.b32.xlu1 %v633_v33, %s6692_s24  ;;  %2805 = vrot.lane.b32.xlu0 %v633_v33, %s6696_s1  ;;  %v4348_v32 = vmax.f32 %v4316_v26, %v4332_v35  ;;  %v6260_v33 = vpack.c.bf16 %v5149_v53, %v5148_v5  ;;  %v2995_v26 = vsel %vm2939_vm6, %v2930_v56, %v9325_v1  ;;  %v4539_v53 = vld [vmem:[#allocation3 + $0x51] sm:$0xff] }
 0x424   :  { %6259 = vmatprep.subr.bf16.mxu1 %v6697_v18  ;;  %v3060_v35 = vsel %vm3004_vm7, %v2995_v26, %v9339_v36  ;;  %v5150_v36 = vld [vmem:[%s10399_s3 + $0x80] sm:$0xff]  ;;  %s6700_s3 = smov 64   ;;  %v2931_v56 = vsel %vm33_vm0, %v9061_v23, %v9364_v47 }
 0x425   :  { %v2536_v20 = vpop.permute.xlu1 %2535  ;;  %v9431_v29 = vpop.permute.xlu0 %2281  ;;  %4416 = vst.msk [vmem:[#allocation3 + $0xc1] sm:$0xff] %vm4051_vm14, %v4348_v32  ;;  %v3125_v1 = vsel %vm3069_vm8, %v3060_v35, %v9362_v42  ;;  %v4488_v32 = vld [vmem:[#allocation3 + $0x21] sm:$0xff] }
 0x426   :  { %v3319_v19 = vsel %vm3264_vm11, %v3254_v10, %v2536_v20  ;;  %6261 = vmatpush1.bf16.msra.mxu1 %v6260_v33  ;;  %v9511_v42 = vld [vmem:[#allocation3 + $0x20] sm:$0xff]  ;;  %v6376_v13 = vpack.i.bf16 %v4488_v32, %v4440_v21  ;;  %v4442_v10 = vld [vmem:[#allocation3 + $0x31] sm:$0xff]  ;;  %v2996_v33 = vsel %vm2939_vm6, %v2931_v56, %v9393_v8 }
 0x427   :  { %2297 = vrot.lane.b32.xlu1 %v698_v37, %s6693_s25  ;;  %2295 = vrot.lane.b32.xlu0 %v697_v44, %s6693_s25  ;;  %v3190_v37 = vsel %vm3134_vm9, %v3125_v1, %v9407_v14  ;;  %v6263_v44 = vpack.c.bf16 %v5151_v49, %v5150_v36  ;;  %v6411_v5 = vpack.i.bf16 %v4490_v30, %v4442_v10  ;;  %v9576_v1 = vld [vmem:[#allocation3 + $0x52] sm:$0xff] }
 0x428   :  { %6262 = vmatprep.subr.bf16.mxu1 %v6697_v18  ;;  %v3255_v20 = vsel %vm3199_vm10, %v3190_v37, %v9431_v29  ;;  %v4504_v29 = vld [vmem:[#allocation3 + $0x22] sm:$0xff]  ;;  %v3061_v26 = vsel %vm3004_vm7, %v2996_v33, %v9418_v43 }
 0x429   :  { %v9450_v40 = vpop.permute.xlu1 %1771  ;;  %v9452_v50 = vpop.permute.xlu0 %1517  ;;  %v6381_v17 = vpack.i.bf16 %v4504_v29, %v9471_v51  ;;  %v9551_v51 = vld [vmem:[#allocation3 + $0x42] sm:$0xff] }
 0x42a   :  { %6264 = vmatpush1.bf16.msra.mxu1 %v6263_v44  ;;  %v3126_v23 = vsel %vm3069_vm8, %v3061_v26, %v9450_v40  ;;  %v4478_v33 = vld [vmem:[#allocation3 + $0x80] sm:$0xff]  ;;  %v9634_v26 = vld [vmem:[#allocation3 + $0x72] sm:$0xff] }
 0x42b   :  { %v6175_v22 = vpop.f32.mrb[40].mxu0  ;;  %2553 = vrot.lane.b32.xlu1 %v762_v27, %s6694_s13  ;;  %2551 = vrot.lane.b32.xlu0 %v761_v12, %s6694_s13  ;;  %v6371_v27 = vpack.i.bf16 %v9511_v42, %v9516_v46  ;;  %v9521_v12 = vld [vmem:[#allocation3 + $0x30] sm:$0xff] }
 0x42c   :  { %v3874_v31 = vadd.f32 %v9082_v15, %v6175_v22  ;;  %v3868_v39 = vpop.f32.mrb[41].mxu0  ;;  %v6386_v22 = vpack.i.bf16 %v9521_v12, %v9511_v42 }
 0x42d   :  { %v3869_v4 = vadd.f32 %v9082_v15, %v3868_v39  ;;  %v2792_v60 = vpop.permute.xlu1 %2791  ;;  %v2538_v7 = vpop.permute.xlu0 %2537 }
 0x42e   :  { %v4028_v61 = vmax.f32 %v3874_v31, 0.0  ;;  %v3384_v48 = vsel %vm3329_vm12, %v3319_v19, %v2792_v60  ;;  %v3320_v34 = vsel %vm3264_vm11, %v3255_v20, %v2538_v7  ;;  %v9541_v19 = vld [vmem:[#allocation3 + $0x32] sm:$0xff] }
 0x42f   :  { %v4027_v6 = vmax.f32 %v3869_v4, 0.0  ;;  %2809 = vrot.lane.b32.xlu1 %v826_v54, %s6696_s1  ;;  %2807 = vrot.lane.b32.xlu0 %v825_v63, %s6696_s1  ;;  %v6396_v54 = vpack.i.bf16 %v4442_v10, %v4488_v32  ;;  %v9538_v63 = vld [vmem:[#allocation3 + $0x40] sm:$0xff]  ;;  %v6401_v0 = vpack.i.bf16 %v9541_v19, %v4504_v29  ;;  %v6416_v21 = vpack.i.bf16 %v9551_v51, %v9541_v19 }
 0x430   :  { %4093 = vst.msk [vmem:[#allocation4 + $0x148] sm:$0xff] %vm4051_vm14, %v4028_v61  ;;  %6194 = vmatprep.mubr.msk.f32.mxu0 %vm3405_vm13, %v3384_v48  ;;  %v6406_v7 = vpack.i.bf16 %v9538_v63, %v9521_v12  ;;  %v9593_v29 = vld [vmem:[#allocation3 + $0x60] sm:$0xff] }
 0x431   :  { %4092 = vst.msk [vmem:[#allocation4 + $0x140] sm:$0xff] %vm4051_vm14, %v4027_v6  ;;  %v9493_v24 = vpop.permute.xlu1 %1773  ;;  %v9495_v62 = vpop.permute.xlu0 %1007  ;;  %v9561_v6 = vld [vmem:[#allocation3 + $0x50] sm:$0xff] }
 0x432   :  { %v6421_v47 = vpack.i.bf16 %v9561_v6, %v9538_v63 }
 0x433   :  { %6367 = vrot.lane.b32.xlu1 %v6366_v11, %s6698_s12  ;;  %6362 = vrot.lane.b32.xlu0 %v6361_v58, %s6699_s14  ;;  %v6426_v58 = vpack.i.bf16 %v4539_v53, %v4490_v30  ;;  %v4446_v30 = vld [vmem:[#allocation3 + $0x71] sm:$0xff] }
 0x435   :  { %v2794_v55 = vpop.permute.xlu1 %2793  ;;  %v2028_v25 = vpop.permute.xlu0 %2027 }
 0x436   :  { %v3385_v14 = vsel %vm3329_vm12, %v3320_v34, %v2794_v55  ;;  %v3191_v8 = vsel %vm3134_vm9, %v3126_v23, %v2028_v25  ;;  %v6436_v34 = vpack.i.bf16 %v9576_v1, %v9551_v51 }
 0x437   :  { %6195 = vmatmul.mubr.msk.f32.gmra.mrb[54].mxu0 %vm3405_vm13, %v3385_v14  ;;  %6377 = vrot.lane.b32.xlu1 %v6376_v13, %s6700_s3  ;;  %v4492_v13 = vld [vmem:[#allocation3 + $0x61] sm:$0xff]  ;;  %v2932_v14 = vsel %vm33_vm0, %v9099_v45, %v9395_v59 }
 0x438   :  { %v4156_v57 = vld [vmem:[#allocation4 + $0x140] ss:$2 sm:$0xff]  ;;  %v4220_v38 = vld [vmem:[#allocation4 + $0x141] ss:$2 sm:$0xff]  ;;  %6372 = vrot.lane.b32.xlu0 %v6371_v27, %s6701_s15  ;;  %v6466_v56 = vpack.i.bf16 %v4446_v30, %v4492_v13 }
 0x439   :  { %v4263_v52 = vmax.f32 %v4156_v57, %v4220_v38  ;;  %v9526_v28 = vpop.permute.xlu1 %1263  ;;  %v9528_v41 = vpop.permute.xlu0 %1009  ;;  %v6446_v38 = vpack.i.bf16 %v4492_v13, %v4539_v53 }
 0x43b   :  { %4295 = vst.msk [vmem:[#allocation5 + $0xa0] sm:$0xff] %vm4051_vm14, %v4263_v52  ;;  %6387 = vrot.lane.b32.xlu1 %v6386_v22, %s6702_s16  ;;  %v9610_v22 = vld [vmem:[#allocation3 + $0x70] sm:$0xff] }
 0x43c   :  { %6382 = vrot.lane.b32.xlu0 %v6381_v17, %s6703_s17 }
 0x43d   :  { %v2284_v31 = vpop.permute.xlu1 %2283  ;;  %v9536_v39 = vpop.permute.xlu0 %2029 }
 0x43e   :  { %v3256_v43 = vsel %vm3199_vm10, %v3191_v8, %v2284_v31 }
 0x43f   :  { %6397 = vrot.lane.b32.xlu1 %v6396_v54, %s6699_s14 }
 0x440   :  { %6392 = vrot.lane.b32.xlu0 %v6396_v54, %s6704_s0 }
 0x441   :  { %v9544_v4 = vpop.permute.xlu1 %1519  ;;  %v9546_v60 = vpop.permute.xlu0 %1265 }
 0x443   :  { %6407 = vrot.lane.b32.xlu1 %v6406_v7, %s6701_s15  ;;  %v6456_v7 = vpack.i.bf16 %v9610_v22, %v9593_v29 }
 0x444   :  { %6402 = vrot.lane.b32.xlu0 %v6401_v0, %s6698_s12 }
 0x445   :  { %v2540_v61 = vpop.permute.xlu1 %2539  ;;  %v2286_v48 = vpop.permute.xlu0 %2285 }
 0x446   :  { %v3321_v37 = vsel %vm3264_vm11, %v3256_v43, %v2540_v61  ;;  %v4494_v43 = vld [vmem:[#allocation3 + $0x81] sm:$0xff] }
 0x447   :  { %6417 = vrot.lane.b32.xlu1 %v6416_v21, %s6703_s17 }
 0x448   :  { %6412 = vrot.lane.b32.xlu0 %v6411_v5, %s6700_s3 }
 0x449   :  { %v9568_v35 = vpop.permute.xlu1 %1775  ;;  %v9570_v11 = vpop.permute.xlu0 %1521 }
 0x44b   :  { %v6178_v32 = vpop.f32.mrb[42].mxu0  ;;  %6427 = vrot.lane.b32.xlu1 %v6426_v58, %s6704_s0 }
 0x44c   :  { %v3884_v36 = vadd.f32 %v9082_v15, %v6178_v32  ;;  %v3878_v49 = vpop.f32.mrb[43].mxu0  ;;  %6422 = vrot.lane.b32.xlu0 %v6421_v47, %s6702_s16  ;;  %v6476_v47 = vpack.i.bf16 %v4478_v33, %v9610_v22  ;;  %v9642_v32 = vld [vmem:[#allocation3 + $0x82] sm:$0xff] }
 0x44d   :  { %v3879_v40 = vadd.f32 %v9082_v15, %v3878_v49  ;;  %v2796_v44 = vpop.permute.xlu1 %2795  ;;  %v2542_v20 = vpop.permute.xlu0 %2541  ;;  %v2997_v15 = vsel %vm2939_vm6, %v2932_v14, %v9420_v3  ;;  %v6441_v3 = vpack.i.bf16 %v9593_v29, %v9561_v6 }
 0x44e   :  { %v4030_v55 = vmax.f32 %v3884_v36, 0.0  ;;  %v3386_v25 = vsel %vm3329_vm12, %v3321_v37, %v2796_v44  ;;  %v3062_v57 = vsel %vm3004_vm7, %v2997_v15, %v9452_v50  ;;  %v9615_v50 = vld [vmem:[#allocation3 + $0x62] sm:$0xff]  ;;  %v6486_v37 = vpack.i.bf16 %v9642_v32, %v9634_v26  ;;  %v4543_v44 = vld [vmem:[#allocation3 + $0x91] sm:$0xff] }
 0x44f   :  { %v4029_v27 = vmax.f32 %v3879_v40, 0.0  ;;  %6197 = vmatprep.mubr.msk.f32.mxu0 %vm3405_vm13, %v3386_v25  ;;  %6437 = vrot.lane.b32.xlu1 %v6436_v34, %s6698_s12  ;;  %v3127_v52 = vsel %vm3069_vm8, %v3062_v57, %v9493_v24  ;;  %v6471_v8 = vpack.i.bf16 %v9634_v26, %v9615_v50  ;;  %v6481_v40 = vpack.i.bf16 %v4494_v43, %v4446_v30  ;;  %v4463_v57 = vld [vmem:[#allocation3 + $0xa2] sm:$0xff] }
 0x450   :  { %4095 = vst.msk [vmem:[#allocation4 + $0x158] sm:$0xff] %vm4051_vm14, %v4030_v55  ;;  %6432 = vrot.lane.b32.xlu0 %v6426_v58, %s6699_s14  ;;  %v3192_v17 = vsel %vm3134_vm9, %v3127_v52, %v9536_v39  ;;  %v6451_v39 = vpack.i.bf16 %v9615_v50, %v9576_v1  ;;  %v4527_v55 = vld [vmem:[#allocation3 + $0x90] sm:$0xff]  ;;  %v6658_v52 = vld [vmem:[#allocation2 + $0x2e8] sm:$0xff] }
 0x451   :  { %4094 = vst.msk [vmem:[#allocation4 + $0x150] sm:$0xff] %vm4051_vm14, %v4029_v27  ;;  %v9602_v45 = vpop.permute.xlu1 %1777  ;;  %v9604_v59 = vpop.permute.xlu0 %1011  ;;  %v3257_v10 = vsel %vm3199_vm10, %v3192_v17, %v2286_v48  ;;  %v6496_v27 = vpack.i.bf16 %v4543_v44, %v4494_v43  ;;  %v6491_v15 = vpack.i.bf16 %v4527_v55, %v4478_v33  ;;  %v4447_v17 = vld [vmem:[#allocation3 + $0xa1] sm:$0xff]  ;;  %v6660_v55 = vld [vmem:[#allocation2 + $0x2f0] sm:$0xff] }
 0x452   :  { %v3322_v31 = vsel %vm3264_vm11, %v3257_v10, %v2542_v20  ;;  %v4317_v20 = vld [vmem:[#allocation5 + $0xa0] sm:$0xff]  ;;  %v4448_v10 = vld [vmem:[#allocation3 + $0xb1] sm:$0xff] }
 0x453   :  { %6447 = vrot.lane.b32.xlu1 %v6446_v38, %s6700_s3  ;;  %v4464_v38 = vld [vmem:[#allocation3 + $0xb2] sm:$0xff]  ;;  %v6501_v30 = vpack.i.bf16 %v4448_v10, %v4447_v17 }
 0x454   :  { %6442 = vrot.lane.b32.xlu0 %v6441_v3, %s6701_s15  ;;  %v2933_v3 = vsel %vm33_vm0, %v6658_v52, %v9495_v62 }
 0x455   :  { %v2798_v54 = vpop.permute.xlu1 %2797  ;;  %v2032_v24 = vpop.permute.xlu0 %2031 }
 0x456   :  { %v3387_v0 = vsel %vm3329_vm12, %v3322_v31, %v2798_v54  ;;  %v2998_v31 = vsel %vm2939_vm6, %v2933_v3, %v9526_v28  ;;  %v9671_v28 = vld [vmem:[#allocation3 + $0xc0] sm:$0xff] }
 0x457   :  { %6198 = vmatmul.mubr.msk.f32.gmra.mrb[56].mxu0 %vm3405_vm13, %v3387_v0  ;;  %6457 = vrot.lane.b32.xlu1 %v6456_v7, %s6702_s16  ;;  %v3063_v54 = vsel %vm3004_vm7, %v2998_v31, %v9544_v4  ;;  %v9677_v4 = vld [vmem:[%s10398_s2] ss:$0 sm:$0xff] }
 0x458   :  { %v4158_v61 = vld [vmem:[#allocation4 + $0x150] ss:$2 sm:$0xff]  ;;  %v4222_v48 = vld [vmem:[#allocation4 + $0x151] ss:$2 sm:$0xff]  ;;  %6452 = vrot.lane.b32.xlu0 %v6451_v39, %s6703_s17  ;;  %v6506_v39 = vpack.i.bf16 %v4464_v38, %v4463_v57  ;;  %v3128_v62 = vsel %vm3069_vm8, %v3063_v54, %v9568_v35 }
 0x459   :  { %v4264_v21 = vmax.f32 %v4158_v61, %v4222_v48  ;;  %v9628_v5 = vpop.permute.xlu1 %1267  ;;  %v9630_v53 = vpop.permute.xlu0 %1013  ;;  %v4496_v61 = vld [vmem:[#allocation3 + $0xc1] sm:$0xff]  ;;  %v3193_v48 = vsel %vm3134_vm9, %v3128_v62, %v2032_v24 }
 0x45b   :  { %4296 = vst.msk [vmem:[#allocation5 + $0xa8] sm:$0xff] %vm4051_vm14, %v4264_v21  ;;  %6467 = vrot.lane.b32.xlu1 %v6466_v56, %s6699_s14 }
 0x45c   :  { %6462 = vrot.lane.b32.xlu0 %v6466_v56, %s6704_s0 }
 0x45d   :  { %v2288_v58 = vpop.permute.xlu1 %2287  ;;  %v9637_v23 = vpop.permute.xlu0 %2033 }
 0x45e   :  { %v3258_v56 = vsel %vm3199_vm10, %v3193_v48, %v2288_v58 }
 0x45f   :  { %6477 = vrot.lane.b32.xlu1 %v6476_v47, %s6701_s15 }
 0x460   :  { %6472 = vrot.lane.b32.xlu0 %v6471_v8, %s6698_s12 }
 0x461   :  { %v9646_v36 = vpop.permute.xlu1 %1523  ;;  %v9648_v49 = vpop.permute.xlu0 %1269 }
 0x462   :  { %v4333_v34 = vld [vmem:[#allocation5 + $0xa8] sm:$0xff] }
 0x463   :  { %6487 = vrot.lane.b32.xlu1 %v6486_v37, %s6703_s17  ;;  %v4349_v25 = vmax.f32 %v4317_v20, %v4333_v34  ;;  %v6516_v37 = vpack.i.bf16 %v4496_v61, %v4448_v10 }
 0x464   :  { %6482 = vrot.lane.b32.xlu0 %v6481_v40, %s6700_s3  ;;  %v9683_v40 = vld [vmem:[#allocation3 + $0xb0] sm:$0xff] }
 0x465   :  { %v2544_v13 = vpop.permute.xlu1 %2543  ;;  %v2290_v14 = vpop.permute.xlu0 %2289  ;;  %4417 = vst.msk [vmem:[#allocation3 + $0xd1] sm:$0xff] %vm4051_vm14, %v4349_v25  ;;  %v6511_v20 = vpack.i.bf16 %v9671_v28, %v9683_v40  ;;  %v2934_v25 = vsel %vm33_vm0, %v6660_v55, %v9528_v41 }
 0x466   :  { %v3323_v35 = vsel %vm3264_vm11, %v3258_v56, %v2544_v13 }
 0x467   :  { %6497 = vrot.lane.b32.xlu1 %v6496_v27, %s6704_s0  ;;  %v9694_v27 = vld [vmem:[#allocation3 + $0xc2] sm:$0xff] }
 0x468   :  { %6492 = vrot.lane.b32.xlu0 %v6491_v15, %s6702_s16  ;;  %v2999_v15 = vsel %vm2939_vm6, %v2934_v25, %v9546_v60  ;;  %v6521_v60 = vpack.i.bf16 %v9694_v27, %v4464_v38 }
 0x469   :  { %v9663_v7 = vpop.permute.xlu1 %1779  ;;  %v9665_v0 = vpop.permute.xlu0 %1525  ;;  %v3064_v57 = vsel %vm3004_vm7, %v2999_v15, %v9570_v11 }
 0x46a   :  { %v3129_v17 = vsel %vm3069_vm8, %v3064_v57, %v9602_v45 }
 0x46b   :  { %v6181_v21 = vpop.f32.mrb[44].mxu0  ;;  %6507 = vrot.lane.b32.xlu1 %v6506_v39, %s6698_s12  ;;  %v3194_v31 = vsel %vm3134_vm9, %v3129_v17, %v9637_v23 }
 0x46c   :  { %v3894_v33 = vadd.f32 %v9677_v4, %v6181_v21  ;;  %v3888_v47 = vpop.f32.mrb[45].mxu0  ;;  %6502 = vrot.lane.b32.xlu0 %v6501_v30, %s6699_s14  ;;  %v9688_v34 = vld [vmem:[#allocation3 + $0xd0] sm:$0xff]  ;;  %v3259_v11 = vsel %vm3199_vm10, %v3194_v31, %v2290_v14 }
 0x46d   :  { %v3889_v24 = vadd.f32 %v9677_v4, %v3888_v47  ;;  %v2800_v8 = vpop.permute.xlu1 %2799  ;;  %v2546_v43 = vpop.permute.xlu0 %2545  ;;  %v6526_v3 = vpack.i.bf16 %v9688_v34, %v9671_v28  ;;  %v9710_v10 = vld [vmem:[#allocation3 + $0xd1] sm:$0xff] }
 0x46e   :  { %v4032_v58 = vmax.f32 %v3894_v33, 0.0  ;;  %v3388_v44 = vsel %vm3329_vm12, %v3323_v35, %v2800_v8  ;;  %v3324_v54 = vsel %vm3264_vm11, %v3259_v11, %v2546_v43  ;;  %v6536_v30 = vpack.i.bf16 %v9710_v10, %v4496_v61  ;;  %v9722_v38 = vld [vmem:[#allocation3 + $0xd2] sm:$0xff] }
 0x46f   :  { %v4031_v13 = vmax.f32 %v3889_v24, 0.0  ;;  %6200 = vmatprep.mubr.msk.f32.mxu0 %vm3405_vm13, %v3388_v44  ;;  %6517 = vrot.lane.b32.xlu1 %v6516_v37, %s6700_s3  ;;  %v6541_v33 = vpack.i.bf16 %v9722_v38, %v9694_v27  ;;  %v6661_v37 = vld [vmem:[#allocation2 + $0x300] sm:$0xff] }
 0x470   :  { %4097 = vst.msk [vmem:[#allocation4 + $0x168] sm:$0xff] %vm4051_vm14, %v4032_v58  ;;  %6512 = vrot.lane.b32.xlu0 %v6511_v20, %s6701_s15  ;;  %v2935_v58 = vsel %vm33_vm0, %v6661_v37, %v9604_v59 }
 0x471   :  { %4096 = vst.msk [vmem:[#allocation4 + $0x160] sm:$0xff] %vm4051_vm14, %v4031_v13  ;;  %v1782_v41 = vpop.permute.xlu1 %1781  ;;  %v9703_v52 = vpop.permute.xlu0 %1015  ;;  %v3000_v44 = vsel %vm2939_vm6, %v2935_v58, %v9628_v5 }
 0x472   :  { %v3065_v20 = vsel %vm3004_vm7, %v3000_v44, %v9646_v36 }
 0x473   :  { %6527 = vrot.lane.b32.xlu1 %v6526_v3, %s6702_s16  ;;  %v3130_v13 = vsel %vm3069_vm8, %v3065_v20, %v9663_v7 }
 0x474   :  { %6522 = vrot.lane.b32.xlu0 %v6521_v60, %s6703_s17 }
 0x475   :  { %v2802_v39 = vpop.permute.xlu1 %2801  ;;  %v2036_v62 = vpop.permute.xlu0 %2035 }
 0x476   :  { %v3389_v45 = vsel %vm3329_vm12, %v3324_v54, %v2802_v39  ;;  %v3195_v15 = vsel %vm3134_vm9, %v3130_v13, %v2036_v62  ;;  %v6662_v39 = vld [vmem:[#allocation2 + $0x308] sm:$0xff] }
 0x477   :  { %6201 = vmatmul.mubr.msk.f32.gmra.mrb[58].mxu0 %vm3405_vm13, %v3389_v45  ;;  %6537 = vrot.lane.b32.xlu1 %v6536_v30, %s6699_s14  ;;  %v2936_v7 = vsel %vm33_vm0, %v6662_v39, %v9630_v53 }
 0x478   :  { %v4160_v23 = vld [vmem:[#allocation4 + $0x160] ss:$2 sm:$0xff]  ;;  %v4224_v48 = vld [vmem:[#allocation4 + $0x161] ss:$2 sm:$0xff]  ;;  %6532 = vrot.lane.b32.xlu0 %v6536_v30, %s6704_s0  ;;  %v3001_v30 = vsel %vm2939_vm6, %v2936_v7, %v9648_v49 }
 0x479   :  { %v4265_v14 = vmax.f32 %v4160_v23, %v4224_v48  ;;  %v1272_v21 = vpop.permute.xlu1 %1271  ;;  %v1018_v56 = vpop.permute.xlu0 %1017  ;;  %v3066_v45 = vsel %vm3004_vm7, %v3001_v30, %v9665_v0 }
 0x47b   :  { %4297 = vst.msk [vmem:[#allocation5 + $0xb0] sm:$0xff] %vm4051_vm14, %v4265_v14  ;;  %v3131_v14 = vsel %vm3069_vm8, %v3066_v45, %v1782_v41  ;;  %v2937_v41 = vsel %vm33_vm0, %v9285_v16, %v9703_v52 }
 0x47c   :  { %6542 = vrot.lane.b32.xlu0 %v6541_v33, %s6698_s12 }
 0x47d   :  { %v2292_v61 = vpop.permute.xlu1 %2291  ;;  %v2038_v47 = vpop.permute.xlu0 %2037 }
 0x47e   :  { %v3260_v3 = vsel %vm3199_vm10, %v3195_v15, %v2292_v61  ;;  %v3196_v33 = vsel %vm3134_vm9, %v3131_v14, %v2038_v47  ;;  %v2938_v47 = vsel %vm33_vm0, %v9303_v9, %v1018_v56  ;;  %vm5032_vm0 = vcmask 261120  }
 0x481   :  { %v1528_v35 = vpop.permute.xlu1 %1527  ;;  %v1274_v24 = vpop.permute.xlu0 %1273 }
 0x482   :  { %v3003_v15 = vsel %vm2939_vm6, %v2938_v47, %v1274_v24 }
 0x485   :  { %v2548_v8 = vpop.permute.xlu1 %2547  ;;  %v2294_v43 = vpop.permute.xlu0 %2293 }
 0x486   :  { %v3325_v59 = vsel %vm3264_vm11, %v3260_v3, %v2548_v8  ;;  %v3261_v53 = vsel %vm3199_vm10, %v3196_v33, %v2294_v43  ;;  %v3002_v43 = vsel %vm2939_vm6, %v2937_v41, %v1272_v21  ;;  %vm5117_vm6 = vcmask 916480  }
 0x489   :  { %v1784_v55 = vpop.permute.xlu1 %1783  ;;  %v1530_v25 = vpop.permute.xlu0 %1529 }
 0x48a   :  { %v3068_v3 = vsel %vm3004_vm7, %v3003_v15, %v1530_v25 }
 0x48b   :  { %v6184_v57 = vpop.f32.mrb[46].mxu0 }
 0x48c   :  { %v3904_v17 = vadd.f32 %v9677_v4, %v6184_v57  ;;  %v3898_v60 = vpop.f32.mrb[47].mxu0  ;;  %v3067_v57 = vsel %vm3004_vm7, %v3002_v43, %v1528_v35  ;;  %vm5458_vm7 = vcmask 1041409  }
 0x48d   :  { %v3899_v5 = vadd.f32 %v9677_v4, %v3898_v60  ;;  %v2804_v31 = vpop.permute.xlu1 %2803  ;;  %v2550_v11 = vpop.permute.xlu0 %2549 }
 0x48e   :  { %v4034_v36 = vmax.f32 %v3904_v17, 0.0  ;;  %v3390_v54 = vsel %vm3329_vm12, %v3325_v59, %v2804_v31  ;;  %v3326_v61 = vsel %vm3264_vm11, %v3261_v53, %v2550_v11  ;;  %v3132_v59 = vsel %vm3069_vm8, %v3067_v57, %v1784_v55  ;;  %v4318_v11 = vld [vmem:[#allocation5 + $0xb0] sm:$0xff] }
 0x48f   :  { %v4033_v62 = vmax.f32 %v3899_v5, 0.0  ;;  %6203 = vmatprep.mubr.msk.f32.mxu0 %vm3405_vm13, %v3390_v54 }
 0x490   :  { %4099 = vst.msk [vmem:[#allocation4 + $0x178] sm:$0xff] %vm4051_vm14, %v4034_v36 }
 0x491   :  { %4098 = vst.msk [vmem:[#allocation4 + $0x170] sm:$0xff] %vm4051_vm14, %v4033_v62  ;;  %v2040_v23 = vpop.permute.xlu1 %2039  ;;  %v1786_v48 = vpop.permute.xlu0 %1785  ;;  %v4423_v62 = vld [vmem:[#allocation3] sm:$0xff] }
 0x492   :  { %v3133_v5 = vsel %vm3069_vm8, %v3068_v3, %v1786_v48  ;;  %v3197_v16 = vsel %vm3134_vm9, %v3132_v59, %v2040_v23  ;;  %vm6705_vm8 = vmmov 0  }
 0x495   :  { %v2042_v8 = vpop.permute.xlu1 %2041  ;;  %v2806_v37 = vpop.permute.xlu0 %2805 }
 0x496   :  { %v3391_v49 = vsel %vm3329_vm12, %v3326_v61, %v2806_v37  ;;  %v3198_v9 = vsel %vm3134_vm9, %v3133_v5, %v2042_v8  ;;  %vm5856_vm9 = vcmask 74752  }
 0x497   :  { %6204 = vmatmul.mubr.msk.f32.gmra.mrb[60].mxu0 %vm3405_vm13, %v3391_v49 }
 0x498   :  { %v4162_v58 = vld [vmem:[#allocation4 + $0x170] ss:$2 sm:$0xff]  ;;  %v4226_v0 = vld [vmem:[#allocation4 + $0x171] ss:$2 sm:$0xff] }
 0x499   :  { %v4266_v44 = vmax.f32 %v4162_v58, %v4226_v0  ;;  %v2298_v20 = vpop.permute.xlu1 %2297  ;;  %v2296_v13 = vpop.permute.xlu0 %2295 }
 0x49a   :  { %v3263_v52 = vsel %vm3199_vm10, %v3198_v9, %v2298_v20  ;;  %v3262_v21 = vsel %vm3199_vm10, %v3197_v16, %v2296_v13 }
 0x49b   :  { %4298 = vst.msk [vmem:[#allocation5 + $0xb8] sm:$0xff] %vm4051_vm14, %v4266_v44 }
 0x49d   :  { %v2554_v17 = vpop.permute.xlu1 %2553  ;;  %v2552_v60 = vpop.permute.xlu0 %2551 }
 0x49e   :  { %v3328_v56 = vsel %vm3264_vm11, %v3263_v52, %v2554_v17  ;;  %v3327_v35 = vsel %vm3264_vm11, %v3262_v21, %v2552_v60 }
 0x4a1   :  { %v2810_v24 = vpop.permute.xlu1 %2809  ;;  %v2808_v25 = vpop.permute.xlu0 %2807 }
 0x4a2   :  { %v3393_v31 = vsel %vm3329_vm12, %v3328_v56, %v2810_v24  ;;  %v3392_v55 = vsel %vm3329_vm12, %v3327_v35, %v2808_v25  ;;  %v4334_v36 = vld [vmem:[#allocation5 + $0xb8] sm:$0xff] }
 0x4a3   :  { %6206 = vmatprep.mubr.msk.f32.mxu0 %vm3405_vm13, %v3392_v55  ;;  %v4350_v54 = vmax.f32 %v4318_v11, %v4334_v36 }
 0x4a4   :  { %6207 = vmatmul.mubr.msk.f32.gmra.mrb[62].mxu0 %vm3405_vm13, %v3393_v31 }
 0x4a5   :  { %v6368_v39 = vpop.permute.xlu1 %6367  ;;  %v6363_v7 = vpop.permute.xlu0 %6362  ;;  %4418 = vst.msk [vmem:[#allocation3 + $0xe1] sm:$0xff] %vm4051_vm14, %v4350_v54  ;;  %6225 = vmatprep.mubr.msk.f32.mxu0 %vm6705_vm8, %v6687_v2 }
 0x4a6   :  { %v6364_v30 = vunpack.i.l.bf16 %v6363_v7  ;;  %v6369_v45 = vunpack.i.l.bf16 %v6368_v39  ;;  %v6365_v23 = vunpack.i.h.bf16 %v6363_v7  ;;  %v6370_v53 = vunpack.i.h.bf16 %v6368_v39 }
 0x4a8   :  { %v5016_v48 = vsel %vm4051_vm14, %v4423_v62, %v6364_v30  ;;  %v5017_v37 = vsel %vm4051_vm14, %v9516_v46, %v6365_v23 }
 0x4a9   :  { %v6378_v14 = vpop.permute.xlu1 %6377  ;;  %v5033_v58 = vsel %vm5032_vm0, %v5016_v48, %v6369_v45  ;;  %v5034_v9 = vsel %vm5032_vm0, %v5017_v37, %v6370_v53 }
 0x4aa   :  { %v6373_v33 = vpop.permute.xlu0 %6372  ;;  %v6379_v49 = vunpack.i.l.bf16 %v6378_v14  ;;  %v6380_v16 = vunpack.i.h.bf16 %v6378_v14 }
 0x4ab   :  { %v6374_v61 = vunpack.i.l.bf16 %v6373_v33  ;;  %v6187_v8 = vpop.f32.mrb[48].mxu0  ;;  %v6375_v41 = vunpack.i.h.bf16 %v6373_v33 }
 0x4ac   :  { %v3914_v0 = vadd.f32 %v9677_v4, %v6187_v8  ;;  %v3908_v44 = vpop.f32.mrb[49].mxu0  ;;  %v9786_v20 = vld [vmem:[#allocation3 + $0xe0] sm:$0xff] }
 0x4ad   :  { %v9788_v13 = vld [vmem:[#allocation3 + $0xe1] sm:$0xff]  ;;  %v5050_v47 = vsel %vm5049_vm2, %v5033_v58, %v6374_v61  ;;  %v3909_v43 = vadd.f32 %v9677_v4, %v3908_v44  ;;  %v6388_v15 = vpop.permute.xlu1 %6387  ;;  %v6546_v57 = vpack.i.bf16 %v9786_v20, %v9688_v34 }
 0x4ae   :  { %v4036_v46 = vmax.f32 %v3914_v0, 0.0  ;;  %v6383_v3 = vpop.permute.xlu0 %6382  ;;  %v6551_v17 = vpack.i.bf16 %v9788_v13, %v9710_v10  ;;  %v9796_v60 = vld [vmem:[#allocation3 + $0xe2] sm:$0xff]  ;;  %v6389_v52 = vunpack.i.l.bf16 %v6388_v15  ;;  %v5067_v21 = vsel %vm5066_vm3, %v5050_v47, %v6379_v49 }
 0x4af   :  { %v4035_v59 = vmax.f32 %v3909_v43, 0.0  ;;  %v6384_v5 = vunpack.i.l.bf16 %v6383_v3  ;;  %6547 = vrot.lane.b32.xlu1 %v6546_v57, %s6701_s15  ;;  %v5051_v10 = vsel %vm5049_vm2, %v5034_v9, %v6375_v41  ;;  %v6385_v56 = vunpack.i.h.bf16 %v6383_v3 }
 0x4b0   :  { %4101 = vst.msk [vmem:[#allocation4 + $0x188] sm:$0xff] %vm4051_vm14, %v4036_v46  ;;  %6552 = vrot.lane.b32.xlu0 %v6551_v17, %s6700_s3  ;;  %v6556_v24 = vpack.i.bf16 %v9796_v60, %v9722_v38  ;;  %v6390_v11 = vunpack.i.h.bf16 %v6388_v15  ;;  %v5068_v39 = vsel %vm5066_vm3, %v5051_v10, %v6380_v16 }
 0x4b1   :  { %4100 = vst.msk [vmem:[#allocation4 + $0x180] sm:$0xff] %vm4051_vm14, %v4035_v59  ;;  %v6398_v35 = vpop.permute.xlu1 %6397  ;;  %v5084_v25 = vsel %vm5083_vm4, %v5067_v21, %v6384_v5  ;;  %v5085_v45 = vsel %vm5083_vm4, %v5068_v39, %v6385_v56 }
 0x4b2   :  { %v6393_v31 = vpop.permute.xlu0 %6392  ;;  %v6399_v36 = vunpack.i.l.bf16 %v6398_v35  ;;  %v5101_v54 = vsel %vm5100_vm5, %v5084_v25, %v6389_v52  ;;  %v6400_v23 = vunpack.i.h.bf16 %v6398_v35  ;;  %v5102_v49 = vsel %vm5100_vm5, %v5085_v45, %v6390_v11 }
 0x4b3   :  { %v6394_v55 = vunpack.i.l.bf16 %v6393_v31  ;;  %6557 = vrot.lane.b32.xlu1 %v6556_v24, %s6703_s17  ;;  %v6395_v7 = vunpack.i.h.bf16 %v6393_v31 }
 0x4b4   :  { %v5018_v8 = vsel %vm4051_vm14, %v9511_v42, %v6399_v36  ;;  %v5019_v47 = vsel %vm4051_vm14, %v9521_v12, %v6400_v23 }
 0x4b5   :  { %v6408_v62 = vpop.permute.xlu1 %6407  ;;  %v5118_v30 = vsel %vm5117_vm6, %v5101_v54, %v6394_v55  ;;  %v5119_v41 = vsel %vm5117_vm6, %v5102_v49, %v6395_v7 }
 0x4b6   :  { %v6403_v48 = vpop.permute.xlu0 %6402  ;;  %5272 = vmatmul.mubr.f32.vlgmr.msra.gmra.mrb[0].mxu1 %v5118_v30  ;;  %v6409_v37 = vunpack.i.l.bf16 %v6408_v62  ;;  %v6410_v43 = vunpack.i.h.bf16 %v6408_v62 }
 0x4b7   :  { %v6405_v14 = vunpack.i.h.bf16 %v6403_v48  ;;  %v6404_v33 = vunpack.i.l.bf16 %v6403_v48  ;;  %5940 = vmatprep.mubr.msk.f32.mxu1 %vm4051_vm14, %v9541_v19 }
 0x4b8   :  { %v4164_v53 = vld [vmem:[#allocation4 + $0x180] ss:$2 sm:$0xff]  ;;  %v4228_v61 = vld [vmem:[#allocation4 + $0x181] ss:$2 sm:$0xff] }
 0x4b9   :  { %v4267_v58 = vmax.f32 %v4164_v53, %v4228_v61  ;;  %v5035_v0 = vsel %vm5032_vm0, %v5018_v8, %v6404_v33  ;;  %v6418_v44 = vpop.permute.xlu1 %6417  ;;  %v5036_v19 = vsel %vm5032_vm0, %v5019_v47, %v6405_v14 }
 0x4ba   :  { %v6413_v15 = vpop.permute.xlu0 %6412  ;;  %5277 = vmatmul.mubr.f32.gmra.mrb[2].mxu1 %v5119_v41  ;;  %v6419_v46 = vunpack.i.l.bf16 %v6418_v44  ;;  %v5052_v3 = vsel %vm5049_vm2, %v5035_v0, %v6409_v37  ;;  %v6420_v5 = vunpack.i.h.bf16 %v6418_v44  ;;  %v5053_v12 = vsel %vm5049_vm2, %v5036_v19, %v6410_v43 }
 0x4bb   :  { %4299 = vst.msk [vmem:[#allocation5 + $0xc0] sm:$0xff] %vm4051_vm14, %v4267_v58  ;;  %v6415_v42 = vunpack.i.h.bf16 %v6413_v15  ;;  %v6414_v57 = vunpack.i.l.bf16 %v6413_v15  ;;  %5941 = vmatprep.mubr.msk.f32.mxu1 %vm4051_vm14, %v9551_v51 }
 0x4bd   :  { %v5069_v17 = vsel %vm5066_vm3, %v5052_v3, %v6414_v57  ;;  %v6428_v59 = vpop.permute.xlu1 %6427  ;;  %v5070_v52 = vsel %vm5066_vm3, %v5053_v12, %v6415_v42 }
 0x4be   :  { %v6429_v16 = vunpack.i.l.bf16 %v6428_v59  ;;  %v6423_v9 = vpop.permute.xlu0 %6422  ;;  %v5086_v51 = vsel %vm5083_vm4, %v5069_v17, %v6419_v46  ;;  %v6430_v11 = vunpack.i.h.bf16 %v6428_v59  ;;  %v5087_v7 = vsel %vm5083_vm4, %v5070_v52, %v6420_v5 }
 0x4bf   :  { %v6425_v21 = vunpack.i.h.bf16 %v6423_v9  ;;  %v6424_v10 = vunpack.i.l.bf16 %v6423_v9  ;;  %v6190_v56 = vpop.f32.mrb[50].mxu0 }
 0x4c0   :  { %v3924_v35 = vadd.f32 %v9677_v4, %v6190_v56  ;;  %v3918_v24 = vpop.f32.mrb[51].mxu0 }
 0x4c1   :  { %v3919_v25 = vadd.f32 %v9677_v4, %v3918_v24  ;;  %v6438_v31 = vpop.permute.xlu1 %6437  ;;  %v5103_v55 = vsel %vm5100_vm5, %v5086_v51, %v6424_v10  ;;  %v5104_v45 = vsel %vm5100_vm5, %v5087_v7, %v6425_v21 }
 0x4c2   :  { %v4038_v36 = vmax.f32 %v3924_v35, 0.0  ;;  %v6433_v54 = vpop.permute.xlu0 %6432  ;;  %v5120_v39 = vsel %vm5117_vm6, %v5103_v55, %v6429_v16  ;;  %v6439_v23 = vunpack.i.l.bf16 %v6438_v31  ;;  %v5121_v61 = vsel %vm5117_vm6, %v5104_v45, %v6430_v11  ;;  %v4319_v45 = vld [vmem:[#allocation5 + $0xc0] sm:$0xff] }
 0x4c3   :  { %v4037_v62 = vmax.f32 %v3919_v25, 0.0  ;;  %v6434_v30 = vunpack.i.l.bf16 %v6433_v54  ;;  %5282 = vmatmul.mubr.f32.gmra.mrb[4].mxu1 %v5120_v39  ;;  %v6435_v48 = vunpack.i.h.bf16 %v6433_v54  ;;  %v6440_v37 = vunpack.i.h.bf16 %v6438_v31 }
 0x4c4   :  { %4103 = vst.msk [vmem:[#allocation4 + $0x198] sm:$0xff] %vm4051_vm14, %v4038_v36  ;;  %5942 = vmatprep.mubr.msk.f32.mxu1 %vm4051_vm14, %v9576_v1 }
 0x4c5   :  { %4102 = vst.msk [vmem:[#allocation4 + $0x190] sm:$0xff] %vm4051_vm14, %v4037_v62  ;;  %v5020_v14 = vsel %vm4051_vm14, %v9538_v63, %v6434_v30  ;;  %v6448_v33 = vpop.permute.xlu1 %6447  ;;  %v5021_v1 = vsel %vm4051_vm14, %v9561_v6, %v6435_v48 }
 0x4c6   :  { %v6443_v53 = vpop.permute.xlu0 %6442  ;;  %v6449_v49 = vunpack.i.l.bf16 %v6448_v33  ;;  %v5037_v58 = vsel %vm5032_vm0, %v5020_v14, %v6439_v23  ;;  %v6450_v19 = vunpack.i.h.bf16 %v6448_v33  ;;  %v5038_v42 = vsel %vm5032_vm0, %v5021_v1, %v6440_v37 }
 0x4c7   :  { %v6444_v8 = vunpack.i.l.bf16 %v6443_v53  ;;  %5287 = vmatmul.mubr.f32.gmra.mrb[6].mxu1 %v5121_v61  ;;  %v6445_v0 = vunpack.i.h.bf16 %v6443_v53 }
 0x4c8   :  { %5943 = vmatprep.mubr.msk.f32.mxu1 %vm4051_vm14, %v9615_v50 }
 0x4c9   :  { %v5054_v44 = vsel %vm5049_vm2, %v5037_v58, %v6444_v8  ;;  %v6458_v63 = vpop.permute.xlu1 %6457  ;;  %v5055_v50 = vsel %vm5049_vm2, %v5038_v42, %v6445_v0 }
 0x4ca   :  { %v6453_v41 = vpop.permute.xlu0 %6452  ;;  %v6459_v57 = vunpack.i.l.bf16 %v6458_v63  ;;  %v5071_v46 = vsel %vm5066_vm3, %v5054_v44, %v6449_v49  ;;  %v6460_v16 = vunpack.i.h.bf16 %v6458_v63  ;;  %v5072_v21 = vsel %vm5066_vm3, %v5055_v50, %v6450_v19  ;;  %v4431_v19 = vld [vmem:[#allocation3 + $0xa0] sm:$0xff] }
 0x4cb   :  { %v6454_v47 = vunpack.i.l.bf16 %v6453_v41  ;;  %v6455_v17 = vunpack.i.h.bf16 %v6453_v41 }
 0x4cc   :  { %v4166_v43 = vld [vmem:[#allocation4 + $0x190] ss:$2 sm:$0xff]  ;;  %v4230_v15 = vld [vmem:[#allocation4 + $0x191] ss:$2 sm:$0xff] }
 0x4cd   :  { %v4268_v3 = vmax.f32 %v4166_v43, %v4230_v15  ;;  %v6468_v59 = vpop.permute.xlu1 %6467  ;;  %v5088_v6 = vsel %vm5083_vm4, %v5071_v46, %v6454_v47  ;;  %v5089_v24 = vsel %vm5083_vm4, %v5072_v21, %v6455_v17  ;;  %v4559_v15 = vld [vmem:[#allocation3 + $0x92] sm:$0xff] }
 0x4ce   :  { %v6463_v5 = vpop.permute.xlu0 %6462  ;;  %v6469_v9 = vunpack.i.l.bf16 %v6468_v59  ;;  %v5105_v52 = vsel %vm5100_vm5, %v5088_v6, %v6459_v57  ;;  %v6470_v25 = vunpack.i.h.bf16 %v6468_v59  ;;  %v5106_v54 = vsel %vm5100_vm5, %v5089_v24, %v6460_v16 }
 0x4cf   :  { %4300 = vst.msk [vmem:[#allocation5 + $0xc8] sm:$0xff] %vm4051_vm14, %v4268_v3  ;;  %v6464_v12 = vunpack.i.l.bf16 %v6463_v5  ;;  %v6465_v10 = vunpack.i.h.bf16 %v6463_v5 }
 0x4d0   :  { %v5022_v55 = vsel %vm4051_vm14, %v9593_v29, %v6469_v9  ;;  %v5023_v48 = vsel %vm4051_vm14, %v9610_v22, %v6470_v25 }
 0x4d1   :  { %v6478_v56 = vpop.permute.xlu1 %6477  ;;  %v5122_v35 = vsel %vm5117_vm6, %v5105_v52, %v6464_v12  ;;  %v5123_v62 = vsel %vm5117_vm6, %v5106_v54, %v6465_v10 }
 0x4d2   :  { %v6473_v51 = vpop.permute.xlu0 %6472  ;;  %5292 = vmatmul.mubr.f32.gmra.mrb[8].mxu1 %v5122_v35  ;;  %v6479_v11 = vunpack.i.l.bf16 %v6478_v56 }
 0x4d3   :  { %v6474_v31 = vunpack.i.l.bf16 %v6473_v51  ;;  %5944 = vmatprep.mubr.msk.f32.mxu1 %vm4051_vm14, %v9634_v26  ;;  %v6475_v36 = vunpack.i.h.bf16 %v6473_v51  ;;  %v6480_v26 = vunpack.i.h.bf16 %v6478_v56 }
 0x4d5   :  { %v5039_v39 = vsel %vm5032_vm0, %v5022_v55, %v6474_v31  ;;  %v6488_v7 = vpop.permute.xlu1 %6487  ;;  %v5040_v33 = vsel %vm5032_vm0, %v5023_v48, %v6475_v36 }
 0x4d6   :  { %v6483_v30 = vpop.permute.xlu0 %6482  ;;  %5297 = vmatmul.mubr.f32.gmra.mrb[10].mxu1 %v5123_v62  ;;  %v4335_v23 = vld [vmem:[#allocation5 + $0xc8] sm:$0xff]  ;;  %v6489_v53 = vunpack.i.l.bf16 %v6488_v7  ;;  %v5056_v8 = vsel %vm5049_vm2, %v5039_v39, %v6479_v11  ;;  %v6490_v22 = vunpack.i.h.bf16 %v6488_v7  ;;  %v5057_v0 = vsel %vm5049_vm2, %v5040_v33, %v6480_v26 }
 0x4d7   :  { %v6484_v14 = vunpack.i.l.bf16 %v6483_v30  ;;  %5945 = vmatprep.mubr.msk.f32.mxu1 %vm4051_vm14, %v9642_v32  ;;  %v4351_v29 = vmax.f32 %v4319_v45, %v4335_v23  ;;  %v6485_v61 = vunpack.i.h.bf16 %v6483_v30 }
 0x4d9   :  { %v5073_v37 = vsel %vm5066_vm3, %v5056_v8, %v6484_v14  ;;  %v6498_v49 = vpop.permute.xlu1 %6497  ;;  %4419 = vst.msk [vmem:[#allocation3 + $0xf1] sm:$0xff] %vm4051_vm14, %v4351_v29  ;;  %v5074_v32 = vsel %vm5066_vm3, %v5057_v0, %v6485_v61 }
 0x4da   :  { %v6499_v58 = vunpack.i.l.bf16 %v6498_v49  ;;  %v6493_v1 = vpop.permute.xlu0 %6492  ;;  %v5090_v41 = vsel %vm5083_vm4, %v5073_v37, %v6489_v53  ;;  %v6500_v46 = vunpack.i.h.bf16 %v6498_v49  ;;  %v5091_v50 = vsel %vm5083_vm4, %v5074_v32, %v6490_v22 }
 0x4db   :  { %v6494_v44 = vunpack.i.l.bf16 %v6493_v1  ;;  %v6495_v63 = vunpack.i.h.bf16 %v6493_v1 }
 0x4dd   :  { %v6508_v47 = vpop.permute.xlu1 %6507  ;;  %v5107_v43 = vsel %vm5100_vm5, %v5090_v41, %v6494_v44  ;;  %v5108_v5 = vsel %vm5100_vm5, %v5091_v50, %v6495_v63 }
 0x4de   :  { %v6503_v42 = vpop.permute.xlu0 %6502  ;;  %v5124_v57 = vsel %vm5117_vm6, %v5107_v43, %v6499_v58  ;;  %v6509_v17 = vunpack.i.l.bf16 %v6508_v47  ;;  %v5125_v24 = vsel %vm5117_vm6, %v5108_v5, %v6500_v46  ;;  %v6510_v51 = vunpack.i.h.bf16 %v6508_v47 }
 0x4df   :  { %v6504_v3 = vunpack.i.l.bf16 %v6503_v42  ;;  %5302 = vmatmul.mubr.f32.gmra.mrb[12].mxu1 %v5124_v57  ;;  %v6505_v12 = vunpack.i.h.bf16 %v6503_v42 }
 0x4e0   :  { %5946 = vmatprep.mubr.msk.f32.mxu1 %vm4051_vm14, %v4559_v15  ;;  %v9881_v59 = vld [vmem:[#allocation3 + $0xf1] sm:$0xff] }
 0x4e1   :  { %v9883_v6 = vld [vmem:[#allocation3 + $0xf0] sm:$0xff]  ;;  %v5024_v16 = vsel %vm4051_vm14, %v4431_v19, %v6504_v3  ;;  %v6518_v9 = vpop.permute.xlu1 %6517  ;;  %v6566_v52 = vpack.i.bf16 %v9881_v59, %v9788_v13  ;;  %v5025_v13 = vsel %vm4051_vm14, %v9683_v40, %v6505_v12 }
 0x4e2   :  { %v6561_v21 = vpack.i.bf16 %v9883_v6, %v9786_v20  ;;  %v6513_v10 = vpop.permute.xlu0 %6512  ;;  %v9891_v56 = vld [vmem:[#allocation3 + $0xf2] sm:$0xff]  ;;  %v6519_v25 = vunpack.i.l.bf16 %v6518_v9  ;;  %v5041_v31 = vsel %vm5032_vm0, %v5024_v16, %v6509_v17  ;;  %v6520_v62 = vunpack.i.h.bf16 %v6518_v9 }
 0x4e3   :  { %v6514_v35 = vunpack.i.l.bf16 %v6513_v10  ;;  %6567 = vrot.lane.b32.xlu1 %v6566_v52, %s6704_s0  ;;  %5307 = vmatmul.mubr.f32.gmra.mrb[14].mxu1 %v5125_v24  ;;  %v6515_v55 = vunpack.i.h.bf16 %v6513_v10  ;;  %v6576_v54 = vpack.i.bf16 %v9891_v56, %v9796_v60  ;;  %v5042_v30 = vsel %vm5032_vm0, %v5025_v13, %v6510_v51 }
 0x4e4   :  { %6562 = vrot.lane.b32.xlu0 %v6561_v21, %s6702_s16  ;;  %5947 = vmatprep.mubr.msk.f32.mxu1 %vm4051_vm14, %v9694_v27 }
 0x4e5   :  { %v5058_v11 = vsel %vm5049_vm2, %v5041_v31, %v6514_v35  ;;  %v6528_v36 = vpop.permute.xlu1 %6527  ;;  %v5059_v23 = vsel %vm5049_vm2, %v5042_v30, %v6515_v55 }
 0x4e6   :  { %v6523_v39 = vpop.permute.xlu0 %6522  ;;  %v6529_v40 = vunpack.i.l.bf16 %v6528_v36  ;;  %v5075_v45 = vsel %vm5066_vm3, %v5058_v11, %v6519_v25  ;;  %v6530_v33 = vunpack.i.h.bf16 %v6528_v36  ;;  %v5076_v37 = vsel %vm5066_vm3, %v5059_v23, %v6520_v62 }
 0x4e7   :  { %v6524_v7 = vunpack.i.l.bf16 %v6523_v39  ;;  %6577 = vrot.lane.b32.xlu1 %v6576_v54, %s6698_s12  ;;  %v6525_v48 = vunpack.i.h.bf16 %v6523_v39 }
 0x4e8   :  { %6572 = vrot.lane.b32.xlu0 %v6566_v52, %s6699_s14 }
 0x4e9   :  { %v5092_v27 = vsel %vm5083_vm4, %v5075_v45, %v6524_v7  ;;  %v5093_v22 = vsel %vm5083_vm4, %v5076_v37, %v6525_v48  ;;  %v6538_v54 = vpop.permute.xlu1 %6537 }
 0x4ea   :  { %v6533_v26 = vpop.permute.xlu0 %6532  ;;  %v5109_v8 = vsel %vm5100_vm5, %v5092_v27, %v6529_v40  ;;  %v5110_v32 = vsel %vm5100_vm5, %v5093_v22, %v6530_v33  ;;  %v6539_v23 = vunpack.i.l.bf16 %v6538_v54 }
 0x4eb   :  { %v6534_v14 = vunpack.i.l.bf16 %v6533_v26  ;;  %v6193_v29 = vpop.f32.mrb[52].mxu0  ;;  %v6535_v49 = vunpack.i.h.bf16 %v6533_v26 }
 0x4ec   :  { %v3934_v53 = vadd.f32 %v9677_v4, %v6193_v29  ;;  %v3928_v61 = vpop.f32.mrb[53].mxu0 }
 0x4ed   :  { %v3929_v58 = vadd.f32 %v9677_v4, %v3928_v61  ;;  %v5126_v1 = vsel %vm5117_vm6, %v5109_v8, %v6534_v14  ;;  %v5127_v63 = vsel %vm5117_vm6, %v5110_v32, %v6535_v49  ;;  %v6540_v14 = vunpack.i.h.bf16 %v6538_v54 }
 0x4ee   :  { %v4040_v0 = vmax.f32 %v3934_v53, 0.0  ;;  %5312 = vmatmul.mubr.f32.gmra.mrb[16].mxu1 %v5126_v1  ;;  %v6543_v62 = vpop.permute.xlu0 %6542  ;;  %v5026_v8 = vsel %vm4051_vm14, %v9671_v28, %v6539_v23 }
 0x4ef   :  { %v4039_v44 = vmax.f32 %v3929_v58, 0.0  ;;  %5948 = vmatprep.mubr.msk.f32.mxu1 %vm4051_vm14, %v9722_v38  ;;  %v6544_v27 = vunpack.i.l.bf16 %v6543_v62  ;;  %v6545_v53 = vunpack.i.h.bf16 %v6543_v62  ;;  %v5027_v1 = vsel %vm4051_vm14, %v9688_v34, %v6540_v14 }
 0x4f0   :  { %4105 = vst.msk [vmem:[#allocation4 + $0x1a8] sm:$0xff] %vm4051_vm14, %v4040_v0 }
 0x4f1   :  { %4104 = vst.msk [vmem:[#allocation4 + $0x1a0] sm:$0xff] %vm4051_vm14, %v4039_v44  ;;  %v5043_v49 = vsel %vm5032_vm0, %v5026_v8, %v6544_v27  ;;  %v5044_v44 = vsel %vm5032_vm0, %v5027_v1, %v6545_v53 }
 0x4f2   :  { %5317 = vmatmul.mubr.f32.gmra.mrb[18].mxu1 %v5127_v63 }
 0x4f3   :  { %5949 = vmatprep.mubr.msk.f32.mxu1 %vm4051_vm14, %v9796_v60 }
 0x4f8   :  { %v4168_v41 = vld [vmem:[#allocation4 + $0x1a0] ss:$2 sm:$0xff]  ;;  %v4232_v47 = vld [vmem:[#allocation4 + $0x1a1] ss:$2 sm:$0xff] }
 0x4f9   :  { %v4269_v43 = vmax.f32 %v4168_v41, %v4232_v47 }
 0x4fb   :  { %4301 = vst.msk [vmem:[#allocation5 + $0xd0] sm:$0xff] %vm4051_vm14, %v4269_v43 }
 0x502   :  { %v4320_v17 = vld [vmem:[#allocation5 + $0xd0] sm:$0xff] }
 0x50a   :  { %v6196_v15 = vpop.f32.mrb[54].mxu0 }
 0x50b   :  { %v3944_v38 = vadd.f32 %v9677_v4, %v6196_v15  ;;  %v3938_v19 = vpop.f32.mrb[55].mxu0 }
 0x50c   :  { %v3939_v42 = vadd.f32 %v9677_v4, %v3938_v19 }
 0x50d   :  { %v4042_v57 = vmax.f32 %v3944_v38, 0.0 }
 0x50e   :  { %v4041_v46 = vmax.f32 %v3939_v42, 0.0 }
 0x50f   :  { %4107 = vst.msk [vmem:[#allocation4 + $0x1b8] sm:$0xff] %vm4051_vm14, %v4042_v57 }
 0x510   :  { %4106 = vst.msk [vmem:[#allocation4 + $0x1b0] sm:$0xff] %vm4051_vm14, %v4041_v46 }
 0x517   :  { %v4170_v3 = vld [vmem:[#allocation4 + $0x1b0] ss:$2 sm:$0xff]  ;;  %v4234_v50 = vld [vmem:[#allocation4 + $0x1b1] ss:$2 sm:$0xff] }
 0x518   :  { %v4270_v60 = vmax.f32 %v4170_v3, %v4234_v50 }
 0x51a   :  { %4302 = vst.msk [vmem:[#allocation5 + $0xd8] sm:$0xff] %vm4051_vm14, %v4270_v60 }
 0x521   :  { %v4336_v5 = vld [vmem:[#allocation5 + $0xd8] sm:$0xff]  ;;  %v6548_v39 = vpop.permute.xlu1 %6547 }
 0x522   :  { %v4352_v12 = vmax.f32 %v4320_v17, %v4336_v5  ;;  %v6549_v29 = vunpack.i.l.bf16 %v6548_v39  ;;  %v6553_v33 = vpop.permute.xlu0 %6552  ;;  %v6550_v37 = vunpack.i.h.bf16 %v6548_v39 }
 0x523   :  { %v6554_v58 = vunpack.i.l.bf16 %v6553_v33  ;;  %v6555_v32 = vunpack.i.h.bf16 %v6553_v33  ;;  %v10003_v33 = vld [vmem:[%s10400_s4] ss:$0 sm:$0xff] }
 0x524   :  { %4420 = vst.msk [vmem:[#allocation3 + $0x101] sm:$0xff] %vm4051_vm14, %v4352_v12  ;;  %v5060_v22 = vsel %vm5049_vm2, %v5043_v49, %v6549_v29  ;;  %v5061_v63 = vsel %vm5049_vm2, %v5044_v44, %v6550_v37 }
 0x525   :  { %v6558_v61 = vpop.permute.xlu1 %6557  ;;  %v5077_v28 = vsel %vm5066_vm3, %v5060_v22, %v6554_v58  ;;  %v5078_v46 = vsel %vm5066_vm3, %v5061_v63, %v6555_v32 }
 0x526   :  { %v6559_v0 = vunpack.i.l.bf16 %v6558_v61  ;;  %v6560_v41 = vunpack.i.h.bf16 %v6558_v61 }
 0x528   :  { %v5094_v34 = vsel %vm5083_vm4, %v5077_v28, %v6559_v0  ;;  %v5095_v5 = vsel %vm5083_vm4, %v5078_v46, %v6560_v41 }
 0x52a   :  { %v6199_v16 = vpop.f32.mrb[56].mxu0 }
 0x52b   :  { %v3954_v9 = vadd.f32 %v9677_v4, %v6199_v16  ;;  %v3948_v52 = vpop.f32.mrb[57].mxu0  ;;  %v9932_v21 = vld [vmem:[#allocation3 + $0x101] sm:$0xff] }
 0x52c   :  { %v9934_v10 = vld [vmem:[#allocation3 + $0x100] sm:$0xff]  ;;  %v3949_v35 = vadd.f32 %v9677_v4, %v3948_v52  ;;  %v6586_v24 = vpack.i.bf16 %v9932_v21, %v9881_v59 }
 0x52d   :  { %v6581_v51 = vpack.i.bf16 %v9934_v10, %v9883_v6  ;;  %v4044_v25 = vmax.f32 %v3954_v9, 0.0  ;;  %v9941_v31 = vld [vmem:[#allocation3 + $0x102] sm:$0xff] }
 0x52e   :  { %v4043_v13 = vmax.f32 %v3949_v35, 0.0  ;;  %6587 = vrot.lane.b32.xlu1 %v6586_v24, %s6700_s3  ;;  %v6591_v55 = vpack.i.bf16 %v9941_v31, %v9891_v56 }
 0x52f   :  { %6582 = vrot.lane.b32.xlu0 %v6581_v51, %s6701_s15  ;;  %4109 = vst.msk [vmem:[#allocation4 + $0x1c8] sm:$0xff] %vm4051_vm14, %v4044_v25 }
 0x530   :  { %4108 = vst.msk [vmem:[#allocation4 + $0x1c0] sm:$0xff] %vm4051_vm14, %v4043_v13 }
 0x533   :  { %6592 = vrot.lane.b32.xlu0 %v6591_v55, %s6703_s17 }
 0x537   :  { %v4172_v59 = vld [vmem:[#allocation4 + $0x1c0] ss:$2 sm:$0xff]  ;;  %v4236_v11 = vld [vmem:[#allocation4 + $0x1c1] ss:$2 sm:$0xff] }
 0x538   :  { %v4271_v36 = vmax.f32 %v4172_v59, %v4236_v11 }
 0x53a   :  { %4303 = vst.msk [vmem:[#allocation5 + $0xe0] sm:$0xff] %vm4051_vm14, %v4271_v36 }
 0x541   :  { %v4321_v9 = vld [vmem:[#allocation5 + $0xe0] sm:$0xff] }
 0x54a   :  { %v6202_v7 = vpop.f32.mrb[58].mxu0 }
 0x54b   :  { %v3964_v30 = vadd.f32 %v9677_v4, %v6202_v7  ;;  %v3958_v40 = vpop.f32.mrb[59].mxu0 }
 0x54c   :  { %v3959_v45 = vadd.f32 %v9677_v4, %v3958_v40 }
 0x54d   :  { %v4046_v48 = vmax.f32 %v3964_v30, 0.0 }
 0x54e   :  { %v4045_v26 = vmax.f32 %v3959_v45, 0.0 }
 0x54f   :  { %4111 = vst.msk [vmem:[#allocation4 + $0x1d8] sm:$0xff] %vm4051_vm14, %v4046_v48 }
 0x550   :  { %4110 = vst.msk [vmem:[#allocation4 + $0x1d0] sm:$0xff] %vm4051_vm14, %v4045_v26 }
 0x555   :  { %v6568_v47 = vpop.permute.xlu1 %6567 }
 0x556   :  { %v6563_v43 = vpop.permute.xlu0 %6562  ;;  %v6569_v15 = vunpack.i.l.bf16 %v6568_v47  ;;  %v6570_v60 = vunpack.i.h.bf16 %v6568_v47 }
 0x557   :  { %v6565_v38 = vunpack.i.h.bf16 %v6563_v43  ;;  %v6564_v19 = vunpack.i.l.bf16 %v6563_v43  ;;  %v4174_v42 = vld [vmem:[#allocation4 + $0x1d0] ss:$2 sm:$0xff]  ;;  %v4238_v57 = vld [vmem:[#allocation4 + $0x1d1] ss:$2 sm:$0xff] }
 0x558   :  { %v4272_v3 = vmax.f32 %v4174_v42, %v4238_v57 }
 0x559   :  { %v5111_v50 = vsel %vm5100_vm5, %v5094_v34, %v6564_v19  ;;  %v5112_v12 = vsel %vm5100_vm5, %v5095_v5, %v6565_v38  ;;  %v4551_v5 = vld [vmem:[#allocation3 + $0x131] sm:$0xff] }
 0x55a   :  { %v5128_v17 = vsel %vm5117_vm6, %v5111_v50, %v6569_v15  ;;  %4304 = vst.msk [vmem:[#allocation5 + $0xe8] sm:$0xff] %vm4051_vm14, %v4272_v3  ;;  %v5129_v16 = vsel %vm5117_vm6, %v5112_v12, %v6570_v60 }
 0x55b   :  { %5322 = vmatmul.mubr.f32.gmra.mrb[20].mxu1 %v5128_v17  ;;  %v4535_v17 = vld [vmem:[#allocation3 + $0x130] sm:$0xff] }
 0x55c   :  { %5950 = vmatprep.mubr.msk.f32.mxu1 %vm4051_vm14, %v9891_v56 }
 0x55f   :  { %5327 = vmatmul.mubr.f32.gmra.mrb[22].mxu1 %v5129_v16 }
 0x560   :  { %5951 = vmatprep.mubr.msk.f32.mxu1 %vm4051_vm14, %v9941_v31 }
 0x561   :  { %v4337_v52 = vld [vmem:[#allocation5 + $0xe8] sm:$0xff] }
 0x562   :  { %v4353_v35 = vmax.f32 %v4321_v9, %v4337_v52 }
 0x564   :  { %4421 = vst.msk [vmem:[#allocation3 + $0x111] sm:$0xff] %vm4051_vm14, %v4353_v35 }
 0x56a   :  { %v6205_v24 = vpop.f32.mrb[60].mxu0 }
 0x56b   :  { %v3974_v51 = vadd.f32 %v9677_v4, %v6205_v24  ;;  %v3968_v25 = vpop.f32.mrb[61].mxu0  ;;  %v9978_v13 = vld [vmem:[#allocation3 + $0x110] sm:$0xff] }
 0x56c   :  { %v4549_v55 = vld [vmem:[#allocation3 + $0x111] sm:$0xff]  ;;  %v3969_v56 = vadd.f32 %v9677_v4, %v3968_v25  ;;  %v6596_v59 = vpack.i.bf16 %v9978_v13, %v9934_v10 }
 0x56d   :  { %v6601_v11 = vpack.i.bf16 %v4549_v55, %v9932_v21  ;;  %v4048_v36 = vmax.f32 %v3974_v51, 0.0  ;;  %v9984_v54 = vld [vmem:[#allocation3 + $0x112] sm:$0xff] }
 0x56e   :  { %v4047_v39 = vmax.f32 %v3969_v56, 0.0  ;;  %6597 = vrot.lane.b32.xlu1 %v6596_v59, %s6702_s16  ;;  %v6611_v7 = vpack.i.bf16 %v9984_v54, %v9941_v31 }
 0x56f   :  { %6602 = vrot.lane.b32.xlu0 %v6601_v11, %s6704_s0  ;;  %4113 = vst.msk [vmem:[#allocation4 + $0x1e8] sm:$0xff] %vm4051_vm14, %v4048_v36 }
 0x570   :  { %4112 = vst.msk [vmem:[#allocation4 + $0x1e0] sm:$0xff] %vm4051_vm14, %v4047_v39 }
 0x572   :  { %6607 = vrot.lane.b32.xlu1 %v6601_v11, %s6699_s14 }
 0x573   :  { %6612 = vrot.lane.b32.xlu0 %v6611_v7, %s6698_s12 }
 0x577   :  { %v4176_v21 = vld [vmem:[#allocation4 + $0x1e0] ss:$2 sm:$0xff]  ;;  %v4240_v62 = vld [vmem:[#allocation4 + $0x1e1] ss:$2 sm:$0xff]  ;;  %v6208_v30 = vpop.f32.mrb[62].mxu0 }
 0x578   :  { %v4273_v40 = vmax.f32 %v4176_v21, %v4240_v62  ;;  %v3984_v45 = vadd.f32 %v9677_v4, %v6208_v30  ;;  %v3978_v23 = vpop.f32.mrb[63].mxu0 }
 0x579   :  { %v3979_v48 = vadd.f32 %v9677_v4, %v3978_v23 }
 0x57a   :  { %4305 = vst.msk [vmem:[#allocation5 + $0xf0] sm:$0xff] %vm4051_vm14, %v4273_v40  ;;  %v4050_v27 = vmax.f32 %v3984_v45, 0.0 }
 0x57b   :  { %v4049_v26 = vmax.f32 %v3979_v48, 0.0 }
 0x57c   :  { %4115 = vst.msk [vmem:[#allocation4 + $0x1f8] sm:$0xff] %vm4051_vm14, %v4050_v27 }
 0x57d   :  { %4114 = vst.msk [vmem:[#allocation4 + $0x1f0] sm:$0xff] %vm4051_vm14, %v4049_v26 }
 0x581   :  { %v4322_v1 = vld [vmem:[#allocation5 + $0xf0] sm:$0xff] }
 0x584   :  { %v4178_v31 = vld [vmem:[#allocation4 + $0x1f0] ss:$2 sm:$0xff]  ;;  %v4242_v14 = vld [vmem:[#allocation4 + $0x1f1] ss:$2 sm:$0xff] }
 0x585   :  { %v4274_v29 = vmax.f32 %v4178_v31, %v4242_v14 }
 0x587   :  { %4306 = vst.msk [vmem:[#allocation5 + $0xf8] sm:$0xff] %vm4051_vm14, %v4274_v29 }
 0x589   :  { %v5273_v53 = vpop.f32.mrb[0].mxu1 }
 0x58a   :  { %v5274_v4 = vadd.f32 %v10003_v33, %v5273_v53  ;;  %v5275_v61 = vpop.f32.mrb[1].mxu1 }
 0x58c   :  { %v5352_v8 = vmax.f32 %v5274_v4, 0.0 }
 0x58d   :  { %v5278_v37 = vpop.f32.mrb[2].mxu1 }
 0x58e   :  { %5368 = vst.msk [vmem:[#allocation6] sm:$0xff] %vm5032_vm0, %v5352_v8  ;;  %v5279_v49 = vadd.f32 %v10003_v33, %v5278_v37  ;;  %v5280_v58 = vpop.f32.mrb[3].mxu1  ;;  %v4338_v22 = vld [vmem:[#allocation5 + $0xf8] sm:$0xff] }
 0x58f   :  { %v4354_v0 = vmax.f32 %v4322_v1, %v4338_v22  ;;  %v6573_v58 = vpop.permute.xlu0 %6572 }
 0x590   :  { %v5353_v44 = vmax.f32 %v5279_v49, 0.0 }
 0x591   :  { %4422 = vst.msk [vmem:[#allocation3 + $0x121] sm:$0xff] %vm4051_vm14, %v4354_v0  ;;  %v5572_v0 = vld [vmem:[%s10401_s5 + $0x80] sm:$0xff] }
 0x592   :  { %5369 = vst.msk [vmem:[#allocation6 + $0x8] sm:$0xff] %vm5032_vm0, %v5353_v44 }
 0x596   :  { %v5283_v32 = vpop.f32.mrb[4].mxu1 }
 0x597   :  { %v5284_v63 = vadd.f32 %v10003_v33, %v5283_v32  ;;  %v5285_v41 = vpop.f32.mrb[5].mxu1  ;;  %v5573_v32 = vld [vmem:[%s10401_s5 + $0x88] sm:$0xff] }
 0x598   :  { %v4486_v47 = vld [vmem:[#allocation3 + $0x120] sm:$0xff]  ;;  %v5557_v41 = vld [vmem:[%s10401_s5 + $0x8] sm:$0xff] }
 0x599   :  { %v4502_v43 = vld [vmem:[#allocation3 + $0x121] sm:$0xff]  ;;  %v5354_v38 = vmax.f32 %v5284_v63, 0.0  ;;  %v6616_v19 = vpack.i.bf16 %v4486_v47, %v9978_v13 }
 0x59a   :  { %v5384_v28 = vld [vmem:[#allocation6] ss:$2 sm:$0xff]  ;;  %v5400_v15 = vld [vmem:[#allocation6 + $0x1] ss:$2 sm:$0xff]  ;;  %v6621_v42 = vpack.i.bf16 %v4502_v43, %v4549_v55  ;;  %v5288_v34 = vpop.f32.mrb[6].mxu1 }
 0x59b   :  { %v5415_v57 = vmax.f32 %v5384_v28, %v5400_v15  ;;  %5370 = vst.msk [vmem:[#allocation6 + $0x10] sm:$0xff] %vm5032_vm0, %v5354_v38  ;;  %v5289_v46 = vadd.f32 %v10003_v33, %v5288_v34  ;;  %v5290_v3 = vpop.f32.mrb[7].mxu1  ;;  %6617 = vrot.lane.b32.xlu1 %v6616_v19, %s6701_s15  ;;  %v10021_v60 = vld [vmem:[#allocation3 + $0x122] sm:$0xff]  ;;  %v5574_v28 = vld [vmem:[%s10401_s5 + $0x90] sm:$0xff]  ;;  %v5575_v15 = vld [vmem:[%s10401_s5 + $0x98] sm:$0xff] }
 0x59c   :  { %6622 = vrot.lane.b32.xlu0 %v6621_v42, %s6700_s3  ;;  %v5556_v63 = vld [vmem:[%s10401_s5] sm:$0xff]  ;;  %v5558_v38 = vld [vmem:[%s10401_s5 + $0x10] sm:$0xff]  ;;  %v6269_v19 = vpack.c.bf16 %v5575_v15, %v5574_v28  ;;  %v5559_v42 = vld [vmem:[%s10401_s5 + $0x18] sm:$0xff]  ;;  %v6574_v3 = vunpack.i.l.bf16 %v6573_v58 }
 0x59d   :  { %5423 = vst.msk [vmem:[#allocation7] sm:$0xff] %vm5032_vm0, %v5415_v57  ;;  %v5355_v50 = vmax.f32 %v5289_v46, 0.0  ;;  %v5576_v57 = vld [vmem:[%s10401_s5 + $0xa0] sm:$0xff]  ;;  %v5577_v34 = vld [vmem:[%s10401_s5 + $0xa8] sm:$0xff]  ;;  %v6578_v46 = vpop.permute.xlu1 %6577 }
 0x59f   :  { %5371 = vst.msk [vmem:[#allocation6 + $0x18] sm:$0xff] %vm5032_vm0, %v5355_v50  ;;  %4868 = vrot.lane.b32.xlu1 %v9984_v54, %s6703_s17 }
 0x5a0   :  { %4932 = vrot.lane.b32.xlu0 %v4486_v47, %s6702_s16  ;;  %v6265_v47 = vpack.c.bf16 %v5573_v32, %v5572_v0 }
 0x5a1   :  { %v6583_v50 = vpop.permute.xlu0 %6582 }
 0x5a2   :  { %6266 = vmatprep.subr.bf16.mxu1 %v6265_v47 }
 0x5a3   :  { %4996 = vrot.lane.b32.xlu1 %v4502_v43, %s6704_s0  ;;  %v6267_v43 = vpack.c.bf16 %v5557_v41, %v5556_v63 }
 0x5a4   :  { %4870 = vrot.lane.b32.xlu0 %v10021_v60, %s6703_s17 }
 0x5a5   :  { %v5293_v12 = vpop.f32.mrb[8].mxu1  ;;  %6268 = vmatpush3.bf16.msra.mxu1 %v6267_v43 }
 0x5a6   :  { %v5386_v16 = vld [vmem:[#allocation6 + $0x10] ss:$2 sm:$0xff]  ;;  %v5402_v9 = vld [vmem:[#allocation6 + $0x11] ss:$2 sm:$0xff]  ;;  %v5294_v52 = vadd.f32 %v10003_v33, %v5293_v12  ;;  %v5295_v35 = vpop.f32.mrb[9].mxu1  ;;  %6270 = vmatprep.subr.bf16.mxu1 %v6269_v19  ;;  %v5560_v12 = vld [vmem:[%s10401_s5 + $0x20] sm:$0xff] }
 0x5a7   :  { %v5416_v24 = vmax.f32 %v5386_v16, %v5402_v9  ;;  %4934 = vrot.lane.b32.xlu1 %v4535_v17, %s6702_s16  ;;  %v6271_v17 = vpack.c.bf16 %v5559_v42, %v5558_v38  ;;  %v5561_v16 = vld [vmem:[%s10401_s5 + $0x28] sm:$0xff]  ;;  %v6579_v9 = vunpack.i.l.bf16 %v6578_v46  ;;  %v5578_v35 = vld [vmem:[%s10401_s5 + $0xb0] sm:$0xff] }
 0x5a8   :  { %4998 = vrot.lane.b32.xlu0 %v4551_v5, %s6704_s0  ;;  %v5356_v51 = vmax.f32 %v5294_v52, 0.0  ;;  %v6273_v5 = vpack.c.bf16 %v5577_v34, %v5576_v57  ;;  %v6575_v52 = vunpack.i.h.bf16 %v6573_v58 }
 0x5a9   :  { %5424 = vst.msk [vmem:[#allocation7 + $0x8] sm:$0xff] %vm5032_vm0, %v5416_v24  ;;  %v5298_v25 = vpop.f32.mrb[10].mxu1  ;;  %v5579_v24 = vld [vmem:[%s10401_s5 + $0xb8] sm:$0xff]  ;;  %6272 = vmatpush3.bf16.msra.mxu1 %v6271_v17 }
 0x5aa   :  { %5372 = vst.msk [vmem:[#allocation6 + $0x20] sm:$0xff] %vm5032_vm0, %v5356_v51  ;;  %v5299_v55 = vadd.f32 %v10003_v33, %v5298_v25  ;;  %v5300_v56 = vpop.f32.mrb[11].mxu1  ;;  %v5028_v51 = vsel %vm4051_vm14, %v9786_v20, %v6574_v3  ;;  %v6584_v25 = vunpack.i.l.bf16 %v6583_v50  ;;  %6274 = vmatprep.subr.bf16.mxu1 %v6273_v5  ;;  %v5563_v20 = vld [vmem:[%s10401_s5 + $0x38] sm:$0xff] }
 0x5ab   :  { %v5431_v56 = vld [vmem:[#allocation7] sm:$0xf] }
 0x5ac   :  { %v5357_v59 = vmax.f32 %v5299_v55, 0.0  ;;  %v6588_v55 = vpop.permute.xlu1 %6587 }
 0x5ae   :  { %5373 = vst.msk [vmem:[#allocation6 + $0x28] sm:$0xff] %vm5032_vm0, %v5357_v59  ;;  %v5439_v59 = vld [vmem:[#allocation7 + $0x4] sm:$0xf] }
 0x5b2   :  { %v5303_v11 = vpop.f32.mrb[12].mxu1 }
 0x5b3   :  { %v5304_v36 = vadd.f32 %v10003_v33, %v5303_v11  ;;  %v5305_v39 = vpop.f32.mrb[13].mxu1  ;;  %v6275_v11 = vpack.c.bf16 %v5561_v16, %v5560_v12 }
 0x5b4   :  { %v6580_v39 = vunpack.i.h.bf16 %v6578_v46 }
 0x5b5   :  { %v5388_v7 = vld [vmem:[#allocation6 + $0x20] ss:$2 sm:$0xff]  ;;  %v5404_v21 = vld [vmem:[#allocation6 + $0x21] ss:$2 sm:$0xff]  ;;  %v5358_v62 = vmax.f32 %v5304_v36, 0.0  ;;  %v5562_v36 = vld [vmem:[%s10401_s5 + $0x30] sm:$0xff]  ;;  %6276 = vmatpush3.bf16.msra.mxu1 %v6275_v11 }
 0x5b6   :  { %v5417_v30 = vmax.f32 %v5388_v7, %v5404_v21  ;;  %v5308_v40 = vpop.f32.mrb[14].mxu1  ;;  %v6593_v7 = vpop.permute.xlu0 %6592 }
 0x5b7   :  { %5374 = vst.msk [vmem:[#allocation6 + $0x30] sm:$0xff] %vm5032_vm0, %v5358_v62  ;;  %v5309_v45 = vadd.f32 %v10003_v33, %v5308_v40  ;;  %v5310_v23 = vpop.f32.mrb[15].mxu1  ;;  %v5029_v40 = vsel %vm4051_vm14, %v9883_v6, %v6575_v52  ;;  %v6279_v6 = vpack.c.bf16 %v5563_v20, %v5562_v36  ;;  %v6595_v58 = vunpack.i.h.bf16 %v6593_v7 }
 0x5b8   :  { %5425 = vst.msk [vmem:[#allocation7 + $0x10] sm:$0xff] %vm5032_vm0, %v5417_v30  ;;  %v6277_v30 = vpack.c.bf16 %v5579_v24, %v5578_v35  ;;  %v5045_v23 = vsel %vm5032_vm0, %v5028_v51, %v6579_v9 }
 0x5b9   :  { %v5359_v48 = vmax.f32 %v5309_v45, 0.0  ;;  %v6585_v45 = vunpack.i.h.bf16 %v6583_v50 }
 0x5ba   :  { %6278 = vmatprep.subr.bf16.mxu1 %v6277_v30 }
 0x5bb   :  { %5375 = vst.msk [vmem:[#allocation6 + $0x38] sm:$0xff] %vm5032_vm0, %v5359_v48  ;;  %6280 = vmatpush3.bf16.msra.mxu1 %v6279_v6 }
 0x5c1   :  { %v5313_v27 = vpop.f32.mrb[16].mxu1 }
 0x5c2   :  { %v5314_v26 = vadd.f32 %v10003_v33, %v5313_v27  ;;  %v5315_v31 = vpop.f32.mrb[17].mxu1  ;;  %v5390_v14 = vld [vmem:[#allocation6 + $0x30] ss:$2 sm:$0xff]  ;;  %v5406_v29 = vld [vmem:[#allocation6 + $0x31] ss:$2 sm:$0xff]  ;;  %v5580_v27 = vld [vmem:[%s10401_s5 + $0xc0] sm:$0xff] }
 0x5c3   :  { %v5418_v53 = vmax.f32 %v5390_v14, %v5406_v29  ;;  %v6589_v31 = vunpack.i.l.bf16 %v6588_v55  ;;  %v5062_v14 = vsel %vm5049_vm2, %v5045_v23, %v6584_v25  ;;  %v6594_v29 = vunpack.i.l.bf16 %v6593_v7 }
 0x5c4   :  { %v5360_v4 = vmax.f32 %v5314_v26, 0.0  ;;  %v5581_v26 = vld [vmem:[%s10401_s5 + $0xc8] sm:$0xff] }
 0x5c5   :  { %v5318_v61 = vpop.f32.mrb[18].mxu1  ;;  %5426 = vst.msk [vmem:[#allocation7 + $0x18] sm:$0xff] %vm5032_vm0, %v5418_v53  ;;  %v10106_v53 = vmax.f32 %v5431_v56, %v5439_v59  ;;  %v5079_v41 = vsel %vm5066_vm3, %v5062_v14, %v6589_v31 }
 0x5c6   :  { %5376 = vst.msk [vmem:[#allocation6 + $0x40] sm:$0xff] %vm5032_vm0, %v5360_v4  ;;  %v5319_v8 = vadd.f32 %v10003_v33, %v5318_v61  ;;  %v5320_v37 = vpop.f32.mrb[19].mxu1  ;;  %v6590_v61 = vunpack.i.h.bf16 %v6588_v55  ;;  %v5096_v47 = vsel %vm5083_vm4, %v5079_v41, %v6594_v29 }
 0x5c7   :  { %v6281_v37 = vpack.c.bf16 %v5581_v26, %v5580_v27 }
 0x5c8   :  { %v5361_v49 = vmax.f32 %v5319_v8, 0.0  ;;  %v5046_v8 = vsel %vm5032_vm0, %v5029_v40, %v6580_v39 }
 0x5c9   :  { %6282 = vmatprep.subr.bf16.mxu1 %v6281_v37  ;;  %v5564_v37 = vld [vmem:[%s10401_s5 + $0x40] sm:$0xff] }
 0x5ca   :  { %5377 = vst.msk [vmem:[#allocation6 + $0x48] sm:$0xff] %vm5032_vm0, %v5361_v49  ;;  %v5063_v49 = vsel %vm5049_vm2, %v5046_v8, %v6585_v45 }
 0x5cb   :  { %v5080_v28 = vsel %vm5066_vm3, %v5063_v49, %v6590_v61  ;;  %v5565_v49 = vld [vmem:[%s10401_s5 + $0x48] sm:$0xff] }
 0x5cc   :  { %v5097_v19 = vsel %vm5083_vm4, %v5080_v28, %v6595_v58  ;;  %v6283_v58 = vpack.c.bf16 %v5565_v49, %v5564_v37 }
 0x5ce   :  { %6284 = vmatpush3.bf16.msra.mxu1 %v6283_v58 }
 0x5d1   :  { %v5392_v1 = vld [vmem:[#allocation6 + $0x40] ss:$2 sm:$0xff]  ;;  %v5408_v22 = vld [vmem:[#allocation6 + $0x41] ss:$2 sm:$0xff] }
 0x5d2   :  { %v5419_v44 = vmax.f32 %v5392_v1, %v5408_v22 }
 0x5d4   :  { %5427 = vst.msk [vmem:[#allocation7 + $0x20] sm:$0xff] %vm5032_vm0, %v5419_v44 }
 0x5db   :  { %v5435_v21 = vld [vmem:[#allocation7 + $0x20] sm:$0xf]  ;;  %v5443_v62 = vld [vmem:[#allocation7 + $0x24] sm:$0xf] }
 0x5dc   :  { %v10097_v48 = vmax.f32 %v5435_v21, %v5443_v62  ;;  %v4567_v62 = vld [vmem:[#allocation3 + $0x132] sm:$0xff] }
 0x5de   :  { %v5457_v4 = vrot.slane %v10097_v48, 7 }
 0x5e0   :  { %v6598_v1 = vpop.permute.xlu1 %6597  ;;  %v10113_v0 = vsel %vm5458_vm7, %v5457_v4, %v10106_v53 }
 0x5e1   :  { %v6603_v22 = vpop.permute.xlu0 %6602  ;;  %v6600_v44 = vunpack.i.h.bf16 %v6598_v1  ;;  %v6599_v32 = vunpack.i.l.bf16 %v6598_v1  ;;  %v5582_v1 = vld [vmem:[%s10401_s5 + $0xd0] sm:$0xff] }
 0x5e2   :  { %v6604_v63 = vunpack.i.l.bf16 %v6603_v22  ;;  %v6605_v15 = vunpack.i.h.bf16 %v6603_v22  ;;  %v5583_v22 = vld [vmem:[%s10401_s5 + $0xd8] sm:$0xff] }
 0x5e3   :  { %v5113_v43 = vsel %vm5100_vm5, %v5096_v47, %v6599_v32  ;;  %v5114_v42 = vsel %vm5100_vm5, %v5097_v19, %v6600_v44  ;;  %v6285_v44 = vpack.c.bf16 %v5583_v22, %v5582_v1  ;;  %v5566_v32 = vld [vmem:[%s10401_s5 + $0x50] sm:$0xff] }
 0x5e4   :  { %v5130_v38 = vsel %vm5117_vm6, %v5113_v43, %v6604_v63  ;;  %v5131_v57 = vsel %vm5117_vm6, %v5114_v42, %v6605_v15  ;;  %v6608_v34 = vpop.permute.xlu1 %6607  ;;  %v5567_v63 = vld [vmem:[%s10401_s5 + $0x58] sm:$0xff]  ;;  %v5584_v15 = vld [vmem:[%s10401_s5 + $0xe0] sm:$0xff] }
 0x5e5   :  { %5332 = vmatmul.mubr.f32.gmra.mrb[24].mxu1 %v5130_v38  ;;  %v6609_v46 = vunpack.i.l.bf16 %v6608_v34  ;;  %v6613_v3 = vpop.permute.xlu0 %6612  ;;  %v6610_v5 = vunpack.i.h.bf16 %v6608_v34  ;;  %v6287_v43 = vpack.c.bf16 %v5567_v63, %v5566_v32  ;;  %6286 = vmatprep.subr.bf16.mxu1 %v6285_v44  ;;  %v5585_v38 = vld [vmem:[%s10401_s5 + $0xe8] sm:$0xff]  ;;  %v5568_v42 = vld [vmem:[%s10401_s5 + $0x60] sm:$0xff] }
 0x5e6   :  { %5952 = vmatprep.mubr.msk.f32.mxu1 %vm4051_vm14, %v9984_v54  ;;  %v6614_v50 = vunpack.i.l.bf16 %v6613_v3  ;;  %v6615_v35 = vunpack.i.h.bf16 %v6613_v3  ;;  %v6289_v19 = vpack.c.bf16 %v5585_v38, %v5584_v15  ;;  %v5432_v34 = vld [vmem:[#allocation7 + $0x8] sm:$0xf]  ;;  %v5606_v38 = vld [vmem:[%s10401_s5 + $0x190] sm:$0xff] }
 0x5e7   :  { %v5030_v17 = vsel %vm4051_vm14, %v9934_v10, %v6609_v46  ;;  %6288 = vmatpush3.bf16.msra.mxu1 %v6287_v43  ;;  %v5440_v46 = vld [vmem:[#allocation7 + $0xc] sm:$0xf]  ;;  %v5588_v43 = vld [vmem:[%s10401_s5 + $0x100] sm:$0xff] }
 0x5e8   :  { %v5047_v54 = vsel %vm5032_vm0, %v5030_v17, %v6614_v50  ;;  %6290 = vmatprep.subr.bf16.mxu1 %v6289_v19  ;;  %v5586_v50 = vld [vmem:[%s10401_s5 + $0xf0] sm:$0xff]  ;;  %v5587_v17 = vld [vmem:[%s10401_s5 + $0xf8] sm:$0xff] }
 0x5e9   :  { %5337 = vmatmul.mubr.f32.gmra.mrb[26].mxu1 %v5131_v57  ;;  %v5569_v57 = vld [vmem:[%s10401_s5 + $0x68] sm:$0xff] }
 0x5ea   :  { %5953 = vmatprep.mubr.msk.f32.mxu1 %vm4051_vm14, %v10021_v60  ;;  %v5031_v60 = vsel %vm4051_vm14, %v9978_v13, %v6610_v5  ;;  %v6291_v3 = vpack.c.bf16 %v5569_v57, %v5568_v42  ;;  %v5448_v5 = vmax.f32 %v5432_v34, %v5440_v46 }
 0x5eb   :  { %v5048_v59 = vsel %vm5032_vm0, %v5031_v60, %v6615_v35 }
 0x5ec   :  { %6292 = vmatpush3.bf16.msra.mxu1 %v6291_v3 }
 0x60d   :  { %v6618_v12 = vpop.permute.xlu1 %6617 }
 0x60e   :  { %v6623_v16 = vpop.permute.xlu0 %6622  ;;  %v6619_v9 = vunpack.i.l.bf16 %v6618_v12  ;;  %v6620_v51 = vunpack.i.h.bf16 %v6618_v12  ;;  %v6293_v12 = vpack.c.bf16 %v5587_v17, %v5586_v50 }
 0x60f   :  { %v6624_v52 = vunpack.i.l.bf16 %v6623_v16  ;;  %v6625_v11 = vunpack.i.h.bf16 %v6623_v16  ;;  %v5570_v16 = vld [vmem:[%s10401_s5 + $0x70] sm:$0xff] }
 0x610   :  { %v5064_v24 = vsel %vm5049_vm2, %v5047_v54, %v6619_v9  ;;  %v5065_v21 = vsel %vm5049_vm2, %v5048_v59, %v6620_v51  ;;  %v5571_v9 = vld [vmem:[%s10401_s5 + $0x78] sm:$0xff]  ;;  %6294 = vmatprep.subr.bf16.mxu1 %v6293_v12  ;;  %v5483_v51 = vrot.slane %v5448_v5, 1  ;;  %v5494_v59 = vrot.slane %v5448_v5, 3 }
 0x611   :  { %v4869_v25 = vpop.permute.xlu1 %4868  ;;  %v5081_v55 = vsel %vm5066_vm3, %v5064_v24, %v6624_v52  ;;  %v5082_v13 = vsel %vm5066_vm3, %v5065_v21, %v6625_v11  ;;  %v6295_v52 = vpack.c.bf16 %v5571_v9, %v5570_v16  ;;  %v5461_v24 = vrot.slane %v10106_v53, 1  ;;  %v5591_v12 = vld [vmem:[%s10401_s5 + $0x118] sm:$0xff]  ;;  %v5608_v16 = vld [vmem:[%s10401_s5 + $0x1a0] sm:$0xff]  ;;  %v5609_v9 = vld [vmem:[%s10401_s5 + $0x1a8] sm:$0xff] }
 0x612   :  { %v4933_v56 = vpop.permute.xlu0 %4932  ;;  %v5098_v10 = vsel %vm5083_vm4, %v5081_v55, %v4869_v25  ;;  %v5467_v25 = vrot.slane %v10097_v48, 1 }
 0x613   :  { %v5115_v36 = vsel %vm5100_vm5, %v5098_v10, %v4933_v56  ;;  %6296 = vmatpush3.bf16.msra.mxu1 %v6295_v52  ;;  %v5462_v55 = vsel %vm5458_vm7, %v10097_v48, %v5461_v24  ;;  %v5466_v56 = vrot.slane %v10106_v53, 2  ;;  %v5488_v10 = vrot.slane %v5448_v5, 2 }
 0x615   :  { %v4997_v39 = vpop.permute.xlu1 %4996 }
 0x616   :  { %v4871_v7 = vpop.permute.xlu0 %4870  ;;  %v5132_v30 = vsel %vm5117_vm6, %v5115_v36, %v4997_v39  ;;  %v5473_v39 = vrot.slane %v10097_v48, 2  ;;  %v5604_v48 = vld [vmem:[%s10401_s5 + $0x180] sm:$0xff] }
 0x617   :  { %5342 = vmatmul.mubr.f32.gmra.mrb[28].mxu1 %v5132_v30  ;;  %v5099_v20 = vsel %vm5083_vm4, %v5082_v13, %v4871_v7  ;;  %v5472_v13 = vrot.slane %v10106_v53, 3  ;;  %v5605_v53 = vld [vmem:[%s10401_s5 + $0x188] sm:$0xff] }
 0x618   :  { %5954 = vmatprep.mubr.msk.f32.mxu1 %vm4051_vm14, %v4567_v62  ;;  %v5468_v62 = vsel %vm5458_vm7, %v5467_v25, %v5466_v56  ;;  %v5593_v25 = vld [vmem:[%s10401_s5 + $0x128] sm:$0xff]  ;;  %v5611_v56 = vld [vmem:[%s10401_s5 + $0x1b8] sm:$0xff] }
 0x619   :  { %v4935_v40 = vpop.permute.xlu1 %4934 }
 0x61a   :  { %v4999_v45 = vpop.permute.xlu0 %4998  ;;  %v5116_v23 = vsel %vm5100_vm5, %v5099_v20, %v4935_v40 }
 0x61b   :  { %v5133_v27 = vsel %vm5117_vm6, %v5116_v23, %v4999_v45  ;;  %v5474_v45 = vsel %vm5458_vm7, %v5473_v39, %v5472_v13  ;;  %v5612_v39 = vld [vmem:[%s10401_s5 + $0x1c0] sm:$0xff]  ;;  %v5597_v13 = vld [vmem:[%s10401_s5 + $0x148] sm:$0xff] }
 0x61c   :  { %5347 = vmatmul.mubr.f32.gmra.mrb[30].mxu1 %v5133_v27  ;;  %v6297_v27 = vpack.c.bf16 %v5605_v53, %v5604_v48  ;;  %v5598_v48 = vld [vmem:[%s10401_s5 + $0x150] sm:$0xff]  ;;  %v5599_v53 = vld [vmem:[%s10401_s5 + $0x158] sm:$0xff] }
 0x61e   :  { %6298 = vmatprep.subr.bf16.mxu1 %v6297_v27  ;;  %v6319_v27 = vpack.c.bf16 %v5599_v53, %v5598_v48  ;;  %v5772_v53 = vld [vmem:[%s10403_s7 + $0x20] sm:$0xff] }
 0x62e   :  { %v5323_v26 = vpop.f32.mrb[20].mxu1 }
 0x62f   :  { %v5324_v31 = vadd.f32 %v10003_v33, %v5323_v26  ;;  %v5325_v14 = vpop.f32.mrb[21].mxu1 }
 0x631   :  { %v5362_v29 = vmax.f32 %v5324_v31, 0.0 }
 0x632   :  { %v5328_v6 = vpop.f32.mrb[22].mxu1 }
 0x633   :  { %5378 = vst.msk [vmem:[#allocation6 + $0x50] sm:$0xff] %vm5032_vm0, %v5362_v29  ;;  %v5329_v4 = vadd.f32 %v10003_v33, %v5328_v6  ;;  %v5330_v61 = vpop.f32.mrb[23].mxu1 }
 0x635   :  { %v5363_v8 = vmax.f32 %v5329_v4, 0.0 }
 0x637   :  { %5379 = vst.msk [vmem:[#allocation6 + $0x58] sm:$0xff] %vm5032_vm0, %v5363_v8 }
 0x63e   :  { %v5394_v41 = vld [vmem:[#allocation6 + $0x50] ss:$2 sm:$0xff]  ;;  %v5410_v47 = vld [vmem:[#allocation6 + $0x51] ss:$2 sm:$0xff] }
 0x63f   :  { %v5420_v28 = vmax.f32 %v5394_v41, %v5410_v47 }
 0x641   :  { %5428 = vst.msk [vmem:[#allocation7 + $0x28] sm:$0xff] %vm5032_vm0, %v5420_v28  ;;  %v5589_v28 = vld [vmem:[%s10401_s5 + $0x108] sm:$0xff] }
 0x642   :  { %v6299_v46 = vpack.c.bf16 %v5589_v28, %v5588_v43  ;;  %v5600_v28 = vld [vmem:[%s10401_s5 + $0x160] sm:$0xff] }
 0x648   :  { %v5436_v54 = vld [vmem:[#allocation7 + $0x28] sm:$0xf]  ;;  %v5444_v35 = vld [vmem:[#allocation7 + $0x2c] sm:$0xf] }
 0x649   :  { %v5452_v60 = vmax.f32 %v5436_v54, %v5444_v35 }
 0x64b   :  { %v5484_v11 = vsel %vm5458_vm7, %v5452_v60, %v5483_v51  ;;  %v5489_v36 = vrot.slane %v5452_v60, 1  ;;  %v5495_v7 = vrot.slane %v5452_v60, 2  ;;  %v5480_v8 = vrot.slane %v5452_v60, 7  ;;  %v5592_v51 = vld [vmem:[%s10401_s5 + $0x120] sm:$0xff] }
 0x64c   :  { %v6626_v21 = vpack.i.bf16 %v5462_v55, %v5484_v11  ;;  %v6305_v60 = vpack.c.bf16 %v5609_v9, %v5608_v16  ;;  %v5610_v55 = vld [vmem:[%s10401_s5 + $0x1b0] sm:$0xff] }
 0x64d   :  { %v5490_v30 = vsel %vm5458_vm7, %v5489_v36, %v5488_v10  ;;  %v5496_v20 = vsel %vm5458_vm7, %v5495_v7, %v5494_v59  ;;  %v5481_v44 = vsel %vm5458_vm7, %v5480_v8, %v5448_v5  ;;  %v5590_v5 = vld [vmem:[%s10401_s5 + $0x110] sm:$0xff]  ;;  %v6307_v10 = vpack.c.bf16 %v5593_v25, %v5592_v51  ;;  %v5595_v36 = vld [vmem:[%s10401_s5 + $0x138] sm:$0xff]  ;;  %v5613_v7 = vld [vmem:[%s10401_s5 + $0x1c8] sm:$0xff] }
 0x64e   :  { %6627 = vrot.lane.b32.xlu1 %v6626_v21, %s6698_s12  ;;  %v6631_v40 = vpack.i.bf16 %v5468_v62, %v5490_v30  ;;  %v6636_v23 = vpack.i.bf16 %v5474_v45, %v5496_v20  ;;  %v6303_v24 = vpack.c.bf16 %v5591_v12, %v5590_v5  ;;  %v6309_v59 = vpack.c.bf16 %v5611_v56, %v5610_v55  ;;  %v5594_v11 = vld [vmem:[%s10401_s5 + $0x130] sm:$0xff]  ;;  %v5596_v30 = vld [vmem:[%s10401_s5 + $0x140] sm:$0xff] }
 0x64f   :  { %v6311_v21 = vpack.c.bf16 %v5595_v36, %v5594_v11  ;;  %v6313_v62 = vpack.c.bf16 %v5613_v7, %v5612_v39  ;;  %v5614_v20 = vld [vmem:[%s10401_s5 + $0x1d0] sm:$0xff]  ;;  %v6315_v45 = vpack.c.bf16 %v5597_v13, %v5596_v30  ;;  %v5768_v13 = vld [vmem:[%s10403_s7] sm:$0xff] }
 0x650   :  { %6632 = vrot.lane.b32.xlu0 %v6631_v40, %s6700_s3  ;;  %v5615_v40 = vld [vmem:[%s10401_s5 + $0x1d8] sm:$0xff] }
 0x652   :  { %6637 = vrot.lane.b32.xlu1 %v6636_v23, %s6702_s16  ;;  %v6317_v23 = vpack.c.bf16 %v5615_v40, %v5614_v20  ;;  %v5769_v20 = vld [vmem:[%s10403_s7 + $0x8] sm:$0xff]  ;;  %v5770_v40 = vld [vmem:[%s10403_s7 + $0x10] sm:$0xff] }
 0x6b8   :  { %v5333_v26 = vpop.f32.mrb[24].mxu1 }
 0x6b9   :  { %v5334_v31 = vadd.f32 %v10003_v33, %v5333_v26  ;;  %v5335_v14 = vpop.f32.mrb[25].mxu1 }
 0x6bb   :  { %v5364_v29 = vmax.f32 %v5334_v31, 0.0 }
 0x6bc   :  { %v5338_v6 = vpop.f32.mrb[26].mxu1 }
 0x6bd   :  { %5380 = vst.msk [vmem:[#allocation6 + $0x60] sm:$0xff] %vm5032_vm0, %v5364_v29  ;;  %v5339_v4 = vadd.f32 %v10003_v33, %v5338_v6  ;;  %v5340_v61 = vpop.f32.mrb[27].mxu1 }
 0x6bf   :  { %v5365_v37 = vmax.f32 %v5339_v4, 0.0 }
 0x6c0   :  { %v6628_v49 = vpop.permute.xlu1 %6627 }
 0x6c1   :  { %v6630_v58 = vunpack.i.h.bf16 %v6628_v49  ;;  %v6629_v1 = vunpack.i.l.bf16 %v6628_v49  ;;  %5381 = vst.msk [vmem:[#allocation6 + $0x68] sm:$0xff] %vm5032_vm0, %v5365_v37 }
 0x6c2   :  { %v6633_v22 = vpop.permute.xlu0 %6632 }
 0x6c3   :  { %v5544_v32 = vsel %vm5032_vm0, %v10113_v0, %v6630_v58  ;;  %v6635_v63 = vunpack.i.h.bf16 %v6633_v22  ;;  %v6634_v41 = vunpack.i.l.bf16 %v6633_v22  ;;  %v5547_v47 = vsel %vm5032_vm0, %v5481_v44, %v6629_v1  ;;  %v5607_v0 = vld [vmem:[%s10401_s5 + $0x198] sm:$0xff]  ;;  %v5433_v1 = vld [vmem:[#allocation7 + $0x10] sm:$0xf]  ;;  %v5441_v44 = vld [vmem:[#allocation7 + $0x14] sm:$0xf] }
 0x6c4   :  { %v6638_v15 = vpop.permute.xlu1 %6637  ;;  %v6301_v17 = vpack.c.bf16 %v5607_v0, %v5606_v38  ;;  %v5434_v22 = vld [vmem:[#allocation7 + $0x18] sm:$0xf]  ;;  %v10308_v0 = vmax.f32 %v5433_v1, %v5441_v44 }
 0x6c5   :  { %v5545_v19 = vsel %vm5066_vm3, %v5544_v32, %v6635_v63  ;;  %v6640_v42 = vunpack.i.h.bf16 %v6638_v15  ;;  %v6639_v57 = vunpack.i.l.bf16 %v6638_v15  ;;  %v5548_v34 = vsel %vm5066_vm3, %v5547_v47, %v6634_v41  ;;  %v5442_v32 = vld [vmem:[#allocation7 + $0x1c] sm:$0xf]  ;;  %v5616_v41 = vld [vmem:[%s10401_s5 + $0x1e0] sm:$0xff]  ;;  %v5601_v15 = vld [vmem:[%s10401_s5 + $0x168] sm:$0xff] }
 0x6c6   :  { %v6323_v38 = vpack.c.bf16 %v5601_v15, %v5600_v28  ;;  %v5505_v16 = vrot.slane %v10308_v0, 1  ;;  %v5516_v39 = vrot.slane %v10308_v0, 3 }
 0x6c7   :  { %v5549_v3 = vsel %vm5100_vm5, %v5548_v34, %v6639_v57  ;;  %v5546_v50 = vsel %vm5100_vm5, %v5545_v19, %v6640_v42  ;;  %v10310_v19 = vmax.f32 %v5434_v22, %v5442_v32  ;;  %v5618_v57 = vld [vmem:[%s10401_s5 + $0x1f0] sm:$0xff]  ;;  %v5619_v34 = vld [vmem:[%s10401_s5 + $0x1f8] sm:$0xff] }
 0x6c8   :  { %5691 = vmatprep.mubr.f32.mxu1 %v5549_v3  ;;  %v5396_v52 = vld [vmem:[#allocation6 + $0x60] ss:$2 sm:$0xff]  ;;  %v5412_v54 = vld [vmem:[#allocation6 + $0x61] ss:$2 sm:$0xff]  ;;  %v6325_v3 = vpack.c.bf16 %v5619_v34, %v5618_v57 }
 0x6c9   :  { %5692 = vmatmul.mubr.f32.vlgmr.msra.gmra.mrb[32].mxu1 %v5546_v50  ;;  %v5421_v35 = vmax.f32 %v5396_v52, %v5412_v54  ;;  %v5603_v50 = vld [vmem:[%s10401_s5 + $0x178] sm:$0xff]  ;;  %v5527_v52 = vrot.slane %v10310_v19, 1  ;;  %v5538_v51 = vrot.slane %v10310_v19, 3 }
 0x6ca   :  { %6300 = vmatpush3.bf16.msra.mxu1 %v6299_v46  ;;  %v5602_v46 = vld [vmem:[%s10401_s5 + $0x170] sm:$0xff] }
 0x6cb   :  { %6302 = vmatprep.subr.bf16.mxu1 %v6301_v17  ;;  %5429 = vst.msk [vmem:[#allocation7 + $0x30] sm:$0xff] %vm5032_vm0, %v5421_v35  ;;  %v6327_v17 = vpack.c.bf16 %v5603_v50, %v5602_v46 }
 0x6ce   :  { %6304 = vmatpush3.bf16.msra.mxu1 %v6303_v24  ;;  %v5510_v24 = vrot.slane %v10308_v0, 2 }
 0x6cf   :  { %6306 = vmatprep.subr.bf16.mxu1 %v6305_v60  ;;  %v5532_v60 = vrot.slane %v10310_v19, 2 }
 0x6d2   :  { %6308 = vmatpush3.bf16.msra.mxu1 %v6307_v10  ;;  %v5437_v63 = vld [vmem:[#allocation7 + $0x30] sm:$0xf]  ;;  %v5445_v47 = vld [vmem:[#allocation7 + $0x34] sm:$0xf] }
 0x6d3   :  { %6310 = vmatprep.subr.bf16.mxu1 %v6309_v59  ;;  %v5453_v42 = vmax.f32 %v5437_v63, %v5445_v47 }
 0x6d5   :  { %v5511_v54 = vrot.slane %v5453_v42, 1  ;;  %v5506_v35 = vsel %vm5458_vm7, %v5453_v42, %v5505_v16  ;;  %v5517_v56 = vrot.slane %v5453_v42, 2 }
 0x6d6   :  { %6312 = vmatpush3.bf16.msra.mxu1 %v6311_v21 }
 0x6d7   :  { %6314 = vmatprep.subr.bf16.mxu1 %v6313_v62  ;;  %v5512_v11 = vsel %vm5458_vm7, %v5511_v54, %v5510_v24  ;;  %v5518_v62 = vsel %vm5458_vm7, %v5517_v56, %v5516_v39 }
 0x6da   :  { %6316 = vmatpush3.bf16.msra.mxu1 %v6315_v45  ;;  %v6330_v45 = vpack.c.bf16 %v5769_v20, %v5768_v13 }
 0x6db   :  { %6318 = vmatprep.subr.bf16.mxu1 %v6317_v23  ;;  %v5771_v23 = vld [vmem:[%s10403_s7 + $0x18] sm:$0xff] }
 0x6dc   :  { %6331 = vmatpush3.bf16.msra.mxu0 %v6330_v45  ;;  %v6333_v48 = vpack.c.bf16 %v5771_v23, %v5770_v40 }
 0x6dd   :  { %6332 = vmatprep.subr.bf16.mxu0 %v6697_v18 }
 0x6de   :  { %6320 = vmatpush3.bf16.msra.mxu1 %v6319_v27  ;;  %v5773_v27 = vld [vmem:[%s10403_s7 + $0x28] sm:$0xff] }
 0x6e0   :  { %6334 = vmatpush3.bf16.msra.mxu0 %v6333_v48 }
 0x6e1   :  { %6335 = vmatprep.subr.bf16.mxu0 %v6697_v18 }
 0x6ea   :  { %v5343_v26 = vpop.f32.mrb[28].mxu1 }
 0x6eb   :  { %v5344_v31 = vadd.f32 %v10003_v33, %v5343_v26  ;;  %v5345_v14 = vpop.f32.mrb[29].mxu1  ;;  %v6336_v26 = vpack.c.bf16 %v5773_v27, %v5772_v53 }
 0x6ec   :  { %v5775_v14 = vld [vmem:[%s10403_s7 + $0x38] sm:$0xff] }
 0x6ed   :  { %v5366_v29 = vmax.f32 %v5344_v31, 0.0  ;;  %v5774_v31 = vld [vmem:[%s10403_s7 + $0x30] sm:$0xff]  ;;  %6337 = vmatpush3.bf16.msra.mxu0 %v6336_v26 }
 0x6ee   :  { %6338 = vmatprep.subr.bf16.mxu0 %v6697_v18 }
 0x6ef   :  { %5382 = vst.msk [vmem:[#allocation6 + $0x70] sm:$0xff] %vm5032_vm0, %v5366_v29  ;;  %v5348_v6 = vpop.f32.mrb[30].mxu1  ;;  %v6339_v29 = vpack.c.bf16 %v5775_v14, %v5774_v31 }
 0x6f0   :  { %v5349_v4 = vadd.f32 %v10003_v33, %v5348_v6  ;;  %v5350_v61 = vpop.f32.mrb[31].mxu1  ;;  %v5617_v33 = vld [vmem:[%s10401_s5 + $0x1e8] sm:$0xff]  ;;  %v5502_v6 = vrot.slane %v5453_v42, 7  ;;  %v5955_v42 = vld [vmem:[%s10402_s6] ss:$0 sm:$0xff]  ;;  %s6663_s6 = scalar_lea.vmem %s5865_s27, 32 }
 0x6f1   :  { %v6321_v43 = vpack.c.bf16 %v5617_v33, %v5616_v41  ;;  %6340 = vmatpush3.bf16.msra.mxu0 %v6339_v29  ;;  %p6664_p0 = scmp.ne.s32.totalorder %s5865_s27, %s6663_s6  ;;  %p6669_p2 = scmp.lt.s32.totalorder %s6663_s6, %s6663_s6 }
 0x6f2   :  { %v5367_v8 = vmax.f32 %v5349_v4, 0.0 }
 0x6f3   :  { %6322 = vmatprep.subr.bf16.mxu1 %v6321_v43  ;;  %p6670_p3 = por %p6669_p2, %p6668_p1 }
 0x6f4   :  { %5383 = vst.msk [vmem:[#allocation6 + $0x78] sm:$0xff] %vm5032_vm0, %v5367_v8  ;;  %6324 = vmatpush3.bf16.msra.mxu1 %v6323_v38 }
 0x6f5   :  { %6326 = vmatprep.subr.bf16.mxu1 %v6325_v3  ;;  %p6671_p4 = pnand %p6670_p3, %p6664_p0 }
 0x6f8   :  { %6328 = vmatpush3.bf16.msra.mxu1 %v6327_v17 }
 0x6fb   :  { %v5398_v37 = vld [vmem:[#allocation6 + $0x70] ss:$2 sm:$0xff]  ;;  %v5414_v49 = vld [vmem:[#allocation6 + $0x71] ss:$2 sm:$0xff] }
 0x6fc   :  { %v5422_v58 = vmax.f32 %v5398_v37, %v5414_v49  ;;  %v5503_v49 = vsel %vm5458_vm7, %v5502_v6, %v10308_v0 }
 0x6fe   :  { %5430 = vst.msk [vmem:[#allocation7 + $0x38] sm:$0xff] %vm5032_vm0, %v5422_v58 }
 0x705   :  { %v5438_v5 = vld [vmem:[#allocation7 + $0x38] sm:$0xf]  ;;  %v5446_v12 = vld [vmem:[#allocation7 + $0x3c] sm:$0xf] }
 0x706   :  { %v5454_v9 = vmax.f32 %v5438_v5, %v5446_v12  ;;  %v5956_v5 = vld [vmem:[%s10404_s8] ss:$0 sm:$0xff] }
 0x708   :  { %v5528_v25 = vsel %vm5458_vm7, %v5454_v9, %v5527_v52  ;;  %v5533_v55 = vrot.slane %v5454_v9, 1  ;;  %v5539_v10 = vrot.slane %v5454_v9, 2  ;;  %v5524_v4 = vrot.slane %v5454_v9, 7 }
 0x709   :  { %v6641_v59 = vpack.i.bf16 %v5506_v35, %v5528_v25 }
 0x70a   :  { %v5534_v36 = vsel %vm5458_vm7, %v5533_v55, %v5532_v60  ;;  %v5540_v7 = vsel %vm5458_vm7, %v5539_v10, %v5538_v51  ;;  %v5525_v1 = vsel %vm5458_vm7, %v5524_v4, %v10310_v19 }
 0x70b   :  { %6642 = vrot.lane.b32.xlu0 %v6641_v59, %s6698_s12  ;;  %v6646_v21 = vpack.i.bf16 %v5512_v11, %v5534_v36  ;;  %v6651_v30 = vpack.i.bf16 %v5518_v62, %v5540_v7 }
 0x70d   :  { %6647 = vrot.lane.b32.xlu1 %v6646_v21, %s6700_s3 }
 0x70f   :  { %6652 = vrot.lane.b32.xlu0 %v6651_v30, %s6702_s16 }
 0x77d   :  { %v6643_v61 = vpop.permute.xlu0 %6642 }
 0x77e   :  { %v6645_v8 = vunpack.i.h.bf16 %v6643_v61  ;;  %v6644_v37 = vunpack.i.l.bf16 %v6643_v61 }
 0x77f   :  { %v6648_v58 = vpop.permute.xlu1 %6647 }
 0x780   :  { %v5550_v22 = vsel %vm5032_vm0, %v5503_v49, %v6645_v8  ;;  %v6650_v44 = vunpack.i.h.bf16 %v6648_v58  ;;  %v6649_v32 = vunpack.i.l.bf16 %v6648_v58  ;;  %v5553_v63 = vsel %vm5032_vm0, %v5525_v1, %v6644_v37 }
 0x781   :  { %v6653_v18 = vpop.permute.xlu0 %6652 }
 0x782   :  { %v5551_v41 = vsel %vm5066_vm3, %v5550_v22, %v6650_v44  ;;  %v6655_v33 = vunpack.i.h.bf16 %v6653_v18  ;;  %v6654_v47 = vunpack.i.l.bf16 %v6653_v18  ;;  %v5554_v43 = vsel %vm5066_vm3, %v5553_v63, %v6649_v32 }
 0x784   :  { %v5555_v28 = vsel %vm5100_vm5, %v5554_v43, %v6654_v47  ;;  %v5552_v15 = vsel %vm5100_vm5, %v5551_v41, %v6655_v33 }
 0x785   :  { %5761 = vmatprep.mubr.f32.mxu1 %v5555_v28 }
 0x786   :  { %5762 = vmatmul.mubr.f32.vlgmr.msra.gmra.mrb[34].mxu1 %v5552_v15 }
 0x79c   :  { %v6058_v38 = vpop.f32.mrb[32].mxu1 }
 0x79d   :  { %v6059_v0 = vpop.f32.mrb[33].mxu1 }
 0x79e   :  { %v6060_v19 = vadd.f32 %v6059_v0, %v6058_v38 }
 0x7a0   :  { %v5694_v46 = vadd.f32 %v6060_v19, %v5955_v42 }
 0x859   :  { %v6093_v57 = vpop.f32.mrb[34].mxu1 }
 0x85a   :  { %v6094_v34 = vpop.f32.mrb[35].mxu1 }
 0x85b   :  { %v6095_v3 = vadd.f32 %v6094_v34, %v6093_v57 }
 0x85d   :  { %v5764_v50 = vadd.f32 %v6095_v3, %v5694_v46 }
 0x85f   :  { %v5767_v17 = vmax.f32 %v5764_v50, 0.0 }
 0x861   :  { %6226 = vmatmul.mubr.msk.f32.vlgmr.msra.gmra.mrb[64].mxu0 %vm5066_vm3, %v5767_v17 }
 0x934   :  { %v5852_v12 = vpop.f32.mrb[64].mxu0 }
 0x935   :  { %v5853_v2 = vadd.f32 %v5956_v5, %v5852_v12  ;;  %v6227_v16 = vpop.f32.mrb[65].mxu0 }
 0x937   :  { %5857 = vst.msk [vmem:[#allocation8] sm:$0x3] %vm5856_vm9, %v5853_v2 }
 0x938   :  { %6674 = shalt.err (!%p6671_p4)
}
 0x939   :  { %s6675_s29 = scalar_lea.hbm %s10405_s9, 32 }
 0x93a   :  { %p6676_p5 = scmp.ne.s32.totalorder %s10405_s9, %s6675_s29  ;;  %p6679_p6 = scmp.lt.u32.totalorder %s6675_s29, %s10405_s9 }
 0x93c   :  { %p6681_p7 = pnand %p6679_p6, %p6676_p5 }
 0x93e   :  { %6684 = shalt.err (!%p6681_p7)
}
 0x93f   :  { %5867 = dma.vmem_to_hbm [thread:$0]  %s5865_s27, 32, %s10405_s9, [#allocation9]  }
 0x940   :  { %6685 = dma.done.wait [#allocation9], 32  }
 0x941   :  { %6686 = vsyncadd [#allocation9], 4294967264 }
 0x942   :  { %5871 = vsyncpa [#allocation9], 1 }

</bundles_post_ra>
